<compile_context>
chip_gen: v7x
topology: tpu7x:2x2x1
jax: 0.10.0
libtpu: 0.0.40
codegen_flags: <defaults>
</compile_context>

<pallas_src>
import functools
import math

import numpy as np
import jax
import jax.numpy as jnp
from jax.experimental import pallas as pl
from jax.experimental.pallas import tpu as pltpu


# --------------------------- in-kernel math helpers ---------------------------

def _layer_norm(x, gamma, beta, eps=1e-5):
    # torch.nn.LayerNorm: biased variance, eps inside rsqrt.
    mean = jnp.mean(x, axis=-1, keepdims=True)
    var = jnp.mean(jnp.square(x - mean), axis=-1, keepdims=True)
    return (x - mean) * jax.lax.rsqrt(var + eps) * gamma + beta


def _erf_approx(x):
    # Abramowitz & Stegun 7.1.26 polynomial erf (max abs error ~1.5e-7).
    # Built from exp/abs/where only so it lowers cleanly in Mosaic.
    p = 0.3275911
    a1, a2, a3, a4, a5 = (0.254829592, -0.284496736, 1.421413741,
                          -1.453152027, 1.061405429)
    ax = jnp.abs(x)
    t = 1.0 / (1.0 + p * ax)
    poly = ((((a5 * t + a4) * t + a3) * t + a2) * t + a1) * t
    y = 1.0 - poly * jnp.exp(-ax * ax)
    return jnp.where(x < 0.0, -y, y)


def _gelu_exact(x):
    # Matches PyTorch activation='gelu' (erf-based) to ~1e-7.
    return 0.5 * x * (1.0 + _erf_approx(x * (1.0 / math.sqrt(2.0))))


def _block_diag_bias(batch, sq, sk):
    """Additive (0 / -1e30) mask so batch-folded attention stays block-diagonal."""
    rq, rk = batch * sq, batch * sk
    r = jax.lax.broadcasted_iota(jnp.int32, (rq, rk), 0)
    c = jax.lax.broadcasted_iota(jnp.int32, (rq, rk), 1)
    same = None
    for b in range(batch):                      # static unroll (B is tiny)
        blk = ((r >= b * sq) & (r < (b + 1) * sq) &
               (c >= b * sk) & (c < (b + 1) * sk))
        same = blk if same is None else jnp.logical_or(same, blk)
    return jnp.where(same, 0.0, -1e30).astype(jnp.float32)


def _mha(x_q, x_kv, w_qkv, b_qkv, w_o, b_o, mask_bias, *, num_heads):
    """Multi-head attention on batch-folded 2-D (rows, D) operands.

    w_qkv is the fused (D, 3D) in-projection (Q part pre-scaled by 1/sqrt(dh)).
    The out-projection is folded per head (concat_h(o_h) @ W_o ==
    sum_h o_h @ W_o[h*dh:(h+1)*dh, :]), so no head concat / transpose.
    mask_bias keeps the attention block-diagonal over the folded batch.
    """
    d = x_q.shape[1]
    dh = d // num_heads

    q = jnp.dot(x_q, w_qkv[:, :d], preferred_element_type=jnp.float32) + b_qkv[:, :d]
    kv = jnp.dot(x_kv, w_qkv[:, d:], preferred_element_type=jnp.float32) + b_qkv[:, d:]
    k = kv[:, :d]
    v = kv[:, d:]

    out = None
    for h in range(num_heads):                  # static unroll (H is tiny)
        sl = slice(h * dh, (h + 1) * dh)
        s = jax.lax.dot_general(q[:, sl], k[:, sl], (((1,), (1,)), ((), ())),
                                preferred_element_type=jnp.float32)
        if mask_bias is not None:
            s = s + mask_bias
        s = s - jnp.max(s, axis=-1, keepdims=True)
        p = jnp.exp(s)
        # exact normalization (pl.reciprocal(approx=True) is a knob if bit
        # closeness to PyTorch is not required)
        p = p * (1.0 / jnp.sum(p, axis=-1, keepdims=True))
        oh = jnp.dot(p, v[:, sl], preferred_element_type=jnp.float32)
        contrib = jnp.dot(oh, w_o[sl, :], preferred_element_type=jnp.float32)
        out = contrib if out is None else out + contrib
    return out + b_o


def _ffn(x, w1, b1, w2, b2):
    h = jnp.dot(x, w1, preferred_element_type=jnp.float32) + b1
    h = _gelu_exact(h)
    return jnp.dot(h, w2, preferred_element_type=jnp.float32) + b2


# ----------------------------- packed weight layout ----------------------------

def _weight_layout(vm_cov, pm_cov, d, d_ff, n_layers):
    """name -> (row_offset, rows, cols) inside the single packed weight slab.

    Row offsets are 8-aligned so every in-kernel slice is sublane-aligned.
    """
    entries = {}
    off = 0
    maxc = 0

    def add(name, rows, cols):
        nonlocal off, maxc
        entries[name] = (off, rows, cols)
        off += ((rows + 7) // 8) * 8
        maxc = max(maxc, cols)

    add("vm_w", vm_cov + 2, d)        # augmented: [vm_w ; ones(1,d) ; vm_b]
    add("pm_w", pm_cov + 2, d)        # augmented: [pm_w ; pm_b]
    add("out_w", 1, d)                # score head as a row vector
    add("out_b", 1, 1)
    add("enc_fnorm", 2, d)
    add("dec_fnorm", 2, d)
    for l in range(n_layers):
        p = f"enc{l}_"
        add(p + "qkv_w", d, 3 * d); add(p + "qkv_b", 1, 3 * d)
        add(p + "wo", d, d);        add(p + "bo", 1, d)
        add(p + "w1", d, d_ff);     add(p + "b1", 1, d_ff)
        add(p + "w2", d_ff, d);     add(p + "b2", 1, d)
        add(p + "ln", 4, d)
    for l in range(n_layers):
        p = f"dec{l}_"
        add(p + "sa_qkv_w", d, 3 * d); add(p + "sa_qkv_b", 1, 3 * d)
        add(p + "sa_wo", d, d);        add(p + "sa_bo", 1, d)
        add(p + "ca_qkv_w", d, 3 * d); add(p + "ca_qkv_b", 1, 3 * d)
        add(p + "ca_wo", d, d);        add(p + "ca_bo", 1, d)
        add(p + "w1", d, d_ff);        add(p + "b1", 1, d_ff)
        add(p + "w2", d_ff, d);        add(p + "b2", 1, d)
        add(p + "ln", 6, d)

    total_rows = ((off + 7) // 8) * 8
    total_cols = ((maxc + 127) // 128) * 128
    return entries, total_rows, total_cols


def pack_params(params, num_head):
    """One-time (outside jit) packing of all weights into a single f32 slab."""
    vm_cov, d = params["vm_w"].shape
    pm_cov = params["pm_w"].shape[0] - 1
    d_ff = params["enc_w1"].shape[2]
    n_layers = params["enc_qkv_w"].shape[0]
    layout, rows, cols = _weight_layout(vm_cov, pm_cov, d, d_ff, n_layers)

    buf = np.zeros((rows, cols), np.float32)

    def put(name, arr):
        arr = np.asarray(arr, np.float32)
        off, r, c = layout[name]
        assert arr.shape == (r, c), (name, arr.shape, (r, c))
        buf[off:off + r, :c] = arr

    scale = 1.0 / math.sqrt(d // num_head)

    def scaled_qkv(w, b):
        # fold 1/sqrt(dh) into the Q projection (weights + bias)
        w = np.asarray(w, np.float32).copy()
        b = np.asarray(b, np.float32).copy()
        w[:, :d] *= scale
        b[:, :d] *= scale
        return w, b

    # vm_encode augmented: row for the broadcast num_step scalar + bias row.
    put("vm_w", np.concatenate([np.asarray(params["vm_w"], np.float32),
                                np.ones((1, d), np.float32),
                                np.asarray(params["vm_b"], np.float32)], axis=0))
    # pm_encode augmented with its bias row.
    put("pm_w", np.concatenate([np.asarray(params["pm_w"], np.float32),
                                np.asarray(params["pm_b"], np.float32)], axis=0))
    put("out_w", np.asarray(params["out_w"], np.float32).T)   # (1, d)
    put("out_b", np.asarray(params["out_b"], np.float32))     # (1, 1)
    put("enc_fnorm", params["enc_fnorm"])
    put("dec_fnorm", params["dec_fnorm"])

    for l in range(n_layers):
        p = f"enc{l}_"
        qw, qb = scaled_qkv(params["enc_qkv_w"][l], params["enc_qkv_b"][l])
        put(p + "qkv_w", qw); put(p + "qkv_b", qb)
        put(p + "wo", params["enc_wo"][l]); put(p + "bo", params["enc_bo"][l])
        put(p + "w1", params["enc_w1"][l]); put(p + "b1", params["enc_b1"][l])
        put(p + "w2", params["enc_w2"][l]); put(p + "b2", params["enc_b2"][l])
        put(p + "ln", params["enc_ln"][l])
    for l in range(n_layers):
        p = f"dec{l}_"
        qw, qb = scaled_qkv(params["dec_sa_qkv_w"][l], params["dec_sa_qkv_b"][l])
        put(p + "sa_qkv_w", qw); put(p + "sa_qkv_b", qb)
        put(p + "sa_wo", params["dec_sa_wo"][l]); put(p + "sa_bo", params["dec_sa_bo"][l])
        qw, qb = scaled_qkv(params["dec_ca_qkv_w"][l], params["dec_ca_qkv_b"][l])
        put(p + "ca_qkv_w", qw); put(p + "ca_qkv_b", qb)
        put(p + "ca_wo", params["dec_ca_wo"][l]); put(p + "ca_bo", params["dec_ca_bo"][l])
        put(p + "w1", params["dec_w1"][l]); put(p + "b1", params["dec_b1"][l])
        put(p + "w2", params["dec_w2"][l]); put(p + "b2", params["dec_b2"][l])
        put(p + "ln", params["dec_ln"][l])

    return jnp.asarray(buf)


# ------------------------------- fused kernel --------------------------------

def _pm_forward_kernel(src_in_ref, src_emb_ref, pm_in_ref, pm_emb_ref, w_ref,
                       score_ref, *, num_heads, n_layers, layout, batch,
                       s_src, s_pm):

    def W(name):
        off, r, c = layout[name]          # static, 8-aligned row offsets
        return w_ref[off:off + r, 0:c]

    # block-diagonal masks so batch-folded attention never mixes batches
    bias_ss = _block_diag_bias(batch, s_src, s_src) if batch > 1 else None
    bias_tt = _block_diag_bias(batch, s_pm, s_pm) if batch > 1 else None
    bias_ts = _block_diag_bias(batch, s_pm, s_src) if batch > 1 else None

    # ---- input encodings (one matmul + one add each; no scratch round trip) --
    # src rows: [num_step broadcast ; vm_encode(vm_state) + vm_embed] per batch
    x = (jnp.dot(src_in_ref[...], W("vm_w"), preferred_element_type=jnp.float32)
         + src_emb_ref[...])                                   # (B*S_src, D)
    # tgt rows: pm_encode([pm_states, pm_attn]) + pm_embed
    y = (jnp.dot(pm_in_ref[...], W("pm_w"), preferred_element_type=jnp.float32)
         + pm_emb_ref[...])                                    # (B*S_pm, D)

    # ---- transformer encoder (post-norm, dropout=0 / eval) --------------------
    for l in range(n_layers):                                  # static unroll
        p = f"enc{l}_"
        ln = W(p + "ln")                                       # (4, D): g1,b1,g2,b2
        sa = _mha(x, x, W(p + "qkv_w"), W(p + "qkv_b"), W(p + "wo"), W(p + "bo"),
                  bias_ss, num_heads=num_heads)
        x = _layer_norm(x + sa, ln[0:1, :], ln[1:2, :])
        ff = _ffn(x, W(p + "w1"), W(p + "b1"), W(p + "w2"), W(p + "b2"))
        x = _layer_norm(x + ff, ln[2:3, :], ln[3:4, :])
    efn = W("enc_fnorm")
    mem = _layer_norm(x, efn[0:1, :], efn[1:2, :])

    # ---- transformer decoder --------------------------------------------------
    for l in range(n_layers):
        p = f"dec{l}_"
        ln = W(p + "ln")                                       # (6, D)
        sa = _mha(y, y, W(p + "sa_qkv_w"), W(p + "sa_qkv_b"),
                  W(p + "sa_wo"), W(p + "sa_bo"), bias_tt, num_heads=num_heads)
        y = _layer_norm(y + sa, ln[0:1, :], ln[1:2, :])
        ca = _mha(y, mem, W(p + "ca_qkv_w"), W(p + "ca_qkv_b"),
                  W(p + "ca_wo"), W(p + "ca_bo"), bias_ts, num_heads=num_heads)
        y = _layer_norm(y + ca, ln[2:3, :], ln[3:4, :])
        ff = _ffn(y, W(p + "w1"), W(p + "b1"), W(p + "w2"), W(p + "b2"))
        y = _layer_norm(y + ff, ln[4:5, :], ln[5:6, :])
    dfn = W("dec_fnorm")
    y = _layer_norm(y, dfn[0:1, :], dfn[1:2, :])

    # ---- score head: lane reduce (no N=1 MXU matmul), one contiguous store ----
    ow = W("out_w")                                            # (1, D)
    ob = W("out_b")                                            # (1, 1)
    score_ref[...] = jnp.sum(y * ow, axis=-1, keepdims=True) + ob   # (B*S_pm, 1)

    # TODO(synk): the custom Transformer also returns attention weights
    # (need_attn_weights=True); only transformer_output[0] feeds this forward,
    # so attention weights are not materialized here.


# ------------------------------- JAX wrapper ----------------------------------

def pm_candidate_forward(packed_w, chosen_vm_embed, chosen_vm_state,
                         num_step_states, pm_states, pm_embed, pm_attn,
                         *, num_head, n_blocks, d_ff):
    B, S_vm, d = chosen_vm_embed.shape           # static shapes
    vm_cov = chosen_vm_state.shape[2]
    S_pm, pm_cov = pm_states.shape[1], pm_states.shape[2]
    S_src = S_vm + 1

    layout, rows, cols = _weight_layout(vm_cov, pm_cov, d, d_ff, n_blocks)
    assert packed_w.shape == (rows, cols), (packed_w.shape, (rows, cols))

    f32 = jnp.float32
    # Tiny XLA-side data prep: build augmented, batch-folded 2-D inputs.
    # src augmented row 0  : [0..0, num_step, 0]  -> num_step broadcast via ones row
    # src augmented rows 1+: [vm_state,   0,   1]  -> vm_encode + bias via bias row
    nstep_row = jnp.concatenate(
        [jnp.zeros((B, 1, vm_cov), f32), num_step_states.astype(f32),
         jnp.zeros((B, 1, 1), f32)], axis=-1)
    vm_rows = jnp.concatenate(
        [chosen_vm_state.astype(f32), jnp.zeros((B, S_vm, 1), f32),
         jnp.ones((B, S_vm, 1), f32)], axis=-1)
    src_in = jnp.concatenate([nstep_row, vm_rows], axis=1).reshape(B * S_src,
                                                                   vm_cov + 2)
    src_emb = jnp.concatenate(
        [jnp.zeros((B, 1, d), f32), chosen_vm_embed.astype(f32)],
        axis=1).reshape(B * S_src, d)
    pm_in = jnp.concatenate(
        [pm_states.astype(f32), pm_attn[:, :, None].astype(f32),
         jnp.ones((B, S_pm, 1), f32)], axis=-1).reshape(B * S_pm, pm_cov + 2)
    pm_emb = pm_embed.astype(f32).reshape(B * S_pm, d)

    kernel = functools.partial(_pm_forward_kernel, num_heads=num_head,
                               n_layers=n_blocks, layout=layout, batch=B,
                               s_src=S_src, s_pm=S_pm)

    def full_spec(shape):
        nd = len(shape)
        return pl.BlockSpec(tuple(shape), lambda i, nd=nd: (0,) * nd)

    # Single grid step: the whole batch is folded into the matmul rows.
    # (For large B, chunk the batch over a "parallel" grid axis so both v7x
    #  TensorCores get work; weights stay resident via the constant index_map.)
    score_col = pl.pallas_call(
        kernel,
        out_shape=jax.ShapeDtypeStruct((B * S_pm, 1), jnp.float32),
        grid=(1,),
        in_specs=[full_spec(src_in.shape), full_spec(src_emb.shape),
                  full_spec(pm_in.shape), full_spec(pm_emb.shape),
                  full_spec(packed_w.shape)],
        out_specs=pl.BlockSpec((B * S_pm, 1), lambda i: (0, 0)),
        compiler_params=pltpu.CompilerParams(
            dimension_semantics=("arbitrary",)),
    )(src_in, src_emb, pm_in, pm_emb, packed_w)

    # torch.squeeze(output_layer(...)): (B, S_pm, 1) -> drop all size-1 dims.
    return jnp.squeeze(score_col.reshape(B, S_pm))


# -------------------------------- param init -----------------------------------

class _KeyGen:
    def __init__(self, key):
        self.key = key

    def __call__(self):
        self.key, sub = jax.random.split(self.key)
        return sub


def init_params(key, *, pm_cov, vm_cov, d_hidden, num_head, n_blocks, d_ff):
    del num_head  # head count is a static argument of the forward, not a weight
    kg = _KeyGen(key)
    d = d_hidden

    def w(d_in, d_out, scale=0.02):
        return jax.random.normal(kg(), (d_in, d_out), jnp.float32) * scale

    def stack_w(d_in, d_out):
        return jnp.stack([w(d_in, d_out) for _ in range(n_blocks)], axis=0)

    def zeros(*shape):
        return jnp.zeros(shape, jnp.float32)

    def ln_rows(n_norms):
        # packed [gamma, beta] pairs per layer: (n_blocks, 2*n_norms, d)
        gb = jnp.concatenate(
            [jnp.stack([jnp.ones((d,), jnp.float32),
                        jnp.zeros((d,), jnp.float32)])] * n_norms, axis=0)
        return jnp.tile(gb[None], (n_blocks, 1, 1))

    gb_final = jnp.stack([jnp.ones((d,), jnp.float32),
                          jnp.zeros((d,), jnp.float32)])

    return {
        "vm_w": w(vm_cov, d), "vm_b": zeros(1, d),
        "pm_w": w(pm_cov + 1, d), "pm_b": zeros(1, d),
        "out_w": w(d, 1), "out_b": zeros(1, 1),
        # encoder stack
        "enc_qkv_w": stack_w(d, 3 * d), "enc_qkv_b": zeros(n_blocks, 1, 3 * d),
        "enc_wo": stack_w(d, d), "enc_bo": zeros(n_blocks, 1, d),
        "enc_w1": stack_w(d, d_ff), "enc_b1": zeros(n_blocks, 1, d_ff),
        "enc_w2": stack_w(d_ff, d), "enc_b2": zeros(n_blocks, 1, d),
        "enc_ln": ln_rows(2), "enc_fnorm": gb_final,
        # decoder stack
        "dec_sa_qkv_w": stack_w(d, 3 * d), "dec_sa_qkv_b": zeros(n_blocks, 1, 3 * d),
        "dec_sa_wo": stack_w(d, d), "dec_sa_bo": zeros(n_blocks, 1, d),
        "dec_ca_qkv_w": stack_w(d, 3 * d), "dec_ca_qkv_b": zeros(n_blocks, 1, 3 * d),
        "dec_ca_wo": stack_w(d, d), "dec_ca_bo": zeros(n_blocks, 1, d),
        "dec_w1": stack_w(d, d_ff), "dec_b1": zeros(n_blocks, 1, d_ff),
        "dec_w2": stack_w(d_ff, d), "dec_b2": zeros(n_blocks, 1, d),
        "dec_ln": ln_rows(3), "dec_fnorm": gb_final,
    }


# ----------------------------------- main ---------------------------------------

if __name__ == "__main__":
    B = 2
    D_HIDDEN = 32
    NUM_HEAD = 4
    N_BLOCKS = 2
    D_FF = 64
    PM_COV = 7
    VM_COV = 6
    S_VM = 5
    S_PM = 8

    root = jax.random.PRNGKey(0)
    k_par, k_in = jax.random.split(root)
    params = init_params(k_par, pm_cov=PM_COV, vm_cov=VM_COV, d_hidden=D_HIDDEN,
                         num_head=NUM_HEAD, n_blocks=N_BLOCKS, d_ff=D_FF)
    packed_w = pack_params(params, num_head=NUM_HEAD)   # one-time, outside jit

    ks = jax.random.split(k_in, 6)
    chosen_vm_embed = jax.random.normal(ks[0], (B, S_VM, D_HIDDEN), jnp.float32)
    chosen_vm_state = jax.random.normal(ks[1], (B, S_VM, VM_COV), jnp.float32)
    num_step_states = jax.random.normal(ks[2], (B, 1, 1), jnp.float32)
    pm_states = jax.random.normal(ks[3], (B, S_PM, PM_COV), jnp.float32)
    pm_embed = jax.random.normal(ks[4], (B, S_PM, D_HIDDEN), jnp.float32)
    pm_attn = jax.random.normal(ks[5], (B, S_PM), jnp.float32)

    fwd = jax.jit(pm_candidate_forward,
                  static_argnames=("num_head", "n_blocks", "d_ff"))
    score = fwd(packed_w, chosen_vm_embed, chosen_vm_state, num_step_states,
                pm_states, pm_embed, pm_attn,
                num_head=NUM_HEAD, n_blocks=N_BLOCKS, d_ff=D_FF)
    jax.block_until_ready(score)
    assert score.shape == (B, S_PM), score.shape
    print("KERNEL_OK")
</pallas_src>

<mosaic_0001>
module attributes {stable_mosaic.version = 11 : i64} {
  func.func @_pm_forward_kernel(%arg0: i32, %arg1: memref<12x8xf32, #tpu.memory_space<vmem>>, %arg2: memref<12x32xf32, #tpu.memory_space<vmem>>, %arg3: memref<16x9xf32, #tpu.memory_space<vmem>>, %arg4: memref<16x32xf32, #tpu.memory_space<vmem>>, %arg5: memref<1016x128xf32, #tpu.memory_space<vmem>>, %arg6: memref<16x1xf32, #tpu.memory_space<vmem>>) attributes {dimension_semantics = [#tpu.dimension_semantics<arbitrary>], iteration_bounds = array<i64: 1>, scalar_prefetch = 0 : i64, scratch_operands = 0 : i64, tpu.core_type = #tpu.core_type<tc>, window_params = [{pipeline_mode = #tpu.pipeline_mode<synchronous>, transform_indices = @transform_0, window_bounds = array<i64: 12, 8>}, {pipeline_mode = #tpu.pipeline_mode<synchronous>, transform_indices = @transform_1, window_bounds = array<i64: 12, 32>}, {pipeline_mode = #tpu.pipeline_mode<synchronous>, transform_indices = @transform_2, window_bounds = array<i64: 16, 9>}, {pipeline_mode = #tpu.pipeline_mode<synchronous>, transform_indices = @transform_3, window_bounds = array<i64: 16, 32>}, {pipeline_mode = #tpu.pipeline_mode<synchronous>, transform_indices = @transform_4, window_bounds = array<i64: 1016, 128>}, {pipeline_mode = #tpu.pipeline_mode<synchronous>, transform_indices = @transform_5, window_bounds = array<i64: 16, 1>}]} {
    %0 = tpu.iota {dimensions = array<i32: 0>} : vector<12x12xi32>
    %1 = tpu.iota {dimensions = array<i32: 1>} : vector<12x12xi32>
    %c0_i32 = arith.constant 0 : i32
    %2 = vector.broadcast %c0_i32 : i32 to vector<12x12xi32>
    %3 = arith.cmpi sge, %0, %2 : vector<12x12xi32>
    %c6_i32 = arith.constant 6 : i32
    %4 = vector.broadcast %c6_i32 : i32 to vector<12x12xi32>
    %5 = arith.cmpi slt, %0, %4 : vector<12x12xi32>
    %6 = arith.andi %3, %5 : vector<12x12xi1>
    %c0_i32_0 = arith.constant 0 : i32
    %7 = vector.broadcast %c0_i32_0 : i32 to vector<12x12xi32>
    %8 = arith.cmpi sge, %1, %7 : vector<12x12xi32>
    %9 = arith.andi %6, %8 : vector<12x12xi1>
    %c6_i32_1 = arith.constant 6 : i32
    %10 = vector.broadcast %c6_i32_1 : i32 to vector<12x12xi32>
    %11 = arith.cmpi slt, %1, %10 : vector<12x12xi32>
    %12 = arith.andi %9, %11 : vector<12x12xi1>
    %c6_i32_2 = arith.constant 6 : i32
    %13 = vector.broadcast %c6_i32_2 : i32 to vector<12x12xi32>
    %14 = arith.cmpi sge, %0, %13 : vector<12x12xi32>
    %c12_i32 = arith.constant 12 : i32
    %15 = vector.broadcast %c12_i32 : i32 to vector<12x12xi32>
    %16 = arith.cmpi slt, %0, %15 : vector<12x12xi32>
    %17 = arith.andi %14, %16 : vector<12x12xi1>
    %c6_i32_3 = arith.constant 6 : i32
    %18 = vector.broadcast %c6_i32_3 : i32 to vector<12x12xi32>
    %19 = arith.cmpi sge, %1, %18 : vector<12x12xi32>
    %20 = arith.andi %17, %19 : vector<12x12xi1>
    %c12_i32_4 = arith.constant 12 : i32
    %21 = vector.broadcast %c12_i32_4 : i32 to vector<12x12xi32>
    %22 = arith.cmpi slt, %1, %21 : vector<12x12xi32>
    %23 = arith.andi %20, %22 : vector<12x12xi1>
    %24 = arith.ori %12, %23 : vector<12x12xi1>
    %cst = arith.constant 0.000000e+00 : f32
    %cst_5 = arith.constant -1.000000e+30 : f32
    %25 = vector.broadcast %cst : f32 to vector<12x12xf32>
    %26 = vector.broadcast %cst_5 : f32 to vector<12x12xf32>
    %27 = arith.select %24, %25, %26 : vector<12x12xi1>, vector<12x12xf32>
    %28 = tpu.iota {dimensions = array<i32: 0>} : vector<16x16xi32>
    %29 = tpu.iota {dimensions = array<i32: 1>} : vector<16x16xi32>
    %c0_i32_6 = arith.constant 0 : i32
    %30 = vector.broadcast %c0_i32_6 : i32 to vector<16x16xi32>
    %31 = arith.cmpi sge, %28, %30 : vector<16x16xi32>
    %c8_i32 = arith.constant 8 : i32
    %32 = vector.broadcast %c8_i32 : i32 to vector<16x16xi32>
    %33 = arith.cmpi slt, %28, %32 : vector<16x16xi32>
    %34 = arith.andi %31, %33 : vector<16x16xi1>
    %c0_i32_7 = arith.constant 0 : i32
    %35 = vector.broadcast %c0_i32_7 : i32 to vector<16x16xi32>
    %36 = arith.cmpi sge, %29, %35 : vector<16x16xi32>
    %37 = arith.andi %34, %36 : vector<16x16xi1>
    %c8_i32_8 = arith.constant 8 : i32
    %38 = vector.broadcast %c8_i32_8 : i32 to vector<16x16xi32>
    %39 = arith.cmpi slt, %29, %38 : vector<16x16xi32>
    %40 = arith.andi %37, %39 : vector<16x16xi1>
    %c8_i32_9 = arith.constant 8 : i32
    %41 = vector.broadcast %c8_i32_9 : i32 to vector<16x16xi32>
    %42 = arith.cmpi sge, %28, %41 : vector<16x16xi32>
    %c16_i32 = arith.constant 16 : i32
    %43 = vector.broadcast %c16_i32 : i32 to vector<16x16xi32>
    %44 = arith.cmpi slt, %28, %43 : vector<16x16xi32>
    %45 = arith.andi %42, %44 : vector<16x16xi1>
    %c8_i32_10 = arith.constant 8 : i32
    %46 = vector.broadcast %c8_i32_10 : i32 to vector<16x16xi32>
    %47 = arith.cmpi sge, %29, %46 : vector<16x16xi32>
    %48 = arith.andi %45, %47 : vector<16x16xi1>
    %c16_i32_11 = arith.constant 16 : i32
    %49 = vector.broadcast %c16_i32_11 : i32 to vector<16x16xi32>
    %50 = arith.cmpi slt, %29, %49 : vector<16x16xi32>
    %51 = arith.andi %48, %50 : vector<16x16xi1>
    %52 = arith.ori %40, %51 : vector<16x16xi1>
    %cst_12 = arith.constant 0.000000e+00 : f32
    %cst_13 = arith.constant -1.000000e+30 : f32
    %53 = vector.broadcast %cst_12 : f32 to vector<16x16xf32>
    %54 = vector.broadcast %cst_13 : f32 to vector<16x16xf32>
    %55 = arith.select %52, %53, %54 : vector<16x16xi1>, vector<16x16xf32>
    %56 = tpu.iota {dimensions = array<i32: 0>} : vector<16x12xi32>
    %57 = tpu.iota {dimensions = array<i32: 1>} : vector<16x12xi32>
    %c0_i32_14 = arith.constant 0 : i32
    %58 = vector.broadcast %c0_i32_14 : i32 to vector<16x12xi32>
    %59 = arith.cmpi sge, %56, %58 : vector<16x12xi32>
    %c8_i32_15 = arith.constant 8 : i32
    %60 = vector.broadcast %c8_i32_15 : i32 to vector<16x12xi32>
    %61 = arith.cmpi slt, %56, %60 : vector<16x12xi32>
    %62 = arith.andi %59, %61 : vector<16x12xi1>
    %c0_i32_16 = arith.constant 0 : i32
    %63 = vector.broadcast %c0_i32_16 : i32 to vector<16x12xi32>
    %64 = arith.cmpi sge, %57, %63 : vector<16x12xi32>
    %65 = arith.andi %62, %64 : vector<16x12xi1>
    %c6_i32_17 = arith.constant 6 : i32
    %66 = vector.broadcast %c6_i32_17 : i32 to vector<16x12xi32>
    %67 = arith.cmpi slt, %57, %66 : vector<16x12xi32>
    %68 = arith.andi %65, %67 : vector<16x12xi1>
    %c8_i32_18 = arith.constant 8 : i32
    %69 = vector.broadcast %c8_i32_18 : i32 to vector<16x12xi32>
    %70 = arith.cmpi sge, %56, %69 : vector<16x12xi32>
    %c16_i32_19 = arith.constant 16 : i32
    %71 = vector.broadcast %c16_i32_19 : i32 to vector<16x12xi32>
    %72 = arith.cmpi slt, %56, %71 : vector<16x12xi32>
    %73 = arith.andi %70, %72 : vector<16x12xi1>
    %c6_i32_20 = arith.constant 6 : i32
    %74 = vector.broadcast %c6_i32_20 : i32 to vector<16x12xi32>
    %75 = arith.cmpi sge, %57, %74 : vector<16x12xi32>
    %76 = arith.andi %73, %75 : vector<16x12xi1>
    %c12_i32_21 = arith.constant 12 : i32
    %77 = vector.broadcast %c12_i32_21 : i32 to vector<16x12xi32>
    %78 = arith.cmpi slt, %57, %77 : vector<16x12xi32>
    %79 = arith.andi %76, %78 : vector<16x12xi1>
    %80 = arith.ori %68, %79 : vector<16x12xi1>
    %cst_22 = arith.constant 0.000000e+00 : f32
    %cst_23 = arith.constant -1.000000e+30 : f32
    %81 = vector.broadcast %cst_22 : f32 to vector<16x12xf32>
    %82 = vector.broadcast %cst_23 : f32 to vector<16x12xf32>
    %83 = arith.select %80, %81, %82 : vector<16x12xi1>, vector<16x12xf32>
    %c0 = arith.constant 0 : index
    %c0_24 = arith.constant 0 : index
    %84 = vector.load %arg1[%c0, %c0_24] : memref<12x8xf32, #tpu.memory_space<vmem>>, vector<12x8xf32>
    %c0_25 = arith.constant 0 : index
    %c0_26 = arith.constant 0 : index
    %85 = vector.load %arg5[%c0_25, %c0_26] : memref<1016x128xf32, #tpu.memory_space<vmem>>, vector<8x32xf32>
    %cst_27 = arith.constant dense<0.000000e+00> : vector<12x32xf32>
    %86 = tpu.matmul %84, %85, %cst_27 {dimension_numbers = #tpu.dot_dimension_numbers<[1], [0], [0], [1], [0, 0, 1, 1], [], []>} : vector<12x8xf32>, vector<8x32xf32>, vector<12x32xf32> -> vector<12x32xf32>
    %c0_28 = arith.constant 0 : index
    %c0_29 = arith.constant 0 : index
    %87 = vector.load %arg2[%c0_28, %c0_29] : memref<12x32xf32, #tpu.memory_space<vmem>>, vector<12x32xf32>
    %88 = arith.addf %86, %87 : vector<12x32xf32>
    %c0_30 = arith.constant 0 : index
    %c0_31 = arith.constant 0 : index
    %89 = vector.load %arg3[%c0_30, %c0_31] : memref<16x9xf32, #tpu.memory_space<vmem>>, vector<16x9xf32>
    %c8 = arith.constant 8 : index
    %c0_32 = arith.constant 0 : index
    %90 = vector.load %arg5[%c8, %c0_32] : memref<1016x128xf32, #tpu.memory_space<vmem>>, vector<9x32xf32>
    %cst_33 = arith.constant dense<0.000000e+00> : vector<16x32xf32>
    %91 = tpu.matmul %89, %90, %cst_33 {dimension_numbers = #tpu.dot_dimension_numbers<[1], [0], [0], [1], [0, 0, 1, 1], [], []>} : vector<16x9xf32>, vector<9x32xf32>, vector<16x32xf32> -> vector<16x32xf32>
    %c0_34 = arith.constant 0 : index
    %c0_35 = arith.constant 0 : index
    %92 = vector.load %arg4[%c0_34, %c0_35] : memref<16x32xf32, #tpu.memory_space<vmem>>, vector<16x32xf32>
    %93 = arith.addf %91, %92 : vector<16x32xf32>
    %c248 = arith.constant 248 : index
    %c0_36 = arith.constant 0 : index
    %94 = vector.load %arg5[%c248, %c0_36] : memref<1016x128xf32, #tpu.memory_space<vmem>>, vector<4x32xf32>
    %c56 = arith.constant 56 : index
    %c0_37 = arith.constant 0 : index
    %95 = vector.load %arg5[%c56, %c0_37] : memref<1016x128xf32, #tpu.memory_space<vmem>>, vector<32x96xf32>
    %c88 = arith.constant 88 : index
    %c0_38 = arith.constant 0 : index
    %96 = vector.load %arg5[%c88, %c0_38] : memref<1016x128xf32, #tpu.memory_space<vmem>>, vector<1x96xf32>
    %c96 = arith.constant 96 : index
    %c0_39 = arith.constant 0 : index
    %97 = vector.load %arg5[%c96, %c0_39] : memref<1016x128xf32, #tpu.memory_space<vmem>>, vector<32x32xf32>
    %c128 = arith.constant 128 : index
    %c0_40 = arith.constant 0 : index
    %98 = vector.load %arg5[%c128, %c0_40] : memref<1016x128xf32, #tpu.memory_space<vmem>>, vector<1x32xf32>
    %99 = vector.extract_strided_slice %95 {offsets = [0, 0], sizes = [32, 32], strides = [1, 1]} : vector<32x96xf32> to vector<32x32xf32>
    %cst_41 = arith.constant dense<0.000000e+00> : vector<12x32xf32>
    %100 = tpu.matmul %88, %99, %cst_41 {dimension_numbers = #tpu.dot_dimension_numbers<[1], [0], [0], [1], [0, 0, 1, 1], [], []>} : vector<12x32xf32>, vector<32x32xf32>, vector<12x32xf32> -> vector<12x32xf32>
    %101 = vector.extract_strided_slice %96 {offsets = [0, 0], sizes = [1, 32], strides = [1, 1]} : vector<1x96xf32> to vector<1x32xf32>
    %102 = vector.broadcast %101 : vector<1x32xf32> to vector<12x32xf32>
    %103 = arith.addf %100, %102 : vector<12x32xf32>
    %104 = vector.extract_strided_slice %95 {offsets = [0, 32], sizes = [32, 64], strides = [1, 1]} : vector<32x96xf32> to vector<32x64xf32>
    %cst_42 = arith.constant dense<0.000000e+00> : vector<12x64xf32>
    %105 = tpu.matmul %88, %104, %cst_42 {dimension_numbers = #tpu.dot_dimension_numbers<[1], [0], [0], [1], [0, 0, 1, 1], [], []>} : vector<12x32xf32>, vector<32x64xf32>, vector<12x64xf32> -> vector<12x64xf32>
    %106 = vector.extract_strided_slice %96 {offsets = [0, 32], sizes = [1, 64], strides = [1, 1]} : vector<1x96xf32> to vector<1x64xf32>
    %107 = vector.broadcast %106 : vector<1x64xf32> to vector<12x64xf32>
    %108 = arith.addf %105, %107 : vector<12x64xf32>
    %109 = vector.extract_strided_slice %108 {offsets = [0, 0], sizes = [12, 32], strides = [1, 1]} : vector<12x64xf32> to vector<12x32xf32>
    %110 = vector.extract_strided_slice %108 {offsets = [0, 32], sizes = [12, 32], strides = [1, 1]} : vector<12x64xf32> to vector<12x32xf32>
    %111 = vector.extract_strided_slice %103 {offsets = [0, 0], sizes = [12, 8], strides = [1, 1]} : vector<12x32xf32> to vector<12x8xf32>
    %112 = vector.extract_strided_slice %109 {offsets = [0, 0], sizes = [12, 8], strides = [1, 1]} : vector<12x32xf32> to vector<12x8xf32>
    %cst_43 = arith.constant dense<0.000000e+00> : vector<12x12xf32>
    %113 = tpu.matmul %111, %112, %cst_43 {dimension_numbers = #tpu.dot_dimension_numbers<[1], [1], [0], [0], [0, 0, 1, 0], [], []>} : vector<12x8xf32>, vector<12x8xf32>, vector<12x12xf32> -> vector<12x12xf32>
    %114 = arith.addf %113, %27 : vector<12x12xf32>
    %cst_44 = arith.constant dense<0xFF800000> : vector<12xf32>
    %115 = vector.multi_reduction <maximumf>, %114, %cst_44 [1] : vector<12x12xf32> to vector<12xf32>
    %116 = vector.shape_cast %115 : vector<12xf32> to vector<12x1xf32>
    %117 = vector.broadcast %116 : vector<12x1xf32> to vector<12x12xf32>
    %118 = arith.subf %114, %117 : vector<12x12xf32>
    %119 = math.exp %118 : vector<12x12xf32>
    %cst_45 = arith.constant dense<0.000000e+00> : vector<12xf32>
    %120 = vector.multi_reduction <add>, %119, %cst_45 [1] : vector<12x12xf32> to vector<12xf32>
    %121 = vector.shape_cast %120 : vector<12xf32> to vector<12x1xf32>
    %cst_46 = arith.constant 1.000000e+00 : f32
    %122 = vector.broadcast %cst_46 : f32 to vector<12x1xf32>
    %123 = arith.divf %122, %121 : vector<12x1xf32>
    %124 = vector.broadcast %123 : vector<12x1xf32> to vector<12x12xf32>
    %125 = arith.mulf %119, %124 : vector<12x12xf32>
    %126 = vector.extract_strided_slice %110 {offsets = [0, 0], sizes = [12, 8], strides = [1, 1]} : vector<12x32xf32> to vector<12x8xf32>
    %cst_47 = arith.constant dense<0.000000e+00> : vector<12x8xf32>
    %127 = tpu.matmul %125, %126, %cst_47 {dimension_numbers = #tpu.dot_dimension_numbers<[1], [0], [0], [1], [0, 0, 1, 1], [], []>} : vector<12x12xf32>, vector<12x8xf32>, vector<12x8xf32> -> vector<12x8xf32>
    %128 = vector.extract_strided_slice %97 {offsets = [0, 0], sizes = [8, 32], strides = [1, 1]} : vector<32x32xf32> to vector<8x32xf32>
    %cst_48 = arith.constant dense<0.000000e+00> : vector<12x32xf32>
    %129 = tpu.matmul %127, %128, %cst_48 {dimension_numbers = #tpu.dot_dimension_numbers<[1], [0], [0], [1], [0, 0, 1, 1], [], []>} : vector<12x8xf32>, vector<8x32xf32>, vector<12x32xf32> -> vector<12x32xf32>
    %130 = vector.extract_strided_slice %103 {offsets = [0, 8], sizes = [12, 8], strides = [1, 1]} : vector<12x32xf32> to vector<12x8xf32>
    %131 = vector.extract_strided_slice %109 {offsets = [0, 8], sizes = [12, 8], strides = [1, 1]} : vector<12x32xf32> to vector<12x8xf32>
    %cst_49 = arith.constant dense<0.000000e+00> : vector<12x12xf32>
    %132 = tpu.matmul %130, %131, %cst_49 {dimension_numbers = #tpu.dot_dimension_numbers<[1], [1], [0], [0], [0, 0, 1, 0], [], []>} : vector<12x8xf32>, vector<12x8xf32>, vector<12x12xf32> -> vector<12x12xf32>
    %133 = arith.addf %132, %27 : vector<12x12xf32>
    %cst_50 = arith.constant dense<0xFF800000> : vector<12xf32>
    %134 = vector.multi_reduction <maximumf>, %133, %cst_50 [1] : vector<12x12xf32> to vector<12xf32>
    %135 = vector.shape_cast %134 : vector<12xf32> to vector<12x1xf32>
    %136 = vector.broadcast %135 : vector<12x1xf32> to vector<12x12xf32>
    %137 = arith.subf %133, %136 : vector<12x12xf32>
    %138 = math.exp %137 : vector<12x12xf32>
    %cst_51 = arith.constant dense<0.000000e+00> : vector<12xf32>
    %139 = vector.multi_reduction <add>, %138, %cst_51 [1] : vector<12x12xf32> to vector<12xf32>
    %140 = vector.shape_cast %139 : vector<12xf32> to vector<12x1xf32>
    %cst_52 = arith.constant 1.000000e+00 : f32
    %141 = vector.broadcast %cst_52 : f32 to vector<12x1xf32>
    %142 = arith.divf %141, %140 : vector<12x1xf32>
    %143 = vector.broadcast %142 : vector<12x1xf32> to vector<12x12xf32>
    %144 = arith.mulf %138, %143 : vector<12x12xf32>
    %145 = vector.extract_strided_slice %110 {offsets = [0, 8], sizes = [12, 8], strides = [1, 1]} : vector<12x32xf32> to vector<12x8xf32>
    %cst_53 = arith.constant dense<0.000000e+00> : vector<12x8xf32>
    %146 = tpu.matmul %144, %145, %cst_53 {dimension_numbers = #tpu.dot_dimension_numbers<[1], [0], [0], [1], [0, 0, 1, 1], [], []>} : vector<12x12xf32>, vector<12x8xf32>, vector<12x8xf32> -> vector<12x8xf32>
    %147 = vector.extract_strided_slice %97 {offsets = [8, 0], sizes = [8, 32], strides = [1, 1]} : vector<32x32xf32> to vector<8x32xf32>
    %cst_54 = arith.constant dense<0.000000e+00> : vector<12x32xf32>
    %148 = tpu.matmul %146, %147, %cst_54 {dimension_numbers = #tpu.dot_dimension_numbers<[1], [0], [0], [1], [0, 0, 1, 1], [], []>} : vector<12x8xf32>, vector<8x32xf32>, vector<12x32xf32> -> vector<12x32xf32>
    %149 = arith.addf %129, %148 : vector<12x32xf32>
    %150 = vector.extract_strided_slice %103 {offsets = [0, 16], sizes = [12, 8], strides = [1, 1]} : vector<12x32xf32> to vector<12x8xf32>
    %151 = vector.extract_strided_slice %109 {offsets = [0, 16], sizes = [12, 8], strides = [1, 1]} : vector<12x32xf32> to vector<12x8xf32>
    %cst_55 = arith.constant dense<0.000000e+00> : vector<12x12xf32>
    %152 = tpu.matmul %150, %151, %cst_55 {dimension_numbers = #tpu.dot_dimension_numbers<[1], [1], [0], [0], [0, 0, 1, 0], [], []>} : vector<12x8xf32>, vector<12x8xf32>, vector<12x12xf32> -> vector<12x12xf32>
    %153 = arith.addf %152, %27 : vector<12x12xf32>
    %cst_56 = arith.constant dense<0xFF800000> : vector<12xf32>
    %154 = vector.multi_reduction <maximumf>, %153, %cst_56 [1] : vector<12x12xf32> to vector<12xf32>
    %155 = vector.shape_cast %154 : vector<12xf32> to vector<12x1xf32>
    %156 = vector.broadcast %155 : vector<12x1xf32> to vector<12x12xf32>
    %157 = arith.subf %153, %156 : vector<12x12xf32>
    %158 = math.exp %157 : vector<12x12xf32>
    %cst_57 = arith.constant dense<0.000000e+00> : vector<12xf32>
    %159 = vector.multi_reduction <add>, %158, %cst_57 [1] : vector<12x12xf32> to vector<12xf32>
    %160 = vector.shape_cast %159 : vector<12xf32> to vector<12x1xf32>
    %cst_58 = arith.constant 1.000000e+00 : f32
    %161 = vector.broadcast %cst_58 : f32 to vector<12x1xf32>
    %162 = arith.divf %161, %160 : vector<12x1xf32>
    %163 = vector.broadcast %162 : vector<12x1xf32> to vector<12x12xf32>
    %164 = arith.mulf %158, %163 : vector<12x12xf32>
    %165 = vector.extract_strided_slice %110 {offsets = [0, 16], sizes = [12, 8], strides = [1, 1]} : vector<12x32xf32> to vector<12x8xf32>
    %cst_59 = arith.constant dense<0.000000e+00> : vector<12x8xf32>
    %166 = tpu.matmul %164, %165, %cst_59 {dimension_numbers = #tpu.dot_dimension_numbers<[1], [0], [0], [1], [0, 0, 1, 1], [], []>} : vector<12x12xf32>, vector<12x8xf32>, vector<12x8xf32> -> vector<12x8xf32>
    %167 = vector.extract_strided_slice %97 {offsets = [16, 0], sizes = [8, 32], strides = [1, 1]} : vector<32x32xf32> to vector<8x32xf32>
    %cst_60 = arith.constant dense<0.000000e+00> : vector<12x32xf32>
    %168 = tpu.matmul %166, %167, %cst_60 {dimension_numbers = #tpu.dot_dimension_numbers<[1], [0], [0], [1], [0, 0, 1, 1], [], []>} : vector<12x8xf32>, vector<8x32xf32>, vector<12x32xf32> -> vector<12x32xf32>
    %169 = arith.addf %149, %168 : vector<12x32xf32>
    %170 = vector.extract_strided_slice %103 {offsets = [0, 24], sizes = [12, 8], strides = [1, 1]} : vector<12x32xf32> to vector<12x8xf32>
    %171 = vector.extract_strided_slice %109 {offsets = [0, 24], sizes = [12, 8], strides = [1, 1]} : vector<12x32xf32> to vector<12x8xf32>
    %cst_61 = arith.constant dense<0.000000e+00> : vector<12x12xf32>
    %172 = tpu.matmul %170, %171, %cst_61 {dimension_numbers = #tpu.dot_dimension_numbers<[1], [1], [0], [0], [0, 0, 1, 0], [], []>} : vector<12x8xf32>, vector<12x8xf32>, vector<12x12xf32> -> vector<12x12xf32>
    %173 = arith.addf %172, %27 : vector<12x12xf32>
    %cst_62 = arith.constant dense<0xFF800000> : vector<12xf32>
    %174 = vector.multi_reduction <maximumf>, %173, %cst_62 [1] : vector<12x12xf32> to vector<12xf32>
    %175 = vector.shape_cast %174 : vector<12xf32> to vector<12x1xf32>
    %176 = vector.broadcast %175 : vector<12x1xf32> to vector<12x12xf32>
    %177 = arith.subf %173, %176 : vector<12x12xf32>
    %178 = math.exp %177 : vector<12x12xf32>
    %cst_63 = arith.constant dense<0.000000e+00> : vector<12xf32>
    %179 = vector.multi_reduction <add>, %178, %cst_63 [1] : vector<12x12xf32> to vector<12xf32>
    %180 = vector.shape_cast %179 : vector<12xf32> to vector<12x1xf32>
    %cst_64 = arith.constant 1.000000e+00 : f32
    %181 = vector.broadcast %cst_64 : f32 to vector<12x1xf32>
    %182 = arith.divf %181, %180 : vector<12x1xf32>
    %183 = vector.broadcast %182 : vector<12x1xf32> to vector<12x12xf32>
    %184 = arith.mulf %178, %183 : vector<12x12xf32>
    %185 = vector.extract_strided_slice %110 {offsets = [0, 24], sizes = [12, 8], strides = [1, 1]} : vector<12x32xf32> to vector<12x8xf32>
    %cst_65 = arith.constant dense<0.000000e+00> : vector<12x8xf32>
    %186 = tpu.matmul %184, %185, %cst_65 {dimension_numbers = #tpu.dot_dimension_numbers<[1], [0], [0], [1], [0, 0, 1, 1], [], []>} : vector<12x12xf32>, vector<12x8xf32>, vector<12x8xf32> -> vector<12x8xf32>
    %187 = vector.extract_strided_slice %97 {offsets = [24, 0], sizes = [8, 32], strides = [1, 1]} : vector<32x32xf32> to vector<8x32xf32>
    %cst_66 = arith.constant dense<0.000000e+00> : vector<12x32xf32>
    %188 = tpu.matmul %186, %187, %cst_66 {dimension_numbers = #tpu.dot_dimension_numbers<[1], [0], [0], [1], [0, 0, 1, 1], [], []>} : vector<12x8xf32>, vector<8x32xf32>, vector<12x32xf32> -> vector<12x32xf32>
    %189 = arith.addf %169, %188 : vector<12x32xf32>
    %190 = vector.broadcast %98 : vector<1x32xf32> to vector<12x32xf32>
    %191 = arith.addf %189, %190 : vector<12x32xf32>
    %192 = arith.addf %88, %191 : vector<12x32xf32>
    %193 = vector.extract_strided_slice %94 {offsets = [0, 0], sizes = [1, 32], strides = [1, 1]} : vector<4x32xf32> to vector<1x32xf32>
    %194 = vector.extract_strided_slice %94 {offsets = [1, 0], sizes = [1, 32], strides = [1, 1]} : vector<4x32xf32> to vector<1x32xf32>
    %cst_67 = arith.constant dense<0.000000e+00> : vector<12xf32>
    %195 = vector.multi_reduction <add>, %192, %cst_67 [1] : vector<12x32xf32> to vector<12xf32>
    %196 = vector.shape_cast %195 : vector<12xf32> to vector<12x1xf32>
    %cst_68 = arith.constant 3.200000e+01 : f32
    %197 = vector.broadcast %cst_68 : f32 to vector<12x1xf32>
    %198 = arith.divf %196, %197 : vector<12x1xf32>
    %199 = vector.broadcast %198 : vector<12x1xf32> to vector<12x32xf32>
    %200 = arith.subf %192, %199 : vector<12x32xf32>
    %201 = arith.mulf %200, %200 : vector<12x32xf32>
    %cst_69 = arith.constant dense<0.000000e+00> : vector<12xf32>
    %202 = vector.multi_reduction <add>, %201, %cst_69 [1] : vector<12x32xf32> to vector<12xf32>
    %203 = vector.shape_cast %202 : vector<12xf32> to vector<12x1xf32>
    %cst_70 = arith.constant 3.200000e+01 : f32
    %204 = vector.broadcast %cst_70 : f32 to vector<12x1xf32>
    %205 = arith.divf %203, %204 : vector<12x1xf32>
    %206 = vector.broadcast %198 : vector<12x1xf32> to vector<12x32xf32>
    %207 = arith.subf %192, %206 : vector<12x32xf32>
    %cst_71 = arith.constant 9.99999974E-6 : f32
    %208 = vector.broadcast %cst_71 : f32 to vector<12x1xf32>
    %209 = arith.addf %205, %208 : vector<12x1xf32>
    %210 = math.rsqrt %209 : vector<12x1xf32>
    %211 = vector.broadcast %210 : vector<12x1xf32> to vector<12x32xf32>
    %212 = arith.mulf %207, %211 : vector<12x32xf32>
    %213 = vector.broadcast %193 : vector<1x32xf32> to vector<12x32xf32>
    %214 = arith.mulf %212, %213 : vector<12x32xf32>
    %215 = vector.broadcast %194 : vector<1x32xf32> to vector<12x32xf32>
    %216 = arith.addf %214, %215 : vector<12x32xf32>
    %c136 = arith.constant 136 : index
    %c0_72 = arith.constant 0 : index
    %217 = vector.load %arg5[%c136, %c0_72] : memref<1016x128xf32, #tpu.memory_space<vmem>>, vector<32x64xf32>
    %c168 = arith.constant 168 : index
    %c0_73 = arith.constant 0 : index
    %218 = vector.load %arg5[%c168, %c0_73] : memref<1016x128xf32, #tpu.memory_space<vmem>>, vector<1x64xf32>
    %c176 = arith.constant 176 : index
    %c0_74 = arith.constant 0 : index
    %219 = vector.load %arg5[%c176, %c0_74] : memref<1016x128xf32, #tpu.memory_space<vmem>>, vector<64x32xf32>
    %c240 = arith.constant 240 : index
    %c0_75 = arith.constant 0 : index
    %220 = vector.load %arg5[%c240, %c0_75] : memref<1016x128xf32, #tpu.memory_space<vmem>>, vector<1x32xf32>
    %cst_76 = arith.constant dense<0.000000e+00> : vector<12x64xf32>
    %221 = tpu.matmul %216, %217, %cst_76 {dimension_numbers = #tpu.dot_dimension_numbers<[1], [0], [0], [1], [0, 0, 1, 1], [], []>} : vector<12x32xf32>, vector<32x64xf32>, vector<12x64xf32> -> vector<12x64xf32>
    %222 = vector.broadcast %218 : vector<1x64xf32> to vector<12x64xf32>
    %223 = arith.addf %221, %222 : vector<12x64xf32>
    %cst_77 = arith.constant 5.000000e-01 : f32
    %224 = vector.broadcast %cst_77 : f32 to vector<12x64xf32>
    %225 = arith.mulf %224, %223 : vector<12x64xf32>
    %cst_78 = arith.constant 0.707106769 : f32
    %226 = vector.broadcast %cst_78 : f32 to vector<12x64xf32>
    %227 = arith.mulf %223, %226 : vector<12x64xf32>
    %228 = math.absf %227 : vector<12x64xf32>
    %cst_79 = arith.constant 0.327591091 : f32
    %229 = vector.broadcast %cst_79 : f32 to vector<12x64xf32>
    %230 = arith.mulf %229, %228 : vector<12x64xf32>
    %cst_80 = arith.constant 1.000000e+00 : f32
    %231 = vector.broadcast %cst_80 : f32 to vector<12x64xf32>
    %232 = arith.addf %231, %230 : vector<12x64xf32>
    %cst_81 = arith.constant 1.000000e+00 : f32
    %233 = vector.broadcast %cst_81 : f32 to vector<12x64xf32>
    %234 = arith.divf %233, %232 : vector<12x64xf32>
    %cst_82 = arith.constant 1.06140542 : f32
    %235 = vector.broadcast %cst_82 : f32 to vector<12x64xf32>
    %236 = arith.mulf %235, %234 : vector<12x64xf32>
    %cst_83 = arith.constant -1.45315206 : f32
    %237 = vector.broadcast %cst_83 : f32 to vector<12x64xf32>
    %238 = arith.addf %236, %237 : vector<12x64xf32>
    %239 = arith.mulf %238, %234 : vector<12x64xf32>
    %cst_84 = arith.constant 1.42141378 : f32
    %240 = vector.broadcast %cst_84 : f32 to vector<12x64xf32>
    %241 = arith.addf %239, %240 : vector<12x64xf32>
    %242 = arith.mulf %241, %234 : vector<12x64xf32>
    %cst_85 = arith.constant -0.284496725 : f32
    %243 = vector.broadcast %cst_85 : f32 to vector<12x64xf32>
    %244 = arith.addf %242, %243 : vector<12x64xf32>
    %245 = arith.mulf %244, %234 : vector<12x64xf32>
    %cst_86 = arith.constant 0.254829586 : f32
    %246 = vector.broadcast %cst_86 : f32 to vector<12x64xf32>
    %247 = arith.addf %245, %246 : vector<12x64xf32>
    %248 = arith.mulf %247, %234 : vector<12x64xf32>
    %cst_87 = arith.constant 0.000000e+00 : f32
    %249 = vector.broadcast %cst_87 : f32 to vector<12x64xf32>
    %250 = arith.subf %249, %228 : vector<12x64xf32>
    %251 = arith.mulf %250, %228 : vector<12x64xf32>
    %252 = math.exp %251 : vector<12x64xf32>
    %253 = arith.mulf %248, %252 : vector<12x64xf32>
    %cst_88 = arith.constant 1.000000e+00 : f32
    %254 = vector.broadcast %cst_88 : f32 to vector<12x64xf32>
    %255 = arith.subf %254, %253 : vector<12x64xf32>
    %cst_89 = arith.constant 0.000000e+00 : f32
    %256 = vector.broadcast %cst_89 : f32 to vector<12x64xf32>
    %257 = arith.cmpf olt, %227, %256 : vector<12x64xf32>
    %cst_90 = arith.constant 0.000000e+00 : f32
    %258 = vector.broadcast %cst_90 : f32 to vector<12x64xf32>
    %259 = arith.subf %258, %255 : vector<12x64xf32>
    %260 = arith.select %257, %259, %255 : vector<12x64xi1>, vector<12x64xf32>
    %cst_91 = arith.constant 1.000000e+00 : f32
    %261 = vector.broadcast %cst_91 : f32 to vector<12x64xf32>
    %262 = arith.addf %261, %260 : vector<12x64xf32>
    %263 = arith.mulf %225, %262 : vector<12x64xf32>
    %cst_92 = arith.constant dense<0.000000e+00> : vector<12x32xf32>
    %264 = tpu.matmul %263, %219, %cst_92 {dimension_numbers = #tpu.dot_dimension_numbers<[1], [0], [0], [1], [0, 0, 1, 1], [], []>} : vector<12x64xf32>, vector<64x32xf32>, vector<12x32xf32> -> vector<12x32xf32>
    %265 = vector.broadcast %220 : vector<1x32xf32> to vector<12x32xf32>
    %266 = arith.addf %264, %265 : vector<12x32xf32>
    %267 = arith.addf %216, %266 : vector<12x32xf32>
    %268 = vector.extract_strided_slice %94 {offsets = [2, 0], sizes = [1, 32], strides = [1, 1]} : vector<4x32xf32> to vector<1x32xf32>
    %269 = vector.extract_strided_slice %94 {offsets = [3, 0], sizes = [1, 32], strides = [1, 1]} : vector<4x32xf32> to vector<1x32xf32>
    %cst_93 = arith.constant dense<0.000000e+00> : vector<12xf32>
    %270 = vector.multi_reduction <add>, %267, %cst_93 [1] : vector<12x32xf32> to vector<12xf32>
    %271 = vector.shape_cast %270 : vector<12xf32> to vector<12x1xf32>
    %cst_94 = arith.constant 3.200000e+01 : f32
    %272 = vector.broadcast %cst_94 : f32 to vector<12x1xf32>
    %273 = arith.divf %271, %272 : vector<12x1xf32>
    %274 = vector.broadcast %273 : vector<12x1xf32> to vector<12x32xf32>
    %275 = arith.subf %267, %274 : vector<12x32xf32>
    %276 = arith.mulf %275, %275 : vector<12x32xf32>
    %cst_95 = arith.constant dense<0.000000e+00> : vector<12xf32>
    %277 = vector.multi_reduction <add>, %276, %cst_95 [1] : vector<12x32xf32> to vector<12xf32>
    %278 = vector.shape_cast %277 : vector<12xf32> to vector<12x1xf32>
    %cst_96 = arith.constant 3.200000e+01 : f32
    %279 = vector.broadcast %cst_96 : f32 to vector<12x1xf32>
    %280 = arith.divf %278, %279 : vector<12x1xf32>
    %281 = vector.broadcast %273 : vector<12x1xf32> to vector<12x32xf32>
    %282 = arith.subf %267, %281 : vector<12x32xf32>
    %cst_97 = arith.constant 9.99999974E-6 : f32
    %283 = vector.broadcast %cst_97 : f32 to vector<12x1xf32>
    %284 = arith.addf %280, %283 : vector<12x1xf32>
    %285 = math.rsqrt %284 : vector<12x1xf32>
    %286 = vector.broadcast %285 : vector<12x1xf32> to vector<12x32xf32>
    %287 = arith.mulf %282, %286 : vector<12x32xf32>
    %288 = vector.broadcast %268 : vector<1x32xf32> to vector<12x32xf32>
    %289 = arith.mulf %287, %288 : vector<12x32xf32>
    %290 = vector.broadcast %269 : vector<1x32xf32> to vector<12x32xf32>
    %291 = arith.addf %289, %290 : vector<12x32xf32>
    %c448 = arith.constant 448 : index
    %c0_98 = arith.constant 0 : index
    %292 = vector.load %arg5[%c448, %c0_98] : memref<1016x128xf32, #tpu.memory_space<vmem>>, vector<4x32xf32>
    %c256 = arith.constant 256 : index
    %c0_99 = arith.constant 0 : index
    %293 = vector.load %arg5[%c256, %c0_99] : memref<1016x128xf32, #tpu.memory_space<vmem>>, vector<32x96xf32>
    %c288 = arith.constant 288 : index
    %c0_100 = arith.constant 0 : index
    %294 = vector.load %arg5[%c288, %c0_100] : memref<1016x128xf32, #tpu.memory_space<vmem>>, vector<1x96xf32>
    %c296 = arith.constant 296 : index
    %c0_101 = arith.constant 0 : index
    %295 = vector.load %arg5[%c296, %c0_101] : memref<1016x128xf32, #tpu.memory_space<vmem>>, vector<32x32xf32>
    %c328 = arith.constant 328 : index
    %c0_102 = arith.constant 0 : index
    %296 = vector.load %arg5[%c328, %c0_102] : memref<1016x128xf32, #tpu.memory_space<vmem>>, vector<1x32xf32>
    %297 = vector.extract_strided_slice %293 {offsets = [0, 0], sizes = [32, 32], strides = [1, 1]} : vector<32x96xf32> to vector<32x32xf32>
    %cst_103 = arith.constant dense<0.000000e+00> : vector<12x32xf32>
    %298 = tpu.matmul %291, %297, %cst_103 {dimension_numbers = #tpu.dot_dimension_numbers<[1], [0], [0], [1], [0, 0, 1, 1], [], []>} : vector<12x32xf32>, vector<32x32xf32>, vector<12x32xf32> -> vector<12x32xf32>
    %299 = vector.extract_strided_slice %294 {offsets = [0, 0], sizes = [1, 32], strides = [1, 1]} : vector<1x96xf32> to vector<1x32xf32>
    %300 = vector.broadcast %299 : vector<1x32xf32> to vector<12x32xf32>
    %301 = arith.addf %298, %300 : vector<12x32xf32>
    %302 = vector.extract_strided_slice %293 {offsets = [0, 32], sizes = [32, 64], strides = [1, 1]} : vector<32x96xf32> to vector<32x64xf32>
    %cst_104 = arith.constant dense<0.000000e+00> : vector<12x64xf32>
    %303 = tpu.matmul %291, %302, %cst_104 {dimension_numbers = #tpu.dot_dimension_numbers<[1], [0], [0], [1], [0, 0, 1, 1], [], []>} : vector<12x32xf32>, vector<32x64xf32>, vector<12x64xf32> -> vector<12x64xf32>
    %304 = vector.extract_strided_slice %294 {offsets = [0, 32], sizes = [1, 64], strides = [1, 1]} : vector<1x96xf32> to vector<1x64xf32>
    %305 = vector.broadcast %304 : vector<1x64xf32> to vector<12x64xf32>
    %306 = arith.addf %303, %305 : vector<12x64xf32>
    %307 = vector.extract_strided_slice %306 {offsets = [0, 0], sizes = [12, 32], strides = [1, 1]} : vector<12x64xf32> to vector<12x32xf32>
    %308 = vector.extract_strided_slice %306 {offsets = [0, 32], sizes = [12, 32], strides = [1, 1]} : vector<12x64xf32> to vector<12x32xf32>
    %309 = vector.extract_strided_slice %301 {offsets = [0, 0], sizes = [12, 8], strides = [1, 1]} : vector<12x32xf32> to vector<12x8xf32>
    %310 = vector.extract_strided_slice %307 {offsets = [0, 0], sizes = [12, 8], strides = [1, 1]} : vector<12x32xf32> to vector<12x8xf32>
    %cst_105 = arith.constant dense<0.000000e+00> : vector<12x12xf32>
    %311 = tpu.matmul %309, %310, %cst_105 {dimension_numbers = #tpu.dot_dimension_numbers<[1], [1], [0], [0], [0, 0, 1, 0], [], []>} : vector<12x8xf32>, vector<12x8xf32>, vector<12x12xf32> -> vector<12x12xf32>
    %312 = arith.addf %311, %27 : vector<12x12xf32>
    %cst_106 = arith.constant dense<0xFF800000> : vector<12xf32>
    %313 = vector.multi_reduction <maximumf>, %312, %cst_106 [1] : vector<12x12xf32> to vector<12xf32>
    %314 = vector.shape_cast %313 : vector<12xf32> to vector<12x1xf32>
    %315 = vector.broadcast %314 : vector<12x1xf32> to vector<12x12xf32>
    %316 = arith.subf %312, %315 : vector<12x12xf32>
    %317 = math.exp %316 : vector<12x12xf32>
    %cst_107 = arith.constant dense<0.000000e+00> : vector<12xf32>
    %318 = vector.multi_reduction <add>, %317, %cst_107 [1] : vector<12x12xf32> to vector<12xf32>
    %319 = vector.shape_cast %318 : vector<12xf32> to vector<12x1xf32>
    %cst_108 = arith.constant 1.000000e+00 : f32
    %320 = vector.broadcast %cst_108 : f32 to vector<12x1xf32>
    %321 = arith.divf %320, %319 : vector<12x1xf32>
    %322 = vector.broadcast %321 : vector<12x1xf32> to vector<12x12xf32>
    %323 = arith.mulf %317, %322 : vector<12x12xf32>
    %324 = vector.extract_strided_slice %308 {offsets = [0, 0], sizes = [12, 8], strides = [1, 1]} : vector<12x32xf32> to vector<12x8xf32>
    %cst_109 = arith.constant dense<0.000000e+00> : vector<12x8xf32>
    %325 = tpu.matmul %323, %324, %cst_109 {dimension_numbers = #tpu.dot_dimension_numbers<[1], [0], [0], [1], [0, 0, 1, 1], [], []>} : vector<12x12xf32>, vector<12x8xf32>, vector<12x8xf32> -> vector<12x8xf32>
    %326 = vector.extract_strided_slice %295 {offsets = [0, 0], sizes = [8, 32], strides = [1, 1]} : vector<32x32xf32> to vector<8x32xf32>
    %cst_110 = arith.constant dense<0.000000e+00> : vector<12x32xf32>
    %327 = tpu.matmul %325, %326, %cst_110 {dimension_numbers = #tpu.dot_dimension_numbers<[1], [0], [0], [1], [0, 0, 1, 1], [], []>} : vector<12x8xf32>, vector<8x32xf32>, vector<12x32xf32> -> vector<12x32xf32>
    %328 = vector.extract_strided_slice %301 {offsets = [0, 8], sizes = [12, 8], strides = [1, 1]} : vector<12x32xf32> to vector<12x8xf32>
    %329 = vector.extract_strided_slice %307 {offsets = [0, 8], sizes = [12, 8], strides = [1, 1]} : vector<12x32xf32> to vector<12x8xf32>
    %cst_111 = arith.constant dense<0.000000e+00> : vector<12x12xf32>
    %330 = tpu.matmul %328, %329, %cst_111 {dimension_numbers = #tpu.dot_dimension_numbers<[1], [1], [0], [0], [0, 0, 1, 0], [], []>} : vector<12x8xf32>, vector<12x8xf32>, vector<12x12xf32> -> vector<12x12xf32>
    %331 = arith.addf %330, %27 : vector<12x12xf32>
    %cst_112 = arith.constant dense<0xFF800000> : vector<12xf32>
    %332 = vector.multi_reduction <maximumf>, %331, %cst_112 [1] : vector<12x12xf32> to vector<12xf32>
    %333 = vector.shape_cast %332 : vector<12xf32> to vector<12x1xf32>
    %334 = vector.broadcast %333 : vector<12x1xf32> to vector<12x12xf32>
    %335 = arith.subf %331, %334 : vector<12x12xf32>
    %336 = math.exp %335 : vector<12x12xf32>
    %cst_113 = arith.constant dense<0.000000e+00> : vector<12xf32>
    %337 = vector.multi_reduction <add>, %336, %cst_113 [1] : vector<12x12xf32> to vector<12xf32>
    %338 = vector.shape_cast %337 : vector<12xf32> to vector<12x1xf32>
    %cst_114 = arith.constant 1.000000e+00 : f32
    %339 = vector.broadcast %cst_114 : f32 to vector<12x1xf32>
    %340 = arith.divf %339, %338 : vector<12x1xf32>
    %341 = vector.broadcast %340 : vector<12x1xf32> to vector<12x12xf32>
    %342 = arith.mulf %336, %341 : vector<12x12xf32>
    %343 = vector.extract_strided_slice %308 {offsets = [0, 8], sizes = [12, 8], strides = [1, 1]} : vector<12x32xf32> to vector<12x8xf32>
    %cst_115 = arith.constant dense<0.000000e+00> : vector<12x8xf32>
    %344 = tpu.matmul %342, %343, %cst_115 {dimension_numbers = #tpu.dot_dimension_numbers<[1], [0], [0], [1], [0, 0, 1, 1], [], []>} : vector<12x12xf32>, vector<12x8xf32>, vector<12x8xf32> -> vector<12x8xf32>
    %345 = vector.extract_strided_slice %295 {offsets = [8, 0], sizes = [8, 32], strides = [1, 1]} : vector<32x32xf32> to vector<8x32xf32>
    %cst_116 = arith.constant dense<0.000000e+00> : vector<12x32xf32>
    %346 = tpu.matmul %344, %345, %cst_116 {dimension_numbers = #tpu.dot_dimension_numbers<[1], [0], [0], [1], [0, 0, 1, 1], [], []>} : vector<12x8xf32>, vector<8x32xf32>, vector<12x32xf32> -> vector<12x32xf32>
    %347 = arith.addf %327, %346 : vector<12x32xf32>
    %348 = vector.extract_strided_slice %301 {offsets = [0, 16], sizes = [12, 8], strides = [1, 1]} : vector<12x32xf32> to vector<12x8xf32>
    %349 = vector.extract_strided_slice %307 {offsets = [0, 16], sizes = [12, 8], strides = [1, 1]} : vector<12x32xf32> to vector<12x8xf32>
    %cst_117 = arith.constant dense<0.000000e+00> : vector<12x12xf32>
    %350 = tpu.matmul %348, %349, %cst_117 {dimension_numbers = #tpu.dot_dimension_numbers<[1], [1], [0], [0], [0, 0, 1, 0], [], []>} : vector<12x8xf32>, vector<12x8xf32>, vector<12x12xf32> -> vector<12x12xf32>
    %351 = arith.addf %350, %27 : vector<12x12xf32>
    %cst_118 = arith.constant dense<0xFF800000> : vector<12xf32>
    %352 = vector.multi_reduction <maximumf>, %351, %cst_118 [1] : vector<12x12xf32> to vector<12xf32>
    %353 = vector.shape_cast %352 : vector<12xf32> to vector<12x1xf32>
    %354 = vector.broadcast %353 : vector<12x1xf32> to vector<12x12xf32>
    %355 = arith.subf %351, %354 : vector<12x12xf32>
    %356 = math.exp %355 : vector<12x12xf32>
    %cst_119 = arith.constant dense<0.000000e+00> : vector<12xf32>
    %357 = vector.multi_reduction <add>, %356, %cst_119 [1] : vector<12x12xf32> to vector<12xf32>
    %358 = vector.shape_cast %357 : vector<12xf32> to vector<12x1xf32>
    %cst_120 = arith.constant 1.000000e+00 : f32
    %359 = vector.broadcast %cst_120 : f32 to vector<12x1xf32>
    %360 = arith.divf %359, %358 : vector<12x1xf32>
    %361 = vector.broadcast %360 : vector<12x1xf32> to vector<12x12xf32>
    %362 = arith.mulf %356, %361 : vector<12x12xf32>
    %363 = vector.extract_strided_slice %308 {offsets = [0, 16], sizes = [12, 8], strides = [1, 1]} : vector<12x32xf32> to vector<12x8xf32>
    %cst_121 = arith.constant dense<0.000000e+00> : vector<12x8xf32>
    %364 = tpu.matmul %362, %363, %cst_121 {dimension_numbers = #tpu.dot_dimension_numbers<[1], [0], [0], [1], [0, 0, 1, 1], [], []>} : vector<12x12xf32>, vector<12x8xf32>, vector<12x8xf32> -> vector<12x8xf32>
    %365 = vector.extract_strided_slice %295 {offsets = [16, 0], sizes = [8, 32], strides = [1, 1]} : vector<32x32xf32> to vector<8x32xf32>
    %cst_122 = arith.constant dense<0.000000e+00> : vector<12x32xf32>
    %366 = tpu.matmul %364, %365, %cst_122 {dimension_numbers = #tpu.dot_dimension_numbers<[1], [0], [0], [1], [0, 0, 1, 1], [], []>} : vector<12x8xf32>, vector<8x32xf32>, vector<12x32xf32> -> vector<12x32xf32>
    %367 = arith.addf %347, %366 : vector<12x32xf32>
    %368 = vector.extract_strided_slice %301 {offsets = [0, 24], sizes = [12, 8], strides = [1, 1]} : vector<12x32xf32> to vector<12x8xf32>
    %369 = vector.extract_strided_slice %307 {offsets = [0, 24], sizes = [12, 8], strides = [1, 1]} : vector<12x32xf32> to vector<12x8xf32>
    %cst_123 = arith.constant dense<0.000000e+00> : vector<12x12xf32>
    %370 = tpu.matmul %368, %369, %cst_123 {dimension_numbers = #tpu.dot_dimension_numbers<[1], [1], [0], [0], [0, 0, 1, 0], [], []>} : vector<12x8xf32>, vector<12x8xf32>, vector<12x12xf32> -> vector<12x12xf32>
    %371 = arith.addf %370, %27 : vector<12x12xf32>
    %cst_124 = arith.constant dense<0xFF800000> : vector<12xf32>
    %372 = vector.multi_reduction <maximumf>, %371, %cst_124 [1] : vector<12x12xf32> to vector<12xf32>
    %373 = vector.shape_cast %372 : vector<12xf32> to vector<12x1xf32>
    %374 = vector.broadcast %373 : vector<12x1xf32> to vector<12x12xf32>
    %375 = arith.subf %371, %374 : vector<12x12xf32>
    %376 = math.exp %375 : vector<12x12xf32>
    %cst_125 = arith.constant dense<0.000000e+00> : vector<12xf32>
    %377 = vector.multi_reduction <add>, %376, %cst_125 [1] : vector<12x12xf32> to vector<12xf32>
    %378 = vector.shape_cast %377 : vector<12xf32> to vector<12x1xf32>
    %cst_126 = arith.constant 1.000000e+00 : f32
    %379 = vector.broadcast %cst_126 : f32 to vector<12x1xf32>
    %380 = arith.divf %379, %378 : vector<12x1xf32>
    %381 = vector.broadcast %380 : vector<12x1xf32> to vector<12x12xf32>
    %382 = arith.mulf %376, %381 : vector<12x12xf32>
    %383 = vector.extract_strided_slice %308 {offsets = [0, 24], sizes = [12, 8], strides = [1, 1]} : vector<12x32xf32> to vector<12x8xf32>
    %cst_127 = arith.constant dense<0.000000e+00> : vector<12x8xf32>
    %384 = tpu.matmul %382, %383, %cst_127 {dimension_numbers = #tpu.dot_dimension_numbers<[1], [0], [0], [1], [0, 0, 1, 1], [], []>} : vector<12x12xf32>, vector<12x8xf32>, vector<12x8xf32> -> vector<12x8xf32>
    %385 = vector.extract_strided_slice %295 {offsets = [24, 0], sizes = [8, 32], strides = [1, 1]} : vector<32x32xf32> to vector<8x32xf32>
    %cst_128 = arith.constant dense<0.000000e+00> : vector<12x32xf32>
    %386 = tpu.matmul %384, %385, %cst_128 {dimension_numbers = #tpu.dot_dimension_numbers<[1], [0], [0], [1], [0, 0, 1, 1], [], []>} : vector<12x8xf32>, vector<8x32xf32>, vector<12x32xf32> -> vector<12x32xf32>
    %387 = arith.addf %367, %386 : vector<12x32xf32>
    %388 = vector.broadcast %296 : vector<1x32xf32> to vector<12x32xf32>
    %389 = arith.addf %387, %388 : vector<12x32xf32>
    %390 = arith.addf %291, %389 : vector<12x32xf32>
    %391 = vector.extract_strided_slice %292 {offsets = [0, 0], sizes = [1, 32], strides = [1, 1]} : vector<4x32xf32> to vector<1x32xf32>
    %392 = vector.extract_strided_slice %292 {offsets = [1, 0], sizes = [1, 32], strides = [1, 1]} : vector<4x32xf32> to vector<1x32xf32>
    %cst_129 = arith.constant dense<0.000000e+00> : vector<12xf32>
    %393 = vector.multi_reduction <add>, %390, %cst_129 [1] : vector<12x32xf32> to vector<12xf32>
    %394 = vector.shape_cast %393 : vector<12xf32> to vector<12x1xf32>
    %cst_130 = arith.constant 3.200000e+01 : f32
    %395 = vector.broadcast %cst_130 : f32 to vector<12x1xf32>
    %396 = arith.divf %394, %395 : vector<12x1xf32>
    %397 = vector.broadcast %396 : vector<12x1xf32> to vector<12x32xf32>
    %398 = arith.subf %390, %397 : vector<12x32xf32>
    %399 = arith.mulf %398, %398 : vector<12x32xf32>
    %cst_131 = arith.constant dense<0.000000e+00> : vector<12xf32>
    %400 = vector.multi_reduction <add>, %399, %cst_131 [1] : vector<12x32xf32> to vector<12xf32>
    %401 = vector.shape_cast %400 : vector<12xf32> to vector<12x1xf32>
    %cst_132 = arith.constant 3.200000e+01 : f32
    %402 = vector.broadcast %cst_132 : f32 to vector<12x1xf32>
    %403 = arith.divf %401, %402 : vector<12x1xf32>
    %404 = vector.broadcast %396 : vector<12x1xf32> to vector<12x32xf32>
    %405 = arith.subf %390, %404 : vector<12x32xf32>
    %cst_133 = arith.constant 9.99999974E-6 : f32
    %406 = vector.broadcast %cst_133 : f32 to vector<12x1xf32>
    %407 = arith.addf %403, %406 : vector<12x1xf32>
    %408 = math.rsqrt %407 : vector<12x1xf32>
    %409 = vector.broadcast %408 : vector<12x1xf32> to vector<12x32xf32>
    %410 = arith.mulf %405, %409 : vector<12x32xf32>
    %411 = vector.broadcast %391 : vector<1x32xf32> to vector<12x32xf32>
    %412 = arith.mulf %410, %411 : vector<12x32xf32>
    %413 = vector.broadcast %392 : vector<1x32xf32> to vector<12x32xf32>
    %414 = arith.addf %412, %413 : vector<12x32xf32>
    %c336 = arith.constant 336 : index
    %c0_134 = arith.constant 0 : index
    %415 = vector.load %arg5[%c336, %c0_134] : memref<1016x128xf32, #tpu.memory_space<vmem>>, vector<32x64xf32>
    %c368 = arith.constant 368 : index
    %c0_135 = arith.constant 0 : index
    %416 = vector.load %arg5[%c368, %c0_135] : memref<1016x128xf32, #tpu.memory_space<vmem>>, vector<1x64xf32>
    %c376 = arith.constant 376 : index
    %c0_136 = arith.constant 0 : index
    %417 = vector.load %arg5[%c376, %c0_136] : memref<1016x128xf32, #tpu.memory_space<vmem>>, vector<64x32xf32>
    %c440 = arith.constant 440 : index
    %c0_137 = arith.constant 0 : index
    %418 = vector.load %arg5[%c440, %c0_137] : memref<1016x128xf32, #tpu.memory_space<vmem>>, vector<1x32xf32>
    %cst_138 = arith.constant dense<0.000000e+00> : vector<12x64xf32>
    %419 = tpu.matmul %414, %415, %cst_138 {dimension_numbers = #tpu.dot_dimension_numbers<[1], [0], [0], [1], [0, 0, 1, 1], [], []>} : vector<12x32xf32>, vector<32x64xf32>, vector<12x64xf32> -> vector<12x64xf32>
    %420 = vector.broadcast %416 : vector<1x64xf32> to vector<12x64xf32>
    %421 = arith.addf %419, %420 : vector<12x64xf32>
    %cst_139 = arith.constant 5.000000e-01 : f32
    %422 = vector.broadcast %cst_139 : f32 to vector<12x64xf32>
    %423 = arith.mulf %422, %421 : vector<12x64xf32>
    %cst_140 = arith.constant 0.707106769 : f32
    %424 = vector.broadcast %cst_140 : f32 to vector<12x64xf32>
    %425 = arith.mulf %421, %424 : vector<12x64xf32>
    %426 = math.absf %425 : vector<12x64xf32>
    %cst_141 = arith.constant 0.327591091 : f32
    %427 = vector.broadcast %cst_141 : f32 to vector<12x64xf32>
    %428 = arith.mulf %427, %426 : vector<12x64xf32>
    %cst_142 = arith.constant 1.000000e+00 : f32
    %429 = vector.broadcast %cst_142 : f32 to vector<12x64xf32>
    %430 = arith.addf %429, %428 : vector<12x64xf32>
    %cst_143 = arith.constant 1.000000e+00 : f32
    %431 = vector.broadcast %cst_143 : f32 to vector<12x64xf32>
    %432 = arith.divf %431, %430 : vector<12x64xf32>
    %cst_144 = arith.constant 1.06140542 : f32
    %433 = vector.broadcast %cst_144 : f32 to vector<12x64xf32>
    %434 = arith.mulf %433, %432 : vector<12x64xf32>
    %cst_145 = arith.constant -1.45315206 : f32
    %435 = vector.broadcast %cst_145 : f32 to vector<12x64xf32>
    %436 = arith.addf %434, %435 : vector<12x64xf32>
    %437 = arith.mulf %436, %432 : vector<12x64xf32>
    %cst_146 = arith.constant 1.42141378 : f32
    %438 = vector.broadcast %cst_146 : f32 to vector<12x64xf32>
    %439 = arith.addf %437, %438 : vector<12x64xf32>
    %440 = arith.mulf %439, %432 : vector<12x64xf32>
    %cst_147 = arith.constant -0.284496725 : f32
    %441 = vector.broadcast %cst_147 : f32 to vector<12x64xf32>
    %442 = arith.addf %440, %441 : vector<12x64xf32>
    %443 = arith.mulf %442, %432 : vector<12x64xf32>
    %cst_148 = arith.constant 0.254829586 : f32
    %444 = vector.broadcast %cst_148 : f32 to vector<12x64xf32>
    %445 = arith.addf %443, %444 : vector<12x64xf32>
    %446 = arith.mulf %445, %432 : vector<12x64xf32>
    %cst_149 = arith.constant 0.000000e+00 : f32
    %447 = vector.broadcast %cst_149 : f32 to vector<12x64xf32>
    %448 = arith.subf %447, %426 : vector<12x64xf32>
    %449 = arith.mulf %448, %426 : vector<12x64xf32>
    %450 = math.exp %449 : vector<12x64xf32>
    %451 = arith.mulf %446, %450 : vector<12x64xf32>
    %cst_150 = arith.constant 1.000000e+00 : f32
    %452 = vector.broadcast %cst_150 : f32 to vector<12x64xf32>
    %453 = arith.subf %452, %451 : vector<12x64xf32>
    %cst_151 = arith.constant 0.000000e+00 : f32
    %454 = vector.broadcast %cst_151 : f32 to vector<12x64xf32>
    %455 = arith.cmpf olt, %425, %454 : vector<12x64xf32>
    %cst_152 = arith.constant 0.000000e+00 : f32
    %456 = vector.broadcast %cst_152 : f32 to vector<12x64xf32>
    %457 = arith.subf %456, %453 : vector<12x64xf32>
    %458 = arith.select %455, %457, %453 : vector<12x64xi1>, vector<12x64xf32>
    %cst_153 = arith.constant 1.000000e+00 : f32
    %459 = vector.broadcast %cst_153 : f32 to vector<12x64xf32>
    %460 = arith.addf %459, %458 : vector<12x64xf32>
    %461 = arith.mulf %423, %460 : vector<12x64xf32>
    %cst_154 = arith.constant dense<0.000000e+00> : vector<12x32xf32>
    %462 = tpu.matmul %461, %417, %cst_154 {dimension_numbers = #tpu.dot_dimension_numbers<[1], [0], [0], [1], [0, 0, 1, 1], [], []>} : vector<12x64xf32>, vector<64x32xf32>, vector<12x32xf32> -> vector<12x32xf32>
    %463 = vector.broadcast %418 : vector<1x32xf32> to vector<12x32xf32>
    %464 = arith.addf %462, %463 : vector<12x32xf32>
    %465 = arith.addf %414, %464 : vector<12x32xf32>
    %466 = vector.extract_strided_slice %292 {offsets = [2, 0], sizes = [1, 32], strides = [1, 1]} : vector<4x32xf32> to vector<1x32xf32>
    %467 = vector.extract_strided_slice %292 {offsets = [3, 0], sizes = [1, 32], strides = [1, 1]} : vector<4x32xf32> to vector<1x32xf32>
    %cst_155 = arith.constant dense<0.000000e+00> : vector<12xf32>
    %468 = vector.multi_reduction <add>, %465, %cst_155 [1] : vector<12x32xf32> to vector<12xf32>
    %469 = vector.shape_cast %468 : vector<12xf32> to vector<12x1xf32>
    %cst_156 = arith.constant 3.200000e+01 : f32
    %470 = vector.broadcast %cst_156 : f32 to vector<12x1xf32>
    %471 = arith.divf %469, %470 : vector<12x1xf32>
    %472 = vector.broadcast %471 : vector<12x1xf32> to vector<12x32xf32>
    %473 = arith.subf %465, %472 : vector<12x32xf32>
    %474 = arith.mulf %473, %473 : vector<12x32xf32>
    %cst_157 = arith.constant dense<0.000000e+00> : vector<12xf32>
    %475 = vector.multi_reduction <add>, %474, %cst_157 [1] : vector<12x32xf32> to vector<12xf32>
    %476 = vector.shape_cast %475 : vector<12xf32> to vector<12x1xf32>
    %cst_158 = arith.constant 3.200000e+01 : f32
    %477 = vector.broadcast %cst_158 : f32 to vector<12x1xf32>
    %478 = arith.divf %476, %477 : vector<12x1xf32>
    %479 = vector.broadcast %471 : vector<12x1xf32> to vector<12x32xf32>
    %480 = arith.subf %465, %479 : vector<12x32xf32>
    %cst_159 = arith.constant 9.99999974E-6 : f32
    %481 = vector.broadcast %cst_159 : f32 to vector<12x1xf32>
    %482 = arith.addf %478, %481 : vector<12x1xf32>
    %483 = math.rsqrt %482 : vector<12x1xf32>
    %484 = vector.broadcast %483 : vector<12x1xf32> to vector<12x32xf32>
    %485 = arith.mulf %480, %484 : vector<12x32xf32>
    %486 = vector.broadcast %466 : vector<1x32xf32> to vector<12x32xf32>
    %487 = arith.mulf %485, %486 : vector<12x32xf32>
    %488 = vector.broadcast %467 : vector<1x32xf32> to vector<12x32xf32>
    %489 = arith.addf %487, %488 : vector<12x32xf32>
    %c40 = arith.constant 40 : index
    %c0_160 = arith.constant 0 : index
    %490 = vector.load %arg5[%c40, %c0_160] : memref<1016x128xf32, #tpu.memory_space<vmem>>, vector<2x32xf32>
    %491 = vector.extract_strided_slice %490 {offsets = [0, 0], sizes = [1, 32], strides = [1, 1]} : vector<2x32xf32> to vector<1x32xf32>
    %492 = vector.extract_strided_slice %490 {offsets = [1, 0], sizes = [1, 32], strides = [1, 1]} : vector<2x32xf32> to vector<1x32xf32>
    %cst_161 = arith.constant dense<0.000000e+00> : vector<12xf32>
    %493 = vector.multi_reduction <add>, %489, %cst_161 [1] : vector<12x32xf32> to vector<12xf32>
    %494 = vector.shape_cast %493 : vector<12xf32> to vector<12x1xf32>
    %cst_162 = arith.constant 3.200000e+01 : f32
    %495 = vector.broadcast %cst_162 : f32 to vector<12x1xf32>
    %496 = arith.divf %494, %495 : vector<12x1xf32>
    %497 = vector.broadcast %496 : vector<12x1xf32> to vector<12x32xf32>
    %498 = arith.subf %489, %497 : vector<12x32xf32>
    %499 = arith.mulf %498, %498 : vector<12x32xf32>
    %cst_163 = arith.constant dense<0.000000e+00> : vector<12xf32>
    %500 = vector.multi_reduction <add>, %499, %cst_163 [1] : vector<12x32xf32> to vector<12xf32>
    %501 = vector.shape_cast %500 : vector<12xf32> to vector<12x1xf32>
    %cst_164 = arith.constant 3.200000e+01 : f32
    %502 = vector.broadcast %cst_164 : f32 to vector<12x1xf32>
    %503 = arith.divf %501, %502 : vector<12x1xf32>
    %504 = vector.broadcast %496 : vector<12x1xf32> to vector<12x32xf32>
    %505 = arith.subf %489, %504 : vector<12x32xf32>
    %cst_165 = arith.constant 9.99999974E-6 : f32
    %506 = vector.broadcast %cst_165 : f32 to vector<12x1xf32>
    %507 = arith.addf %503, %506 : vector<12x1xf32>
    %508 = math.rsqrt %507 : vector<12x1xf32>
    %509 = vector.broadcast %508 : vector<12x1xf32> to vector<12x32xf32>
    %510 = arith.mulf %505, %509 : vector<12x32xf32>
    %511 = vector.broadcast %491 : vector<1x32xf32> to vector<12x32xf32>
    %512 = arith.mulf %510, %511 : vector<12x32xf32>
    %513 = vector.broadcast %492 : vector<1x32xf32> to vector<12x32xf32>
    %514 = arith.addf %512, %513 : vector<12x32xf32>
    %c728 = arith.constant 728 : index
    %c0_166 = arith.constant 0 : index
    %515 = vector.load %arg5[%c728, %c0_166] : memref<1016x128xf32, #tpu.memory_space<vmem>>, vector<6x32xf32>
    %c456 = arith.constant 456 : index
    %c0_167 = arith.constant 0 : index
    %516 = vector.load %arg5[%c456, %c0_167] : memref<1016x128xf32, #tpu.memory_space<vmem>>, vector<32x96xf32>
    %c488 = arith.constant 488 : index
    %c0_168 = arith.constant 0 : index
    %517 = vector.load %arg5[%c488, %c0_168] : memref<1016x128xf32, #tpu.memory_space<vmem>>, vector<1x96xf32>
    %c496 = arith.constant 496 : index
    %c0_169 = arith.constant 0 : index
    %518 = vector.load %arg5[%c496, %c0_169] : memref<1016x128xf32, #tpu.memory_space<vmem>>, vector<32x32xf32>
    %c528 = arith.constant 528 : index
    %c0_170 = arith.constant 0 : index
    %519 = vector.load %arg5[%c528, %c0_170] : memref<1016x128xf32, #tpu.memory_space<vmem>>, vector<1x32xf32>
    %520 = vector.extract_strided_slice %516 {offsets = [0, 0], sizes = [32, 32], strides = [1, 1]} : vector<32x96xf32> to vector<32x32xf32>
    %cst_171 = arith.constant dense<0.000000e+00> : vector<16x32xf32>
    %521 = tpu.matmul %93, %520, %cst_171 {dimension_numbers = #tpu.dot_dimension_numbers<[1], [0], [0], [1], [0, 0, 1, 1], [], []>} : vector<16x32xf32>, vector<32x32xf32>, vector<16x32xf32> -> vector<16x32xf32>
    %522 = vector.extract_strided_slice %517 {offsets = [0, 0], sizes = [1, 32], strides = [1, 1]} : vector<1x96xf32> to vector<1x32xf32>
    %523 = vector.broadcast %522 : vector<1x32xf32> to vector<16x32xf32>
    %524 = arith.addf %521, %523 : vector<16x32xf32>
    %525 = vector.extract_strided_slice %516 {offsets = [0, 32], sizes = [32, 64], strides = [1, 1]} : vector<32x96xf32> to vector<32x64xf32>
    %cst_172 = arith.constant dense<0.000000e+00> : vector<16x64xf32>
    %526 = tpu.matmul %93, %525, %cst_172 {dimension_numbers = #tpu.dot_dimension_numbers<[1], [0], [0], [1], [0, 0, 1, 1], [], []>} : vector<16x32xf32>, vector<32x64xf32>, vector<16x64xf32> -> vector<16x64xf32>
    %527 = vector.extract_strided_slice %517 {offsets = [0, 32], sizes = [1, 64], strides = [1, 1]} : vector<1x96xf32> to vector<1x64xf32>
    %528 = vector.broadcast %527 : vector<1x64xf32> to vector<16x64xf32>
    %529 = arith.addf %526, %528 : vector<16x64xf32>
    %530 = vector.extract_strided_slice %529 {offsets = [0, 0], sizes = [16, 32], strides = [1, 1]} : vector<16x64xf32> to vector<16x32xf32>
    %531 = vector.extract_strided_slice %529 {offsets = [0, 32], sizes = [16, 32], strides = [1, 1]} : vector<16x64xf32> to vector<16x32xf32>
    %532 = vector.extract_strided_slice %524 {offsets = [0, 0], sizes = [16, 8], strides = [1, 1]} : vector<16x32xf32> to vector<16x8xf32>
    %533 = vector.extract_strided_slice %530 {offsets = [0, 0], sizes = [16, 8], strides = [1, 1]} : vector<16x32xf32> to vector<16x8xf32>
    %cst_173 = arith.constant dense<0.000000e+00> : vector<16x16xf32>
    %534 = tpu.matmul %532, %533, %cst_173 {dimension_numbers = #tpu.dot_dimension_numbers<[1], [1], [0], [0], [0, 0, 1, 0], [], []>} : vector<16x8xf32>, vector<16x8xf32>, vector<16x16xf32> -> vector<16x16xf32>
    %535 = arith.addf %534, %55 : vector<16x16xf32>
    %cst_174 = arith.constant dense<0xFF800000> : vector<16xf32>
    %536 = vector.multi_reduction <maximumf>, %535, %cst_174 [1] : vector<16x16xf32> to vector<16xf32>
    %537 = vector.shape_cast %536 : vector<16xf32> to vector<16x1xf32>
    %538 = vector.broadcast %537 : vector<16x1xf32> to vector<16x16xf32>
    %539 = arith.subf %535, %538 : vector<16x16xf32>
    %540 = math.exp %539 : vector<16x16xf32>
    %cst_175 = arith.constant dense<0.000000e+00> : vector<16xf32>
    %541 = vector.multi_reduction <add>, %540, %cst_175 [1] : vector<16x16xf32> to vector<16xf32>
    %542 = vector.shape_cast %541 : vector<16xf32> to vector<16x1xf32>
    %cst_176 = arith.constant 1.000000e+00 : f32
    %543 = vector.broadcast %cst_176 : f32 to vector<16x1xf32>
    %544 = arith.divf %543, %542 : vector<16x1xf32>
    %545 = vector.broadcast %544 : vector<16x1xf32> to vector<16x16xf32>
    %546 = arith.mulf %540, %545 : vector<16x16xf32>
    %547 = vector.extract_strided_slice %531 {offsets = [0, 0], sizes = [16, 8], strides = [1, 1]} : vector<16x32xf32> to vector<16x8xf32>
    %cst_177 = arith.constant dense<0.000000e+00> : vector<16x8xf32>
    %548 = tpu.matmul %546, %547, %cst_177 {dimension_numbers = #tpu.dot_dimension_numbers<[1], [0], [0], [1], [0, 0, 1, 1], [], []>} : vector<16x16xf32>, vector<16x8xf32>, vector<16x8xf32> -> vector<16x8xf32>
    %549 = vector.extract_strided_slice %518 {offsets = [0, 0], sizes = [8, 32], strides = [1, 1]} : vector<32x32xf32> to vector<8x32xf32>
    %cst_178 = arith.constant dense<0.000000e+00> : vector<16x32xf32>
    %550 = tpu.matmul %548, %549, %cst_178 {dimension_numbers = #tpu.dot_dimension_numbers<[1], [0], [0], [1], [0, 0, 1, 1], [], []>} : vector<16x8xf32>, vector<8x32xf32>, vector<16x32xf32> -> vector<16x32xf32>
    %551 = vector.extract_strided_slice %524 {offsets = [0, 8], sizes = [16, 8], strides = [1, 1]} : vector<16x32xf32> to vector<16x8xf32>
    %552 = vector.extract_strided_slice %530 {offsets = [0, 8], sizes = [16, 8], strides = [1, 1]} : vector<16x32xf32> to vector<16x8xf32>
    %cst_179 = arith.constant dense<0.000000e+00> : vector<16x16xf32>
    %553 = tpu.matmul %551, %552, %cst_179 {dimension_numbers = #tpu.dot_dimension_numbers<[1], [1], [0], [0], [0, 0, 1, 0], [], []>} : vector<16x8xf32>, vector<16x8xf32>, vector<16x16xf32> -> vector<16x16xf32>
    %554 = arith.addf %553, %55 : vector<16x16xf32>
    %cst_180 = arith.constant dense<0xFF800000> : vector<16xf32>
    %555 = vector.multi_reduction <maximumf>, %554, %cst_180 [1] : vector<16x16xf32> to vector<16xf32>
    %556 = vector.shape_cast %555 : vector<16xf32> to vector<16x1xf32>
    %557 = vector.broadcast %556 : vector<16x1xf32> to vector<16x16xf32>
    %558 = arith.subf %554, %557 : vector<16x16xf32>
    %559 = math.exp %558 : vector<16x16xf32>
    %cst_181 = arith.constant dense<0.000000e+00> : vector<16xf32>
    %560 = vector.multi_reduction <add>, %559, %cst_181 [1] : vector<16x16xf32> to vector<16xf32>
    %561 = vector.shape_cast %560 : vector<16xf32> to vector<16x1xf32>
    %cst_182 = arith.constant 1.000000e+00 : f32
    %562 = vector.broadcast %cst_182 : f32 to vector<16x1xf32>
    %563 = arith.divf %562, %561 : vector<16x1xf32>
    %564 = vector.broadcast %563 : vector<16x1xf32> to vector<16x16xf32>
    %565 = arith.mulf %559, %564 : vector<16x16xf32>
    %566 = vector.extract_strided_slice %531 {offsets = [0, 8], sizes = [16, 8], strides = [1, 1]} : vector<16x32xf32> to vector<16x8xf32>
    %cst_183 = arith.constant dense<0.000000e+00> : vector<16x8xf32>
    %567 = tpu.matmul %565, %566, %cst_183 {dimension_numbers = #tpu.dot_dimension_numbers<[1], [0], [0], [1], [0, 0, 1, 1], [], []>} : vector<16x16xf32>, vector<16x8xf32>, vector<16x8xf32> -> vector<16x8xf32>
    %568 = vector.extract_strided_slice %518 {offsets = [8, 0], sizes = [8, 32], strides = [1, 1]} : vector<32x32xf32> to vector<8x32xf32>
    %cst_184 = arith.constant dense<0.000000e+00> : vector<16x32xf32>
    %569 = tpu.matmul %567, %568, %cst_184 {dimension_numbers = #tpu.dot_dimension_numbers<[1], [0], [0], [1], [0, 0, 1, 1], [], []>} : vector<16x8xf32>, vector<8x32xf32>, vector<16x32xf32> -> vector<16x32xf32>
    %570 = arith.addf %550, %569 : vector<16x32xf32>
    %571 = vector.extract_strided_slice %524 {offsets = [0, 16], sizes = [16, 8], strides = [1, 1]} : vector<16x32xf32> to vector<16x8xf32>
    %572 = vector.extract_strided_slice %530 {offsets = [0, 16], sizes = [16, 8], strides = [1, 1]} : vector<16x32xf32> to vector<16x8xf32>
    %cst_185 = arith.constant dense<0.000000e+00> : vector<16x16xf32>
    %573 = tpu.matmul %571, %572, %cst_185 {dimension_numbers = #tpu.dot_dimension_numbers<[1], [1], [0], [0], [0, 0, 1, 0], [], []>} : vector<16x8xf32>, vector<16x8xf32>, vector<16x16xf32> -> vector<16x16xf32>
    %574 = arith.addf %573, %55 : vector<16x16xf32>
    %cst_186 = arith.constant dense<0xFF800000> : vector<16xf32>
    %575 = vector.multi_reduction <maximumf>, %574, %cst_186 [1] : vector<16x16xf32> to vector<16xf32>
    %576 = vector.shape_cast %575 : vector<16xf32> to vector<16x1xf32>
    %577 = vector.broadcast %576 : vector<16x1xf32> to vector<16x16xf32>
    %578 = arith.subf %574, %577 : vector<16x16xf32>
    %579 = math.exp %578 : vector<16x16xf32>
    %cst_187 = arith.constant dense<0.000000e+00> : vector<16xf32>
    %580 = vector.multi_reduction <add>, %579, %cst_187 [1] : vector<16x16xf32> to vector<16xf32>
    %581 = vector.shape_cast %580 : vector<16xf32> to vector<16x1xf32>
    %cst_188 = arith.constant 1.000000e+00 : f32
    %582 = vector.broadcast %cst_188 : f32 to vector<16x1xf32>
    %583 = arith.divf %582, %581 : vector<16x1xf32>
    %584 = vector.broadcast %583 : vector<16x1xf32> to vector<16x16xf32>
    %585 = arith.mulf %579, %584 : vector<16x16xf32>
    %586 = vector.extract_strided_slice %531 {offsets = [0, 16], sizes = [16, 8], strides = [1, 1]} : vector<16x32xf32> to vector<16x8xf32>
    %cst_189 = arith.constant dense<0.000000e+00> : vector<16x8xf32>
    %587 = tpu.matmul %585, %586, %cst_189 {dimension_numbers = #tpu.dot_dimension_numbers<[1], [0], [0], [1], [0, 0, 1, 1], [], []>} : vector<16x16xf32>, vector<16x8xf32>, vector<16x8xf32> -> vector<16x8xf32>
    %588 = vector.extract_strided_slice %518 {offsets = [16, 0], sizes = [8, 32], strides = [1, 1]} : vector<32x32xf32> to vector<8x32xf32>
    %cst_190 = arith.constant dense<0.000000e+00> : vector<16x32xf32>
    %589 = tpu.matmul %587, %588, %cst_190 {dimension_numbers = #tpu.dot_dimension_numbers<[1], [0], [0], [1], [0, 0, 1, 1], [], []>} : vector<16x8xf32>, vector<8x32xf32>, vector<16x32xf32> -> vector<16x32xf32>
    %590 = arith.addf %570, %589 : vector<16x32xf32>
    %591 = vector.extract_strided_slice %524 {offsets = [0, 24], sizes = [16, 8], strides = [1, 1]} : vector<16x32xf32> to vector<16x8xf32>
    %592 = vector.extract_strided_slice %530 {offsets = [0, 24], sizes = [16, 8], strides = [1, 1]} : vector<16x32xf32> to vector<16x8xf32>
    %cst_191 = arith.constant dense<0.000000e+00> : vector<16x16xf32>
    %593 = tpu.matmul %591, %592, %cst_191 {dimension_numbers = #tpu.dot_dimension_numbers<[1], [1], [0], [0], [0, 0, 1, 0], [], []>} : vector<16x8xf32>, vector<16x8xf32>, vector<16x16xf32> -> vector<16x16xf32>
    %594 = arith.addf %593, %55 : vector<16x16xf32>
    %cst_192 = arith.constant dense<0xFF800000> : vector<16xf32>
    %595 = vector.multi_reduction <maximumf>, %594, %cst_192 [1] : vector<16x16xf32> to vector<16xf32>
    %596 = vector.shape_cast %595 : vector<16xf32> to vector<16x1xf32>
    %597 = vector.broadcast %596 : vector<16x1xf32> to vector<16x16xf32>
    %598 = arith.subf %594, %597 : vector<16x16xf32>
    %599 = math.exp %598 : vector<16x16xf32>
    %cst_193 = arith.constant dense<0.000000e+00> : vector<16xf32>
    %600 = vector.multi_reduction <add>, %599, %cst_193 [1] : vector<16x16xf32> to vector<16xf32>
    %601 = vector.shape_cast %600 : vector<16xf32> to vector<16x1xf32>
    %cst_194 = arith.constant 1.000000e+00 : f32
    %602 = vector.broadcast %cst_194 : f32 to vector<16x1xf32>
    %603 = arith.divf %602, %601 : vector<16x1xf32>
    %604 = vector.broadcast %603 : vector<16x1xf32> to vector<16x16xf32>
    %605 = arith.mulf %599, %604 : vector<16x16xf32>
    %606 = vector.extract_strided_slice %531 {offsets = [0, 24], sizes = [16, 8], strides = [1, 1]} : vector<16x32xf32> to vector<16x8xf32>
    %cst_195 = arith.constant dense<0.000000e+00> : vector<16x8xf32>
    %607 = tpu.matmul %605, %606, %cst_195 {dimension_numbers = #tpu.dot_dimension_numbers<[1], [0], [0], [1], [0, 0, 1, 1], [], []>} : vector<16x16xf32>, vector<16x8xf32>, vector<16x8xf32> -> vector<16x8xf32>
    %608 = vector.extract_strided_slice %518 {offsets = [24, 0], sizes = [8, 32], strides = [1, 1]} : vector<32x32xf32> to vector<8x32xf32>
    %cst_196 = arith.constant dense<0.000000e+00> : vector<16x32xf32>
    %609 = tpu.matmul %607, %608, %cst_196 {dimension_numbers = #tpu.dot_dimension_numbers<[1], [0], [0], [1], [0, 0, 1, 1], [], []>} : vector<16x8xf32>, vector<8x32xf32>, vector<16x32xf32> -> vector<16x32xf32>
    %610 = arith.addf %590, %609 : vector<16x32xf32>
    %611 = vector.broadcast %519 : vector<1x32xf32> to vector<16x32xf32>
    %612 = arith.addf %610, %611 : vector<16x32xf32>
    %613 = arith.addf %93, %612 : vector<16x32xf32>
    %614 = vector.extract_strided_slice %515 {offsets = [0, 0], sizes = [1, 32], strides = [1, 1]} : vector<6x32xf32> to vector<1x32xf32>
    %615 = vector.extract_strided_slice %515 {offsets = [1, 0], sizes = [1, 32], strides = [1, 1]} : vector<6x32xf32> to vector<1x32xf32>
    %cst_197 = arith.constant dense<0.000000e+00> : vector<16xf32>
    %616 = vector.multi_reduction <add>, %613, %cst_197 [1] : vector<16x32xf32> to vector<16xf32>
    %617 = vector.shape_cast %616 : vector<16xf32> to vector<16x1xf32>
    %cst_198 = arith.constant 3.200000e+01 : f32
    %618 = vector.broadcast %cst_198 : f32 to vector<16x1xf32>
    %619 = arith.divf %617, %618 : vector<16x1xf32>
    %620 = vector.broadcast %619 : vector<16x1xf32> to vector<16x32xf32>
    %621 = arith.subf %613, %620 : vector<16x32xf32>
    %622 = arith.mulf %621, %621 : vector<16x32xf32>
    %cst_199 = arith.constant dense<0.000000e+00> : vector<16xf32>
    %623 = vector.multi_reduction <add>, %622, %cst_199 [1] : vector<16x32xf32> to vector<16xf32>
    %624 = vector.shape_cast %623 : vector<16xf32> to vector<16x1xf32>
    %cst_200 = arith.constant 3.200000e+01 : f32
    %625 = vector.broadcast %cst_200 : f32 to vector<16x1xf32>
    %626 = arith.divf %624, %625 : vector<16x1xf32>
    %627 = vector.broadcast %619 : vector<16x1xf32> to vector<16x32xf32>
    %628 = arith.subf %613, %627 : vector<16x32xf32>
    %cst_201 = arith.constant 9.99999974E-6 : f32
    %629 = vector.broadcast %cst_201 : f32 to vector<16x1xf32>
    %630 = arith.addf %626, %629 : vector<16x1xf32>
    %631 = math.rsqrt %630 : vector<16x1xf32>
    %632 = vector.broadcast %631 : vector<16x1xf32> to vector<16x32xf32>
    %633 = arith.mulf %628, %632 : vector<16x32xf32>
    %634 = vector.broadcast %614 : vector<1x32xf32> to vector<16x32xf32>
    %635 = arith.mulf %633, %634 : vector<16x32xf32>
    %636 = vector.broadcast %615 : vector<1x32xf32> to vector<16x32xf32>
    %637 = arith.addf %635, %636 : vector<16x32xf32>
    %c536 = arith.constant 536 : index
    %c0_202 = arith.constant 0 : index
    %638 = vector.load %arg5[%c536, %c0_202] : memref<1016x128xf32, #tpu.memory_space<vmem>>, vector<32x96xf32>
    %c568 = arith.constant 568 : index
    %c0_203 = arith.constant 0 : index
    %639 = vector.load %arg5[%c568, %c0_203] : memref<1016x128xf32, #tpu.memory_space<vmem>>, vector<1x96xf32>
    %c576 = arith.constant 576 : index
    %c0_204 = arith.constant 0 : index
    %640 = vector.load %arg5[%c576, %c0_204] : memref<1016x128xf32, #tpu.memory_space<vmem>>, vector<32x32xf32>
    %c608 = arith.constant 608 : index
    %c0_205 = arith.constant 0 : index
    %641 = vector.load %arg5[%c608, %c0_205] : memref<1016x128xf32, #tpu.memory_space<vmem>>, vector<1x32xf32>
    %642 = vector.extract_strided_slice %638 {offsets = [0, 0], sizes = [32, 32], strides = [1, 1]} : vector<32x96xf32> to vector<32x32xf32>
    %cst_206 = arith.constant dense<0.000000e+00> : vector<16x32xf32>
    %643 = tpu.matmul %637, %642, %cst_206 {dimension_numbers = #tpu.dot_dimension_numbers<[1], [0], [0], [1], [0, 0, 1, 1], [], []>} : vector<16x32xf32>, vector<32x32xf32>, vector<16x32xf32> -> vector<16x32xf32>
    %644 = vector.extract_strided_slice %639 {offsets = [0, 0], sizes = [1, 32], strides = [1, 1]} : vector<1x96xf32> to vector<1x32xf32>
    %645 = vector.broadcast %644 : vector<1x32xf32> to vector<16x32xf32>
    %646 = arith.addf %643, %645 : vector<16x32xf32>
    %647 = vector.extract_strided_slice %638 {offsets = [0, 32], sizes = [32, 64], strides = [1, 1]} : vector<32x96xf32> to vector<32x64xf32>
    %cst_207 = arith.constant dense<0.000000e+00> : vector<12x64xf32>
    %648 = tpu.matmul %514, %647, %cst_207 {dimension_numbers = #tpu.dot_dimension_numbers<[1], [0], [0], [1], [0, 0, 1, 1], [], []>} : vector<12x32xf32>, vector<32x64xf32>, vector<12x64xf32> -> vector<12x64xf32>
    %649 = vector.extract_strided_slice %639 {offsets = [0, 32], sizes = [1, 64], strides = [1, 1]} : vector<1x96xf32> to vector<1x64xf32>
    %650 = vector.broadcast %649 : vector<1x64xf32> to vector<12x64xf32>
    %651 = arith.addf %648, %650 : vector<12x64xf32>
    %652 = vector.extract_strided_slice %651 {offsets = [0, 0], sizes = [12, 32], strides = [1, 1]} : vector<12x64xf32> to vector<12x32xf32>
    %653 = vector.extract_strided_slice %651 {offsets = [0, 32], sizes = [12, 32], strides = [1, 1]} : vector<12x64xf32> to vector<12x32xf32>
    %654 = vector.extract_strided_slice %646 {offsets = [0, 0], sizes = [16, 8], strides = [1, 1]} : vector<16x32xf32> to vector<16x8xf32>
    %655 = vector.extract_strided_slice %652 {offsets = [0, 0], sizes = [12, 8], strides = [1, 1]} : vector<12x32xf32> to vector<12x8xf32>
    %cst_208 = arith.constant dense<0.000000e+00> : vector<16x12xf32>
    %656 = tpu.matmul %654, %655, %cst_208 {dimension_numbers = #tpu.dot_dimension_numbers<[1], [1], [0], [0], [0, 0, 1, 0], [], []>} : vector<16x8xf32>, vector<12x8xf32>, vector<16x12xf32> -> vector<16x12xf32>
    %657 = arith.addf %656, %83 : vector<16x12xf32>
    %cst_209 = arith.constant dense<0xFF800000> : vector<16xf32>
    %658 = vector.multi_reduction <maximumf>, %657, %cst_209 [1] : vector<16x12xf32> to vector<16xf32>
    %659 = vector.shape_cast %658 : vector<16xf32> to vector<16x1xf32>
    %660 = vector.broadcast %659 : vector<16x1xf32> to vector<16x12xf32>
    %661 = arith.subf %657, %660 : vector<16x12xf32>
    %662 = math.exp %661 : vector<16x12xf32>
    %cst_210 = arith.constant dense<0.000000e+00> : vector<16xf32>
    %663 = vector.multi_reduction <add>, %662, %cst_210 [1] : vector<16x12xf32> to vector<16xf32>
    %664 = vector.shape_cast %663 : vector<16xf32> to vector<16x1xf32>
    %cst_211 = arith.constant 1.000000e+00 : f32
    %665 = vector.broadcast %cst_211 : f32 to vector<16x1xf32>
    %666 = arith.divf %665, %664 : vector<16x1xf32>
    %667 = vector.broadcast %666 : vector<16x1xf32> to vector<16x12xf32>
    %668 = arith.mulf %662, %667 : vector<16x12xf32>
    %669 = vector.extract_strided_slice %653 {offsets = [0, 0], sizes = [12, 8], strides = [1, 1]} : vector<12x32xf32> to vector<12x8xf32>
    %cst_212 = arith.constant dense<0.000000e+00> : vector<16x8xf32>
    %670 = tpu.matmul %668, %669, %cst_212 {dimension_numbers = #tpu.dot_dimension_numbers<[1], [0], [0], [1], [0, 0, 1, 1], [], []>} : vector<16x12xf32>, vector<12x8xf32>, vector<16x8xf32> -> vector<16x8xf32>
    %671 = vector.extract_strided_slice %640 {offsets = [0, 0], sizes = [8, 32], strides = [1, 1]} : vector<32x32xf32> to vector<8x32xf32>
    %cst_213 = arith.constant dense<0.000000e+00> : vector<16x32xf32>
    %672 = tpu.matmul %670, %671, %cst_213 {dimension_numbers = #tpu.dot_dimension_numbers<[1], [0], [0], [1], [0, 0, 1, 1], [], []>} : vector<16x8xf32>, vector<8x32xf32>, vector<16x32xf32> -> vector<16x32xf32>
    %673 = vector.extract_strided_slice %646 {offsets = [0, 8], sizes = [16, 8], strides = [1, 1]} : vector<16x32xf32> to vector<16x8xf32>
    %674 = vector.extract_strided_slice %652 {offsets = [0, 8], sizes = [12, 8], strides = [1, 1]} : vector<12x32xf32> to vector<12x8xf32>
    %cst_214 = arith.constant dense<0.000000e+00> : vector<16x12xf32>
    %675 = tpu.matmul %673, %674, %cst_214 {dimension_numbers = #tpu.dot_dimension_numbers<[1], [1], [0], [0], [0, 0, 1, 0], [], []>} : vector<16x8xf32>, vector<12x8xf32>, vector<16x12xf32> -> vector<16x12xf32>
    %676 = arith.addf %675, %83 : vector<16x12xf32>
    %cst_215 = arith.constant dense<0xFF800000> : vector<16xf32>
    %677 = vector.multi_reduction <maximumf>, %676, %cst_215 [1] : vector<16x12xf32> to vector<16xf32>
    %678 = vector.shape_cast %677 : vector<16xf32> to vector<16x1xf32>
    %679 = vector.broadcast %678 : vector<16x1xf32> to vector<16x12xf32>
    %680 = arith.subf %676, %679 : vector<16x12xf32>
    %681 = math.exp %680 : vector<16x12xf32>
    %cst_216 = arith.constant dense<0.000000e+00> : vector<16xf32>
    %682 = vector.multi_reduction <add>, %681, %cst_216 [1] : vector<16x12xf32> to vector<16xf32>
    %683 = vector.shape_cast %682 : vector<16xf32> to vector<16x1xf32>
    %cst_217 = arith.constant 1.000000e+00 : f32
    %684 = vector.broadcast %cst_217 : f32 to vector<16x1xf32>
    %685 = arith.divf %684, %683 : vector<16x1xf32>
    %686 = vector.broadcast %685 : vector<16x1xf32> to vector<16x12xf32>
    %687 = arith.mulf %681, %686 : vector<16x12xf32>
    %688 = vector.extract_strided_slice %653 {offsets = [0, 8], sizes = [12, 8], strides = [1, 1]} : vector<12x32xf32> to vector<12x8xf32>
    %cst_218 = arith.constant dense<0.000000e+00> : vector<16x8xf32>
    %689 = tpu.matmul %687, %688, %cst_218 {dimension_numbers = #tpu.dot_dimension_numbers<[1], [0], [0], [1], [0, 0, 1, 1], [], []>} : vector<16x12xf32>, vector<12x8xf32>, vector<16x8xf32> -> vector<16x8xf32>
    %690 = vector.extract_strided_slice %640 {offsets = [8, 0], sizes = [8, 32], strides = [1, 1]} : vector<32x32xf32> to vector<8x32xf32>
    %cst_219 = arith.constant dense<0.000000e+00> : vector<16x32xf32>
    %691 = tpu.matmul %689, %690, %cst_219 {dimension_numbers = #tpu.dot_dimension_numbers<[1], [0], [0], [1], [0, 0, 1, 1], [], []>} : vector<16x8xf32>, vector<8x32xf32>, vector<16x32xf32> -> vector<16x32xf32>
    %692 = arith.addf %672, %691 : vector<16x32xf32>
    %693 = vector.extract_strided_slice %646 {offsets = [0, 16], sizes = [16, 8], strides = [1, 1]} : vector<16x32xf32> to vector<16x8xf32>
    %694 = vector.extract_strided_slice %652 {offsets = [0, 16], sizes = [12, 8], strides = [1, 1]} : vector<12x32xf32> to vector<12x8xf32>
    %cst_220 = arith.constant dense<0.000000e+00> : vector<16x12xf32>
    %695 = tpu.matmul %693, %694, %cst_220 {dimension_numbers = #tpu.dot_dimension_numbers<[1], [1], [0], [0], [0, 0, 1, 0], [], []>} : vector<16x8xf32>, vector<12x8xf32>, vector<16x12xf32> -> vector<16x12xf32>
    %696 = arith.addf %695, %83 : vector<16x12xf32>
    %cst_221 = arith.constant dense<0xFF800000> : vector<16xf32>
    %697 = vector.multi_reduction <maximumf>, %696, %cst_221 [1] : vector<16x12xf32> to vector<16xf32>
    %698 = vector.shape_cast %697 : vector<16xf32> to vector<16x1xf32>
    %699 = vector.broadcast %698 : vector<16x1xf32> to vector<16x12xf32>
    %700 = arith.subf %696, %699 : vector<16x12xf32>
    %701 = math.exp %700 : vector<16x12xf32>
    %cst_222 = arith.constant dense<0.000000e+00> : vector<16xf32>
    %702 = vector.multi_reduction <add>, %701, %cst_222 [1] : vector<16x12xf32> to vector<16xf32>
    %703 = vector.shape_cast %702 : vector<16xf32> to vector<16x1xf32>
    %cst_223 = arith.constant 1.000000e+00 : f32
    %704 = vector.broadcast %cst_223 : f32 to vector<16x1xf32>
    %705 = arith.divf %704, %703 : vector<16x1xf32>
    %706 = vector.broadcast %705 : vector<16x1xf32> to vector<16x12xf32>
    %707 = arith.mulf %701, %706 : vector<16x12xf32>
    %708 = vector.extract_strided_slice %653 {offsets = [0, 16], sizes = [12, 8], strides = [1, 1]} : vector<12x32xf32> to vector<12x8xf32>
    %cst_224 = arith.constant dense<0.000000e+00> : vector<16x8xf32>
    %709 = tpu.matmul %707, %708, %cst_224 {dimension_numbers = #tpu.dot_dimension_numbers<[1], [0], [0], [1], [0, 0, 1, 1], [], []>} : vector<16x12xf32>, vector<12x8xf32>, vector<16x8xf32> -> vector<16x8xf32>
    %710 = vector.extract_strided_slice %640 {offsets = [16, 0], sizes = [8, 32], strides = [1, 1]} : vector<32x32xf32> to vector<8x32xf32>
    %cst_225 = arith.constant dense<0.000000e+00> : vector<16x32xf32>
    %711 = tpu.matmul %709, %710, %cst_225 {dimension_numbers = #tpu.dot_dimension_numbers<[1], [0], [0], [1], [0, 0, 1, 1], [], []>} : vector<16x8xf32>, vector<8x32xf32>, vector<16x32xf32> -> vector<16x32xf32>
    %712 = arith.addf %692, %711 : vector<16x32xf32>
    %713 = vector.extract_strided_slice %646 {offsets = [0, 24], sizes = [16, 8], strides = [1, 1]} : vector<16x32xf32> to vector<16x8xf32>
    %714 = vector.extract_strided_slice %652 {offsets = [0, 24], sizes = [12, 8], strides = [1, 1]} : vector<12x32xf32> to vector<12x8xf32>
    %cst_226 = arith.constant dense<0.000000e+00> : vector<16x12xf32>
    %715 = tpu.matmul %713, %714, %cst_226 {dimension_numbers = #tpu.dot_dimension_numbers<[1], [1], [0], [0], [0, 0, 1, 0], [], []>} : vector<16x8xf32>, vector<12x8xf32>, vector<16x12xf32> -> vector<16x12xf32>
    %716 = arith.addf %715, %83 : vector<16x12xf32>
    %cst_227 = arith.constant dense<0xFF800000> : vector<16xf32>
    %717 = vector.multi_reduction <maximumf>, %716, %cst_227 [1] : vector<16x12xf32> to vector<16xf32>
    %718 = vector.shape_cast %717 : vector<16xf32> to vector<16x1xf32>
    %719 = vector.broadcast %718 : vector<16x1xf32> to vector<16x12xf32>
    %720 = arith.subf %716, %719 : vector<16x12xf32>
    %721 = math.exp %720 : vector<16x12xf32>
    %cst_228 = arith.constant dense<0.000000e+00> : vector<16xf32>
    %722 = vector.multi_reduction <add>, %721, %cst_228 [1] : vector<16x12xf32> to vector<16xf32>
    %723 = vector.shape_cast %722 : vector<16xf32> to vector<16x1xf32>
    %cst_229 = arith.constant 1.000000e+00 : f32
    %724 = vector.broadcast %cst_229 : f32 to vector<16x1xf32>
    %725 = arith.divf %724, %723 : vector<16x1xf32>
    %726 = vector.broadcast %725 : vector<16x1xf32> to vector<16x12xf32>
    %727 = arith.mulf %721, %726 : vector<16x12xf32>
    %728 = vector.extract_strided_slice %653 {offsets = [0, 24], sizes = [12, 8], strides = [1, 1]} : vector<12x32xf32> to vector<12x8xf32>
    %cst_230 = arith.constant dense<0.000000e+00> : vector<16x8xf32>
    %729 = tpu.matmul %727, %728, %cst_230 {dimension_numbers = #tpu.dot_dimension_numbers<[1], [0], [0], [1], [0, 0, 1, 1], [], []>} : vector<16x12xf32>, vector<12x8xf32>, vector<16x8xf32> -> vector<16x8xf32>
    %730 = vector.extract_strided_slice %640 {offsets = [24, 0], sizes = [8, 32], strides = [1, 1]} : vector<32x32xf32> to vector<8x32xf32>
    %cst_231 = arith.constant dense<0.000000e+00> : vector<16x32xf32>
    %731 = tpu.matmul %729, %730, %cst_231 {dimension_numbers = #tpu.dot_dimension_numbers<[1], [0], [0], [1], [0, 0, 1, 1], [], []>} : vector<16x8xf32>, vector<8x32xf32>, vector<16x32xf32> -> vector<16x32xf32>
    %732 = arith.addf %712, %731 : vector<16x32xf32>
    %733 = vector.broadcast %641 : vector<1x32xf32> to vector<16x32xf32>
    %734 = arith.addf %732, %733 : vector<16x32xf32>
    %735 = arith.addf %637, %734 : vector<16x32xf32>
    %736 = vector.extract_strided_slice %515 {offsets = [2, 0], sizes = [1, 32], strides = [1, 1]} : vector<6x32xf32> to vector<1x32xf32>
    %737 = vector.extract_strided_slice %515 {offsets = [3, 0], sizes = [1, 32], strides = [1, 1]} : vector<6x32xf32> to vector<1x32xf32>
    %cst_232 = arith.constant dense<0.000000e+00> : vector<16xf32>
    %738 = vector.multi_reduction <add>, %735, %cst_232 [1] : vector<16x32xf32> to vector<16xf32>
    %739 = vector.shape_cast %738 : vector<16xf32> to vector<16x1xf32>
    %cst_233 = arith.constant 3.200000e+01 : f32
    %740 = vector.broadcast %cst_233 : f32 to vector<16x1xf32>
    %741 = arith.divf %739, %740 : vector<16x1xf32>
    %742 = vector.broadcast %741 : vector<16x1xf32> to vector<16x32xf32>
    %743 = arith.subf %735, %742 : vector<16x32xf32>
    %744 = arith.mulf %743, %743 : vector<16x32xf32>
    %cst_234 = arith.constant dense<0.000000e+00> : vector<16xf32>
    %745 = vector.multi_reduction <add>, %744, %cst_234 [1] : vector<16x32xf32> to vector<16xf32>
    %746 = vector.shape_cast %745 : vector<16xf32> to vector<16x1xf32>
    %cst_235 = arith.constant 3.200000e+01 : f32
    %747 = vector.broadcast %cst_235 : f32 to vector<16x1xf32>
    %748 = arith.divf %746, %747 : vector<16x1xf32>
    %749 = vector.broadcast %741 : vector<16x1xf32> to vector<16x32xf32>
    %750 = arith.subf %735, %749 : vector<16x32xf32>
    %cst_236 = arith.constant 9.99999974E-6 : f32
    %751 = vector.broadcast %cst_236 : f32 to vector<16x1xf32>
    %752 = arith.addf %748, %751 : vector<16x1xf32>
    %753 = math.rsqrt %752 : vector<16x1xf32>
    %754 = vector.broadcast %753 : vector<16x1xf32> to vector<16x32xf32>
    %755 = arith.mulf %750, %754 : vector<16x32xf32>
    %756 = vector.broadcast %736 : vector<1x32xf32> to vector<16x32xf32>
    %757 = arith.mulf %755, %756 : vector<16x32xf32>
    %758 = vector.broadcast %737 : vector<1x32xf32> to vector<16x32xf32>
    %759 = arith.addf %757, %758 : vector<16x32xf32>
    %c616 = arith.constant 616 : index
    %c0_237 = arith.constant 0 : index
    %760 = vector.load %arg5[%c616, %c0_237] : memref<1016x128xf32, #tpu.memory_space<vmem>>, vector<32x64xf32>
    %c648 = arith.constant 648 : index
    %c0_238 = arith.constant 0 : index
    %761 = vector.load %arg5[%c648, %c0_238] : memref<1016x128xf32, #tpu.memory_space<vmem>>, vector<1x64xf32>
    %c656 = arith.constant 656 : index
    %c0_239 = arith.constant 0 : index
    %762 = vector.load %arg5[%c656, %c0_239] : memref<1016x128xf32, #tpu.memory_space<vmem>>, vector<64x32xf32>
    %c720 = arith.constant 720 : index
    %c0_240 = arith.constant 0 : index
    %763 = vector.load %arg5[%c720, %c0_240] : memref<1016x128xf32, #tpu.memory_space<vmem>>, vector<1x32xf32>
    %cst_241 = arith.constant dense<0.000000e+00> : vector<16x64xf32>
    %764 = tpu.matmul %759, %760, %cst_241 {dimension_numbers = #tpu.dot_dimension_numbers<[1], [0], [0], [1], [0, 0, 1, 1], [], []>} : vector<16x32xf32>, vector<32x64xf32>, vector<16x64xf32> -> vector<16x64xf32>
    %765 = vector.broadcast %761 : vector<1x64xf32> to vector<16x64xf32>
    %766 = arith.addf %764, %765 : vector<16x64xf32>
    %cst_242 = arith.constant 5.000000e-01 : f32
    %767 = vector.broadcast %cst_242 : f32 to vector<16x64xf32>
    %768 = arith.mulf %767, %766 : vector<16x64xf32>
    %cst_243 = arith.constant 0.707106769 : f32
    %769 = vector.broadcast %cst_243 : f32 to vector<16x64xf32>
    %770 = arith.mulf %766, %769 : vector<16x64xf32>
    %771 = math.absf %770 : vector<16x64xf32>
    %cst_244 = arith.constant 0.327591091 : f32
    %772 = vector.broadcast %cst_244 : f32 to vector<16x64xf32>
    %773 = arith.mulf %772, %771 : vector<16x64xf32>
    %cst_245 = arith.constant 1.000000e+00 : f32
    %774 = vector.broadcast %cst_245 : f32 to vector<16x64xf32>
    %775 = arith.addf %774, %773 : vector<16x64xf32>
    %cst_246 = arith.constant 1.000000e+00 : f32
    %776 = vector.broadcast %cst_246 : f32 to vector<16x64xf32>
    %777 = arith.divf %776, %775 : vector<16x64xf32>
    %cst_247 = arith.constant 1.06140542 : f32
    %778 = vector.broadcast %cst_247 : f32 to vector<16x64xf32>
    %779 = arith.mulf %778, %777 : vector<16x64xf32>
    %cst_248 = arith.constant -1.45315206 : f32
    %780 = vector.broadcast %cst_248 : f32 to vector<16x64xf32>
    %781 = arith.addf %779, %780 : vector<16x64xf32>
    %782 = arith.mulf %781, %777 : vector<16x64xf32>
    %cst_249 = arith.constant 1.42141378 : f32
    %783 = vector.broadcast %cst_249 : f32 to vector<16x64xf32>
    %784 = arith.addf %782, %783 : vector<16x64xf32>
    %785 = arith.mulf %784, %777 : vector<16x64xf32>
    %cst_250 = arith.constant -0.284496725 : f32
    %786 = vector.broadcast %cst_250 : f32 to vector<16x64xf32>
    %787 = arith.addf %785, %786 : vector<16x64xf32>
    %788 = arith.mulf %787, %777 : vector<16x64xf32>
    %cst_251 = arith.constant 0.254829586 : f32
    %789 = vector.broadcast %cst_251 : f32 to vector<16x64xf32>
    %790 = arith.addf %788, %789 : vector<16x64xf32>
    %791 = arith.mulf %790, %777 : vector<16x64xf32>
    %cst_252 = arith.constant 0.000000e+00 : f32
    %792 = vector.broadcast %cst_252 : f32 to vector<16x64xf32>
    %793 = arith.subf %792, %771 : vector<16x64xf32>
    %794 = arith.mulf %793, %771 : vector<16x64xf32>
    %795 = math.exp %794 : vector<16x64xf32>
    %796 = arith.mulf %791, %795 : vector<16x64xf32>
    %cst_253 = arith.constant 1.000000e+00 : f32
    %797 = vector.broadcast %cst_253 : f32 to vector<16x64xf32>
    %798 = arith.subf %797, %796 : vector<16x64xf32>
    %cst_254 = arith.constant 0.000000e+00 : f32
    %799 = vector.broadcast %cst_254 : f32 to vector<16x64xf32>
    %800 = arith.cmpf olt, %770, %799 : vector<16x64xf32>
    %cst_255 = arith.constant 0.000000e+00 : f32
    %801 = vector.broadcast %cst_255 : f32 to vector<16x64xf32>
    %802 = arith.subf %801, %798 : vector<16x64xf32>
    %803 = arith.select %800, %802, %798 : vector<16x64xi1>, vector<16x64xf32>
    %cst_256 = arith.constant 1.000000e+00 : f32
    %804 = vector.broadcast %cst_256 : f32 to vector<16x64xf32>
    %805 = arith.addf %804, %803 : vector<16x64xf32>
    %806 = arith.mulf %768, %805 : vector<16x64xf32>
    %cst_257 = arith.constant dense<0.000000e+00> : vector<16x32xf32>
    %807 = tpu.matmul %806, %762, %cst_257 {dimension_numbers = #tpu.dot_dimension_numbers<[1], [0], [0], [1], [0, 0, 1, 1], [], []>} : vector<16x64xf32>, vector<64x32xf32>, vector<16x32xf32> -> vector<16x32xf32>
    %808 = vector.broadcast %763 : vector<1x32xf32> to vector<16x32xf32>
    %809 = arith.addf %807, %808 : vector<16x32xf32>
    %810 = arith.addf %759, %809 : vector<16x32xf32>
    %811 = vector.extract_strided_slice %515 {offsets = [4, 0], sizes = [1, 32], strides = [1, 1]} : vector<6x32xf32> to vector<1x32xf32>
    %812 = vector.extract_strided_slice %515 {offsets = [5, 0], sizes = [1, 32], strides = [1, 1]} : vector<6x32xf32> to vector<1x32xf32>
    %cst_258 = arith.constant dense<0.000000e+00> : vector<16xf32>
    %813 = vector.multi_reduction <add>, %810, %cst_258 [1] : vector<16x32xf32> to vector<16xf32>
    %814 = vector.shape_cast %813 : vector<16xf32> to vector<16x1xf32>
    %cst_259 = arith.constant 3.200000e+01 : f32
    %815 = vector.broadcast %cst_259 : f32 to vector<16x1xf32>
    %816 = arith.divf %814, %815 : vector<16x1xf32>
    %817 = vector.broadcast %816 : vector<16x1xf32> to vector<16x32xf32>
    %818 = arith.subf %810, %817 : vector<16x32xf32>
    %819 = arith.mulf %818, %818 : vector<16x32xf32>
    %cst_260 = arith.constant dense<0.000000e+00> : vector<16xf32>
    %820 = vector.multi_reduction <add>, %819, %cst_260 [1] : vector<16x32xf32> to vector<16xf32>
    %821 = vector.shape_cast %820 : vector<16xf32> to vector<16x1xf32>
    %cst_261 = arith.constant 3.200000e+01 : f32
    %822 = vector.broadcast %cst_261 : f32 to vector<16x1xf32>
    %823 = arith.divf %821, %822 : vector<16x1xf32>
    %824 = vector.broadcast %816 : vector<16x1xf32> to vector<16x32xf32>
    %825 = arith.subf %810, %824 : vector<16x32xf32>
    %cst_262 = arith.constant 9.99999974E-6 : f32
    %826 = vector.broadcast %cst_262 : f32 to vector<16x1xf32>
    %827 = arith.addf %823, %826 : vector<16x1xf32>
    %828 = math.rsqrt %827 : vector<16x1xf32>
    %829 = vector.broadcast %828 : vector<16x1xf32> to vector<16x32xf32>
    %830 = arith.mulf %825, %829 : vector<16x32xf32>
    %831 = vector.broadcast %811 : vector<1x32xf32> to vector<16x32xf32>
    %832 = arith.mulf %830, %831 : vector<16x32xf32>
    %833 = vector.broadcast %812 : vector<1x32xf32> to vector<16x32xf32>
    %834 = arith.addf %832, %833 : vector<16x32xf32>
    %c1008 = arith.constant 1008 : index
    %c0_263 = arith.constant 0 : index
    %835 = vector.load %arg5[%c1008, %c0_263] : memref<1016x128xf32, #tpu.memory_space<vmem>>, vector<6x32xf32>
    %c736 = arith.constant 736 : index
    %c0_264 = arith.constant 0 : index
    %836 = vector.load %arg5[%c736, %c0_264] : memref<1016x128xf32, #tpu.memory_space<vmem>>, vector<32x96xf32>
    %c768 = arith.constant 768 : index
    %c0_265 = arith.constant 0 : index
    %837 = vector.load %arg5[%c768, %c0_265] : memref<1016x128xf32, #tpu.memory_space<vmem>>, vector<1x96xf32>
    %c776 = arith.constant 776 : index
    %c0_266 = arith.constant 0 : index
    %838 = vector.load %arg5[%c776, %c0_266] : memref<1016x128xf32, #tpu.memory_space<vmem>>, vector<32x32xf32>
    %c808 = arith.constant 808 : index
    %c0_267 = arith.constant 0 : index
    %839 = vector.load %arg5[%c808, %c0_267] : memref<1016x128xf32, #tpu.memory_space<vmem>>, vector<1x32xf32>
    %840 = vector.extract_strided_slice %836 {offsets = [0, 0], sizes = [32, 32], strides = [1, 1]} : vector<32x96xf32> to vector<32x32xf32>
    %cst_268 = arith.constant dense<0.000000e+00> : vector<16x32xf32>
    %841 = tpu.matmul %834, %840, %cst_268 {dimension_numbers = #tpu.dot_dimension_numbers<[1], [0], [0], [1], [0, 0, 1, 1], [], []>} : vector<16x32xf32>, vector<32x32xf32>, vector<16x32xf32> -> vector<16x32xf32>
    %842 = vector.extract_strided_slice %837 {offsets = [0, 0], sizes = [1, 32], strides = [1, 1]} : vector<1x96xf32> to vector<1x32xf32>
    %843 = vector.broadcast %842 : vector<1x32xf32> to vector<16x32xf32>
    %844 = arith.addf %841, %843 : vector<16x32xf32>
    %845 = vector.extract_strided_slice %836 {offsets = [0, 32], sizes = [32, 64], strides = [1, 1]} : vector<32x96xf32> to vector<32x64xf32>
    %cst_269 = arith.constant dense<0.000000e+00> : vector<16x64xf32>
    %846 = tpu.matmul %834, %845, %cst_269 {dimension_numbers = #tpu.dot_dimension_numbers<[1], [0], [0], [1], [0, 0, 1, 1], [], []>} : vector<16x32xf32>, vector<32x64xf32>, vector<16x64xf32> -> vector<16x64xf32>
    %847 = vector.extract_strided_slice %837 {offsets = [0, 32], sizes = [1, 64], strides = [1, 1]} : vector<1x96xf32> to vector<1x64xf32>
    %848 = vector.broadcast %847 : vector<1x64xf32> to vector<16x64xf32>
    %849 = arith.addf %846, %848 : vector<16x64xf32>
    %850 = vector.extract_strided_slice %849 {offsets = [0, 0], sizes = [16, 32], strides = [1, 1]} : vector<16x64xf32> to vector<16x32xf32>
    %851 = vector.extract_strided_slice %849 {offsets = [0, 32], sizes = [16, 32], strides = [1, 1]} : vector<16x64xf32> to vector<16x32xf32>
    %852 = vector.extract_strided_slice %844 {offsets = [0, 0], sizes = [16, 8], strides = [1, 1]} : vector<16x32xf32> to vector<16x8xf32>
    %853 = vector.extract_strided_slice %850 {offsets = [0, 0], sizes = [16, 8], strides = [1, 1]} : vector<16x32xf32> to vector<16x8xf32>
    %cst_270 = arith.constant dense<0.000000e+00> : vector<16x16xf32>
    %854 = tpu.matmul %852, %853, %cst_270 {dimension_numbers = #tpu.dot_dimension_numbers<[1], [1], [0], [0], [0, 0, 1, 0], [], []>} : vector<16x8xf32>, vector<16x8xf32>, vector<16x16xf32> -> vector<16x16xf32>
    %855 = arith.addf %854, %55 : vector<16x16xf32>
    %cst_271 = arith.constant dense<0xFF800000> : vector<16xf32>
    %856 = vector.multi_reduction <maximumf>, %855, %cst_271 [1] : vector<16x16xf32> to vector<16xf32>
    %857 = vector.shape_cast %856 : vector<16xf32> to vector<16x1xf32>
    %858 = vector.broadcast %857 : vector<16x1xf32> to vector<16x16xf32>
    %859 = arith.subf %855, %858 : vector<16x16xf32>
    %860 = math.exp %859 : vector<16x16xf32>
    %cst_272 = arith.constant dense<0.000000e+00> : vector<16xf32>
    %861 = vector.multi_reduction <add>, %860, %cst_272 [1] : vector<16x16xf32> to vector<16xf32>
    %862 = vector.shape_cast %861 : vector<16xf32> to vector<16x1xf32>
    %cst_273 = arith.constant 1.000000e+00 : f32
    %863 = vector.broadcast %cst_273 : f32 to vector<16x1xf32>
    %864 = arith.divf %863, %862 : vector<16x1xf32>
    %865 = vector.broadcast %864 : vector<16x1xf32> to vector<16x16xf32>
    %866 = arith.mulf %860, %865 : vector<16x16xf32>
    %867 = vector.extract_strided_slice %851 {offsets = [0, 0], sizes = [16, 8], strides = [1, 1]} : vector<16x32xf32> to vector<16x8xf32>
    %cst_274 = arith.constant dense<0.000000e+00> : vector<16x8xf32>
    %868 = tpu.matmul %866, %867, %cst_274 {dimension_numbers = #tpu.dot_dimension_numbers<[1], [0], [0], [1], [0, 0, 1, 1], [], []>} : vector<16x16xf32>, vector<16x8xf32>, vector<16x8xf32> -> vector<16x8xf32>
    %869 = vector.extract_strided_slice %838 {offsets = [0, 0], sizes = [8, 32], strides = [1, 1]} : vector<32x32xf32> to vector<8x32xf32>
    %cst_275 = arith.constant dense<0.000000e+00> : vector<16x32xf32>
    %870 = tpu.matmul %868, %869, %cst_275 {dimension_numbers = #tpu.dot_dimension_numbers<[1], [0], [0], [1], [0, 0, 1, 1], [], []>} : vector<16x8xf32>, vector<8x32xf32>, vector<16x32xf32> -> vector<16x32xf32>
    %871 = vector.extract_strided_slice %844 {offsets = [0, 8], sizes = [16, 8], strides = [1, 1]} : vector<16x32xf32> to vector<16x8xf32>
    %872 = vector.extract_strided_slice %850 {offsets = [0, 8], sizes = [16, 8], strides = [1, 1]} : vector<16x32xf32> to vector<16x8xf32>
    %cst_276 = arith.constant dense<0.000000e+00> : vector<16x16xf32>
    %873 = tpu.matmul %871, %872, %cst_276 {dimension_numbers = #tpu.dot_dimension_numbers<[1], [1], [0], [0], [0, 0, 1, 0], [], []>} : vector<16x8xf32>, vector<16x8xf32>, vector<16x16xf32> -> vector<16x16xf32>
    %874 = arith.addf %873, %55 : vector<16x16xf32>
    %cst_277 = arith.constant dense<0xFF800000> : vector<16xf32>
    %875 = vector.multi_reduction <maximumf>, %874, %cst_277 [1] : vector<16x16xf32> to vector<16xf32>
    %876 = vector.shape_cast %875 : vector<16xf32> to vector<16x1xf32>
    %877 = vector.broadcast %876 : vector<16x1xf32> to vector<16x16xf32>
    %878 = arith.subf %874, %877 : vector<16x16xf32>
    %879 = math.exp %878 : vector<16x16xf32>
    %cst_278 = arith.constant dense<0.000000e+00> : vector<16xf32>
    %880 = vector.multi_reduction <add>, %879, %cst_278 [1] : vector<16x16xf32> to vector<16xf32>
    %881 = vector.shape_cast %880 : vector<16xf32> to vector<16x1xf32>
    %cst_279 = arith.constant 1.000000e+00 : f32
    %882 = vector.broadcast %cst_279 : f32 to vector<16x1xf32>
    %883 = arith.divf %882, %881 : vector<16x1xf32>
    %884 = vector.broadcast %883 : vector<16x1xf32> to vector<16x16xf32>
    %885 = arith.mulf %879, %884 : vector<16x16xf32>
    %886 = vector.extract_strided_slice %851 {offsets = [0, 8], sizes = [16, 8], strides = [1, 1]} : vector<16x32xf32> to vector<16x8xf32>
    %cst_280 = arith.constant dense<0.000000e+00> : vector<16x8xf32>
    %887 = tpu.matmul %885, %886, %cst_280 {dimension_numbers = #tpu.dot_dimension_numbers<[1], [0], [0], [1], [0, 0, 1, 1], [], []>} : vector<16x16xf32>, vector<16x8xf32>, vector<16x8xf32> -> vector<16x8xf32>
    %888 = vector.extract_strided_slice %838 {offsets = [8, 0], sizes = [8, 32], strides = [1, 1]} : vector<32x32xf32> to vector<8x32xf32>
    %cst_281 = arith.constant dense<0.000000e+00> : vector<16x32xf32>
    %889 = tpu.matmul %887, %888, %cst_281 {dimension_numbers = #tpu.dot_dimension_numbers<[1], [0], [0], [1], [0, 0, 1, 1], [], []>} : vector<16x8xf32>, vector<8x32xf32>, vector<16x32xf32> -> vector<16x32xf32>
    %890 = arith.addf %870, %889 : vector<16x32xf32>
    %891 = vector.extract_strided_slice %844 {offsets = [0, 16], sizes = [16, 8], strides = [1, 1]} : vector<16x32xf32> to vector<16x8xf32>
    %892 = vector.extract_strided_slice %850 {offsets = [0, 16], sizes = [16, 8], strides = [1, 1]} : vector<16x32xf32> to vector<16x8xf32>
    %cst_282 = arith.constant dense<0.000000e+00> : vector<16x16xf32>
    %893 = tpu.matmul %891, %892, %cst_282 {dimension_numbers = #tpu.dot_dimension_numbers<[1], [1], [0], [0], [0, 0, 1, 0], [], []>} : vector<16x8xf32>, vector<16x8xf32>, vector<16x16xf32> -> vector<16x16xf32>
    %894 = arith.addf %893, %55 : vector<16x16xf32>
    %cst_283 = arith.constant dense<0xFF800000> : vector<16xf32>
    %895 = vector.multi_reduction <maximumf>, %894, %cst_283 [1] : vector<16x16xf32> to vector<16xf32>
    %896 = vector.shape_cast %895 : vector<16xf32> to vector<16x1xf32>
    %897 = vector.broadcast %896 : vector<16x1xf32> to vector<16x16xf32>
    %898 = arith.subf %894, %897 : vector<16x16xf32>
    %899 = math.exp %898 : vector<16x16xf32>
    %cst_284 = arith.constant dense<0.000000e+00> : vector<16xf32>
    %900 = vector.multi_reduction <add>, %899, %cst_284 [1] : vector<16x16xf32> to vector<16xf32>
    %901 = vector.shape_cast %900 : vector<16xf32> to vector<16x1xf32>
    %cst_285 = arith.constant 1.000000e+00 : f32
    %902 = vector.broadcast %cst_285 : f32 to vector<16x1xf32>
    %903 = arith.divf %902, %901 : vector<16x1xf32>
    %904 = vector.broadcast %903 : vector<16x1xf32> to vector<16x16xf32>
    %905 = arith.mulf %899, %904 : vector<16x16xf32>
    %906 = vector.extract_strided_slice %851 {offsets = [0, 16], sizes = [16, 8], strides = [1, 1]} : vector<16x32xf32> to vector<16x8xf32>
    %cst_286 = arith.constant dense<0.000000e+00> : vector<16x8xf32>
    %907 = tpu.matmul %905, %906, %cst_286 {dimension_numbers = #tpu.dot_dimension_numbers<[1], [0], [0], [1], [0, 0, 1, 1], [], []>} : vector<16x16xf32>, vector<16x8xf32>, vector<16x8xf32> -> vector<16x8xf32>
    %908 = vector.extract_strided_slice %838 {offsets = [16, 0], sizes = [8, 32], strides = [1, 1]} : vector<32x32xf32> to vector<8x32xf32>
    %cst_287 = arith.constant dense<0.000000e+00> : vector<16x32xf32>
    %909 = tpu.matmul %907, %908, %cst_287 {dimension_numbers = #tpu.dot_dimension_numbers<[1], [0], [0], [1], [0, 0, 1, 1], [], []>} : vector<16x8xf32>, vector<8x32xf32>, vector<16x32xf32> -> vector<16x32xf32>
    %910 = arith.addf %890, %909 : vector<16x32xf32>
    %911 = vector.extract_strided_slice %844 {offsets = [0, 24], sizes = [16, 8], strides = [1, 1]} : vector<16x32xf32> to vector<16x8xf32>
    %912 = vector.extract_strided_slice %850 {offsets = [0, 24], sizes = [16, 8], strides = [1, 1]} : vector<16x32xf32> to vector<16x8xf32>
    %cst_288 = arith.constant dense<0.000000e+00> : vector<16x16xf32>
    %913 = tpu.matmul %911, %912, %cst_288 {dimension_numbers = #tpu.dot_dimension_numbers<[1], [1], [0], [0], [0, 0, 1, 0], [], []>} : vector<16x8xf32>, vector<16x8xf32>, vector<16x16xf32> -> vector<16x16xf32>
    %914 = arith.addf %913, %55 : vector<16x16xf32>
    %cst_289 = arith.constant dense<0xFF800000> : vector<16xf32>
    %915 = vector.multi_reduction <maximumf>, %914, %cst_289 [1] : vector<16x16xf32> to vector<16xf32>
    %916 = vector.shape_cast %915 : vector<16xf32> to vector<16x1xf32>
    %917 = vector.broadcast %916 : vector<16x1xf32> to vector<16x16xf32>
    %918 = arith.subf %914, %917 : vector<16x16xf32>
    %919 = math.exp %918 : vector<16x16xf32>
    %cst_290 = arith.constant dense<0.000000e+00> : vector<16xf32>
    %920 = vector.multi_reduction <add>, %919, %cst_290 [1] : vector<16x16xf32> to vector<16xf32>
    %921 = vector.shape_cast %920 : vector<16xf32> to vector<16x1xf32>
    %cst_291 = arith.constant 1.000000e+00 : f32
    %922 = vector.broadcast %cst_291 : f32 to vector<16x1xf32>
    %923 = arith.divf %922, %921 : vector<16x1xf32>
    %924 = vector.broadcast %923 : vector<16x1xf32> to vector<16x16xf32>
    %925 = arith.mulf %919, %924 : vector<16x16xf32>
    %926 = vector.extract_strided_slice %851 {offsets = [0, 24], sizes = [16, 8], strides = [1, 1]} : vector<16x32xf32> to vector<16x8xf32>
    %cst_292 = arith.constant dense<0.000000e+00> : vector<16x8xf32>
    %927 = tpu.matmul %925, %926, %cst_292 {dimension_numbers = #tpu.dot_dimension_numbers<[1], [0], [0], [1], [0, 0, 1, 1], [], []>} : vector<16x16xf32>, vector<16x8xf32>, vector<16x8xf32> -> vector<16x8xf32>
    %928 = vector.extract_strided_slice %838 {offsets = [24, 0], sizes = [8, 32], strides = [1, 1]} : vector<32x32xf32> to vector<8x32xf32>
    %cst_293 = arith.constant dense<0.000000e+00> : vector<16x32xf32>
    %929 = tpu.matmul %927, %928, %cst_293 {dimension_numbers = #tpu.dot_dimension_numbers<[1], [0], [0], [1], [0, 0, 1, 1], [], []>} : vector<16x8xf32>, vector<8x32xf32>, vector<16x32xf32> -> vector<16x32xf32>
    %930 = arith.addf %910, %929 : vector<16x32xf32>
    %931 = vector.broadcast %839 : vector<1x32xf32> to vector<16x32xf32>
    %932 = arith.addf %930, %931 : vector<16x32xf32>
    %933 = arith.addf %834, %932 : vector<16x32xf32>
    %934 = vector.extract_strided_slice %835 {offsets = [0, 0], sizes = [1, 32], strides = [1, 1]} : vector<6x32xf32> to vector<1x32xf32>
    %935 = vector.extract_strided_slice %835 {offsets = [1, 0], sizes = [1, 32], strides = [1, 1]} : vector<6x32xf32> to vector<1x32xf32>
    %cst_294 = arith.constant dense<0.000000e+00> : vector<16xf32>
    %936 = vector.multi_reduction <add>, %933, %cst_294 [1] : vector<16x32xf32> to vector<16xf32>
    %937 = vector.shape_cast %936 : vector<16xf32> to vector<16x1xf32>
    %cst_295 = arith.constant 3.200000e+01 : f32
    %938 = vector.broadcast %cst_295 : f32 to vector<16x1xf32>
    %939 = arith.divf %937, %938 : vector<16x1xf32>
    %940 = vector.broadcast %939 : vector<16x1xf32> to vector<16x32xf32>
    %941 = arith.subf %933, %940 : vector<16x32xf32>
    %942 = arith.mulf %941, %941 : vector<16x32xf32>
    %cst_296 = arith.constant dense<0.000000e+00> : vector<16xf32>
    %943 = vector.multi_reduction <add>, %942, %cst_296 [1] : vector<16x32xf32> to vector<16xf32>
    %944 = vector.shape_cast %943 : vector<16xf32> to vector<16x1xf32>
    %cst_297 = arith.constant 3.200000e+01 : f32
    %945 = vector.broadcast %cst_297 : f32 to vector<16x1xf32>
    %946 = arith.divf %944, %945 : vector<16x1xf32>
    %947 = vector.broadcast %939 : vector<16x1xf32> to vector<16x32xf32>
    %948 = arith.subf %933, %947 : vector<16x32xf32>
    %cst_298 = arith.constant 9.99999974E-6 : f32
    %949 = vector.broadcast %cst_298 : f32 to vector<16x1xf32>
    %950 = arith.addf %946, %949 : vector<16x1xf32>
    %951 = math.rsqrt %950 : vector<16x1xf32>
    %952 = vector.broadcast %951 : vector<16x1xf32> to vector<16x32xf32>
    %953 = arith.mulf %948, %952 : vector<16x32xf32>
    %954 = vector.broadcast %934 : vector<1x32xf32> to vector<16x32xf32>
    %955 = arith.mulf %953, %954 : vector<16x32xf32>
    %956 = vector.broadcast %935 : vector<1x32xf32> to vector<16x32xf32>
    %957 = arith.addf %955, %956 : vector<16x32xf32>
    %c816 = arith.constant 816 : index
    %c0_299 = arith.constant 0 : index
    %958 = vector.load %arg5[%c816, %c0_299] : memref<1016x128xf32, #tpu.memory_space<vmem>>, vector<32x96xf32>
    %c848 = arith.constant 848 : index
    %c0_300 = arith.constant 0 : index
    %959 = vector.load %arg5[%c848, %c0_300] : memref<1016x128xf32, #tpu.memory_space<vmem>>, vector<1x96xf32>
    %c856 = arith.constant 856 : index
    %c0_301 = arith.constant 0 : index
    %960 = vector.load %arg5[%c856, %c0_301] : memref<1016x128xf32, #tpu.memory_space<vmem>>, vector<32x32xf32>
    %c888 = arith.constant 888 : index
    %c0_302 = arith.constant 0 : index
    %961 = vector.load %arg5[%c888, %c0_302] : memref<1016x128xf32, #tpu.memory_space<vmem>>, vector<1x32xf32>
    %962 = vector.extract_strided_slice %958 {offsets = [0, 0], sizes = [32, 32], strides = [1, 1]} : vector<32x96xf32> to vector<32x32xf32>
    %cst_303 = arith.constant dense<0.000000e+00> : vector<16x32xf32>
    %963 = tpu.matmul %957, %962, %cst_303 {dimension_numbers = #tpu.dot_dimension_numbers<[1], [0], [0], [1], [0, 0, 1, 1], [], []>} : vector<16x32xf32>, vector<32x32xf32>, vector<16x32xf32> -> vector<16x32xf32>
    %964 = vector.extract_strided_slice %959 {offsets = [0, 0], sizes = [1, 32], strides = [1, 1]} : vector<1x96xf32> to vector<1x32xf32>
    %965 = vector.broadcast %964 : vector<1x32xf32> to vector<16x32xf32>
    %966 = arith.addf %963, %965 : vector<16x32xf32>
    %967 = vector.extract_strided_slice %958 {offsets = [0, 32], sizes = [32, 64], strides = [1, 1]} : vector<32x96xf32> to vector<32x64xf32>
    %cst_304 = arith.constant dense<0.000000e+00> : vector<12x64xf32>
    %968 = tpu.matmul %514, %967, %cst_304 {dimension_numbers = #tpu.dot_dimension_numbers<[1], [0], [0], [1], [0, 0, 1, 1], [], []>} : vector<12x32xf32>, vector<32x64xf32>, vector<12x64xf32> -> vector<12x64xf32>
    %969 = vector.extract_strided_slice %959 {offsets = [0, 32], sizes = [1, 64], strides = [1, 1]} : vector<1x96xf32> to vector<1x64xf32>
    %970 = vector.broadcast %969 : vector<1x64xf32> to vector<12x64xf32>
    %971 = arith.addf %968, %970 : vector<12x64xf32>
    %972 = vector.extract_strided_slice %971 {offsets = [0, 0], sizes = [12, 32], strides = [1, 1]} : vector<12x64xf32> to vector<12x32xf32>
    %973 = vector.extract_strided_slice %971 {offsets = [0, 32], sizes = [12, 32], strides = [1, 1]} : vector<12x64xf32> to vector<12x32xf32>
    %974 = vector.extract_strided_slice %966 {offsets = [0, 0], sizes = [16, 8], strides = [1, 1]} : vector<16x32xf32> to vector<16x8xf32>
    %975 = vector.extract_strided_slice %972 {offsets = [0, 0], sizes = [12, 8], strides = [1, 1]} : vector<12x32xf32> to vector<12x8xf32>
    %cst_305 = arith.constant dense<0.000000e+00> : vector<16x12xf32>
    %976 = tpu.matmul %974, %975, %cst_305 {dimension_numbers = #tpu.dot_dimension_numbers<[1], [1], [0], [0], [0, 0, 1, 0], [], []>} : vector<16x8xf32>, vector<12x8xf32>, vector<16x12xf32> -> vector<16x12xf32>
    %977 = arith.addf %976, %83 : vector<16x12xf32>
    %cst_306 = arith.constant dense<0xFF800000> : vector<16xf32>
    %978 = vector.multi_reduction <maximumf>, %977, %cst_306 [1] : vector<16x12xf32> to vector<16xf32>
    %979 = vector.shape_cast %978 : vector<16xf32> to vector<16x1xf32>
    %980 = vector.broadcast %979 : vector<16x1xf32> to vector<16x12xf32>
    %981 = arith.subf %977, %980 : vector<16x12xf32>
    %982 = math.exp %981 : vector<16x12xf32>
    %cst_307 = arith.constant dense<0.000000e+00> : vector<16xf32>
    %983 = vector.multi_reduction <add>, %982, %cst_307 [1] : vector<16x12xf32> to vector<16xf32>
    %984 = vector.shape_cast %983 : vector<16xf32> to vector<16x1xf32>
    %cst_308 = arith.constant 1.000000e+00 : f32
    %985 = vector.broadcast %cst_308 : f32 to vector<16x1xf32>
    %986 = arith.divf %985, %984 : vector<16x1xf32>
    %987 = vector.broadcast %986 : vector<16x1xf32> to vector<16x12xf32>
    %988 = arith.mulf %982, %987 : vector<16x12xf32>
    %989 = vector.extract_strided_slice %973 {offsets = [0, 0], sizes = [12, 8], strides = [1, 1]} : vector<12x32xf32> to vector<12x8xf32>
    %cst_309 = arith.constant dense<0.000000e+00> : vector<16x8xf32>
    %990 = tpu.matmul %988, %989, %cst_309 {dimension_numbers = #tpu.dot_dimension_numbers<[1], [0], [0], [1], [0, 0, 1, 1], [], []>} : vector<16x12xf32>, vector<12x8xf32>, vector<16x8xf32> -> vector<16x8xf32>
    %991 = vector.extract_strided_slice %960 {offsets = [0, 0], sizes = [8, 32], strides = [1, 1]} : vector<32x32xf32> to vector<8x32xf32>
    %cst_310 = arith.constant dense<0.000000e+00> : vector<16x32xf32>
    %992 = tpu.matmul %990, %991, %cst_310 {dimension_numbers = #tpu.dot_dimension_numbers<[1], [0], [0], [1], [0, 0, 1, 1], [], []>} : vector<16x8xf32>, vector<8x32xf32>, vector<16x32xf32> -> vector<16x32xf32>
    %993 = vector.extract_strided_slice %966 {offsets = [0, 8], sizes = [16, 8], strides = [1, 1]} : vector<16x32xf32> to vector<16x8xf32>
    %994 = vector.extract_strided_slice %972 {offsets = [0, 8], sizes = [12, 8], strides = [1, 1]} : vector<12x32xf32> to vector<12x8xf32>
    %cst_311 = arith.constant dense<0.000000e+00> : vector<16x12xf32>
    %995 = tpu.matmul %993, %994, %cst_311 {dimension_numbers = #tpu.dot_dimension_numbers<[1], [1], [0], [0], [0, 0, 1, 0], [], []>} : vector<16x8xf32>, vector<12x8xf32>, vector<16x12xf32> -> vector<16x12xf32>
    %996 = arith.addf %995, %83 : vector<16x12xf32>
    %cst_312 = arith.constant dense<0xFF800000> : vector<16xf32>
    %997 = vector.multi_reduction <maximumf>, %996, %cst_312 [1] : vector<16x12xf32> to vector<16xf32>
    %998 = vector.shape_cast %997 : vector<16xf32> to vector<16x1xf32>
    %999 = vector.broadcast %998 : vector<16x1xf32> to vector<16x12xf32>
    %1000 = arith.subf %996, %999 : vector<16x12xf32>
    %1001 = math.exp %1000 : vector<16x12xf32>
    %cst_313 = arith.constant dense<0.000000e+00> : vector<16xf32>
    %1002 = vector.multi_reduction <add>, %1001, %cst_313 [1] : vector<16x12xf32> to vector<16xf32>
    %1003 = vector.shape_cast %1002 : vector<16xf32> to vector<16x1xf32>
    %cst_314 = arith.constant 1.000000e+00 : f32
    %1004 = vector.broadcast %cst_314 : f32 to vector<16x1xf32>
    %1005 = arith.divf %1004, %1003 : vector<16x1xf32>
    %1006 = vector.broadcast %1005 : vector<16x1xf32> to vector<16x12xf32>
    %1007 = arith.mulf %1001, %1006 : vector<16x12xf32>
    %1008 = vector.extract_strided_slice %973 {offsets = [0, 8], sizes = [12, 8], strides = [1, 1]} : vector<12x32xf32> to vector<12x8xf32>
    %cst_315 = arith.constant dense<0.000000e+00> : vector<16x8xf32>
    %1009 = tpu.matmul %1007, %1008, %cst_315 {dimension_numbers = #tpu.dot_dimension_numbers<[1], [0], [0], [1], [0, 0, 1, 1], [], []>} : vector<16x12xf32>, vector<12x8xf32>, vector<16x8xf32> -> vector<16x8xf32>
    %1010 = vector.extract_strided_slice %960 {offsets = [8, 0], sizes = [8, 32], strides = [1, 1]} : vector<32x32xf32> to vector<8x32xf32>
    %cst_316 = arith.constant dense<0.000000e+00> : vector<16x32xf32>
    %1011 = tpu.matmul %1009, %1010, %cst_316 {dimension_numbers = #tpu.dot_dimension_numbers<[1], [0], [0], [1], [0, 0, 1, 1], [], []>} : vector<16x8xf32>, vector<8x32xf32>, vector<16x32xf32> -> vector<16x32xf32>
    %1012 = arith.addf %992, %1011 : vector<16x32xf32>
    %1013 = vector.extract_strided_slice %966 {offsets = [0, 16], sizes = [16, 8], strides = [1, 1]} : vector<16x32xf32> to vector<16x8xf32>
    %1014 = vector.extract_strided_slice %972 {offsets = [0, 16], sizes = [12, 8], strides = [1, 1]} : vector<12x32xf32> to vector<12x8xf32>
    %cst_317 = arith.constant dense<0.000000e+00> : vector<16x12xf32>
    %1015 = tpu.matmul %1013, %1014, %cst_317 {dimension_numbers = #tpu.dot_dimension_numbers<[1], [1], [0], [0], [0, 0, 1, 0], [], []>} : vector<16x8xf32>, vector<12x8xf32>, vector<16x12xf32> -> vector<16x12xf32>
    %1016 = arith.addf %1015, %83 : vector<16x12xf32>
    %cst_318 = arith.constant dense<0xFF800000> : vector<16xf32>
    %1017 = vector.multi_reduction <maximumf>, %1016, %cst_318 [1] : vector<16x12xf32> to vector<16xf32>
    %1018 = vector.shape_cast %1017 : vector<16xf32> to vector<16x1xf32>
    %1019 = vector.broadcast %1018 : vector<16x1xf32> to vector<16x12xf32>
    %1020 = arith.subf %1016, %1019 : vector<16x12xf32>
    %1021 = math.exp %1020 : vector<16x12xf32>
    %cst_319 = arith.constant dense<0.000000e+00> : vector<16xf32>
    %1022 = vector.multi_reduction <add>, %1021, %cst_319 [1] : vector<16x12xf32> to vector<16xf32>
    %1023 = vector.shape_cast %1022 : vector<16xf32> to vector<16x1xf32>
    %cst_320 = arith.constant 1.000000e+00 : f32
    %1024 = vector.broadcast %cst_320 : f32 to vector<16x1xf32>
    %1025 = arith.divf %1024, %1023 : vector<16x1xf32>
    %1026 = vector.broadcast %1025 : vector<16x1xf32> to vector<16x12xf32>
    %1027 = arith.mulf %1021, %1026 : vector<16x12xf32>
    %1028 = vector.extract_strided_slice %973 {offsets = [0, 16], sizes = [12, 8], strides = [1, 1]} : vector<12x32xf32> to vector<12x8xf32>
    %cst_321 = arith.constant dense<0.000000e+00> : vector<16x8xf32>
    %1029 = tpu.matmul %1027, %1028, %cst_321 {dimension_numbers = #tpu.dot_dimension_numbers<[1], [0], [0], [1], [0, 0, 1, 1], [], []>} : vector<16x12xf32>, vector<12x8xf32>, vector<16x8xf32> -> vector<16x8xf32>
    %1030 = vector.extract_strided_slice %960 {offsets = [16, 0], sizes = [8, 32], strides = [1, 1]} : vector<32x32xf32> to vector<8x32xf32>
    %cst_322 = arith.constant dense<0.000000e+00> : vector<16x32xf32>
    %1031 = tpu.matmul %1029, %1030, %cst_322 {dimension_numbers = #tpu.dot_dimension_numbers<[1], [0], [0], [1], [0, 0, 1, 1], [], []>} : vector<16x8xf32>, vector<8x32xf32>, vector<16x32xf32> -> vector<16x32xf32>
    %1032 = arith.addf %1012, %1031 : vector<16x32xf32>
    %1033 = vector.extract_strided_slice %966 {offsets = [0, 24], sizes = [16, 8], strides = [1, 1]} : vector<16x32xf32> to vector<16x8xf32>
    %1034 = vector.extract_strided_slice %972 {offsets = [0, 24], sizes = [12, 8], strides = [1, 1]} : vector<12x32xf32> to vector<12x8xf32>
    %cst_323 = arith.constant dense<0.000000e+00> : vector<16x12xf32>
    %1035 = tpu.matmul %1033, %1034, %cst_323 {dimension_numbers = #tpu.dot_dimension_numbers<[1], [1], [0], [0], [0, 0, 1, 0], [], []>} : vector<16x8xf32>, vector<12x8xf32>, vector<16x12xf32> -> vector<16x12xf32>
    %1036 = arith.addf %1035, %83 : vector<16x12xf32>
    %cst_324 = arith.constant dense<0xFF800000> : vector<16xf32>
    %1037 = vector.multi_reduction <maximumf>, %1036, %cst_324 [1] : vector<16x12xf32> to vector<16xf32>
    %1038 = vector.shape_cast %1037 : vector<16xf32> to vector<16x1xf32>
    %1039 = vector.broadcast %1038 : vector<16x1xf32> to vector<16x12xf32>
    %1040 = arith.subf %1036, %1039 : vector<16x12xf32>
    %1041 = math.exp %1040 : vector<16x12xf32>
    %cst_325 = arith.constant dense<0.000000e+00> : vector<16xf32>
    %1042 = vector.multi_reduction <add>, %1041, %cst_325 [1] : vector<16x12xf32> to vector<16xf32>
    %1043 = vector.shape_cast %1042 : vector<16xf32> to vector<16x1xf32>
    %cst_326 = arith.constant 1.000000e+00 : f32
    %1044 = vector.broadcast %cst_326 : f32 to vector<16x1xf32>
    %1045 = arith.divf %1044, %1043 : vector<16x1xf32>
    %1046 = vector.broadcast %1045 : vector<16x1xf32> to vector<16x12xf32>
    %1047 = arith.mulf %1041, %1046 : vector<16x12xf32>
    %1048 = vector.extract_strided_slice %973 {offsets = [0, 24], sizes = [12, 8], strides = [1, 1]} : vector<12x32xf32> to vector<12x8xf32>
    %cst_327 = arith.constant dense<0.000000e+00> : vector<16x8xf32>
    %1049 = tpu.matmul %1047, %1048, %cst_327 {dimension_numbers = #tpu.dot_dimension_numbers<[1], [0], [0], [1], [0, 0, 1, 1], [], []>} : vector<16x12xf32>, vector<12x8xf32>, vector<16x8xf32> -> vector<16x8xf32>
    %1050 = vector.extract_strided_slice %960 {offsets = [24, 0], sizes = [8, 32], strides = [1, 1]} : vector<32x32xf32> to vector<8x32xf32>
    %cst_328 = arith.constant dense<0.000000e+00> : vector<16x32xf32>
    %1051 = tpu.matmul %1049, %1050, %cst_328 {dimension_numbers = #tpu.dot_dimension_numbers<[1], [0], [0], [1], [0, 0, 1, 1], [], []>} : vector<16x8xf32>, vector<8x32xf32>, vector<16x32xf32> -> vector<16x32xf32>
    %1052 = arith.addf %1032, %1051 : vector<16x32xf32>
    %1053 = vector.broadcast %961 : vector<1x32xf32> to vector<16x32xf32>
    %1054 = arith.addf %1052, %1053 : vector<16x32xf32>
    %1055 = arith.addf %957, %1054 : vector<16x32xf32>
    %1056 = vector.extract_strided_slice %835 {offsets = [2, 0], sizes = [1, 32], strides = [1, 1]} : vector<6x32xf32> to vector<1x32xf32>
    %1057 = vector.extract_strided_slice %835 {offsets = [3, 0], sizes = [1, 32], strides = [1, 1]} : vector<6x32xf32> to vector<1x32xf32>
    %cst_329 = arith.constant dense<0.000000e+00> : vector<16xf32>
    %1058 = vector.multi_reduction <add>, %1055, %cst_329 [1] : vector<16x32xf32> to vector<16xf32>
    %1059 = vector.shape_cast %1058 : vector<16xf32> to vector<16x1xf32>
    %cst_330 = arith.constant 3.200000e+01 : f32
    %1060 = vector.broadcast %cst_330 : f32 to vector<16x1xf32>
    %1061 = arith.divf %1059, %1060 : vector<16x1xf32>
    %1062 = vector.broadcast %1061 : vector<16x1xf32> to vector<16x32xf32>
    %1063 = arith.subf %1055, %1062 : vector<16x32xf32>
    %1064 = arith.mulf %1063, %1063 : vector<16x32xf32>
    %cst_331 = arith.constant dense<0.000000e+00> : vector<16xf32>
    %1065 = vector.multi_reduction <add>, %1064, %cst_331 [1] : vector<16x32xf32> to vector<16xf32>
    %1066 = vector.shape_cast %1065 : vector<16xf32> to vector<16x1xf32>
    %cst_332 = arith.constant 3.200000e+01 : f32
    %1067 = vector.broadcast %cst_332 : f32 to vector<16x1xf32>
    %1068 = arith.divf %1066, %1067 : vector<16x1xf32>
    %1069 = vector.broadcast %1061 : vector<16x1xf32> to vector<16x32xf32>
    %1070 = arith.subf %1055, %1069 : vector<16x32xf32>
    %cst_333 = arith.constant 9.99999974E-6 : f32
    %1071 = vector.broadcast %cst_333 : f32 to vector<16x1xf32>
    %1072 = arith.addf %1068, %1071 : vector<16x1xf32>
    %1073 = math.rsqrt %1072 : vector<16x1xf32>
    %1074 = vector.broadcast %1073 : vector<16x1xf32> to vector<16x32xf32>
    %1075 = arith.mulf %1070, %1074 : vector<16x32xf32>
    %1076 = vector.broadcast %1056 : vector<1x32xf32> to vector<16x32xf32>
    %1077 = arith.mulf %1075, %1076 : vector<16x32xf32>
    %1078 = vector.broadcast %1057 : vector<1x32xf32> to vector<16x32xf32>
    %1079 = arith.addf %1077, %1078 : vector<16x32xf32>
    %c896 = arith.constant 896 : index
    %c0_334 = arith.constant 0 : index
    %1080 = vector.load %arg5[%c896, %c0_334] : memref<1016x128xf32, #tpu.memory_space<vmem>>, vector<32x64xf32>
    %c928 = arith.constant 928 : index
    %c0_335 = arith.constant 0 : index
    %1081 = vector.load %arg5[%c928, %c0_335] : memref<1016x128xf32, #tpu.memory_space<vmem>>, vector<1x64xf32>
    %c936 = arith.constant 936 : index
    %c0_336 = arith.constant 0 : index
    %1082 = vector.load %arg5[%c936, %c0_336] : memref<1016x128xf32, #tpu.memory_space<vmem>>, vector<64x32xf32>
    %c1000 = arith.constant 1000 : index
    %c0_337 = arith.constant 0 : index
    %1083 = vector.load %arg5[%c1000, %c0_337] : memref<1016x128xf32, #tpu.memory_space<vmem>>, vector<1x32xf32>
    %cst_338 = arith.constant dense<0.000000e+00> : vector<16x64xf32>
    %1084 = tpu.matmul %1079, %1080, %cst_338 {dimension_numbers = #tpu.dot_dimension_numbers<[1], [0], [0], [1], [0, 0, 1, 1], [], []>} : vector<16x32xf32>, vector<32x64xf32>, vector<16x64xf32> -> vector<16x64xf32>
    %1085 = vector.broadcast %1081 : vector<1x64xf32> to vector<16x64xf32>
    %1086 = arith.addf %1084, %1085 : vector<16x64xf32>
    %cst_339 = arith.constant 5.000000e-01 : f32
    %1087 = vector.broadcast %cst_339 : f32 to vector<16x64xf32>
    %1088 = arith.mulf %1087, %1086 : vector<16x64xf32>
    %cst_340 = arith.constant 0.707106769 : f32
    %1089 = vector.broadcast %cst_340 : f32 to vector<16x64xf32>
    %1090 = arith.mulf %1086, %1089 : vector<16x64xf32>
    %1091 = math.absf %1090 : vector<16x64xf32>
    %cst_341 = arith.constant 0.327591091 : f32
    %1092 = vector.broadcast %cst_341 : f32 to vector<16x64xf32>
    %1093 = arith.mulf %1092, %1091 : vector<16x64xf32>
    %cst_342 = arith.constant 1.000000e+00 : f32
    %1094 = vector.broadcast %cst_342 : f32 to vector<16x64xf32>
    %1095 = arith.addf %1094, %1093 : vector<16x64xf32>
    %cst_343 = arith.constant 1.000000e+00 : f32
    %1096 = vector.broadcast %cst_343 : f32 to vector<16x64xf32>
    %1097 = arith.divf %1096, %1095 : vector<16x64xf32>
    %cst_344 = arith.constant 1.06140542 : f32
    %1098 = vector.broadcast %cst_344 : f32 to vector<16x64xf32>
    %1099 = arith.mulf %1098, %1097 : vector<16x64xf32>
    %cst_345 = arith.constant -1.45315206 : f32
    %1100 = vector.broadcast %cst_345 : f32 to vector<16x64xf32>
    %1101 = arith.addf %1099, %1100 : vector<16x64xf32>
    %1102 = arith.mulf %1101, %1097 : vector<16x64xf32>
    %cst_346 = arith.constant 1.42141378 : f32
    %1103 = vector.broadcast %cst_346 : f32 to vector<16x64xf32>
    %1104 = arith.addf %1102, %1103 : vector<16x64xf32>
    %1105 = arith.mulf %1104, %1097 : vector<16x64xf32>
    %cst_347 = arith.constant -0.284496725 : f32
    %1106 = vector.broadcast %cst_347 : f32 to vector<16x64xf32>
    %1107 = arith.addf %1105, %1106 : vector<16x64xf32>
    %1108 = arith.mulf %1107, %1097 : vector<16x64xf32>
    %cst_348 = arith.constant 0.254829586 : f32
    %1109 = vector.broadcast %cst_348 : f32 to vector<16x64xf32>
    %1110 = arith.addf %1108, %1109 : vector<16x64xf32>
    %1111 = arith.mulf %1110, %1097 : vector<16x64xf32>
    %cst_349 = arith.constant 0.000000e+00 : f32
    %1112 = vector.broadcast %cst_349 : f32 to vector<16x64xf32>
    %1113 = arith.subf %1112, %1091 : vector<16x64xf32>
    %1114 = arith.mulf %1113, %1091 : vector<16x64xf32>
    %1115 = math.exp %1114 : vector<16x64xf32>
    %1116 = arith.mulf %1111, %1115 : vector<16x64xf32>
    %cst_350 = arith.constant 1.000000e+00 : f32
    %1117 = vector.broadcast %cst_350 : f32 to vector<16x64xf32>
    %1118 = arith.subf %1117, %1116 : vector<16x64xf32>
    %cst_351 = arith.constant 0.000000e+00 : f32
    %1119 = vector.broadcast %cst_351 : f32 to vector<16x64xf32>
    %1120 = arith.cmpf olt, %1090, %1119 : vector<16x64xf32>
    %cst_352 = arith.constant 0.000000e+00 : f32
    %1121 = vector.broadcast %cst_352 : f32 to vector<16x64xf32>
    %1122 = arith.subf %1121, %1118 : vector<16x64xf32>
    %1123 = arith.select %1120, %1122, %1118 : vector<16x64xi1>, vector<16x64xf32>
    %cst_353 = arith.constant 1.000000e+00 : f32
    %1124 = vector.broadcast %cst_353 : f32 to vector<16x64xf32>
    %1125 = arith.addf %1124, %1123 : vector<16x64xf32>
    %1126 = arith.mulf %1088, %1125 : vector<16x64xf32>
    %cst_354 = arith.constant dense<0.000000e+00> : vector<16x32xf32>
    %1127 = tpu.matmul %1126, %1082, %cst_354 {dimension_numbers = #tpu.dot_dimension_numbers<[1], [0], [0], [1], [0, 0, 1, 1], [], []>} : vector<16x64xf32>, vector<64x32xf32>, vector<16x32xf32> -> vector<16x32xf32>
    %1128 = vector.broadcast %1083 : vector<1x32xf32> to vector<16x32xf32>
    %1129 = arith.addf %1127, %1128 : vector<16x32xf32>
    %1130 = arith.addf %1079, %1129 : vector<16x32xf32>
    %1131 = vector.extract_strided_slice %835 {offsets = [4, 0], sizes = [1, 32], strides = [1, 1]} : vector<6x32xf32> to vector<1x32xf32>
    %1132 = vector.extract_strided_slice %835 {offsets = [5, 0], sizes = [1, 32], strides = [1, 1]} : vector<6x32xf32> to vector<1x32xf32>
    %cst_355 = arith.constant dense<0.000000e+00> : vector<16xf32>
    %1133 = vector.multi_reduction <add>, %1130, %cst_355 [1] : vector<16x32xf32> to vector<16xf32>
    %1134 = vector.shape_cast %1133 : vector<16xf32> to vector<16x1xf32>
    %cst_356 = arith.constant 3.200000e+01 : f32
    %1135 = vector.broadcast %cst_356 : f32 to vector<16x1xf32>
    %1136 = arith.divf %1134, %1135 : vector<16x1xf32>
    %1137 = vector.broadcast %1136 : vector<16x1xf32> to vector<16x32xf32>
    %1138 = arith.subf %1130, %1137 : vector<16x32xf32>
    %1139 = arith.mulf %1138, %1138 : vector<16x32xf32>
    %cst_357 = arith.constant dense<0.000000e+00> : vector<16xf32>
    %1140 = vector.multi_reduction <add>, %1139, %cst_357 [1] : vector<16x32xf32> to vector<16xf32>
    %1141 = vector.shape_cast %1140 : vector<16xf32> to vector<16x1xf32>
    %cst_358 = arith.constant 3.200000e+01 : f32
    %1142 = vector.broadcast %cst_358 : f32 to vector<16x1xf32>
    %1143 = arith.divf %1141, %1142 : vector<16x1xf32>
    %1144 = vector.broadcast %1136 : vector<16x1xf32> to vector<16x32xf32>
    %1145 = arith.subf %1130, %1144 : vector<16x32xf32>
    %cst_359 = arith.constant 9.99999974E-6 : f32
    %1146 = vector.broadcast %cst_359 : f32 to vector<16x1xf32>
    %1147 = arith.addf %1143, %1146 : vector<16x1xf32>
    %1148 = math.rsqrt %1147 : vector<16x1xf32>
    %1149 = vector.broadcast %1148 : vector<16x1xf32> to vector<16x32xf32>
    %1150 = arith.mulf %1145, %1149 : vector<16x32xf32>
    %1151 = vector.broadcast %1131 : vector<1x32xf32> to vector<16x32xf32>
    %1152 = arith.mulf %1150, %1151 : vector<16x32xf32>
    %1153 = vector.broadcast %1132 : vector<1x32xf32> to vector<16x32xf32>
    %1154 = arith.addf %1152, %1153 : vector<16x32xf32>
    %c48 = arith.constant 48 : index
    %c0_360 = arith.constant 0 : index
    %1155 = vector.load %arg5[%c48, %c0_360] : memref<1016x128xf32, #tpu.memory_space<vmem>>, vector<2x32xf32>
    %1156 = vector.extract_strided_slice %1155 {offsets = [0, 0], sizes = [1, 32], strides = [1, 1]} : vector<2x32xf32> to vector<1x32xf32>
    %1157 = vector.extract_strided_slice %1155 {offsets = [1, 0], sizes = [1, 32], strides = [1, 1]} : vector<2x32xf32> to vector<1x32xf32>
    %cst_361 = arith.constant dense<0.000000e+00> : vector<16xf32>
    %1158 = vector.multi_reduction <add>, %1154, %cst_361 [1] : vector<16x32xf32> to vector<16xf32>
    %1159 = vector.shape_cast %1158 : vector<16xf32> to vector<16x1xf32>
    %cst_362 = arith.constant 3.200000e+01 : f32
    %1160 = vector.broadcast %cst_362 : f32 to vector<16x1xf32>
    %1161 = arith.divf %1159, %1160 : vector<16x1xf32>
    %1162 = vector.broadcast %1161 : vector<16x1xf32> to vector<16x32xf32>
    %1163 = arith.subf %1154, %1162 : vector<16x32xf32>
    %1164 = arith.mulf %1163, %1163 : vector<16x32xf32>
    %cst_363 = arith.constant dense<0.000000e+00> : vector<16xf32>
    %1165 = vector.multi_reduction <add>, %1164, %cst_363 [1] : vector<16x32xf32> to vector<16xf32>
    %1166 = vector.shape_cast %1165 : vector<16xf32> to vector<16x1xf32>
    %cst_364 = arith.constant 3.200000e+01 : f32
    %1167 = vector.broadcast %cst_364 : f32 to vector<16x1xf32>
    %1168 = arith.divf %1166, %1167 : vector<16x1xf32>
    %1169 = vector.broadcast %1161 : vector<16x1xf32> to vector<16x32xf32>
    %1170 = arith.subf %1154, %1169 : vector<16x32xf32>
    %cst_365 = arith.constant 9.99999974E-6 : f32
    %1171 = vector.broadcast %cst_365 : f32 to vector<16x1xf32>
    %1172 = arith.addf %1168, %1171 : vector<16x1xf32>
    %1173 = math.rsqrt %1172 : vector<16x1xf32>
    %1174 = vector.broadcast %1173 : vector<16x1xf32> to vector<16x32xf32>
    %1175 = arith.mulf %1170, %1174 : vector<16x32xf32>
    %1176 = vector.broadcast %1156 : vector<1x32xf32> to vector<16x32xf32>
    %1177 = arith.mulf %1175, %1176 : vector<16x32xf32>
    %1178 = vector.broadcast %1157 : vector<1x32xf32> to vector<16x32xf32>
    %1179 = arith.addf %1177, %1178 : vector<16x32xf32>
    %c24 = arith.constant 24 : index
    %c0_366 = arith.constant 0 : index
    %1180 = vector.load %arg5[%c24, %c0_366] : memref<1016x128xf32, #tpu.memory_space<vmem>>, vector<1x32xf32>
    %c32 = arith.constant 32 : index
    %c0_367 = arith.constant 0 : index
    %1181 = vector.load %arg5[%c32, %c0_367] : memref<1016x128xf32, #tpu.memory_space<vmem>>, vector<1x1xf32>
    %1182 = vector.broadcast %1180 : vector<1x32xf32> to vector<16x32xf32>
    %1183 = arith.mulf %1179, %1182 : vector<16x32xf32>
    %cst_368 = arith.constant dense<0.000000e+00> : vector<16xf32>
    %1184 = vector.multi_reduction <add>, %1183, %cst_368 [1] : vector<16x32xf32> to vector<16xf32>
    %1185 = vector.shape_cast %1184 : vector<16xf32> to vector<16x1xf32>
    %1186 = vector.broadcast %1181 : vector<1x1xf32> to vector<16x1xf32>
    %1187 = arith.addf %1185, %1186 : vector<16x1xf32>
    %c0_369 = arith.constant 0 : index
    %c0_370 = arith.constant 0 : index
    %1188 = vector.load %arg6[%c0_369, %c0_370] : memref<16x1xf32, #tpu.memory_space<vmem>>, vector<16x1xf32>
    tpu.vector_store %arg6[%c0_369, %c0_370], %1187 {strides = array<i32>} : memref<16x1xf32, #tpu.memory_space<vmem>>, vector<16x1xf32>,
    return
  }
  func.func @transform_0(%arg0: i32) -> (i32, i32) {
    %c0_i32 = arith.constant 0 : i32
    %c0_i32_0 = arith.constant 0 : i32
    %c0_i32_1 = arith.constant 0 : i32
    return %c0_i32, %c0_i32_0 : i32, i32
  }
  func.func @transform_1(%arg0: i32) -> (i32, i32) {
    %c0_i32 = arith.constant 0 : i32
    %c0_i32_0 = arith.constant 0 : i32
    %c0_i32_1 = arith.constant 0 : i32
    return %c0_i32, %c0_i32_0 : i32, i32
  }
  func.func @transform_2(%arg0: i32) -> (i32, i32) {
    %c0_i32 = arith.constant 0 : i32
    %c0_i32_0 = arith.constant 0 : i32
    %c0_i32_1 = arith.constant 0 : i32
    return %c0_i32, %c0_i32_0 : i32, i32
  }
  func.func @transform_3(%arg0: i32) -> (i32, i32) {
    %c0_i32 = arith.constant 0 : i32
    %c0_i32_0 = arith.constant 0 : i32
    %c0_i32_1 = arith.constant 0 : i32
    return %c0_i32, %c0_i32_0 : i32, i32
  }
  func.func @transform_4(%arg0: i32) -> (i32, i32) {
    %c0_i32 = arith.constant 0 : i32
    %c0_i32_0 = arith.constant 0 : i32
    %c0_i32_1 = arith.constant 0 : i32
    return %c0_i32, %c0_i32_0 : i32, i32
  }
  func.func @transform_5(%arg0: i32) -> (i32, i32) {
    %c0_i32 = arith.constant 0 : i32
    %c0_i32_0 = arith.constant 0 : i32
    %c0_i32_1 = arith.constant 0 : i32
    return %c0_i32, %c0_i32_0 : i32, i32
  }
}

</mosaic_0001>

<bundles_post_ra>
// kernel: pm_candidate_forward.1
= control target key start
LH: loop header
LB: loop body
LE: loop exit
PB: predicated region body
PF: predicated region fallthrough
CT: control target
= control target key end

     0   :  { %10 = vsyncpa [#allocation3], 0  ;;  %s12227_s18 = smov [#allocation2]   ;;  %s13374_s0 = inlined_call_operand.vmem [shape: f32[12,8], index: 0, kind: input, shape index: {}]   ;;  %s13375_s1 = inlined_call_operand.vmem [shape: f32[12,32], index: 1, kind: input, shape index: {}]   ;;  %s13376_s2 = inlined_call_operand.vmem [shape: f32[16,9], index: 2, kind: input, shape index: {}]   ;;  %s13377_s3 = inlined_call_operand.vmem [shape: f32[16,32], index: 3, kind: input, shape index: {}]   ;;  %s13378_s4 = inlined_call_operand.hbm [shape: f32[1016,128], index: 4, kind: input, shape index: {}]   ;;  %s13379_s5 = inlined_call_operand.vmem [shape: f32[16,1], index: 5, kind: output, shape index: {}]  }
   0x1   :  { %s24_s19 = sshll.u32 %s12227_s18, 4  ;;  %s12203_s22 = scalar_lea.hbm %s13378_s4, 16256  ;;  %s25_s19 = int_to_ptr.vmem [resolvable:$true] %s24_s19 }
   0x2   :  { %p12204_p0 = scmp.ne.s32.totalorder %s13378_s4, %s12203_s22  ;;  %p12207_p1 = scmp.lt.u32.totalorder %s12203_s22, %s13378_s4 }
   0x4   :  { %p12209_p2 = pnand %p12207_p1, %p12204_p0 }
   0x6   :  { %12212 = shalt.err (!%p12209_p2)
}
   0x7   :  { %s12213_s27 = scalar_lea.vmem %s25_s19, 16256  ;;  %p12218_p4 = scmp.lt.s32.totalorder %s25_s19, %s25_s19 }
   0x8   :  { %p12214_p3 = scmp.ne.s32.totalorder %s25_s19, %s12213_s27  ;;  %p12219_p5 = scmp.lt.s32.totalorder %s12213_s27, %s12213_s27 }
   0xa   :  { %p12220_p6 = por %p12219_p5, %p12218_p4 }
   0xc   :  { %p12221_p7 = pnand %p12220_p6, %p12214_p3 }
   0xe   :  { %12224 = shalt.err (!%p12221_p7)
}
   0xf   :  { %s12228_s28 = smov 128   ;;  %s12229_s29 = smov 8  }
  0x10   :  { %30 = dma.hbm_to_vmem [thread:$0]  %s13378_s4, 16256, %s25_s19, [#allocation3], %s12228_s28, %s12228_s28, %s12229_s29  }
  0x11   :  { %12225 = dma.done.wait [#allocation3], 16256  }
  0x12   :  { %12226 = vsyncadd [#allocation3], 4294951040  ;;  %vm202_vm0 = vcmask 1040384   ;;  %vm107_vm1 = vcmask 64512   ;;  %vm12230_vm2 = vmmov 1   ;;  %v104_v1 = vld [vmem:[#allocation2] sm:$0xff]  ;;  %v34_v46 = vlaneseq }
  0x13   :  { %vm12282_vm3 = vmpackc.low %vm202_vm0, %vm12230_vm2  ;;  %v102_v2 = vld [vmem:[%s13374_s0] sm:$0xff]  ;;  %v103_v3 = vld [vmem:[%s13374_s0 + $0x8] sm:$0xf]  ;;  %10423 = vmatprep.subr.mxu0 %v104_v1  ;;  %vm195_vm4 = vcmask 72704   ;;  %s12231_s0 = smov 96   ;;  %vm296_vm5 = vcmask 261120  }
  0x14   :  { %10425 = vmatprep.mubr.msk.f32.mxu0 %vm107_vm1, %v102_v2  ;;  %v282_v4 = vld [vmem:[#allocation2 + $0x38] sm:$0xff]  ;;  %v283_v5 = vld [vmem:[#allocation2 + $0x40] sm:$0xff]  ;;  %v284_v6 = vld [vmem:[#allocation2 + $0x48] sm:$0xff]  ;;  %10424 = vmatpush3.msra.mxu0 %v104_v1  ;;  %v12351_v47 = vshrl.u32 %v34_v46, 7  ;;  %v12353_v48 = vand.u32 127, %v34_v46  ;;  %s12234_s17 = smov 112  }
  0x15   :  { %v11661_v7 = vpack.i.bf16 %v283_v5, %v282_v4  ;;  %v285_v8 = vld [vmem:[#allocation2 + $0x50] sm:$0xff]  ;;  %v191_v9 = vld [vmem:[#allocation2 + $0x8] sm:$0xff]  ;;  %10426 = vmatmul.mubr.msk.f32.vlgmr.msra.gmra.mrb[0].mxu0 %vm107_vm1, %v103_v3  ;;  %v11149_v11 = vpack.c.bf16 %v283_v5, %v282_v4  ;;  %v189_v13 = vld [vmem:[%s13376_s2] sm:$0xff]  ;;  %v12232_v50 = vmov -1e+30   ;;  %s12235_s18 = smov 88  }
  0x16   :  { %v192_v10 = vld [vmem:[#allocation2 + $0x10] sm:$0x1]  ;;  %v11666_v14 = vpack.i.bf16 %v285_v8, %v284_v6  ;;  %10432 = vmatprep.mubr.msk.f32.mxu1 %vm195_vm4, %v189_v13  ;;  %v190_v15 = vld [vmem:[%s13376_s2 + $0x8] sm:$0xff]  ;;  %v11153_v16 = vpack.c.bf16 %v285_v8, %v284_v6  ;;  %v9746_v17 = vld [vmem:[#allocation2 + $0x58] ss:$0 sm:$0xff]  ;;  %v36_v49 = vadd.s32 8, %v12351_v47 }
  0x17   :  { %v11143_v12 = vpack.c.bf16 %v192_v10, %v191_v9  ;;  %11662 = vrot.lane.b32.xlu0 %v11661_v7, %s12231_s0  ;;  %395 = vrot.lane.b32.xlu1 %v9746_v17, %s12231_s0  ;;  %v105_v23 = vld [vmem:[%s13375_s1] sm:$0xff]  ;;  %v106_v26 = vld [vmem:[%s13375_s1 + $0x8] sm:$0xf]  ;;  %vm12337_vm6 = vmpackc.low %vm107_vm1, %vm107_vm1  ;;  %vm57_vm7 = vcmp.ge.s32.totalorder %v12353_v48, 6  ;;  %vm51_vm8 = vcmp.ge.s32.totalorder %v12351_v47, 6  ;;  %vm41_vm10 = vcmp.lt.s32.totalorder %v12351_v47, 6 }
  0x18   :  { %vm54_vm9 = vcmp.lt.s32.totalorder %v36_v49, 12  ;;  %vm48_vm11 = vcmp.lt.s32.totalorder %v12353_v48, 6  ;;  %vm60_vm12 = vcmp.lt.s32.totalorder %v12353_v48, 12  ;;  %vm58_vm13 = vmand %vm51_vm8, %vm57_vm7  ;;  %vm564_vm8 = vcmask 93184   ;;  %s12233_s1 = smov 120   ;;  %s12236_s19 = smov 104  }
  0x19   :  { %11145 = vmatprep.subr.msk.bf16.mxu1 %vm12282_vm3, %v11143_v12  ;;  %vm59_vm14 = vmand %vm54_vm9, %vm57_vm7  ;;  %vm560_vm9 = vcmask 97280   ;;  %s12237_s20 = smov 80   ;;  %s12238_s21 = smov 72  }
  0x1a   :  { %11148 = vmatpush3.bf16.msk.msra.mxu1 %vm12282_vm3, %v11143_v12  ;;  %vm49_vm15 = vmand %vm41_vm10, %vm48_vm11  ;;  %vm597_vm10 = vcmask 1043456  }
  0x1b   :  { %11150 = vmatprep.subr.bf16.mxu1 %v11149_v11  ;;  %11667 = vrot.lane.b32.xlu0 %v11666_v14, %s12231_s0  ;;  %vm61_vm0 = vmand %vm58_vm13, %vm60_vm12 }
  0x1c   :  { %vm62_vm3 = vmand %vm59_vm14, %vm60_vm12 }
  0x1d   :  { %10433 = vmatmul.mubr.msk.f32.vlgmr.msra.gmra.mrb[0].mxu1 %vm195_vm4, %v190_v15  ;;  %vm63_vm4 = vmor %vm49_vm15, %vm61_vm0  ;;  %v12372_v51 = vsel %vm62_vm3, 0.0, %v12232_v50  ;;  %vm1817_vm0 = vcmask 523264  }
  0x1e   :  { %11152 = vmatpush3.bf16.msra.mxu1 %v11149_v11  ;;  %v12375_v52 = vsel %vm63_vm4, 0.0, %v12232_v50  ;;  %vm12398_vm13 = vmpackc.low %vm597_vm10, %vm12230_vm2  ;;  %vm1623_vm2 = vcmask 257024   ;;  %vm85_vm10 = vcmp.lt.s32.totalorder %v12353_v48, 16 }
  0x1f   :  { %11154 = vmatprep.subr.bf16.mxu1 %v11153_v16 }
  0x22   :  { %11156 = vmatpush3.bf16.msra.mxu1 %v11153_v16 }
  0x89   :  { %v11663_v18 = vpop.permute.xlu0 %11662  ;;  %v396_v37 = vpop.permute.xlu1 %395 }
  0x8a   :  { %v11665_v19 = vunpack.i.h.bf16 %v11663_v18  ;;  %v11664_v20 = vunpack.i.l.bf16 %v11663_v18 }
  0x8c   :  { %v11157_v21 = vpack.c.bf16 %v11665_v19, %v11664_v20 }
  0x8d   :  { %v11668_v22 = vpop.permute.xlu0 %11667 }
  0x8e   :  { %11158 = vmatprep.subr.bf16.mxu1 %v11157_v21  ;;  %v11670_v24 = vunpack.i.h.bf16 %v11668_v22  ;;  %v11669_v25 = vunpack.i.l.bf16 %v11668_v22 }
  0x90   :  { %v11161_v31 = vpack.c.bf16 %v11670_v24, %v11669_v25 }
  0xe8   :  { %v10427_v27 = vpop.f32.mrb[0].mxu0 }
  0xe9   :  { %v180_v28 = vpop.f32.mrb[1].mxu0  ;;  %v12317_v30 = vadd.f32 %v10427_v27, %v106_v26 }
  0xea   :  { %v12315_v29 = vadd.f32 %v180_v28, %v105_v23 }
  0xec   :  { %10443 = vmatprep.mubr.msk.f32.mxu1 %vm296_vm5, %v12315_v29 }
  0xed   :  { %10444 = vmatmul.mubr.msk.f32.vlgmr.msra.gmra.mrb[2].mxu1 %vm296_vm5, %v12317_v30 }
  0xee   :  { %11160 = vmatpush3.bf16.msra.mxu1 %v11157_v21  ;;  %10454 = vmatprep.mubr.msk.f32.mxu1 %vm296_vm5, %v12315_v29 }
  0xef   :  { %11162 = vmatprep.subr.bf16.mxu1 %v11161_v31 }
  0xf0   :  { %v12325_v32 = vpop.f32.mrb[0].mxu1 }
  0xf1   :  { %v12327_v33 = vpop.f32.mrb[1].mxu1 }
  0xf2   :  { %11164 = vmatpush3.bf16.msra.mxu1 %v11161_v31 }
  0xf5   :  { %10455 = vmatmul.mubr.msk.f32.vlgmr.msra.gmra.mrb[4].mxu1 %vm296_vm5, %v12317_v30 }
 0x1c0   :  { %v10445_v34 = vpop.f32.mrb[2].mxu1 }
 0x1c1   :  { %v369_v35 = vpop.f32.mrb[3].mxu1  ;;  %v12347_v45 = vadd.f32 %v10445_v34, %v9746_v17 }
 0x1c2   :  { %v12331_v36 = vadd.f32 %v9746_v17, %v369_v35 }
 0x1c4   :  { %10461 = vmatprep.mubr.msk.f32.mxu0 %vm107_vm1, %v12331_v36 }
 0x1c8   :  { %v10456_v38 = vpop.f32.mrb[4].mxu1 }
 0x1c9   :  { %v470_v39 = vadd.f32 %v10456_v38, %v396_v37  ;;  %v464_v40 = vpop.f32.mrb[5].mxu1 }
 0x1ca   :  { %v465_v41 = vadd.f32 %v464_v40, %v396_v37 }
 0x1cc   :  { %v11165_v43 = vpack.c.bf16 %v470_v39, %v465_v41  ;;  %v12341_v44 = vpack.i.bf16 %v470_v39, %v465_v41 }
 0x1ce   :  { %11167 = vmatprep.subr.msk.bf16.mxu0 %vm12337_vm6, %v11165_v43 }
 0x1cf   :  { %11170 = vmatpush3.bf16.xpose.msk.msra.mxu0 %vm12337_vm6, %v11165_v43 }
 0x1d6   :  { %10462 = vmatmul.mubr.msk.f32.vlgmr.msra.gmra.mrb[2].mxu0 %vm107_vm1, %v12347_v45 }
 0x2a9   :  { %v10463_v53 = vpop.f32.mrb[2].mxu0 }
 0x2aa   :  { %v557_v54 = vadd.f32 %v10463_v53, %v12372_v51  ;;  %v551_v55 = vpop.f32.mrb[3].mxu0 }
 0x2ab   :  { %v552_v56 = vadd.f32 %v551_v55, %v12375_v52 }
 0x2ac   :  { %v565_v57 = vsel %vm564_vm8, %v557_v54, -inf }
 0x2ad   :  { %566 = vmax.xlane.f32.xlu0 %v565_v57  ;;  %v561_v58 = vsel %vm560_vm9, %v552_v56, -inf }
 0x2ae   :  { %562 = vmax.xlane.f32.xlu1 %v561_v58 }
 0x33a   :  { %v567_v59 = vpop.xlane.xlu0 %566 }
 0x33b   :  { %v569_v60 = vsub.f32 %v557_v54, %v567_v59  ;;  %v563_v61 = vpop.xlane.xlu1 %562 }
 0x33c   :  { %v568_v62 = vsub.f32 %v552_v56, %v563_v61 }
 0x33d   :  { %v572_v63 = vmul.f32 1.442695, %v569_v60 }
 0x33e   :  { %v570_v0 = vmul.f32 1.442695, %v568_v62 }
 0x33f   :  { %11931 = vpow2.f32 %v572_v63 }
 0x340   :  { %11933 = vpow2.f32 %v570_v0 }
 0x349   :  { %v11932_v1 = vpop.eup %11931 }
 0x34a   :  { %v11934_v2 = vpop.eup %11933  ;;  %v577_v3 = vsel %vm564_vm8, %v11932_v1, 0.0 }
 0x34b   :  { %578 = vadd.xlane.f32.xlu1 %v577_v3  ;;  %v574_v4 = vsel %vm560_vm9, %v11934_v2, 0.0 }
 0x34c   :  { %575 = vadd.xlane.f32.xlu0 %v574_v4 }
 0x35c   :  { %11677 = vrot.lane.b32.xlu1 %v12341_v44, %s12233_s1 }
 0x360   :  { %675 = vrot.lane.b32.xlu1 %v12331_v36, %s12233_s1 }
 0x362   :  { %11672 = vrot.lane.b32.xlu0 %v12341_v44, %s12231_s0 }
 0x364   :  { %11682 = vrot.lane.b32.xlu1 %v12341_v44, %s12234_s17 }
 0x366   :  { %677 = vrot.lane.b32.xlu0 %v12347_v45, %s12233_s1 }
 0x368   :  { %1042 = vrot.lane.b32.xlu1 %v12347_v45, %s12234_s17 }
 0x36a   :  { %1040 = vrot.lane.b32.xlu0 %v12331_v36, %s12234_s17 }
 0x3d8   :  { %v579_v5 = vpop.xlane.xlu1 %578 }
 0x3d9   :  { %11935 = vrcp.f32 %v579_v5  ;;  %v576_v6 = vpop.xlane.xlu0 %575 }
 0x3da   :  { %11937 = vrcp.f32 %v576_v6 }
 0x3dc   :  { %v11678_v7 = vpop.permute.xlu1 %11677 }
 0x3dd   :  { %v11673_v8 = vpop.permute.xlu0 %11672  ;;  %v11680_v9 = vunpack.i.h.bf16 %v11678_v7  ;;  %v11679_v10 = vunpack.i.l.bf16 %v11678_v7 }
 0x3de   :  { %v11675_v11 = vunpack.i.h.bf16 %v11673_v8  ;;  %v11674_v12 = vunpack.i.l.bf16 %v11673_v8 }
 0x3df   :  { %v11177_v16 = vpack.c.bf16 %v11680_v9, %v11679_v10 }
 0x3e0   :  { %v11171_v14 = vpack.c.bf16 %v11675_v11, %v11674_v12  ;;  %v676_v15 = vpop.permute.xlu1 %675 }
 0x3e1   :  { %v678_v25 = vpop.permute.xlu0 %677 }
 0x3e2   :  { %11173 = vmatprep.subr.msk.bf16.mxu1 %vm12398_vm13, %v11171_v14 }
 0x3e3   :  { %v11936_v17 = vpop.eup %11935  ;;  %11176 = vmatpush3.bf16.msk.msra.mxu1 %vm12398_vm13, %v11171_v14 }
 0x3e4   :  { %v11938_v18 = vpop.eup %11937  ;;  %v11683_v19 = vpop.permute.xlu1 %11682  ;;  %11179 = vmatprep.subr.msk.bf16.mxu1 %vm12337_vm6, %v11177_v16  ;;  %v585_v21 = vmul.f32 %v11936_v17, %v11932_v1 }
 0x3e5   :  { %v584_v20 = vmul.f32 %v11938_v18, %v11934_v2  ;;  %v11685_v22 = vunpack.i.h.bf16 %v11683_v19  ;;  %v11684_v23 = vunpack.i.l.bf16 %v11683_v19  ;;  %v1041_v26 = vpop.permute.xlu0 %1040 }
 0x3e7   :  { %10468 = vmatprep.mubr.msk.f32.mxu1 %vm560_vm9, %v584_v20  ;;  %v11189_v24 = vpack.c.bf16 %v11685_v22, %v11684_v23 }
 0x3e8   :  { %10469 = vmatmul.mubr.msk.f32.vlgmr.msra.gmra.mrb[6].mxu1 %vm560_vm9, %v585_v21  ;;  %v1043_v27 = vpop.permute.xlu1 %1042 }
 0x3e9   :  { %10475 = vmatprep.mubr.msk.f32.mxu1 %vm107_vm1, %v676_v15 }
 0x3ec   :  { %11182 = vmatpush3.bf16.xpose.msk.msra.mxu1 %vm12337_vm6, %v11177_v16 }
 0x3ed   :  { %11191 = vmatprep.subr.msk.bf16.mxu1 %vm12337_vm6, %v11189_v24 }
 0x3f3   :  { %10476 = vmatmul.mubr.msk.f32.vlgmr.msra.gmra.mrb[8].mxu1 %vm107_vm1, %v678_v25  ;;  %v288_v25 = vld [vmem:[#allocation2 + $0x68] sm:$0xff] }
 0x3f4   :  { %11194 = vmatpush3.bf16.xpose.msk.msra.mxu1 %vm12337_vm6, %v11189_v24  ;;  %10499 = vmatprep.mubr.msk.f32.mxu1 %vm107_vm1, %v1041_v26  ;;  %v287_v26 = vld [vmem:[#allocation2 + $0x60] sm:$0xff] }
 0x3fb   :  { %10500 = vmatmul.mubr.msk.f32.vlgmr.msra.gmra.mrb[10].mxu1 %vm107_vm1, %v1043_v27 }
 0x4bb   :  { %v12420_v28 = vpop.f32.mrb[6].mxu1 }
 0x4bc   :  { %v12422_v31 = vpop.f32.mrb[7].mxu1 }
 0x4c6   :  { %v10477_v34 = vpop.f32.mrb[8].mxu1 }
 0x4c7   :  { %v763_v35 = vadd.f32 %v10477_v34, %v12372_v51  ;;  %v757_v37 = vpop.f32.mrb[9].mxu1 }
 0x4c8   :  { %v758_v38 = vadd.f32 %v757_v37, %v12375_v52 }
 0x4c9   :  { %v769_v39 = vsel %vm564_vm8, %v763_v35, -inf }
 0x4ca   :  { %770 = vmax.xlane.f32.xlu1 %v769_v39  ;;  %v766_v40 = vsel %vm560_vm9, %v758_v38, -inf }
 0x4cb   :  { %767 = vmax.xlane.f32.xlu0 %v766_v40 }
 0x4ce   :  { %v10501_v41 = vpop.f32.mrb[10].mxu1 }
 0x4cf   :  { %v1122_v43 = vpop.f32.mrb[11].mxu1  ;;  %v1128_v46 = vadd.f32 %v10501_v41, %v12372_v51 }
 0x4d0   :  { %v1123_v2 = vadd.f32 %v1122_v43, %v12375_v52 }
 0x4d1   :  { %v1134_v49 = vsel %vm564_vm8, %v1128_v46, -inf }
 0x4d2   :  { %v1131_v3 = vsel %vm560_vm9, %v1123_v2, -inf }
 0x4db   :  { %11687 = vrot.lane.b32.xlu1 %v12341_v44, %s12235_s18 }
 0x4df   :  { %1326 = vrot.lane.b32.xlu1 %v12331_v36, %s12236_s19 }
 0x4e3   :  { %1328 = vrot.lane.b32.xlu1 %v12347_v45, %s12236_s19 }
 0x507   :  { %1135 = vmax.xlane.f32.xlu1 %v1134_v49 }
 0x518   :  { %11697 = vrot.lane.b32.xlu1 %v12341_v44, %s12237_s20 }
 0x51c   :  { %11702 = vrot.lane.b32.xlu1 %v12341_v44, %s12238_s21 }
 0x557   :  { %v771_v53 = vpop.xlane.xlu1 %770 }
 0x558   :  { %v773_v54 = vsub.f32 %v763_v35, %v771_v53  ;;  %v768_v55 = vpop.xlane.xlu0 %767 }
 0x559   :  { %v772_v36 = vsub.f32 %v758_v38, %v768_v55 }
 0x55a   :  { %v776_v56 = vmul.f32 1.442695, %v773_v54 }
 0x55b   :  { %v774_v57 = vmul.f32 1.442695, %v772_v36  ;;  %v11688_v45 = vpop.permute.xlu1 %11687 }
 0x55c   :  { %v11690_v58 = vunpack.i.h.bf16 %v11688_v45  ;;  %v11689_v59 = vunpack.i.l.bf16 %v11688_v45  ;;  %v289_v45 = vld [vmem:[#allocation2 + $0x70] sm:$0xff] }
 0x55d   :  { %11939 = vpow2.f32 %v774_v57 }
 0x55e   :  { %v11183_v60 = vpack.c.bf16 %v11690_v58, %v11689_v59  ;;  %11941 = vpow2.f32 %v776_v56 }
 0x55f   :  { %v1327_v61 = vpop.permute.xlu1 %1326 }
 0x560   :  { %11185 = vmatprep.subr.msk.bf16.mxu0 %vm12398_vm13, %v11183_v60  ;;  %10518 = vmatprep.mubr.msk.f32.mxu1 %vm107_vm1, %v1327_v61 }
 0x561   :  { %11188 = vmatpush3.bf16.msk.msra.mxu0 %vm12398_vm13, %v11183_v60 }
 0x562   :  { %10485 = vmatprep.subr.mxu0 %v288_v25 }
 0x563   :  { %v1329_v14 = vpop.permute.xlu1 %1328 }
 0x567   :  { %v11940_v62 = vpop.eup %11939 }
 0x568   :  { %v778_v63 = vsel %vm560_vm9, %v11940_v62, 0.0  ;;  %v11942_v0 = vpop.eup %11941 }
 0x569   :  { %779 = vadd.xlane.f32.xlu0 %v778_v63  ;;  %v781_v1 = vsel %vm564_vm8, %v11942_v0, 0.0 }
 0x56d   :  { %782 = vadd.xlane.f32.xlu0 %v781_v1 }
 0x583   :  { %11692 = vrot.lane.b32.xlu0 %v12341_v44, %s12236_s19 }
 0x594   :  { %v1136_v15 = vpop.xlane.xlu1 %1135 }
 0x595   :  { %v1138_v16 = vsub.f32 %v1128_v46, %v1136_v15 }
 0x597   :  { %v1141_v19 = vmul.f32 1.442695, %v1138_v16 }
 0x598   :  { %v11698_v34 = vpop.permute.xlu1 %11697 }
 0x599   :  { %v11700_v37 = vunpack.i.h.bf16 %v11698_v34  ;;  %v11699_v38 = vunpack.i.l.bf16 %v11698_v34 }
 0x59b   :  { %v11195_v41 = vpack.c.bf16 %v11700_v37, %v11699_v38 }
 0x59c   :  { %v11703_v55 = vpop.permute.xlu1 %11702 }
 0x59d   :  { %v11705_v58 = vunpack.i.h.bf16 %v11703_v55  ;;  %v11704_v59 = vunpack.i.l.bf16 %v11703_v55 }
 0x59f   :  { %v11207_v61 = vpack.c.bf16 %v11705_v58, %v11704_v59 }
 0x5a2   :  { %1132 = vmax.xlane.f32.xlu0 %v1131_v3 }
 0x5f6   :  { %v780_v4 = vpop.xlane.xlu0 %779 }
 0x5f7   :  { %11943 = vrcp.f32 %v780_v4 }
 0x5fa   :  { %v783_v5 = vpop.xlane.xlu0 %782 }
 0x5fb   :  { %11945 = vrcp.f32 %v783_v5 }
 0x5fe   :  { %v11693_v6 = vpop.permute.xlu0 %11692 }
 0x5ff   :  { %v11695_v7 = vunpack.i.h.bf16 %v11693_v6  ;;  %v11694_v8 = vunpack.i.l.bf16 %v11693_v6 }
 0x601   :  { %v11944_v9 = vpop.eup %11943  ;;  %v11201_v10 = vpack.c.bf16 %v11695_v7, %v11694_v8 }
 0x602   :  { %v788_v11 = vmul.f32 %v11944_v9, %v11940_v62  ;;  %v290_v9 = vld [vmem:[#allocation2 + $0x78] sm:$0xff] }
 0x603   :  { %11203 = vmatprep.subr.msk.bf16.mxu1 %vm12337_vm6, %v11201_v10 }
 0x604   :  { %10482 = vmatprep.mubr.msk.f32.mxu0 %vm560_vm9, %v788_v11  ;;  %11206 = vmatpush3.bf16.xpose.msk.msra.mxu1 %vm12337_vm6, %v11201_v10 }
 0x605   :  { %v11946_v44 = vpop.eup %11945 }
 0x606   :  { %v789_v12 = vmul.f32 %v11946_v44, %v11942_v0 }
 0x608   :  { %10483 = vmatmul.mubr.msk.f32.vlgmr.msra.gmra.mrb[4].mxu0 %vm560_vm9, %v789_v12 }
 0x609   :  { %10486 = vmatpush3.msra.mxu0 %v288_v25 }
 0x60a   :  { %10490 = vmatprep.subr.mxu0 %v287_v26 }
 0x60b   :  { %10519 = vmatmul.mubr.msk.f32.vlgmr.msra.gmra.mrb[12].mxu1 %vm107_vm1, %v1329_v14 }
 0x62f   :  { %v1133_v17 = vpop.xlane.xlu0 %1132 }
 0x630   :  { %v1137_v18 = vsub.f32 %v1123_v2, %v1133_v17 }
 0x632   :  { %v1139_v20 = vmul.f32 1.442695, %v1137_v18  ;;  %v9787_v18 = vld [vmem:[#allocation2 + $0x80] ss:$0 sm:$0xff] }
 0x634   :  { %11947 = vpow2.f32 %v1139_v20 }
 0x635   :  { %11949 = vpow2.f32 %v1141_v19 }
 0x63e   :  { %v11948_v21 = vpop.eup %11947 }
 0x63f   :  { %v1143_v22 = vsel %vm560_vm9, %v11948_v21, 0.0  ;;  %v11950_v23 = vpop.eup %11949 }
 0x640   :  { %1144 = vadd.xlane.f32.xlu0 %v1143_v22  ;;  %v1146_v24 = vsel %vm564_vm8, %v11950_v23, 0.0 }
 0x644   :  { %1147 = vadd.xlane.f32.xlu0 %v1146_v24 }
 0x6cd   :  { %v1145_v27 = vpop.xlane.xlu0 %1144 }
 0x6ce   :  { %11951 = vrcp.f32 %v1145_v27 }
 0x6d1   :  { %v1148_v35 = vpop.xlane.xlu0 %1147 }
 0x6d2   :  { %11953 = vrcp.f32 %v1148_v35 }
 0x6d8   :  { %v11952_v53 = vpop.eup %11951 }
 0x6d9   :  { %v1153_v57 = vmul.f32 %v11952_v53, %v11948_v21  ;;  %v1662_v53 = vld [vmem:[#allocation2 + $0x98] sm:$0xff] }
 0x6db   :  { %v10484_v39 = vpop.f32.mrb[4].mxu0 }
 0x6dc   :  { %v869_v40 = vpop.f32.mrb[5].mxu0  ;;  %v11954_v56 = vpop.eup %11953 }
 0x6dd   :  { %10487 = vmatprep.mubr.msk.f32.mxu0 %vm107_vm1, %v869_v40  ;;  %v1154_v60 = vmul.f32 %v11954_v56, %v11950_v23 }
 0x6de   :  { %10488 = vmatmul.mubr.msk.f32.vlgmr.msra.gmra.mrb[6].mxu0 %vm107_vm1, %v10484_v39  ;;  %v10520_v43 = vpop.f32.mrb[12].mxu1 }
 0x6df   :  { %10491 = vmatpush3.msra.mxu0 %v287_v26  ;;  %10492 = vmatprep.mubr.msk.f32.mxu0 %vm107_vm1, %v12422_v31  ;;  %v1408_v46 = vpop.f32.mrb[13].mxu1  ;;  %v1414_v36 = vadd.f32 %v10520_v43, %v12372_v51 }
 0x6e0   :  { %11197 = vmatprep.subr.msk.bf16.mxu0 %vm12398_vm13, %v11195_v41  ;;  %v1409_v49 = vadd.f32 %v1408_v46, %v12375_v52  ;;  %v1661_v46 = vld [vmem:[#allocation2 + $0x90] sm:$0xff] }
 0x6e1   :  { %v1420_v31 = vsel %vm564_vm8, %v1414_v36, -inf }
 0x6e2   :  { %v1417_v54 = vsel %vm560_vm9, %v1409_v49, -inf }
 0x6e3   :  { %1418 = vmax.xlane.f32.xlu0 %v1417_v54  ;;  %v1663_v54 = vld [vmem:[#allocation2 + $0xa0] sm:$0xff] }
 0x6e4   :  { %v11217_v55 = vpack.c.bf16 %v1663_v54, %v1662_v53 }
 0x6e6   :  { %10493 = vmatmul.mubr.msk.f32.vlgmr.msra.gmra.mrb[6].mxu0 %vm107_vm1, %v12420_v28 }
 0x6e7   :  { %11200 = vmatpush3.bf16.msk.msra.mxu0 %vm12398_vm13, %v11195_v41  ;;  %10506 = vmatprep.mubr.msk.f32.mxu0 %vm560_vm9, %v1153_v57 }
 0x6e8   :  { %1421 = vmax.xlane.f32.xlu0 %v1420_v31  ;;  %10509 = vmatprep.subr.mxu0 %v289_v45  ;;  %v12495_v31 = vsub.s32 0, %v12351_v47 }
 0x6ea   :  { %10507 = vmatmul.mubr.msk.f32.vlgmr.msra.gmra.mrb[8].mxu0 %vm560_vm9, %v1154_v60  ;;  %v12497_v60 = vld [vmem:[#allocation2 + $0xf8] sm:$0xf] }
 0x6eb   :  { %10510 = vmatpush3.msra.mxu0 %v289_v45 }
 0x6ec   :  { %11209 = vmatprep.subr.msk.bf16.mxu0 %vm12398_vm13, %v11207_v61 }
 0x770   :  { %v1419_v62 = vpop.xlane.xlu0 %1418 }
 0x771   :  { %v1423_v63 = vsub.f32 %v1409_v49, %v1419_v62  ;;  %v1651_v62 = vrot.slane %v12497_v60, %v12495_v31 }
 0x773   :  { %v1425_v28 = vmul.f32 1.442695, %v1423_v63 }
 0x775   :  { %11955 = vpow2.f32 %v1425_v28  ;;  %v1422_v0 = vpop.xlane.xlu0 %1421 }
 0x776   :  { %v1424_v1 = vsub.f32 %v1414_v36, %v1422_v0 }
 0x778   :  { %v1427_v2 = vmul.f32 1.442695, %v1424_v1 }
 0x77a   :  { %11957 = vpow2.f32 %v1427_v2 }
 0x77f   :  { %v11956_v3 = vpop.eup %11955 }
 0x780   :  { %v1429_v4 = vsel %vm560_vm9, %v11956_v3, 0.0 }
 0x781   :  { %1430 = vadd.xlane.f32.xlu0 %v1429_v4 }
 0x784   :  { %v11958_v5 = vpop.eup %11957 }
 0x785   :  { %v1432_v6 = vsel %vm564_vm8, %v11958_v5, 0.0 }
 0x786   :  { %1433 = vadd.xlane.f32.xlu0 %v1432_v6 }
 0x7bd   :  { %v10508_v7 = vpop.f32.mrb[8].mxu0 }
 0x7be   :  { %v1234_v8 = vpop.f32.mrb[9].mxu0 }
 0x7bf   :  { %10511 = vmatprep.mubr.msk.f32.mxu0 %vm107_vm1, %v1234_v8  ;;  %v1666_v8 = vld [vmem:[#allocation2 + $0xb8] sm:$0xff] }
 0x7c0   :  { %10512 = vmatmul.mubr.msk.f32.vlgmr.msra.gmra.mrb[6].mxu0 %vm107_vm1, %v10508_v7  ;;  %v1665_v7 = vld [vmem:[#allocation2 + $0xb0] sm:$0xff] }
 0x7c1   :  { %11212 = vmatpush3.bf16.msk.msra.mxu0 %vm12398_vm13, %v11207_v61  ;;  %v12500_v61 = vsub.s32 1, %v12351_v47 }
 0x7c2   :  { %10528 = vmatprep.subr.mxu0 %v290_v9 }
 0x7c3   :  { %v1657_v0 = vrot.slane %v12497_v60, %v12500_v61 }
 0x80e   :  { %v1431_v10 = vpop.xlane.xlu0 %1430 }
 0x80f   :  { %11959 = vrcp.f32 %v1431_v10  ;;  %v1667_v10 = vld [vmem:[#allocation2 + $0xc0] sm:$0xff] }
 0x813   :  { %v1434_v11 = vpop.xlane.xlu0 %1433 }
 0x814   :  { %11961 = vrcp.f32 %v1434_v11  ;;  %v1668_v11 = vld [vmem:[#allocation2 + $0xc8] sm:$0xff] }
 0x819   :  { %v11960_v44 = vpop.eup %11959 }
 0x81a   :  { %v1439_v12 = vmul.f32 %v11960_v44, %v11956_v3  ;;  %v11225_v44 = vpack.c.bf16 %v1668_v11, %v1667_v10 }
 0x81c   :  { %10525 = vmatprep.mubr.msk.f32.mxu0 %vm560_vm9, %v1439_v12  ;;  %v1669_v12 = vld [vmem:[#allocation2 + $0xd0] sm:$0xff] }
 0x81e   :  { %v11962_v14 = vpop.eup %11961 }
 0x81f   :  { %v1440_v15 = vmul.f32 %v11962_v14, %v11958_v5  ;;  %v1670_v14 = vld [vmem:[#allocation2 + $0xd8] sm:$0xff] }
 0x821   :  { %10526 = vmatmul.mubr.msk.f32.vlgmr.msra.gmra.mrb[10].mxu0 %vm560_vm9, %v1440_v15  ;;  %v11229_v15 = vpack.c.bf16 %v1670_v14, %v1669_v12 }
 0x822   :  { %10529 = vmatpush3.msra.mxu0 %v290_v9  ;;  %v11221_v9 = vpack.c.bf16 %v1666_v8, %v1665_v7 }
 0x824   :  { %11222 = vmatprep.subr.bf16.mxu0 %v11221_v9 }
 0x8f4   :  { %v10527_v16 = vpop.f32.mrb[10].mxu0 }
 0x8f5   :  { %v1520_v17 = vpop.f32.mrb[11].mxu0 }
 0x8f6   :  { %10530 = vmatprep.mubr.msk.f32.mxu0 %vm107_vm1, %v1520_v17  ;;  %v1672_v17 = vld [vmem:[#allocation2 + $0xe8] sm:$0xff] }
 0x8f7   :  { %10531 = vmatmul.mubr.msk.f32.vlgmr.msra.gmra.mrb[6].mxu0 %vm107_vm1, %v10527_v16  ;;  %v1671_v16 = vld [vmem:[#allocation2 + $0xe0] sm:$0xff] }
 0x8f8   :  { %11224 = vmatpush3.bf16.msra.mxu0 %v11221_v9 }
 0x8f9   :  { %11226 = vmatprep.subr.bf16.mxu0 %v11225_v44 }
 0x8fc   :  { %11228 = vmatpush3.bf16.msra.mxu0 %v11225_v44 }
 0x8fd   :  { %11230 = vmatprep.subr.bf16.mxu0 %v11229_v15 }
 0x900   :  { %11232 = vmatpush3.bf16.msra.mxu0 %v11229_v15 }
 0x9ca   :  { %v10532_v19 = vpop.f32.mrb[6].mxu0 }
 0x9cb   :  { %v1617_v20 = vadd.f32 %v10532_v19, %v9787_v18  ;;  %v1601_v21 = vpop.f32.mrb[7].mxu0  ;;  %v9788_v19 = vld [vmem:[#allocation2 + $0xa8] ss:$0 sm:$0xff] }
 0x9cc   :  { %v1616_v22 = vadd.f32 %v9787_v18, %v1601_v21  ;;  %v11233_v18 = vpack.c.bf16 %v1672_v17, %v1671_v16 }
 0x9cd   :  { %v1619_v23 = vadd.f32 %v1617_v20, %v12317_v30 }
 0x9ce   :  { %v1618_v24 = vadd.f32 %v1616_v22, %v12315_v29  ;;  %v1660_v29 = vld [vmem:[#allocation2 + $0x88] sm:$0xff]  ;;  %11234 = vmatprep.subr.bf16.mxu0 %v11233_v18 }
 0x9cf   :  { %v1624_v25 = vsel %vm1623_vm2, %v1619_v23, 0.0  ;;  %v11213_v49 = vpack.c.bf16 %v1661_v46, %v1660_v29  ;;  %11236 = vmatpush3.bf16.msra.mxu0 %v11233_v18 }
 0x9d0   :  { %1625 = vadd.xlane.f32.xlu1 %v1624_v25  ;;  %v1620_v26 = vsel %vm296_vm5, %v1618_v24, 0.0 }
 0x9d1   :  { %1621 = vadd.xlane.f32.xlu0 %v1620_v26  ;;  %11214 = vmatprep.subr.bf16.mxu1 %v11213_v49 }
 0x9d2   :  { %11216 = vmatpush3.bf16.msra.mxu1 %v11213_v49 }
 0x9d3   :  { %11218 = vmatprep.subr.bf16.mxu1 %v11217_v55 }
 0x9d6   :  { %11220 = vmatpush3.bf16.msra.mxu1 %v11217_v55 }
 0xa5d   :  { %v1626_v27 = vpop.xlane.xlu1 %1625 }
 0xa5e   :  { %v1629_v34 = vmul.f32 0.03125, %v1626_v27  ;;  %v1622_v35 = vpop.xlane.xlu0 %1621 }
 0xa5f   :  { %v1628_v37 = vmul.f32 0.03125, %v1622_v35 }
 0xa60   :  { %v1631_v38 = vsub.f32 %v1619_v23, %v1629_v34 }
 0xa61   :  { %v1630_v39 = vsub.f32 %v1618_v24, %v1628_v37 }
 0xa62   :  { %v1633_v43 = vmul.f32 %v1631_v38, %v1631_v38 }
 0xa63   :  { %v1632_v40 = vmul.f32 %v1630_v39, %v1630_v39 }
 0xa64   :  { %v1637_v30 = vsel %vm1623_vm2, %v1633_v43, 0.0 }
 0xa65   :  { %v1634_v41 = vsel %vm296_vm5, %v1632_v40, 0.0 }
 0xa66   :  { %1635 = vadd.xlane.f32.xlu0 %v1634_v41 }
 0xa6a   :  { %1638 = vadd.xlane.f32.xlu0 %v1637_v30 }
 0xaf3   :  { %v1636_v36 = vpop.xlane.xlu0 %1635 }
 0xaf4   :  { %v1640_v56 = vmul.f32 0.03125, %v1636_v36 }
 0xaf6   :  { %v1642_v57 = vadd.f32 1e-05, %v1640_v56 }
 0xaf7   :  { %v1639_v45 = vpop.xlane.xlu0 %1638 }
 0xaf8   :  { %11963 = vrsqrt.f32 %v1642_v57  ;;  %v1641_v58 = vmul.f32 0.03125, %v1639_v45 }
 0xafa   :  { %v1643_v59 = vadd.f32 1e-05, %v1641_v58 }
 0xafc   :  { %11965 = vrsqrt.f32 %v1643_v59 }
 0xb02   :  { %v11964_v63 = vpop.eup %11963 }
 0xb03   :  { %v1646_v28 = vmul.f32 %v11964_v63, %v1630_v39 }
 0xb05   :  { %v1652_v1 = vmul.f32 %v1651_v62, %v1646_v28 }
 0xb06   :  { %v11966_v2 = vpop.eup %11965 }
 0xb07   :  { %v1647_v3 = vmul.f32 %v11966_v2, %v1631_v38  ;;  %v12506_v4 = vadd.f32 %v1657_v0, %v1652_v1 }
 0xb09   :  { %v1653_v5 = vmul.f32 %v1651_v62, %v1647_v3  ;;  %10541 = vmatprep.mubr.msk.f32.mxu1 %vm296_vm5, %v12506_v4 }
 0xb0b   :  { %v12510_v6 = vadd.f32 %v1657_v0, %v1653_v5 }
 0xb0d   :  { %10542 = vmatmul.mubr.msk.f32.vlgmr.msra.gmra.mrb[14].mxu1 %vm296_vm5, %v12510_v6 }
 0xbe0   :  { %v10543_v20 = vpop.f32.mrb[14].mxu1 }
 0xbe1   :  { %v1756_v21 = vadd.f32 %v10543_v20, %v9788_v19  ;;  %v1750_v22 = vpop.f32.mrb[15].mxu1 }
 0xbe2   :  { %v1751_v23 = vadd.f32 %v9788_v19, %v1750_v22 }
 0xbe3   :  { %v1762_v24 = vmul.f32 0.70710677, %v1756_v21  ;;  %v1760_v22 = vmul.f32 0.5, %v1756_v21 }
 0xbe4   :  { %v1761_v25 = vmul.f32 0.70710677, %v1751_v23  ;;  %v1759_v19 = vmul.f32 0.5, %v1751_v23 }
 0xbe5   :  { %v1764_v26 = vand.u32 2147483647, %v1762_v24  ;;  %vm1804_vm14 = vcmp.lt.f32.partialorder %v1762_v24, 0.0 }
 0xbe6   :  { %v1763_v27 = vand.u32 2147483647, %v1761_v25  ;;  %vm1803_vm15 = vcmp.lt.f32.partialorder %v1761_v25, 0.0 }
 0xbe7   :  { %v1766_v34 = vmul.f32 0.3275911, %v1764_v26  ;;  %v1792_v39 = vsub.f32 0.0, %v1764_v26 }
 0xbe8   :  { %v1765_v35 = vmul.f32 0.3275911, %v1763_v27  ;;  %v1791_v40 = vsub.f32 0.0, %v1763_v27 }
 0xbe9   :  { %v1768_v37 = vadd.f32 1.0, %v1766_v34  ;;  %v1794_v43 = vmul.f32 %v1792_v39, %v1764_v26  ;;  %v9791_v34 = vld [vmem:[#allocation2 + $0xf0] ss:$0 sm:$0xff] }
 0xbea   :  { %v1767_v38 = vadd.f32 1.0, %v1765_v35  ;;  %v1793_v46 = vmul.f32 %v1791_v40, %v1763_v27  ;;  %v1942_v40 = vld [vmem:[#allocation2 + $0x110] sm:$0xff] }
 0xbeb   :  { %11967 = vrcp.f32 %v1768_v37  ;;  %v1797_v54 = vmul.f32 1.442695, %v1794_v43 }
 0xbec   :  { %11969 = vrcp.f32 %v1767_v38  ;;  %v1795_v56 = vmul.f32 1.442695, %v1793_v46 }
 0xbed   :  { %11971 = vpow2.f32 %v1797_v54 }
 0xbee   :  { %11973 = vpow2.f32 %v1795_v56  ;;  %v1940_v56 = vld [vmem:[#allocation2 + $0x100] sm:$0xff] }
 0xbf5   :  { %v11968_v41 = vpop.eup %11967 }
 0xbf6   :  { %v11970_v30 = vpop.eup %11969  ;;  %v1774_v29 = vmul.f32 1.0614054, %v11968_v41 }
 0xbf7   :  { %v1773_v49 = vmul.f32 1.0614054, %v11970_v30  ;;  %v11972_v7 = vpop.eup %11971 }
 0xbf8   :  { %v1776_v53 = vadd.f32 -1.4531521, %v1774_v29  ;;  %v11974_v9 = vpop.eup %11973 }
 0xbf9   :  { %v1775_v55 = vadd.f32 -1.4531521, %v1773_v49 }
 0xbfa   :  { %v1778_v36 = vmul.f32 %v11968_v41, %v1776_v53 }
 0xbfb   :  { %v1777_v57 = vmul.f32 %v11970_v30, %v1775_v55 }
 0xbfc   :  { %v1780_v45 = vadd.f32 1.4214138, %v1778_v36 }
 0xbfd   :  { %v1779_v58 = vadd.f32 1.4214138, %v1777_v57  ;;  %v1941_v57 = vld [vmem:[#allocation2 + $0x108] sm:$0xff] }
 0xbfe   :  { %v1782_v59 = vmul.f32 %v11968_v41, %v1780_v45  ;;  %v11706_v45 = vpack.i.bf16 %v1941_v57, %v1940_v56 }
 0xbff   :  { %v1781_v62 = vmul.f32 %v11970_v30, %v1779_v58  ;;  %v11237_v58 = vpack.c.bf16 %v1941_v57, %v1940_v56 }
 0xc00   :  { %v1784_v63 = vadd.f32 -0.28449672, %v1782_v59 }
 0xc01   :  { %v1783_v28 = vadd.f32 -0.28449672, %v1781_v62  ;;  %11238 = vmatprep.subr.bf16.mxu1 %v11237_v58  ;;  %v9794_v62 = vld [vmem:[#allocation2 + $0x120] ss:$0 sm:$0xff] }
 0xc02   :  { %v1786_v0 = vmul.f32 %v11968_v41, %v1784_v63  ;;  %11240 = vmatpush3.bf16.msra.mxu1 %v11237_v58 }
 0xc03   :  { %v1785_v1 = vmul.f32 %v11970_v30, %v1783_v28 }
 0xc04   :  { %v1788_v2 = vadd.f32 0.2548296, %v1786_v0 }
 0xc05   :  { %v1787_v3 = vadd.f32 0.2548296, %v1785_v1 }
 0xc06   :  { %v1790_v5 = vmul.f32 %v11968_v41, %v1788_v2  ;;  %v1943_v41 = vld [vmem:[#allocation2 + $0x118] sm:$0xff] }
 0xc07   :  { %v1789_v8 = vmul.f32 %v11970_v30, %v1787_v3  ;;  %v11711_v43 = vpack.i.bf16 %v1943_v41, %v1942_v40  ;;  %v11241_v59 = vpack.c.bf16 %v1943_v41, %v1942_v40 }
 0xc08   :  { %v1800_v10 = vmul.f32 %v11972_v7, %v1790_v5 }
 0xc09   :  { %v1799_v11 = vmul.f32 %v11974_v9, %v1789_v8  ;;  %11712 = vrot.lane.b32.xlu1 %v11711_v43, %s12231_s0  ;;  %11242 = vmatprep.subr.bf16.mxu1 %v11241_v59  ;;  %v12526_v9 = vsub.s32 2, %v12351_v47 }
 0xc0a   :  { %v1802_v44 = vsub.f32 1.0, %v1800_v10  ;;  %11244 = vmatpush3.bf16.msra.mxu1 %v11241_v59 }
 0xc0b   :  { %v1801_v12 = vsub.f32 1.0, %v1799_v11  ;;  %v12529_v11 = vsub.s32 3, %v12351_v47 }
 0xc0c   :  { %v1806_v14 = vsub.f32 0.0, %v1802_v44 }
 0xc0d   :  { %v1805_v15 = vsub.f32 0.0, %v1801_v12 }
 0xc0e   :  { %v1808_v16 = vsel %vm1804_vm14, %v1806_v14, %v1802_v44  ;;  %v1930_v44 = vrot.slane %v12497_v60, %v12526_v9 }
 0xc0f   :  { %v1810_v17 = vadd.f32 1.0, %v1808_v16  ;;  %v1807_v18 = vsel %vm1803_vm15, %v1805_v15, %v1801_v12  ;;  %v1936_v15 = vrot.slane %v12497_v60, %v12529_v11  ;;  %vm73_vm15 = vcmp.lt.s32.totalorder %v12353_v48, 8 }
 0xc10   :  { %v1809_v20 = vadd.f32 1.0, %v1807_v18 }
 0xc11   :  { %v1812_v27 = vmul.f32 %v1810_v17, %v1760_v22 }
 0xc12   :  { %v1811_v26 = vmul.f32 %v1809_v20, %v1759_v19 }
 0xc14   :  { %10560 = vmatprep.mubr.msk.f32.mxu0 %vm1817_vm0, %v1811_v26 }
 0xc15   :  { %10561 = vmatmul.mubr.msk.f32.vlgmr.msra.gmra.mrb[12].mxu0 %vm1817_vm0, %v1812_v27 }
 0xc7b   :  { %v11713_v16 = vpop.permute.xlu1 %11712 }
 0xc7c   :  { %v11715_v22 = vunpack.i.h.bf16 %v11713_v16  ;;  %v11714_v26 = vunpack.i.l.bf16 %v11713_v16 }
 0xce8   :  { %v10562_v35 = vpop.f32.mrb[12].mxu0 }
 0xce9   :  { %v1890_v37 = vpop.f32.mrb[13].mxu0  ;;  %v1896_v38 = vadd.f32 %v10562_v35, %v9791_v34  ;;  %v11249_v35 = vpack.c.bf16 %v11715_v22, %v11714_v26 }
 0xcea   :  { %v1891_v24 = vadd.f32 %v9791_v34, %v1890_v37 }
 0xceb   :  { %v1900_v23 = vadd.f32 %v1896_v38, %v12510_v6 }
 0xcec   :  { %v1899_v39 = vadd.f32 %v1891_v24, %v12506_v4 }
 0xced   :  { %v1904_v21 = vsel %vm1623_vm2, %v1900_v23, 0.0 }
 0xcee   :  { %v1901_v25 = vsel %vm296_vm5, %v1899_v39, 0.0 }
 0xcef   :  { %1902 = vadd.xlane.f32.xlu0 %v1901_v25 }
 0xcf3   :  { %1905 = vadd.xlane.f32.xlu0 %v1904_v21 }
 0xd7c   :  { %v1903_v30 = vpop.xlane.xlu0 %1902 }
 0xd7d   :  { %v1907_v29 = vmul.f32 0.03125, %v1903_v30 }
 0xd7f   :  { %v1909_v46 = vsub.f32 %v1899_v39, %v1907_v29 }
 0xd80   :  { %v1906_v49 = vpop.xlane.xlu0 %1905 }
 0xd81   :  { %v1908_v53 = vmul.f32 0.03125, %v1906_v49  ;;  %v1911_v54 = vmul.f32 %v1909_v46, %v1909_v46 }
 0xd83   :  { %v1910_v4 = vsub.f32 %v1900_v23, %v1908_v53  ;;  %v1913_v55 = vsel %vm296_vm5, %v1911_v54, 0.0 }
 0xd84   :  { %1914 = vadd.xlane.f32.xlu0 %v1913_v55 }
 0xd85   :  { %v1912_v6 = vmul.f32 %v1910_v4, %v1910_v4 }
 0xd87   :  { %v1916_v36 = vsel %vm1623_vm2, %v1912_v6, 0.0 }
 0xd88   :  { %1917 = vadd.xlane.f32.xlu0 %v1916_v36 }
 0xd9e   :  { %11707 = vrot.lane.b32.xlu0 %v11706_v45, %s12231_s0 }
 0xda2   :  { %2052 = vrot.lane.b32.xlu0 %v9794_v62, %s12231_s0 }
 0xe11   :  { %v1915_v63 = vpop.xlane.xlu0 %1914 }
 0xe12   :  { %v1919_v28 = vmul.f32 0.03125, %v1915_v63 }
 0xe14   :  { %v1921_v0 = vadd.f32 1e-05, %v1919_v28 }
 0xe15   :  { %v1918_v1 = vpop.xlane.xlu0 %1917 }
 0xe16   :  { %11975 = vrsqrt.f32 %v1921_v0  ;;  %v1920_v2 = vmul.f32 0.03125, %v1918_v1 }
 0xe18   :  { %v1922_v3 = vadd.f32 1e-05, %v1920_v2 }
 0xe19   :  { %v11708_v5 = vpop.permute.xlu0 %11707 }
 0xe1a   :  { %11977 = vrsqrt.f32 %v1922_v3  ;;  %v11710_v7 = vunpack.i.h.bf16 %v11708_v5  ;;  %v11709_v8 = vunpack.i.l.bf16 %v11708_v5 }
 0xe1c   :  { %v11245_v10 = vpack.c.bf16 %v11710_v7, %v11709_v8 }
 0xe1d   :  { %v2053_v24 = vpop.permute.xlu0 %2052 }
 0xe1e   :  { %11246 = vmatprep.subr.bf16.mxu1 %v11245_v10 }
 0xe20   :  { %v11976_v12 = vpop.eup %11975 }
 0xe21   :  { %v1925_v14 = vmul.f32 %v11976_v12, %v1909_v46 }
 0xe23   :  { %v1931_v17 = vmul.f32 %v1930_v44, %v1925_v14 }
 0xe24   :  { %v11978_v18 = vpop.eup %11977 }
 0xe25   :  { %v1926_v19 = vmul.f32 %v11978_v18, %v1910_v4  ;;  %v12535_v20 = vadd.f32 %v1936_v15, %v1931_v17 }
 0xe27   :  { %v1932_v27 = vmul.f32 %v1930_v44, %v1926_v19  ;;  %10571 = vmatprep.mubr.msk.f32.mxu1 %vm296_vm5, %v12535_v20 }
 0xe29   :  { %v12539_v34 = vadd.f32 %v1936_v15, %v1932_v27 }
 0xe2b   :  { %10572 = vmatmul.mubr.msk.f32.vlgmr.msra.gmra.mrb[16].mxu1 %vm296_vm5, %v12539_v34 }
 0xe2c   :  { %11248 = vmatpush3.bf16.msra.mxu1 %v11245_v10  ;;  %10582 = vmatprep.mubr.msk.f32.mxu1 %vm296_vm5, %v12535_v20 }
 0xe2d   :  { %11250 = vmatprep.subr.bf16.mxu1 %v11249_v35 }
 0xe30   :  { %11252 = vmatpush3.bf16.msra.mxu1 %v11249_v35 }
 0xe33   :  { %10583 = vmatmul.mubr.msk.f32.vlgmr.msra.gmra.mrb[18].mxu1 %vm296_vm5, %v12539_v34 }
 0xefe   :  { %v10573_v60 = vpop.f32.mrb[16].mxu1 }
 0xeff   :  { %v2026_v37 = vpop.f32.mrb[17].mxu1  ;;  %v12557_v43 = vadd.f32 %v10573_v60, %v9794_v62 }
 0xf00   :  { %v12547_v38 = vadd.f32 %v9794_v62, %v2026_v37 }
 0xf02   :  { %10589 = vmatprep.mubr.msk.f32.mxu0 %vm107_vm1, %v12547_v38 }
 0xf06   :  { %v10584_v39 = vpop.f32.mrb[18].mxu1 }
 0xf07   :  { %v2127_v25 = vadd.f32 %v10584_v39, %v2053_v24  ;;  %v2121_v23 = vpop.f32.mrb[19].mxu1 }
 0xf08   :  { %v2122_v21 = vadd.f32 %v2121_v23, %v2053_v24 }
 0xf0a   :  { %v11253_v40 = vpack.c.bf16 %v2127_v25, %v2122_v21  ;;  %v12551_v41 = vpack.i.bf16 %v2127_v25, %v2122_v21 }
 0xf0c   :  { %11255 = vmatprep.subr.msk.bf16.mxu0 %vm12337_vm6, %v11253_v40 }
 0xf0d   :  { %11258 = vmatpush3.bf16.xpose.msk.msra.mxu0 %vm12337_vm6, %v11253_v40 }
 0xf14   :  { %10590 = vmatmul.mubr.msk.f32.vlgmr.msra.gmra.mrb[14].mxu0 %vm107_vm1, %v12557_v43 }
 0xfe7   :  { %v10591_v30 = vpop.f32.mrb[14].mxu0 }
 0xfe8   :  { %v2214_v29 = vadd.f32 %v10591_v30, %v12372_v51  ;;  %v2208_v46 = vpop.f32.mrb[15].mxu0 }
 0xfe9   :  { %v2209_v49 = vadd.f32 %v2208_v46, %v12375_v52 }
 0xfea   :  { %v2220_v53 = vsel %vm564_vm8, %v2214_v29, -inf }
 0xfeb   :  { %2221 = vmax.xlane.f32.xlu1 %v2220_v53  ;;  %v2217_v54 = vsel %vm560_vm9, %v2209_v49, -inf }
 0xfec   :  { %2218 = vmax.xlane.f32.xlu0 %v2217_v54 }
 0xffc   :  { %11717 = vrot.lane.b32.xlu1 %v12551_v41, %s12231_s0 }
0x1000   :  { %2329 = vrot.lane.b32.xlu1 %v12547_v38, %s12233_s1 }
0x1004   :  { %2331 = vrot.lane.b32.xlu1 %v12557_v43, %s12233_s1 }
0x1008   :  { %2694 = vrot.lane.b32.xlu1 %v12547_v38, %s12234_s17 }
0x1078   :  { %v2222_v4 = vpop.xlane.xlu1 %2221 }
0x1079   :  { %v2224_v55 = vsub.f32 %v2214_v29, %v2222_v4  ;;  %v2219_v6 = vpop.xlane.xlu0 %2218 }
0x107a   :  { %v2223_v36 = vsub.f32 %v2209_v49, %v2219_v6 }
0x107b   :  { %v2227_v56 = vmul.f32 1.442695, %v2224_v55 }
0x107c   :  { %v2225_v57 = vmul.f32 1.442695, %v2223_v36  ;;  %v11718_v45 = vpop.permute.xlu1 %11717 }
0x107d   :  { %11979 = vpow2.f32 %v2227_v56  ;;  %v11720_v58 = vunpack.i.h.bf16 %v11718_v45  ;;  %v11719_v59 = vunpack.i.l.bf16 %v11718_v45 }
0x107e   :  { %11981 = vpow2.f32 %v2225_v57 }
0x107f   :  { %v11259_v62 = vpack.c.bf16 %v11720_v58, %v11719_v59 }
0x1080   :  { %v2330_v15 = vpop.permute.xlu1 %2329 }
0x1081   :  { %11261 = vmatprep.subr.msk.bf16.mxu1 %vm12398_vm13, %v11259_v62 }
0x1082   :  { %11264 = vmatpush3.bf16.msk.msra.mxu1 %vm12398_vm13, %v11259_v62 }
0x1084   :  { %v2332_v26 = vpop.permute.xlu1 %2331 }
0x1087   :  { %v11980_v63 = vpop.eup %11979 }
0x1088   :  { %v2232_v28 = vsel %vm564_vm8, %v11980_v63, 0.0  ;;  %v11982_v0 = vpop.eup %11981  ;;  %v2695_v27 = vpop.permute.xlu1 %2694 }
0x1089   :  { %2233 = vadd.xlane.f32.xlu0 %v2232_v28  ;;  %v2229_v1 = vsel %vm560_vm9, %v11982_v0, 0.0 }
0x108d   :  { %2230 = vadd.xlane.f32.xlu0 %v2229_v1 }
0x10a3   :  { %11722 = vrot.lane.b32.xlu0 %v12551_v41, %s12233_s1 }
0x10a7   :  { %11727 = vrot.lane.b32.xlu0 %v12551_v41, %s12234_s17 }
0x10ab   :  { %2696 = vrot.lane.b32.xlu0 %v12557_v43, %s12234_s17 }
0x1116   :  { %v2234_v2 = vpop.xlane.xlu0 %2233 }
0x1117   :  { %11983 = vrcp.f32 %v2234_v2 }
0x111a   :  { %v2231_v3 = vpop.xlane.xlu0 %2230 }
0x111b   :  { %11985 = vrcp.f32 %v2231_v3 }
0x111e   :  { %v11723_v5 = vpop.permute.xlu0 %11722 }
0x111f   :  { %v11725_v7 = vunpack.i.h.bf16 %v11723_v5  ;;  %v11724_v8 = vunpack.i.l.bf16 %v11723_v5 }
0x1121   :  { %v11265_v10 = vpack.c.bf16 %v11725_v7, %v11724_v8  ;;  %v11984_v12 = vpop.eup %11983 }
0x1122   :  { %v11728_v44 = vpop.permute.xlu0 %11727  ;;  %v2240_v19 = vmul.f32 %v11984_v12, %v11980_v63 }
0x1123   :  { %11267 = vmatprep.subr.msk.bf16.mxu1 %vm12337_vm6, %v11265_v10  ;;  %v11730_v16 = vunpack.i.h.bf16 %v11728_v44  ;;  %v11729_v17 = vunpack.i.l.bf16 %v11728_v44 }
0x1125   :  { %v11986_v14 = vpop.eup %11985  ;;  %v11277_v22 = vpack.c.bf16 %v11730_v16, %v11729_v17 }
0x1126   :  { %v2239_v18 = vmul.f32 %v11986_v14, %v11982_v0  ;;  %v2697_v35 = vpop.permute.xlu0 %2696 }
0x1128   :  { %10596 = vmatprep.mubr.msk.f32.mxu1 %vm560_vm9, %v2239_v18 }
0x1129   :  { %10597 = vmatmul.mubr.msk.f32.vlgmr.msra.gmra.mrb[20].mxu1 %vm560_vm9, %v2240_v19 }
0x112a   :  { %11270 = vmatpush3.bf16.xpose.msk.msra.mxu1 %vm12337_vm6, %v11265_v10  ;;  %10603 = vmatprep.mubr.msk.f32.mxu1 %vm107_vm1, %v2330_v15 }
0x112b   :  { %11279 = vmatprep.subr.msk.bf16.mxu1 %vm12337_vm6, %v11277_v22 }
0x1131   :  { %10604 = vmatmul.mubr.msk.f32.vlgmr.msra.gmra.mrb[22].mxu1 %vm107_vm1, %v2332_v26 }
0x1132   :  { %11282 = vmatpush3.bf16.xpose.msk.msra.mxu1 %vm12337_vm6, %v11277_v22  ;;  %10627 = vmatprep.mubr.msk.f32.mxu1 %vm107_vm1, %v2695_v27 }
0x1139   :  { %10628 = vmatmul.mubr.msk.f32.vlgmr.msra.gmra.mrb[24].mxu1 %vm107_vm1, %v2697_v35 }
0x11fc   :  { %v12599_v60 = vpop.f32.mrb[20].mxu1 }
0x11fd   :  { %v12601_v37 = vpop.f32.mrb[21].mxu1 }
0x1204   :  { %v10605_v24 = vpop.f32.mrb[22].mxu1 }
0x1205   :  { %v2417_v39 = vadd.f32 %v10605_v24, %v12372_v51  ;;  %v2411_v25 = vpop.f32.mrb[23].mxu1 }
0x1206   :  { %v2412_v23 = vadd.f32 %v2411_v25, %v12375_v52  ;;  %v1946_v25 = vld [vmem:[#allocation2 + $0x130] sm:$0xff] }
0x1207   :  { %v2423_v21 = vsel %vm564_vm8, %v2417_v39, -inf }
0x1208   :  { %2424 = vmax.xlane.f32.xlu0 %v2423_v21  ;;  %v2420_v40 = vsel %vm560_vm9, %v2412_v23, -inf }
0x1209   :  { %2421 = vmax.xlane.f32.xlu1 %v2420_v40 }
0x120c   :  { %v10629_v30 = vpop.f32.mrb[24].mxu1 }
0x120d   :  { %v2776_v29 = vpop.f32.mrb[25].mxu1  ;;  %v2782_v58 = vadd.f32 %v10629_v30, %v12372_v51 }
0x120e   :  { %v2777_v45 = vadd.f32 %v2776_v29, %v12375_v52 }
0x120f   :  { %v2788_v62 = vsel %vm564_vm8, %v2782_v58, -inf }
0x1210   :  { %v2785_v59 = vsel %vm560_vm9, %v2777_v45, -inf }
0x1295   :  { %v2425_v46 = vpop.xlane.xlu0 %2424 }
0x1296   :  { %v2427_v49 = vsub.f32 %v2417_v39, %v2425_v46  ;;  %v2422_v53 = vpop.xlane.xlu1 %2421 }
0x1297   :  { %v2426_v54 = vsub.f32 %v2412_v23, %v2422_v53  ;;  %v1945_v23 = vld [vmem:[#allocation2 + $0x128] sm:$0xff] }
0x1298   :  { %v2430_v4 = vmul.f32 1.442695, %v2427_v49 }
0x1299   :  { %v2428_v55 = vmul.f32 1.442695, %v2426_v54 }
0x129a   :  { %11987 = vpow2.f32 %v2430_v4 }
0x129b   :  { %11989 = vpow2.f32 %v2428_v55 }
0x12a4   :  { %v11988_v6 = vpop.eup %11987 }
0x12a5   :  { %v11990_v36 = vpop.eup %11989  ;;  %v2435_v56 = vsel %vm564_vm8, %v11988_v6, 0.0 }
0x12a6   :  { %2436 = vadd.xlane.f32.xlu1 %v2435_v56  ;;  %v2432_v57 = vsel %vm560_vm9, %v11990_v36, 0.0 }
0x12a7   :  { %2433 = vadd.xlane.f32.xlu0 %v2432_v57 }
0x12b7   :  { %11737 = vrot.lane.b32.xlu1 %v12551_v41, %s12236_s19 }
0x12bb   :  { %2980 = vrot.lane.b32.xlu1 %v12547_v38, %s12236_s19 }
0x12bd   :  { %11732 = vrot.lane.b32.xlu0 %v12551_v41, %s12235_s18 }
0x12c1   :  { %2982 = vrot.lane.b32.xlu0 %v12557_v43, %s12236_s19 }
0x12df   :  { %2786 = vmax.xlane.f32.xlu1 %v2785_v59 }
0x12e0   :  { %2789 = vmax.xlane.f32.xlu0 %v2788_v62 }
0x1333   :  { %v2437_v63 = vpop.xlane.xlu1 %2436 }
0x1334   :  { %11991 = vrcp.f32 %v2437_v63  ;;  %v2434_v28 = vpop.xlane.xlu0 %2433 }
0x1335   :  { %11993 = vrcp.f32 %v2434_v28 }
0x1337   :  { %v11738_v38 = vpop.permute.xlu1 %11737 }
0x1338   :  { %v11740_v0 = vunpack.i.h.bf16 %v11738_v38  ;;  %v11739_v1 = vunpack.i.l.bf16 %v11738_v38  ;;  %v11733_v2 = vpop.permute.xlu0 %11732 }
0x1339   :  { %v11735_v3 = vunpack.i.h.bf16 %v11733_v2  ;;  %v11734_v43 = vunpack.i.l.bf16 %v11733_v2 }
0x133a   :  { %v11289_v5 = vpack.c.bf16 %v11740_v0, %v11739_v1 }
0x133b   :  { %v11271_v7 = vpack.c.bf16 %v11735_v3, %v11734_v43  ;;  %v2981_v8 = vpop.permute.xlu1 %2980 }
0x133c   :  { %11291 = vmatprep.subr.msk.bf16.mxu1 %vm12337_vm6, %v11289_v5  ;;  %10646 = vmatprep.mubr.msk.f32.mxu1 %vm107_vm1, %v2981_v8  ;;  %v2983_v15 = vpop.permute.xlu0 %2982 }
0x133d   :  { %11273 = vmatprep.subr.msk.bf16.mxu0 %vm12398_vm13, %v11271_v7  ;;  %11294 = vmatpush3.bf16.xpose.msk.msra.mxu1 %vm12337_vm6, %v11289_v5 }
0x133e   :  { %v11992_v10 = vpop.eup %11991  ;;  %11276 = vmatpush3.bf16.msk.msra.mxu0 %vm12398_vm13, %v11271_v7 }
0x133f   :  { %v11994_v44 = vpop.eup %11993  ;;  %v2443_v14 = vmul.f32 %v11992_v10, %v11988_v6  ;;  %10613 = vmatprep.subr.mxu0 %v1946_v25 }
0x1340   :  { %v2442_v12 = vmul.f32 %v11994_v44, %v11990_v36 }
0x1342   :  { %10610 = vmatprep.mubr.msk.f32.mxu0 %vm560_vm9, %v2442_v12 }
0x1343   :  { %10611 = vmatmul.mubr.msk.f32.vlgmr.msra.gmra.mrb[16].mxu0 %vm560_vm9, %v2443_v14 }
0x1344   :  { %10647 = vmatmul.mubr.msk.f32.vlgmr.msra.gmra.mrb[26].mxu1 %vm107_vm1, %v2983_v15  ;;  %10614 = vmatpush3.msra.mxu0 %v1946_v25  ;;  %v1948_v15 = vld [vmem:[#allocation2 + $0x140] sm:$0xff] }
0x1345   :  { %10618 = vmatprep.subr.mxu0 %v1945_v23 }
0x136c   :  { %v2787_v16 = vpop.xlane.xlu1 %2786 }
0x136d   :  { %v2791_v17 = vsub.f32 %v2777_v45, %v2787_v16  ;;  %v2790_v18 = vpop.xlane.xlu0 %2789 }
0x136e   :  { %v2792_v19 = vsub.f32 %v2782_v58, %v2790_v18 }
0x136f   :  { %v2793_v22 = vmul.f32 1.442695, %v2791_v17 }
0x1370   :  { %v2795_v26 = vmul.f32 1.442695, %v2792_v19 }
0x1371   :  { %11995 = vpow2.f32 %v2793_v22 }
0x1372   :  { %11997 = vpow2.f32 %v2795_v26  ;;  %v9835_v26 = vld [vmem:[#allocation2 + $0x148] ss:$0 sm:$0xff] }
0x137b   :  { %v11996_v27 = vpop.eup %11995 }
0x137c   :  { %v11998_v35 = vpop.eup %11997  ;;  %v2797_v24 = vsel %vm560_vm9, %v11996_v27, 0.0 }
0x137d   :  { %2798 = vadd.xlane.f32.xlu0 %v2797_v24  ;;  %v2800_v39 = vsel %vm564_vm8, %v11998_v35, 0.0 }
0x137e   :  { %2801 = vadd.xlane.f32.xlu1 %v2800_v39 }
0x1393   :  { %11742 = vrot.lane.b32.xlu0 %v12551_v41, %s12237_s20 }
0x140a   :  { %v2799_v21 = vpop.xlane.xlu0 %2798 }
0x140b   :  { %11999 = vrcp.f32 %v2799_v21  ;;  %v2802_v30 = vpop.xlane.xlu1 %2801 }
0x140c   :  { %12001 = vrcp.f32 %v2802_v30  ;;  %v3632_v30 = vld [vmem:[#allocation2 + $0x1d8] sm:$0xff] }
0x140e   :  { %v11743_v40 = vpop.permute.xlu0 %11742 }
0x140f   :  { %v11745_v29 = vunpack.i.h.bf16 %v11743_v40  ;;  %v11744_v46 = vunpack.i.l.bf16 %v11743_v40 }
0x1411   :  { %v11283_v55 = vpack.c.bf16 %v11745_v29, %v11744_v46  ;;  %v3633_v29 = vld [vmem:[#allocation2 + $0x1e0] sm:$0xff] }
0x1412   :  { %v11756_v46 = vpack.i.bf16 %v3633_v29, %v3632_v30 }
0x1415   :  { %v12000_v57 = vpop.eup %11999 }
0x1416   :  { %v10612_v49 = vpop.f32.mrb[16].mxu0  ;;  %v12002_v58 = vpop.eup %12001 }
0x1417   :  { %v2523_v53 = vpop.f32.mrb[17].mxu0  ;;  %v10648_v54 = vpop.f32.mrb[26].mxu1 }
0x1418   :  { %10615 = vmatprep.mubr.msk.f32.mxu0 %vm107_vm1, %v2523_v53  ;;  %v3062_v4 = vpop.f32.mrb[27].mxu1  ;;  %v3068_v36 = vadd.f32 %v10648_v54, %v12372_v51  ;;  %v2808_v51 = vmul.f32 %v12002_v58, %v11998_v35 }
0x1419   :  { %v3063_v6 = vadd.f32 %v3062_v4, %v12375_v52  ;;  %10616 = vmatmul.mubr.msk.f32.vlgmr.msra.gmra.mrb[18].mxu0 %vm107_vm1, %v10612_v49  ;;  %v2807_v52 = vmul.f32 %v12000_v57, %v11996_v27  ;;  %v3630_v57 = vld [vmem:[#allocation2 + $0x1c8] sm:$0xff] }
0x141a   :  { %10619 = vmatpush3.msra.mxu0 %v1945_v23  ;;  %10620 = vmatprep.mubr.msk.f32.mxu0 %vm107_vm1, %v12601_v37  ;;  %v3074_v45 = vsel %vm564_vm8, %v3068_v36, -inf  ;;  %v1947_v37 = vld [vmem:[#allocation2 + $0x138] sm:$0xff] }
0x141b   :  { %11285 = vmatprep.subr.msk.bf16.mxu0 %vm12398_vm13, %v11283_v55  ;;  %v3071_v56 = vsel %vm560_vm9, %v3063_v6, -inf }
0x141c   :  { %3072 = vmax.xlane.f32.xlu1 %v3071_v56 }
0x1420   :  { %3075 = vmax.xlane.f32.xlu1 %v3074_v45  ;;  %v3631_v45 = vld [vmem:[#allocation2 + $0x1d0] sm:$0xff] }
0x1421   :  { %10621 = vmatmul.mubr.msk.f32.vlgmr.msra.gmra.mrb[18].mxu0 %vm107_vm1, %v12599_v60  ;;  %v11751_v58 = vpack.i.bf16 %v3631_v45, %v3630_v57 }
0x1422   :  { %11288 = vmatpush3.bf16.msk.msra.mxu0 %vm12398_vm13, %v11283_v55  ;;  %10634 = vmatprep.mubr.msk.f32.mxu0 %vm560_vm9, %v2807_v52  ;;  %v3312_v52 = vld [vmem:[#allocation2 + $0x150] sm:$0xff] }
0x1423   :  { %10637 = vmatprep.subr.mxu0 %v1947_v37 }
0x1425   :  { %10635 = vmatmul.mubr.msk.f32.vlgmr.msra.gmra.mrb[20].mxu0 %vm560_vm9, %v2808_v51  ;;  %v3313_v51 = vld [vmem:[#allocation2 + $0x158] sm:$0xff] }
0x1426   :  { %10638 = vmatpush3.msra.mxu0 %v1947_v37  ;;  %v11301_v37 = vpack.c.bf16 %v3313_v51, %v3312_v52 }
0x1428   :  { %11302 = vmatprep.subr.bf16.mxu1 %v11301_v37 }
0x1429   :  { %11304 = vmatpush3.bf16.msra.mxu1 %v11301_v37 }
0x14a9   :  { %v3073_v59 = vpop.xlane.xlu1 %3072 }
0x14aa   :  { %v3077_v62 = vsub.f32 %v3063_v6, %v3073_v59  ;;  %v3314_v59 = vld [vmem:[#allocation2 + $0x160] sm:$0xff] }
0x14ac   :  { %v3079_v38 = vmul.f32 1.442695, %v3077_v62  ;;  %v3315_v62 = vld [vmem:[#allocation2 + $0x168] sm:$0xff] }
0x14ad   :  { %v3076_v63 = vpop.xlane.xlu1 %3075 }
0x14ae   :  { %v3078_v28 = vsub.f32 %v3068_v36, %v3076_v63  ;;  %v11305_v63 = vpack.c.bf16 %v3315_v62, %v3314_v59 }
0x14b0   :  { %v3081_v0 = vmul.f32 1.442695, %v3078_v28  ;;  %11306 = vmatprep.subr.bf16.mxu1 %v11305_v63  ;;  %v11325_v28 = vpack.c.bf16 %v3631_v45, %v3630_v57 }
0x14b1   :  { %11308 = vmatpush3.bf16.msra.mxu1 %v11305_v63 }
0x14b2   :  { %12003 = vpow2.f32 %v3081_v0  ;;  %11326 = vmatprep.subr.bf16.mxu1 %v11325_v28 }
0x14b3   :  { %12005 = vpow2.f32 %v3079_v38  ;;  %v12675_v38 = vld [vmem:[#allocation2 + $0x1e8] ss:$0 sm:$0xff] }
0x14bc   :  { %v12004_v60 = vpop.eup %12003 }
0x14bd   :  { %v3086_v1 = vsel %vm564_vm8, %v12004_v60, 0.0  ;;  %v12006_v2 = vpop.eup %12005  ;;  %vm82_vm8 = vcmp.ge.s32.totalorder %v12353_v48, 8 }
0x14be   :  { %3087 = vadd.xlane.f32.xlu1 %v3086_v1  ;;  %v3083_v3 = vsel %vm560_vm9, %v12006_v2, 0.0  ;;  %vm87_vm14 = vmand %vm82_vm8, %vm85_vm10 }
0x14c2   :  { %3084 = vadd.xlane.f32.xlu1 %v3083_v3 }
0x14d3   :  { %11747 = vrot.lane.b32.xlu1 %v12551_v41, %s12238_s21 }
0x14f8   :  { %v10636_v43 = vpop.f32.mrb[20].mxu0 }
0x14f9   :  { %v2888_v5 = vpop.f32.mrb[21].mxu0 }
0x14fa   :  { %10639 = vmatprep.mubr.msk.f32.mxu0 %vm107_vm1, %v2888_v5  ;;  %v12679_v5 = vld [vmem:[#allocation2 + $0x1c0] sm:$0xf] }
0x14fb   :  { %10640 = vmatmul.mubr.msk.f32.vlgmr.msra.gmra.mrb[18].mxu0 %vm107_vm1, %v10636_v43 }
0x154b   :  { %v3088_v7 = vpop.xlane.xlu1 %3087 }
0x154c   :  { %12007 = vrcp.f32 %v3088_v7  ;;  %v3303_v7 = vrot.slane %v12679_v5, %v12495_v31 }
0x154f   :  { %v3085_v8 = vpop.xlane.xlu1 %3084 }
0x1550   :  { %12009 = vrcp.f32 %v3085_v8 }
0x1553   :  { %v11748_v10 = vpop.permute.xlu1 %11747 }
0x1554   :  { %v11750_v44 = vunpack.i.h.bf16 %v11748_v10  ;;  %v11749_v12 = vunpack.i.l.bf16 %v11748_v10 }
0x1556   :  { %v11295_v14 = vpack.c.bf16 %v11750_v44, %v11749_v12  ;;  %v12008_v16 = vpop.eup %12007  ;;  %v3309_v44 = vrot.slane %v12679_v5, %v12500_v61 }
0x1557   :  { %v3094_v18 = vmul.f32 %v12008_v16, %v12004_v60 }
0x1558   :  { %11297 = vmatprep.subr.msk.bf16.mxu0 %vm12398_vm13, %v11295_v14 }
0x1559   :  { %11300 = vmatpush3.bf16.msk.msra.mxu0 %vm12398_vm13, %v11295_v14 }
0x155a   :  { %v12010_v41 = vpop.eup %12009  ;;  %10656 = vmatprep.subr.mxu0 %v1948_v15 }
0x155b   :  { %v3093_v17 = vmul.f32 %v12010_v41, %v12006_v2 }
0x155d   :  { %10653 = vmatprep.mubr.msk.f32.mxu0 %vm560_vm9, %v3093_v17  ;;  %v193_v17 = vld [vmem:[%s13377_s3] sm:$0xff] }
0x155e   :  { %10654 = vmatmul.mubr.msk.f32.vlgmr.msra.gmra.mrb[22].mxu0 %vm560_vm9, %v3094_v18 }
0x155f   :  { %10657 = vmatpush3.msra.mxu0 %v1948_v15 }
0x1631   :  { %v10655_v19 = vpop.f32.mrb[22].mxu0 }
0x1632   :  { %v3174_v22 = vpop.f32.mrb[23].mxu0 }
0x1633   :  { %10658 = vmatprep.mubr.msk.f32.mxu0 %vm107_vm1, %v3174_v22 }
0x1634   :  { %10659 = vmatmul.mubr.msk.f32.vlgmr.msra.gmra.mrb[18].mxu0 %vm107_vm1, %v10655_v19 }
0x1707   :  { %v10660_v27 = vpop.f32.mrb[18].mxu0 }
0x1708   :  { %v3271_v35 = vadd.f32 %v10660_v27, %v9835_v26  ;;  %v3255_v24 = vpop.f32.mrb[19].mxu0  ;;  %v11329_v27 = vpack.c.bf16 %v3633_v29, %v3632_v30  ;;  %v3317_v30 = vld [vmem:[#allocation2 + $0x178] sm:$0xff]  ;;  %v3318_v29 = vld [vmem:[#allocation2 + $0x180] sm:$0xff] }
0x1709   :  { %v3270_v39 = vadd.f32 %v9835_v26, %v3255_v24 }
0x170a   :  { %v3273_v25 = vadd.f32 %v3271_v35, %v12539_v34  ;;  %v12695_v35 = vadd.f32 %v12327_v33, %v193_v17 }
0x170b   :  { %v3272_v23 = vadd.f32 %v3270_v39, %v12535_v20 }
0x170c   :  { %v3277_v21 = vsel %vm1623_vm2, %v3273_v25, 0.0 }
0x170d   :  { %3278 = vadd.xlane.f32.xlu1 %v3277_v21  ;;  %v3274_v40 = vsel %vm296_vm5, %v3272_v23, 0.0  ;;  %v194_v21 = vld [vmem:[%s13377_s3 + $0x8] sm:$0xff] }
0x170e   :  { %3275 = vadd.xlane.f32.xlu0 %v3274_v40  ;;  %v12705_v33 = vadd.f32 %v12325_v32, %v194_v21  ;;  %v3319_v32 = vld [vmem:[#allocation2 + $0x188] sm:$0xff] }
0x171e   :  { %11757 = vrot.lane.b32.xlu1 %v11756_v46, %s12231_s0  ;;  %v11309_v46 = vpack.c.bf16 %v3318_v29, %v3317_v30 }
0x1720   :  { %11310 = vmatprep.subr.bf16.mxu0 %v11309_v46 }
0x1721   :  { %11312 = vmatpush3.bf16.msra.mxu0 %v11309_v46 }
0x179a   :  { %v3279_v49 = vpop.xlane.xlu1 %3278 }
0x179b   :  { %v3281_v53 = vmul.f32 0.03125, %v3279_v49  ;;  %v3276_v54 = vpop.xlane.xlu0 %3275  ;;  %v3320_v49 = vld [vmem:[#allocation2 + $0x190] sm:$0xff] }
0x179c   :  { %v3280_v4 = vmul.f32 0.03125, %v3276_v54  ;;  %v3321_v54 = vld [vmem:[#allocation2 + $0x198] sm:$0xff] }
0x179d   :  { %v3283_v55 = vsub.f32 %v3273_v25, %v3281_v53  ;;  %v11313_v53 = vpack.c.bf16 %v3320_v49, %v3319_v32 }
0x179e   :  { %v3282_v6 = vsub.f32 %v3272_v23, %v3280_v4  ;;  %v11758_v24 = vpop.permute.xlu1 %11757  ;;  %v3322_v4 = vld [vmem:[#allocation2 + $0x1a0] sm:$0xff] }
0x179f   :  { %v3285_v36 = vmul.f32 %v3283_v55, %v3283_v55  ;;  %v11760_v39 = vunpack.i.h.bf16 %v11758_v24  ;;  %v11759_v25 = vunpack.i.l.bf16 %v11758_v24  ;;  %11314 = vmatprep.subr.bf16.mxu0 %v11313_v53 }
0x17a0   :  { %v3284_v34 = vmul.f32 %v3282_v6, %v3282_v6  ;;  %11316 = vmatpush3.bf16.msra.mxu0 %v11313_v53 }
0x17a1   :  { %v3289_v56 = vsel %vm1623_vm2, %v3285_v36, 0.0  ;;  %v11337_v40 = vpack.c.bf16 %v11760_v39, %v11759_v25  ;;  %v9836_v36 = vld [vmem:[#allocation2 + $0x170] ss:$0 sm:$0xff] }
0x17a2   :  { %v3286_v20 = vsel %vm296_vm5, %v3284_v34, 0.0  ;;  %v3324_v34 = vld [vmem:[#allocation2 + $0x1b0] sm:$0xff] }
0x17a3   :  { %3287 = vadd.xlane.f32.xlu0 %v3286_v20 }
0x17a7   :  { %3290 = vadd.xlane.f32.xlu0 %v3289_v56 }
0x17bd   :  { %11752 = vrot.lane.b32.xlu0 %v11751_v58, %s12231_s0 }
0x17c1   :  { %3742 = vrot.lane.b32.xlu0 %v12675_v38, %s12231_s0 }
0x1830   :  { %v3288_v0 = vpop.xlane.xlu0 %3287 }
0x1831   :  { %v3292_v60 = vmul.f32 0.03125, %v3288_v0 }
0x1833   :  { %v3294_v1 = vadd.f32 1e-05, %v3292_v60 }
0x1834   :  { %v3291_v2 = vpop.xlane.xlu0 %3290 }
0x1835   :  { %12011 = vrsqrt.f32 %v3294_v1  ;;  %v3293_v3 = vmul.f32 0.03125, %v3291_v2 }
0x1837   :  { %v3295_v43 = vadd.f32 1e-05, %v3293_v3 }
0x1838   :  { %v11753_v41 = vpop.permute.xlu0 %11752 }
0x1839   :  { %12013 = vrsqrt.f32 %v3295_v43  ;;  %v11755_v22 = vunpack.i.h.bf16 %v11753_v41  ;;  %v11754_v26 = vunpack.i.l.bf16 %v11753_v41 }
0x183b   :  { %v11333_v23 = vpack.c.bf16 %v11755_v22, %v11754_v26 }
0x183c   :  { %v3743_v2 = vpop.permute.xlu0 %3742 }
0x183f   :  { %v12012_v8 = vpop.eup %12011 }
0x1840   :  { %v3298_v10 = vmul.f32 %v12012_v8, %v3282_v6  ;;  %v3323_v6 = vld [vmem:[#allocation2 + $0x1a8] sm:$0xff] }
0x1841   :  { %v11321_v20 = vpack.c.bf16 %v3324_v34, %v3323_v6 }
0x1842   :  { %v3304_v12 = vmul.f32 %v3303_v7, %v3298_v10 }
0x1843   :  { %v12014_v14 = vpop.eup %12013 }
0x1844   :  { %v3299_v15 = vmul.f32 %v12014_v14, %v3283_v55  ;;  %v12685_v16 = vadd.f32 %v3309_v44, %v3304_v12  ;;  %v11317_v55 = vpack.c.bf16 %v3322_v4, %v3321_v54 }
0x1846   :  { %v3305_v18 = vmul.f32 %v3303_v7, %v3299_v15  ;;  %10669 = vmatprep.mubr.msk.f32.mxu1 %vm296_vm5, %v12685_v16  ;;  %11318 = vmatprep.subr.bf16.mxu0 %v11317_v55 }
0x1847   :  { %11320 = vmatpush3.bf16.msra.mxu0 %v11317_v55 }
0x1848   :  { %v12692_v19 = vadd.f32 %v3309_v44, %v3305_v18  ;;  %11322 = vmatprep.subr.bf16.mxu0 %v11321_v20 }
0x184a   :  { %10670 = vmatmul.mubr.msk.f32.vlgmr.msra.gmra.mrb[28].mxu1 %vm296_vm5, %v12692_v19 }
0x184b   :  { %11328 = vmatpush3.bf16.msra.mxu1 %v11325_v28  ;;  %10699 = vmatprep.mubr.msk.f32.mxu1 %vm296_vm5, %v12695_v35 }
0x184c   :  { %11330 = vmatprep.subr.bf16.mxu1 %v11329_v27  ;;  %11324 = vmatpush3.bf16.msra.mxu0 %v11321_v20 }
0x184f   :  { %11332 = vmatpush3.bf16.msra.mxu1 %v11329_v27 }
0x1850   :  { %11334 = vmatprep.subr.bf16.mxu1 %v11333_v23 }
0x1852   :  { %10700 = vmatmul.mubr.msk.f32.vlgmr.msra.gmra.mrb[30].mxu1 %vm296_vm5, %v12705_v33 }
0x1853   :  { %11336 = vmatpush3.bf16.msra.mxu1 %v11333_v23  ;;  %10710 = vmatprep.mubr.msk.f32.mxu1 %vm296_vm5, %v12695_v35 }
0x1854   :  { %11338 = vmatprep.subr.bf16.mxu1 %v11337_v40 }
0x1857   :  { %11340 = vmatpush3.bf16.msra.mxu1 %v11337_v40 }
0x185a   :  { %10711 = vmatmul.mubr.msk.f32.vlgmr.msra.gmra.mrb[32].mxu1 %vm296_vm5, %v12705_v33 }
0x191d   :  { %v10671_v56 = vpop.f32.mrb[28].mxu1 }
0x191e   :  { %v12713_v57 = vadd.f32 %v10671_v56, %v9836_v36  ;;  %v3402_v45 = vpop.f32.mrb[29].mxu1 }
0x191f   :  { %v12715_v58 = vadd.f32 %v9836_v36, %v3402_v45 }
0x1920   :  { %v3414_v52 = vmul.f32 0.70710677, %v12713_v57 }
0x1921   :  { %v3413_v51 = vmul.f32 0.70710677, %v12715_v58 }
0x1922   :  { %v3416_v37 = vand.u32 2147483647, %v3414_v52  ;;  %vm3456_vm3 = vcmp.lt.f32.partialorder %v3414_v52, 0.0 }
0x1923   :  { %v3415_v59 = vand.u32 2147483647, %v3413_v51  ;;  %vm3455_vm4 = vcmp.lt.f32.partialorder %v3413_v51, 0.0 }
0x1924   :  { %v3418_v62 = vmul.f32 0.3275911, %v3416_v37  ;;  %v3444_v3 = vsub.f32 0.0, %v3416_v37 }
0x1925   :  { %v3417_v63 = vmul.f32 0.3275911, %v3415_v59  ;;  %v12719_v28 = vpop.f32.mrb[30].mxu1  ;;  %v3443_v10 = vsub.f32 0.0, %v3415_v59 }
0x1926   :  { %v3420_v0 = vadd.f32 1.0, %v3418_v62  ;;  %v3716_v60 = vpop.f32.mrb[31].mxu1  ;;  %v3446_v12 = vmul.f32 %v3444_v3, %v3416_v37  ;;  %v3411_v3 = vmul.f32 0.5, %v12715_v58  ;;  %v12738_v58 = vadd.f32 %v12719_v28, %v12675_v38 }
0x1927   :  { %v3419_v1 = vadd.f32 1.0, %v3417_v63  ;;  %v3445_v22 = vmul.f32 %v3443_v10, %v3415_v59  ;;  %v12756_v28 = vsel %vm73_vm15, 0.0, %v12232_v50 }
0x1928   :  { %12015 = vrcp.f32 %v3420_v0  ;;  %v3449_v24 = vmul.f32 1.442695, %v3446_v12 }
0x1929   :  { %12017 = vrcp.f32 %v3419_v1  ;;  %v3447_v23 = vmul.f32 1.442695, %v3445_v22 }
0x192a   :  { %12019 = vpow2.f32 %v3449_v24 }
0x192b   :  { %12021 = vpow2.f32 %v3447_v23 }
0x192d   :  { %v10712_v43 = vpop.f32.mrb[32].mxu1 }
0x192e   :  { %v3817_v7 = vadd.f32 %v10712_v43, %v3743_v2  ;;  %v3811_v8 = vpop.f32.mrb[33].mxu1 }
0x192f   :  { %v3812_v44 = vadd.f32 %v3811_v8, %v3743_v2 }
0x1931   :  { %v11341_v14 = vpack.c.bf16 %v3817_v7, %v3812_v44  ;;  %v12721_v15 = vpack.i.bf16 %v3817_v7, %v3812_v44  ;;  %v3412_v7 = vmul.f32 0.5, %v12713_v57  ;;  %v12728_v44 = vadd.f32 %v12675_v38, %v3716_v60  ;;  %v12742_v57 = vld [vmem:[#allocation2 + $0x1b8] ss:$0 sm:$0xff] }
0x1932   :  { %v12016_v41 = vpop.eup %12015  ;;  %v12753_v38 = vsel %vm87_vm14, 0.0, %v12232_v50 }
0x1933   :  { %v12018_v17 = vpop.eup %12017  ;;  %v3426_v18 = vmul.f32 1.0614054, %v12016_v41  ;;  %11343 = vmatprep.subr.msk.bf16.mxu0 %vm12337_vm6, %v11341_v14 }
0x1934   :  { %v3425_v26 = vmul.f32 1.0614054, %v12018_v17  ;;  %v12020_v34 = vpop.eup %12019 }
0x1935   :  { %v3428_v27 = vadd.f32 -1.4531521, %v3426_v18  ;;  %v12022_v36 = vpop.eup %12021 }
0x1936   :  { %v3427_v39 = vadd.f32 -1.4531521, %v3425_v26 }
0x1937   :  { %v3430_v25 = vmul.f32 %v12016_v41, %v3428_v27 }
0x1938   :  { %v3429_v21 = vmul.f32 %v12018_v17, %v3427_v39 }
0x1939   :  { %v3432_v40 = vadd.f32 1.4214138, %v3430_v25 }
0x193a   :  { %v3431_v30 = vadd.f32 1.4214138, %v3429_v21 }
0x193b   :  { %v3434_v29 = vmul.f32 %v12016_v41, %v3432_v40 }
0x193c   :  { %v3433_v46 = vmul.f32 %v12018_v17, %v3431_v30 }
0x193d   :  { %v3436_v32 = vadd.f32 -0.28449672, %v3434_v29 }
0x193e   :  { %v3435_v49 = vadd.f32 -0.28449672, %v3433_v46 }
0x193f   :  { %v3438_v53 = vmul.f32 %v12016_v41, %v3436_v32 }
0x1940   :  { %v3437_v54 = vmul.f32 %v12018_v17, %v3435_v49 }
0x1941   :  { %v3440_v4 = vadd.f32 0.2548296, %v3438_v53 }
0x1942   :  { %v3439_v55 = vadd.f32 0.2548296, %v3437_v54 }
0x1943   :  { %v3442_v6 = vmul.f32 %v12016_v41, %v3440_v4 }
0x1944   :  { %v3441_v20 = vmul.f32 %v12018_v17, %v3439_v55 }
0x1945   :  { %v3452_v56 = vmul.f32 %v12020_v34, %v3442_v6 }
0x1946   :  { %v3451_v45 = vmul.f32 %v12022_v36, %v3441_v20 }
0x1947   :  { %v3454_v37 = vsub.f32 1.0, %v3452_v56 }
0x1948   :  { %v3453_v59 = vsub.f32 1.0, %v3451_v45 }
0x1949   :  { %v3458_v62 = vsub.f32 0.0, %v3454_v37 }
0x194a   :  { %v3457_v63 = vsub.f32 0.0, %v3453_v59 }
0x194b   :  { %v3460_v0 = vsel %vm3456_vm3, %v3458_v62, %v3454_v37  ;;  %vm3907_vm3 = vcmask 130048  }
0x194c   :  { %v3462_v1 = vadd.f32 1.0, %v3460_v0  ;;  %v3459_v2 = vsel %vm3455_vm4, %v3457_v63, %v3453_v59 }
0x194d   :  { %v3461_v43 = vadd.f32 1.0, %v3459_v2 }
0x194e   :  { %v3464_v10 = vmul.f32 %v3462_v1, %v3412_v7 }
0x194f   :  { %v3463_v8 = vmul.f32 %v3461_v43, %v3411_v3 }
0x1951   :  { %10688 = vmatprep.mubr.msk.f32.mxu0 %vm1817_vm0, %v3463_v8 }
0x1952   :  { %10689 = vmatmul.mubr.msk.f32.vlgmr.msra.gmra.mrb[24].mxu0 %vm1817_vm0, %v3464_v10 }
0x1953   :  { %11346 = vmatpush3.bf16.xpose.msk.msra.mxu0 %vm12337_vm6, %v11341_v14  ;;  %10717 = vmatprep.mubr.msk.f32.mxu0 %vm107_vm1, %v12728_v44 }
0x195a   :  { %10718 = vmatmul.mubr.msk.f32.vlgmr.msra.gmra.mrb[26].mxu0 %vm107_vm1, %v12738_v58 }
0x1a25   :  { %v10690_v52 = vpop.f32.mrb[24].mxu0 }
0x1a26   :  { %v12747_v51 = vadd.f32 %v10690_v52, %v12742_v57  ;;  %v12749_v60 = vpop.f32.mrb[25].mxu0 }
0x1a2d   :  { %v10719_v12 = vpop.f32.mrb[26].mxu0 }
0x1a2e   :  { %v3904_v14 = vadd.f32 %v10719_v12, %v12753_v38  ;;  %v3898_v41 = vpop.f32.mrb[27].mxu0 }
0x1a2f   :  { %v3899_v17 = vadd.f32 %v3898_v41, %v12756_v28 }
0x1a30   :  { %v3911_v18 = vsel %vm3907_vm3, %v3904_v14, -inf }
0x1a31   :  { %3912 = vmax.xlane.f32.xlu1 %v3911_v18  ;;  %v3908_v22 = vsel %vm3907_vm3, %v3899_v17, -inf }
0x1a32   :  { %3909 = vmax.xlane.f32.xlu0 %v3908_v22 }
0x1a42   :  { %11762 = vrot.lane.b32.xlu1 %v12721_v15, %s12231_s0 }
0x1a46   :  { %4019 = vrot.lane.b32.xlu1 %v12728_v44, %s12233_s1 }
0x1a4a   :  { %4021 = vrot.lane.b32.xlu1 %v12738_v58, %s12233_s1 }
0x1a4e   :  { %4383 = vrot.lane.b32.xlu1 %v12728_v44, %s12234_s17 }
0x1abe   :  { %v3913_v26 = vpop.xlane.xlu1 %3912 }
0x1abf   :  { %v3915_v27 = vsub.f32 %v3904_v14, %v3913_v26  ;;  %v3910_v24 = vpop.xlane.xlu0 %3909 }
0x1ac0   :  { %v3914_v39 = vsub.f32 %v3899_v17, %v3910_v24 }
0x1ac1   :  { %v3918_v25 = vmul.f32 1.442695, %v3915_v27 }
0x1ac2   :  { %v3916_v23 = vmul.f32 1.442695, %v3914_v39  ;;  %v11763_v21 = vpop.permute.xlu1 %11762 }
0x1ac3   :  { %12023 = vpow2.f32 %v3918_v25  ;;  %v11765_v40 = vunpack.i.h.bf16 %v11763_v21  ;;  %v11764_v30 = vunpack.i.l.bf16 %v11763_v21 }
0x1ac4   :  { %12025 = vpow2.f32 %v3916_v23 }
0x1ac5   :  { %v11347_v29 = vpack.c.bf16 %v11765_v40, %v11764_v30 }
0x1ac6   :  { %v4020_v37 = vpop.permute.xlu1 %4019 }
0x1ac7   :  { %11348 = vmatprep.subr.bf16.mxu1 %v11347_v29 }
0x1ac8   :  { %11350 = vmatpush3.bf16.msra.mxu1 %v11347_v29 }
0x1aca   :  { %v4022_v2 = vpop.permute.xlu1 %4021 }
0x1acd   :  { %v12024_v46 = vpop.eup %12023 }
0x1ace   :  { %v3923_v32 = vsel %vm3907_vm3, %v12024_v46, 0.0  ;;  %v12026_v49 = vpop.eup %12025  ;;  %v4384_v3 = vpop.permute.xlu1 %4383 }
0x1acf   :  { %3924 = vadd.xlane.f32.xlu0 %v3923_v32  ;;  %v3920_v53 = vsel %vm3907_vm3, %v12026_v49, 0.0 }
0x1ad3   :  { %3921 = vadd.xlane.f32.xlu0 %v3920_v53 }
0x1ae9   :  { %11767 = vrot.lane.b32.xlu0 %v12721_v15, %s12233_s1 }
0x1aed   :  { %11772 = vrot.lane.b32.xlu0 %v12721_v15, %s12234_s17 }
0x1af1   :  { %4385 = vrot.lane.b32.xlu0 %v12738_v58, %s12234_s17 }
0x1b5c   :  { %v3925_v54 = vpop.xlane.xlu0 %3924 }
0x1b5d   :  { %12027 = vrcp.f32 %v3925_v54 }
0x1b60   :  { %v3922_v4 = vpop.xlane.xlu0 %3921 }
0x1b61   :  { %12029 = vrcp.f32 %v3922_v4 }
0x1b64   :  { %v11768_v55 = vpop.permute.xlu0 %11767 }
0x1b65   :  { %v11770_v6 = vunpack.i.h.bf16 %v11768_v55  ;;  %v11769_v34 = vunpack.i.l.bf16 %v11768_v55 }
0x1b67   :  { %v11351_v20 = vpack.c.bf16 %v11770_v6, %v11769_v34  ;;  %v12028_v56 = vpop.eup %12027 }
0x1b68   :  { %v11773_v36 = vpop.permute.xlu0 %11772  ;;  %v3931_v0 = vmul.f32 %v12028_v56, %v12024_v46 }
0x1b69   :  { %11353 = vmatprep.subr.msk.bf16.mxu1 %vm12337_vm6, %v11351_v20  ;;  %v11775_v59 = vunpack.i.h.bf16 %v11773_v36  ;;  %v11774_v62 = vunpack.i.l.bf16 %v11773_v36 }
0x1b6b   :  { %v12030_v45 = vpop.eup %12029  ;;  %v11361_v1 = vpack.c.bf16 %v11775_v59, %v11774_v62 }
0x1b6c   :  { %v3930_v63 = vmul.f32 %v12030_v45, %v12026_v49  ;;  %v4386_v43 = vpop.permute.xlu0 %4385 }
0x1b6e   :  { %10724 = vmatprep.mubr.msk.f32.mxu1 %vm3907_vm3, %v3930_v63 }
0x1b6f   :  { %10725 = vmatmul.mubr.msk.f32.vlgmr.msra.gmra.mrb[34].mxu1 %vm3907_vm3, %v3931_v0 }
0x1b70   :  { %11356 = vmatpush3.bf16.xpose.msk.msra.mxu1 %vm12337_vm6, %v11351_v20  ;;  %10731 = vmatprep.mubr.msk.f32.mxu1 %vm107_vm1, %v4020_v37 }
0x1b71   :  { %11363 = vmatprep.subr.msk.bf16.mxu1 %vm12337_vm6, %v11361_v1 }
0x1b77   :  { %10732 = vmatmul.mubr.msk.f32.vlgmr.msra.gmra.mrb[36].mxu1 %vm107_vm1, %v4022_v2 }
0x1b78   :  { %11366 = vmatpush3.bf16.xpose.msk.msra.mxu1 %vm12337_vm6, %v11361_v1  ;;  %10755 = vmatprep.mubr.msk.f32.mxu1 %vm107_vm1, %v4384_v3 }
0x1b7f   :  { %10756 = vmatmul.mubr.msk.f32.vlgmr.msra.gmra.mrb[38].mxu1 %vm107_vm1, %v4386_v43 }
0x1c42   :  { %v12792_v7 = vpop.f32.mrb[34].mxu1 }
0x1c43   :  { %v12794_v8 = vpop.f32.mrb[35].mxu1 }
0x1c4a   :  { %v10733_v10 = vpop.f32.mrb[36].mxu1 }
0x1c4b   :  { %v4107_v52 = vadd.f32 %v10733_v10, %v12753_v38  ;;  %v4101_v12 = vpop.f32.mrb[37].mxu1 }
0x1c4c   :  { %v4102_v14 = vadd.f32 %v4101_v12, %v12756_v28 }
0x1c4d   :  { %v4113_v41 = vsel %vm3907_vm3, %v4107_v52, -inf }
0x1c4e   :  { %4114 = vmax.xlane.f32.xlu0 %v4113_v41  ;;  %v4110_v17 = vsel %vm3907_vm3, %v4102_v14, -inf }
0x1c4f   :  { %4111 = vmax.xlane.f32.xlu1 %v4110_v17 }
0x1c52   :  { %v10757_v18 = vpop.f32.mrb[38].mxu1 }
0x1c53   :  { %v4465_v22 = vpop.f32.mrb[39].mxu1  ;;  %v4471_v32 = vadd.f32 %v10757_v18, %v12753_v38  ;;  %v3636_v18 = vld [vmem:[#allocation2 + $0x1f8] sm:$0xff] }
0x1c54   :  { %v4466_v46 = vadd.f32 %v4465_v22, %v12756_v28  ;;  %v3635_v22 = vld [vmem:[#allocation2 + $0x1f0] sm:$0xff] }
0x1c55   :  { %v4477_v53 = vsel %vm3907_vm3, %v4471_v32, -inf }
0x1c56   :  { %v4474_v49 = vsel %vm3907_vm3, %v4466_v46, -inf }
0x1cdb   :  { %v4115_v26 = vpop.xlane.xlu0 %4114 }
0x1cdc   :  { %v4117_v27 = vsub.f32 %v4107_v52, %v4115_v26  ;;  %v4112_v24 = vpop.xlane.xlu1 %4111  ;;  %v3542_v26 = vadd.f32 %v12742_v57, %v12749_v60 }
0x1cdd   :  { %v4116_v39 = vsub.f32 %v4102_v14, %v4112_v24 }
0x1cde   :  { %v4120_v25 = vmul.f32 1.442695, %v4117_v27  ;;  %v3550_v27 = vadd.f32 %v3542_v26, %v12685_v16 }
0x1cdf   :  { %v4118_v23 = vmul.f32 1.442695, %v4116_v39 }
0x1ce0   :  { %12031 = vpow2.f32 %v4120_v25  ;;  %v3552_v24 = vsel %vm296_vm5, %v3550_v27, 0.0 }
0x1ce1   :  { %12033 = vpow2.f32 %v4118_v23 }
0x1cea   :  { %v12032_v21 = vpop.eup %12031 }
0x1ceb   :  { %v12034_v40 = vpop.eup %12033  ;;  %v4125_v30 = vsel %vm3907_vm3, %v12032_v21, 0.0 }
0x1cec   :  { %4126 = vadd.xlane.f32.xlu1 %v4125_v30  ;;  %v4122_v29 = vsel %vm3907_vm3, %v12034_v40, 0.0 }
0x1ced   :  { %4123 = vadd.xlane.f32.xlu0 %v4122_v29 }
0x1cfd   :  { %11782 = vrot.lane.b32.xlu1 %v12721_v15, %s12236_s19 }
0x1d01   :  { %4668 = vrot.lane.b32.xlu1 %v12728_v44, %s12236_s19 }
0x1d03   :  { %11777 = vrot.lane.b32.xlu0 %v12721_v15, %s12235_s18 }
0x1d07   :  { %4670 = vrot.lane.b32.xlu0 %v12738_v58, %s12236_s19 }
0x1d25   :  { %4475 = vmax.xlane.f32.xlu1 %v4474_v49 }
0x1d26   :  { %4478 = vmax.xlane.f32.xlu0 %v4477_v53 }
0x1d79   :  { %v4127_v54 = vpop.xlane.xlu1 %4126 }
0x1d7a   :  { %12035 = vrcp.f32 %v4127_v54  ;;  %v4124_v4 = vpop.xlane.xlu0 %4123 }
0x1d7b   :  { %12037 = vrcp.f32 %v4124_v4 }
0x1d7d   :  { %v11783_v44 = vpop.permute.xlu1 %11782 }
0x1d7e   :  { %v11785_v55 = vunpack.i.h.bf16 %v11783_v44  ;;  %v11784_v6 = vunpack.i.l.bf16 %v11783_v44  ;;  %v11778_v34 = vpop.permute.xlu0 %11777 }
0x1d7f   :  { %v11780_v20 = vunpack.i.h.bf16 %v11778_v34  ;;  %v11779_v58 = vunpack.i.l.bf16 %v11778_v34 }
0x1d80   :  { %v11371_v36 = vpack.c.bf16 %v11785_v55, %v11784_v6 }
0x1d81   :  { %v4669_v56 = vpop.permute.xlu1 %4668  ;;  %v11357_v45 = vpack.c.bf16 %v11780_v20, %v11779_v58 }
0x1d82   :  { %11373 = vmatprep.subr.msk.bf16.mxu1 %vm12337_vm6, %v11371_v36  ;;  %10774 = vmatprep.mubr.msk.f32.mxu1 %vm107_vm1, %v4669_v56  ;;  %v4671_v0 = vpop.permute.xlu0 %4670 }
0x1d83   :  { %11358 = vmatprep.subr.bf16.mxu0 %v11357_v45  ;;  %11376 = vmatpush3.bf16.xpose.msk.msra.mxu1 %vm12337_vm6, %v11371_v36  ;;  %v3637_v36 = vld [vmem:[#allocation2 + $0x200] sm:$0xff] }
0x1d84   :  { %v12036_v37 = vpop.eup %12035  ;;  %11360 = vmatpush3.bf16.msra.mxu0 %v11357_v45 }
0x1d85   :  { %v12038_v59 = vpop.eup %12037  ;;  %v4133_v63 = vmul.f32 %v12036_v37, %v12032_v21  ;;  %10741 = vmatprep.subr.mxu0 %v3636_v18 }
0x1d86   :  { %v4132_v62 = vmul.f32 %v12038_v59, %v12034_v40 }
0x1d88   :  { %10738 = vmatprep.mubr.msk.f32.mxu0 %vm3907_vm3, %v4132_v62 }
0x1d89   :  { %10739 = vmatmul.mubr.msk.f32.vlgmr.msra.gmra.mrb[28].mxu0 %vm3907_vm3, %v4133_v63 }
0x1d8a   :  { %10775 = vmatmul.mubr.msk.f32.vlgmr.msra.gmra.mrb[40].mxu1 %vm107_vm1, %v4671_v0  ;;  %10742 = vmatpush3.msra.mxu0 %v3636_v18 }
0x1d8b   :  { %10746 = vmatprep.subr.mxu0 %v3635_v22 }
0x1db2   :  { %v4476_v1 = vpop.xlane.xlu1 %4475 }
0x1db3   :  { %v4480_v2 = vsub.f32 %v4466_v46, %v4476_v1  ;;  %v4479_v3 = vpop.xlane.xlu0 %4478 }
0x1db4   :  { %v4481_v43 = vsub.f32 %v4471_v32, %v4479_v3  ;;  %v3551_v3 = vadd.f32 %v12747_v51, %v12692_v19 }
0x1db5   :  { %v4482_v10 = vmul.f32 1.442695, %v4480_v2 }
0x1db6   :  { %v4484_v52 = vmul.f32 1.442695, %v4481_v43  ;;  %v3555_v43 = vsel %vm1623_vm2, %v3551_v3, 0.0 }
0x1db7   :  { %12039 = vpow2.f32 %v4482_v10 }
0x1db8   :  { %12041 = vpow2.f32 %v4484_v52 }
0x1dc1   :  { %v12040_v12 = vpop.eup %12039 }
0x1dc2   :  { %v12042_v14 = vpop.eup %12041  ;;  %v4486_v41 = vsel %vm3907_vm3, %v12040_v12, 0.0 }
0x1dc3   :  { %4487 = vadd.xlane.f32.xlu0 %v4486_v41  ;;  %v4489_v17 = vsel %vm3907_vm3, %v12042_v14, 0.0 }
0x1dc4   :  { %4490 = vadd.xlane.f32.xlu1 %v4489_v17 }
0x1dd9   :  { %11787 = vrot.lane.b32.xlu0 %v12721_v15, %s12237_s20 }
0x1df8   :  { %3553 = vadd.xlane.f32.xlu0 %v3552_v24 }
0x1e50   :  { %v4488_v39 = vpop.xlane.xlu0 %4487 }
0x1e51   :  { %12043 = vrcp.f32 %v4488_v39  ;;  %v4491_v23 = vpop.xlane.xlu1 %4490 }
0x1e52   :  { %12045 = vrcp.f32 %v4491_v23 }
0x1e54   :  { %v11788_v25 = vpop.permute.xlu0 %11787 }
0x1e55   :  { %v11790_v21 = vunpack.i.h.bf16 %v11788_v25  ;;  %v11789_v40 = vunpack.i.l.bf16 %v11788_v25 }
0x1e57   :  { %v11367_v16 = vpack.c.bf16 %v11790_v21, %v11789_v40  ;;  %v3581_v21 = vrot.slane %v12679_v5, %v12526_v9 }
0x1e5b   :  { %v12044_v53 = vpop.eup %12043 }
0x1e5c   :  { %v10740_v30 = vpop.f32.mrb[28].mxu0  ;;  %v12046_v4 = vpop.eup %12045  ;;  %v4496_v44 = vmul.f32 %v12044_v53, %v12040_v12  ;;  %v3638_v53 = vld [vmem:[#allocation2 + $0x208] sm:$0xff] }
0x1e5d   :  { %v4212_v29 = vpop.f32.mrb[29].mxu0  ;;  %v10776_v46 = vpop.f32.mrb[40].mxu1  ;;  %v4497_v55 = vmul.f32 %v12046_v4, %v12042_v14 }
0x1e5e   :  { %10743 = vmatprep.mubr.msk.f32.mxu0 %vm107_vm1, %v4212_v29  ;;  %v4750_v32 = vpop.f32.mrb[41].mxu1  ;;  %v4756_v60 = vadd.f32 %v10776_v46, %v12753_v38 }
0x1e5f   :  { %v4751_v57 = vadd.f32 %v4750_v32, %v12756_v28  ;;  %10744 = vmatmul.mubr.msk.f32.vlgmr.msra.gmra.mrb[30].mxu0 %vm107_vm1, %v10740_v30  ;;  %v3587_v32 = vrot.slane %v12679_v5, %v12529_v11 }
0x1e60   :  { %10747 = vmatpush3.msra.mxu0 %v3635_v22  ;;  %10748 = vmatprep.mubr.msk.f32.mxu0 %vm107_vm1, %v12794_v8  ;;  %v4762_v54 = vsel %vm3907_vm3, %v4756_v60, -inf }
0x1e61   :  { %11368 = vmatprep.subr.bf16.mxu0 %v11367_v16  ;;  %v4759_v49 = vsel %vm3907_vm3, %v4751_v57, -inf }
0x1e62   :  { %4760 = vmax.xlane.f32.xlu1 %v4759_v49 }
0x1e66   :  { %4763 = vmax.xlane.f32.xlu1 %v4762_v54 }
0x1e67   :  { %10749 = vmatmul.mubr.msk.f32.vlgmr.msra.gmra.mrb[30].mxu0 %vm107_vm1, %v12792_v7 }
0x1e68   :  { %11370 = vmatpush3.bf16.msra.mxu0 %v11367_v16  ;;  %10762 = vmatprep.mubr.msk.f32.mxu0 %vm3907_vm3, %v4496_v44 }
0x1e69   :  { %10765 = vmatprep.subr.mxu0 %v3637_v36 }
0x1e6b   :  { %10763 = vmatmul.mubr.msk.f32.vlgmr.msra.gmra.mrb[32].mxu0 %vm3907_vm3, %v4497_v55 }
0x1e6c   :  { %10766 = vmatpush3.msra.mxu0 %v3637_v36 }
0x1e85   :  { %v3554_v8 = vpop.xlane.xlu0 %3553 }
0x1e86   :  { %v3558_v6 = vmul.f32 0.03125, %v3554_v8 }
0x1e88   :  { %v3560_v34 = vsub.f32 %v3550_v27, %v3558_v6 }
0x1e8a   :  { %v3562_v20 = vmul.f32 %v3560_v34, %v3560_v34 }
0x1e8c   :  { %v3564_v58 = vsel %vm296_vm5, %v3562_v20, 0.0 }
0x1e8d   :  { %3565 = vadd.xlane.f32.xlu0 %v3564_v58 }
0x1eef   :  { %v4761_v56 = vpop.xlane.xlu1 %4760 }
0x1ef0   :  { %v4765_v45 = vsub.f32 %v4751_v57, %v4761_v56 }
0x1ef2   :  { %v4767_v59 = vmul.f32 1.442695, %v4765_v45 }
0x1ef3   :  { %v4764_v37 = vpop.xlane.xlu1 %4763 }
0x1ef4   :  { %v4766_v7 = vsub.f32 %v4756_v60, %v4764_v37 }
0x1ef6   :  { %v4769_v62 = vmul.f32 1.442695, %v4766_v7  ;;  %v9879_v7 = vld [vmem:[#allocation2 + $0x210] ss:$0 sm:$0xff] }
0x1ef8   :  { %12047 = vpow2.f32 %v4769_v62 }
0x1ef9   :  { %12049 = vpow2.f32 %v4767_v59 }
0x1f02   :  { %v12048_v63 = vpop.eup %12047 }
0x1f03   :  { %v4774_v0 = vsel %vm3907_vm3, %v12048_v63, 0.0  ;;  %v12050_v1 = vpop.eup %12049 }
0x1f04   :  { %4775 = vadd.xlane.f32.xlu1 %v4774_v0  ;;  %v4771_v2 = vsel %vm3907_vm3, %v12050_v1, 0.0 }
0x1f08   :  { %4772 = vadd.xlane.f32.xlu1 %v4771_v2 }
0x1f19   :  { %11792 = vrot.lane.b32.xlu1 %v12721_v15, %s12238_s21 }
0x1f1a   :  { %v3566_v27 = vpop.xlane.xlu0 %3565 }
0x1f1b   :  { %v3570_v24 = vmul.f32 0.03125, %v3566_v27 }
0x1f1d   :  { %v3572_v39 = vadd.f32 1e-05, %v3570_v24 }
0x1f3d   :  { %3556 = vadd.xlane.f32.xlu1 %v3555_v43 }
0x1f3e   :  { %v10764_v10 = vpop.f32.mrb[32].mxu0 }
0x1f3f   :  { %v4576_v52 = vpop.f32.mrb[33].mxu0 }
0x1f40   :  { %10767 = vmatprep.mubr.msk.f32.mxu0 %vm107_vm1, %v4576_v52 }
0x1f41   :  { %10768 = vmatmul.mubr.msk.f32.vlgmr.msra.gmra.mrb[30].mxu0 %vm107_vm1, %v10764_v10 }
0x1f91   :  { %v4776_v12 = vpop.xlane.xlu1 %4775 }
0x1f92   :  { %12051 = vrcp.f32 %v4776_v12 }
0x1f95   :  { %v4773_v14 = vpop.xlane.xlu1 %4772 }
0x1f96   :  { %12053 = vrcp.f32 %v4773_v14 }
0x1f97   :  { %12055 = vrsqrt.f32 %v3572_v39 }
0x1f99   :  { %v11793_v41 = vpop.permute.xlu1 %11792 }
0x1f9a   :  { %v11795_v17 = vunpack.i.h.bf16 %v11793_v41  ;;  %v11794_v18 = vunpack.i.l.bf16 %v11793_v41 }
0x1f9c   :  { %v11377_v15 = vpack.c.bf16 %v11795_v17, %v11794_v18  ;;  %v12052_v22 = vpop.eup %12051 }
0x1f9d   :  { %v4782_v26 = vmul.f32 %v12052_v22, %v12048_v63 }
0x1f9e   :  { %11378 = vmatprep.subr.bf16.mxu0 %v11377_v15 }
0x1f9f   :  { %11380 = vmatpush3.bf16.msra.mxu0 %v11377_v15 }
0x1fa0   :  { %v12054_v19 = vpop.eup %12053  ;;  %10784 = vmatprep.subr.mxu0 %v3638_v53 }
0x1fa1   :  { %v4781_v51 = vmul.f32 %v12054_v19, %v12050_v1  ;;  %v12056_v25 = vpop.eup %12055 }
0x1fa2   :  { %v3576_v23 = vmul.f32 %v12056_v25, %v3560_v34 }
0x1fa3   :  { %10781 = vmatprep.mubr.msk.f32.mxu0 %vm3907_vm3, %v4781_v51 }
0x1fa4   :  { %10782 = vmatmul.mubr.msk.f32.vlgmr.msra.gmra.mrb[34].mxu0 %vm3907_vm3, %v4782_v26  ;;  %v3582_v46 = vmul.f32 %v3581_v21, %v3576_v23 }
0x1fa5   :  { %10785 = vmatpush3.msra.mxu0 %v3638_v53 }
0x1fa6   :  { %v3588_v60 = vadd.f32 %v3587_v32, %v3582_v46 }
0x1fa8   :  { %v3591_v49 = vsel %vm296_vm5, %v3588_v60, 0.0 }
0x1fca   :  { %v3557_v40 = vpop.xlane.xlu1 %3556 }
0x1fcb   :  { %v3559_v30 = vmul.f32 0.03125, %v3557_v40 }
0x1fcd   :  { %v3561_v29 = vsub.f32 %v3551_v3, %v3559_v30 }
0x1fcf   :  { %v3563_v57 = vmul.f32 %v3561_v29, %v3561_v29 }
0x1fd1   :  { %v3567_v16 = vsel %vm1623_vm2, %v3563_v57, 0.0  ;;  %v5002_v57 = vld [vmem:[#allocation2 + $0x230] sm:$0xff] }
0x1fd2   :  { %3568 = vadd.xlane.f32.xlu0 %v3567_v16 }
0x1fd6   :  { %3592 = vadd.xlane.f32.xlu0 %v3591_v49 }
0x205f   :  { %v3569_v54 = vpop.xlane.xlu0 %3568 }
0x2060   :  { %v3571_v4 = vmul.f32 0.03125, %v3569_v54 }
0x2062   :  { %v3573_v44 = vadd.f32 1e-05, %v3571_v4 }
0x2063   :  { %v3593_v36 = vpop.xlane.xlu0 %3592 }
0x2064   :  { %12057 = vrsqrt.f32 %v3573_v44  ;;  %v3597_v37 = vmul.f32 0.03125, %v3593_v36 }
0x2066   :  { %v3599_v1 = vsub.f32 %v3588_v60, %v3597_v37 }
0x2068   :  { %v3601_v14 = vmul.f32 %v3599_v1, %v3599_v1 }
0x206a   :  { %v3603_v17 = vsel %vm296_vm5, %v3601_v14, 0.0  ;;  %v12890_v14 = vld [vmem:[#allocation2 + $0x2d8] sm:$0x3f] }
0x206e   :  { %v12058_v55 = vpop.eup %12057 }
0x206f   :  { %v3577_v8 = vmul.f32 %v12058_v55, %v3561_v29  ;;  %v3590_v29 = vld [vmem:[#allocation2 + $0x28] sm:$0x3] }
0x2070   :  { %v3620_v46 = vrot.slane %v3590_v29, %v12495_v31  ;;  %v3626_v53 = vrot.slane %v3590_v29, %v12500_v61 }
0x2071   :  { %v3583_v6 = vmul.f32 %v3581_v21, %v3577_v8 }
0x2073   :  { %v3589_v34 = vadd.f32 %v3587_v32, %v3583_v6  ;;  %v5001_v32 = vld [vmem:[#allocation2 + $0x228] sm:$0xff]  ;;  %v4999_v6 = vld [vmem:[#allocation2 + $0x218] sm:$0xff] }
0x2074   :  { %v11801_v4 = vpack.i.bf16 %v5002_v57, %v5001_v32  ;;  %v11385_v36 = vpack.c.bf16 %v5002_v57, %v5001_v32 }
0x2075   :  { %v3594_v5 = vsel %vm1623_vm2, %v3589_v34, 0.0 }
0x2076   :  { %3595 = vadd.xlane.f32.xlu0 %v3594_v5 }
0x2077   :  { %v10783_v20 = vpop.f32.mrb[34].mxu0 }
0x2078   :  { %v4861_v58 = vpop.f32.mrb[35].mxu0 }
0x2079   :  { %10786 = vmatprep.mubr.msk.f32.mxu0 %vm107_vm1, %v4861_v58 }
0x207a   :  { %10787 = vmatmul.mubr.msk.f32.vlgmr.msra.gmra.mrb[30].mxu0 %vm107_vm1, %v10783_v20 }
0x2103   :  { %v3596_v56 = vpop.xlane.xlu0 %3595 }
0x2104   :  { %v3598_v45 = vmul.f32 0.03125, %v3596_v56  ;;  %v9880_v56 = vld [vmem:[#allocation2 + $0x238] ss:$0 sm:$0xff] }
0x2106   :  { %v3600_v62 = vsub.f32 %v3589_v34, %v3598_v45  ;;  %v5000_v34 = vld [vmem:[#allocation2 + $0x220] sm:$0xff] }
0x2107   :  { %v11796_v20 = vpack.i.bf16 %v5000_v34, %v4999_v6  ;;  %v11381_v58 = vpack.c.bf16 %v5000_v34, %v4999_v6 }
0x2108   :  { %v3602_v52 = vmul.f32 %v3600_v62, %v3600_v62 }
0x2109   :  { %11382 = vmatprep.subr.bf16.mxu1 %v11381_v58 }
0x210a   :  { %v3606_v41 = vsel %vm1623_vm2, %v3602_v52, 0.0  ;;  %11384 = vmatpush3.bf16.msra.mxu1 %v11381_v58  ;;  %vm97_vm2 = vmand %vm57_vm7, %vm60_vm12  ;;  %vm9733_vm12 = vcmask 7168  }
0x210b   :  { %11386 = vmatprep.subr.bf16.mxu1 %v11385_v36  ;;  %v12951_v58 = vsel %vm97_vm2, 0.0, %v12232_v50 }
0x210e   :  { %11388 = vmatpush3.bf16.msra.mxu1 %v11385_v36  ;;  %v12956_v36 = vsel %vm48_vm11, 0.0, %v12232_v50 }
0x214d   :  { %v10788_v59 = vpop.f32.mrb[30].mxu0 }
0x214e   :  { %v4958_v63 = vadd.f32 %v10788_v59, %v9879_v7  ;;  %v4942_v0 = vpop.f32.mrb[31].mxu0 }
0x214f   :  { %v4957_v2 = vadd.f32 %v9879_v7, %v4942_v0 }
0x2150   :  { %v4960_v3 = vadd.f32 %v4958_v63, %v12705_v33 }
0x2151   :  { %v4959_v43 = vadd.f32 %v4957_v2, %v12695_v35 }
0x2152   :  { %v4964_v10 = vsel %vm296_vm5, %v4960_v3, 0.0 }
0x2153   :  { %4965 = vadd.xlane.f32.xlu1 %v4964_v10  ;;  %v4961_v12 = vsel %vm296_vm5, %v4959_v43, 0.0 }
0x2154   :  { %4962 = vadd.xlane.f32.xlu0 %v4961_v12 }
0x2157   :  { %3607 = vadd.xlane.f32.xlu1 %v3606_v41  ;;  %v4990_v41 = vrot.slane %v12890_v14, %v12495_v31 }
0x2158   :  { %3604 = vadd.xlane.f32.xlu0 %v3603_v17 }
0x21e0   :  { %v4966_v18 = vpop.xlane.xlu1 %4965 }
0x21e1   :  { %v4968_v15 = vmul.f32 0.03125, %v4966_v18  ;;  %v4963_v22 = vpop.xlane.xlu0 %4962 }
0x21e2   :  { %v4967_v33 = vmul.f32 0.03125, %v4963_v22 }
0x21e3   :  { %v12869_v19 = vsub.f32 %v4960_v3, %v4968_v15 }
0x21e4   :  { %v12871_v35 = vsub.f32 %v4959_v43, %v4967_v33  ;;  %v3608_v51 = vpop.xlane.xlu1 %3607  ;;  %v4996_v33 = vrot.slane %v12890_v14, %v12500_v61 }
0x21e5   :  { %v3610_v26 = vmul.f32 0.03125, %v3608_v51  ;;  %v3605_v27 = vpop.xlane.xlu0 %3604  ;;  %v4972_v24 = vmul.f32 %v12869_v19, %v12869_v19 }
0x21e6   :  { %v3609_v39 = vmul.f32 0.03125, %v3605_v27  ;;  %v4971_v25 = vmul.f32 %v12871_v35, %v12871_v35 }
0x21e7   :  { %v3612_v23 = vadd.f32 1e-05, %v3610_v26  ;;  %v4976_v21 = vsel %vm296_vm5, %v4972_v24, 0.0 }
0x21e8   :  { %v3611_v40 = vadd.f32 1e-05, %v3609_v39  ;;  %4977 = vadd.xlane.f32.xlu1 %v4976_v21  ;;  %v4973_v30 = vsel %vm296_vm5, %v4971_v25, 0.0 }
0x21e9   :  { %12059 = vrsqrt.f32 %v3612_v23  ;;  %4974 = vadd.xlane.f32.xlu0 %v4973_v30 }
0x21ea   :  { %12061 = vrsqrt.f32 %v3611_v40 }
0x21f3   :  { %v12060_v16 = vpop.eup %12059 }
0x21f4   :  { %v12062_v60 = vpop.eup %12061  ;;  %v3616_v49 = vmul.f32 %v12060_v16, %v3600_v62 }
0x21f5   :  { %v3615_v54 = vmul.f32 %v12062_v60, %v3599_v1 }
0x21f6   :  { %v3622_v44 = vmul.f32 %v3620_v46, %v3616_v49 }
0x21f7   :  { %v3621_v55 = vmul.f32 %v3620_v46, %v3615_v54 }
0x21f8   :  { %v12881_v8 = vadd.f32 %v3626_v53, %v3622_v44 }
0x21f9   :  { %v12883_v5 = vadd.f32 %v3626_v53, %v3621_v55  ;;  %11802 = vrot.lane.b32.xlu1 %v11801_v4, %s12231_s0 }
0x21fb   :  { %10808 = vmatprep.mubr.msk.f32.mxu0 %vm296_vm5, %v12883_v5 }
0x21fd   :  { %5111 = vrot.lane.b32.xlu1 %v9880_v56, %s12231_s0 }
0x21ff   :  { %11797 = vrot.lane.b32.xlu0 %v11796_v20, %s12231_s0 }
0x2275   :  { %v4978_v45 = vpop.xlane.xlu1 %4977 }
0x2276   :  { %v4980_v37 = vmul.f32 0.03125, %v4978_v45  ;;  %v4975_v7 = vpop.xlane.xlu0 %4974 }
0x2277   :  { %v4979_v59 = vmul.f32 0.03125, %v4975_v7 }
0x2278   :  { %v4982_v62 = vadd.f32 1e-05, %v4980_v37 }
0x2279   :  { %v4981_v63 = vadd.f32 1e-05, %v4979_v59  ;;  %v11803_v0 = vpop.permute.xlu1 %11802 }
0x227a   :  { %12063 = vrsqrt.f32 %v4982_v62  ;;  %v11798_v1 = vpop.permute.xlu0 %11797  ;;  %v11805_v2 = vunpack.i.h.bf16 %v11803_v0  ;;  %v11804_v3 = vunpack.i.l.bf16 %v11803_v0 }
0x227b   :  { %12065 = vrsqrt.f32 %v4981_v63  ;;  %v11800_v43 = vunpack.i.h.bf16 %v11798_v1  ;;  %v11799_v10 = vunpack.i.l.bf16 %v11798_v1 }
0x227c   :  { %v11393_v12 = vpack.c.bf16 %v11805_v2, %v11804_v3 }
0x227d   :  { %v11389_v52 = vpack.c.bf16 %v11800_v43, %v11799_v10 }
0x227f   :  { %11390 = vmatprep.subr.bf16.mxu0 %v11389_v52 }
0x2280   :  { %11392 = vmatpush3.bf16.msra.mxu0 %v11389_v52 }
0x2281   :  { %11394 = vmatprep.subr.bf16.mxu0 %v11393_v12 }
0x2284   :  { %v12064_v17 = vpop.eup %12063  ;;  %11396 = vmatpush3.bf16.msra.mxu0 %v11393_v12 }
0x2285   :  { %v12066_v18 = vpop.eup %12065  ;;  %v4986_v15 = vmul.f32 %v12064_v17, %v12869_v19  ;;  %v5112_v19 = vpop.permute.xlu1 %5111 }
0x2286   :  { %v4985_v22 = vmul.f32 %v12066_v18, %v12871_v35 }
0x2287   :  { %10809 = vmatmul.mubr.msk.f32.vlgmr.msra.gmra.mrb[36].mxu0 %vm296_vm5, %v12881_v8  ;;  %v4992_v51 = vmul.f32 %v4990_v41, %v4986_v15 }
0x2288   :  { %v4991_v26 = vmul.f32 %v4990_v41, %v4985_v22 }
0x2289   :  { %v12902_v24 = vadd.f32 %v4996_v33, %v4992_v51 }
0x228a   :  { %v12900_v27 = vadd.f32 %v4996_v33, %v4991_v26 }
0x228c   :  { %10797 = vmatprep.mubr.msk.f32.mxu1 %vm296_vm5, %v12900_v27 }
0x228d   :  { %10798 = vmatmul.mubr.msk.f32.vlgmr.msra.gmra.mrb[42].mxu1 %vm296_vm5, %v12902_v24 }
0x235a   :  { %v10810_v35 = vpop.f32.mrb[36].mxu0 }
0x235b   :  { %v5192_v39 = vadd.f32 %v10810_v35, %v5112_v19  ;;  %v5186_v25 = vpop.f32.mrb[37].mxu0 }
0x235c   :  { %v5187_v23 = vadd.f32 %v5186_v25, %v5112_v19 }
0x235e   :  { %v12908_v21 = vpack.i.bf16 %v5192_v39, %v5187_v23  ;;  %v11397_v40 = vpack.c.bf16 %v5192_v39, %v5187_v23 }
0x2360   :  { %v10799_v30 = vpop.f32.mrb[42].mxu1  ;;  %11807 = vrot.lane.b32.xlu0 %v12908_v21, %s12233_s1  ;;  %11399 = vmatprep.subr.msk.bf16.mxu1 %vm12337_vm6, %v11397_v40 }
0x2361   :  { %v12914_v29 = vadd.f32 %v10799_v30, %v9880_v56  ;;  %v5085_v46 = vpop.f32.mrb[43].mxu1  ;;  %11402 = vmatpush3.bf16.xpose.msk.msra.mxu1 %vm12337_vm6, %v11397_v40 }
0x2362   :  { %v12918_v32 = vadd.f32 %v9880_v56, %v5085_v46 }
0x2364   :  { %5394 = vrot.lane.b32.xlu1 %v12918_v32, %s12233_s1  ;;  %10815 = vmatprep.mubr.msk.f32.mxu1 %vm107_vm1, %v12918_v32 }
0x2365   :  { %5396 = vrot.lane.b32.xlu0 %v12914_v29, %s12233_s1 }
0x2368   :  { %11812 = vrot.lane.b32.xlu1 %v12908_v21, %s12234_s17  ;;  %10816 = vmatmul.mubr.msk.f32.vlgmr.msra.gmra.mrb[44].mxu1 %vm107_vm1, %v12914_v29 }
0x2369   :  { %5759 = vrot.lane.b32.xlu0 %v12918_v32, %s12234_s17 }
0x236c   :  { %5761 = vrot.lane.b32.xlu1 %v12914_v29, %s12234_s17 }
0x23d2   :  { %v11808_v57 = vpop.permute.xlu0 %11807 }
0x23d3   :  { %v11810_v16 = vunpack.i.h.bf16 %v11808_v57  ;;  %v11809_v60 = vunpack.i.l.bf16 %v11808_v57 }
0x23d5   :  { %v11409_v49 = vpack.c.bf16 %v11810_v16, %v11809_v60 }
0x23d6   :  { %v5395_v53 = vpop.permute.xlu1 %5394 }
0x23d7   :  { %11411 = vmatprep.subr.msk.bf16.mxu1 %vm12337_vm6, %v11409_v49  ;;  %10829 = vmatprep.mubr.msk.f32.mxu1 %vm107_vm1, %v5395_v53  ;;  %v5397_v54 = vpop.permute.xlu0 %5396 }
0x23d8   :  { %11414 = vmatpush3.bf16.xpose.msk.msra.mxu1 %vm12337_vm6, %v11409_v49 }
0x23da   :  { %v11813_v4 = vpop.permute.xlu1 %11812 }
0x23db   :  { %v11815_v44 = vunpack.i.h.bf16 %v11813_v4  ;;  %v11814_v55 = vunpack.i.l.bf16 %v11813_v4  ;;  %v5760_v34 = vpop.permute.xlu0 %5759 }
0x23dd   :  { %v11421_v6 = vpack.c.bf16 %v11815_v44, %v11814_v55 }
0x23de   :  { %v5762_v20 = vpop.permute.xlu1 %5761 }
0x23df   :  { %10830 = vmatmul.mubr.msk.f32.vlgmr.msra.gmra.mrb[46].mxu1 %vm107_vm1, %v5397_v54  ;;  %11423 = vmatprep.subr.msk.bf16.mxu1 %vm12337_vm6, %v11421_v6 }
0x23e0   :  { %11426 = vmatpush3.bf16.xpose.msk.msra.mxu1 %vm12337_vm6, %v11421_v6  ;;  %10853 = vmatprep.mubr.msk.f32.mxu1 %vm107_vm1, %v5760_v34 }
0x23e7   :  { %10854 = vmatmul.mubr.msk.f32.vlgmr.msra.gmra.mrb[48].mxu1 %vm107_vm1, %v5762_v20 }
0x243b   :  { %v10817_v56 = vpop.f32.mrb[44].mxu1 }
0x243c   :  { %v5279_v45 = vadd.f32 %v10817_v56, %v12951_v58  ;;  %v5273_v37 = vpop.f32.mrb[45].mxu1 }
0x243d   :  { %v5274_v7 = vadd.f32 %v5273_v37, %v12956_v36 }
0x243e   :  { %v5285_v59 = vsel %vm560_vm9, %v5279_v45, -inf }
0x243f   :  { %5286 = vmax.xlane.f32.xlu1 %v5285_v59  ;;  %v5282_v62 = vsel %vm560_vm9, %v5274_v7, -inf }
0x2440   :  { %5283 = vmax.xlane.f32.xlu0 %v5282_v62 }
0x24b2   :  { %v10831_v63 = vpop.f32.mrb[46].mxu1 }
0x24b3   :  { %v5476_v0 = vpop.f32.mrb[47].mxu1  ;;  %v5482_v48 = vadd.f32 %v10831_v63, %v12951_v58 }
0x24b4   :  { %v5477_v1 = vadd.f32 %v5476_v0, %v12956_v36 }
0x24b5   :  { %v5488_v3 = vsel %vm560_vm9, %v5482_v48, -inf }
0x24b6   :  { %v5485_v50 = vsel %vm560_vm9, %v5477_v1, -inf }
0x24b7   :  { %5486 = vmax.xlane.f32.xlu0 %v5485_v50 }
0x24ba   :  { %v10855_v2 = vpop.f32.mrb[48].mxu1 }
0x24bb   :  { %v5841_v43 = vpop.f32.mrb[49].mxu1  ;;  %5489 = vmax.xlane.f32.xlu0 %v5488_v3  ;;  %v5847_v53 = vadd.f32 %v10855_v2, %v12951_v58 }
0x24bc   :  { %v5842_v54 = vadd.f32 %v5841_v43, %v12956_v36 }
0x24bd   :  { %v5853_v44 = vsel %vm560_vm9, %v5847_v53, -inf }
0x24be   :  { %v5850_v4 = vsel %vm560_vm9, %v5842_v54, -inf }
0x24cc   :  { %v5287_v10 = vpop.xlane.xlu1 %5286 }
0x24cd   :  { %v5289_v52 = vsub.f32 %v5279_v45, %v5287_v10  ;;  %v5284_v12 = vpop.xlane.xlu0 %5283 }
0x24ce   :  { %v5288_v41 = vsub.f32 %v5274_v7, %v5284_v12 }
0x24cf   :  { %v5292_v17 = vmul.f32 1.442695, %v5289_v52 }
0x24d0   :  { %v5290_v18 = vmul.f32 1.442695, %v5288_v41 }
0x24d1   :  { %12067 = vpow2.f32 %v5292_v17 }
0x24d2   :  { %12069 = vpow2.f32 %v5290_v18 }
0x24db   :  { %v12068_v15 = vpop.eup %12067 }
0x24dc   :  { %v12070_v22 = vpop.eup %12069  ;;  %v5297_v33 = vsel %vm560_vm9, %v12068_v15, 0.0 }
0x24dd   :  { %5298 = vadd.xlane.f32.xlu0 %v5297_v33  ;;  %v5294_v51 = vsel %vm560_vm9, %v12070_v22, 0.0 }
0x24de   :  { %5295 = vadd.xlane.f32.xlu1 %v5294_v51 }
0x2544   :  { %v5487_v26 = vpop.xlane.xlu0 %5486 }
0x2545   :  { %v5491_v19 = vsub.f32 %v5477_v1, %v5487_v26 }
0x2547   :  { %v5493_v35 = vmul.f32 1.442695, %v5491_v19 }
0x2548   :  { %v5490_v39 = vpop.xlane.xlu0 %5489 }
0x2549   :  { %12071 = vpow2.f32 %v5493_v35  ;;  %v5492_v25 = vsub.f32 %v5482_v48, %v5490_v39  ;;  %v5005_v39 = vld [vmem:[#allocation2 + $0x248] sm:$0xff] }
0x254b   :  { %v5495_v23 = vmul.f32 1.442695, %v5492_v25  ;;  %v5004_v25 = vld [vmem:[#allocation2 + $0x240] sm:$0xff] }
0x254d   :  { %12073 = vpow2.f32 %v5495_v23 }
0x2553   :  { %v12072_v40 = vpop.eup %12071 }
0x2554   :  { %v5497_v30 = vsel %vm560_vm9, %v12072_v40, 0.0 }
0x2555   :  { %5498 = vadd.xlane.f32.xlu1 %v5497_v30 }
0x2557   :  { %v12074_v46 = vpop.eup %12073 }
0x2558   :  { %v5500_v57 = vsel %vm560_vm9, %v12074_v46, 0.0 }
0x2559   :  { %5501 = vadd.xlane.f32.xlu0 %v5500_v57 }
0x2566   :  { %11817 = vrot.lane.b32.xlu1 %v12908_v21, %s12231_s0 }
0x256a   :  { %11827 = vrot.lane.b32.xlu1 %v12908_v21, %s12236_s19 }
0x256b   :  { %v5296_v16 = vpop.xlane.xlu1 %5295 }
0x256c   :  { %12075 = vrcp.f32 %v5296_v16 }
0x256e   :  { %6045 = vrot.lane.b32.xlu1 %v12918_v32, %s12236_s19  ;;  %v5299_v32 = vpop.xlane.xlu0 %5298 }
0x256f   :  { %11822 = vrot.lane.b32.xlu0 %v12908_v21, %s12235_s18  ;;  %12077 = vrcp.f32 %v5299_v32 }
0x2573   :  { %6047 = vrot.lane.b32.xlu0 %v12914_v29, %s12236_s19 }
0x2576   :  { %v12076_v60 = vpop.eup %12075 }
0x2577   :  { %v5304_v49 = vmul.f32 %v12076_v60, %v12070_v22 }
0x2579   :  { %10822 = vmatprep.mubr.msk.f32.mxu0 %vm560_vm9, %v5304_v49  ;;  %v12078_v45 = vpop.eup %12077 }
0x257a   :  { %v5305_v2 = vmul.f32 %v12078_v45, %v12068_v15 }
0x2592   :  { %5851 = vmax.xlane.f32.xlu1 %v5850_v4  ;;  %5854 = vmax.xlane.f32.xlu0 %v5853_v44 }
0x25e2   :  { %v5499_v55 = vpop.xlane.xlu1 %5498 }
0x25e3   :  { %12079 = vrcp.f32 %v5499_v55 }
0x25e6   :  { %v11818_v6 = vpop.permute.xlu1 %11817  ;;  %v5502_v29 = vpop.xlane.xlu0 %5501 }
0x25e7   :  { %v11820_v34 = vunpack.i.h.bf16 %v11818_v6  ;;  %v11819_v20 = vunpack.i.l.bf16 %v11818_v6  ;;  %12081 = vrcp.f32 %v5502_v29 }
0x25e9   :  { %v11403_v56 = vpack.c.bf16 %v11820_v34, %v11819_v20 }
0x25ea   :  { %v11828_v37 = vpop.permute.xlu1 %11827  ;;  %v11823_v7 = vpop.permute.xlu0 %11822 }
0x25eb   :  { %v11830_v59 = vunpack.i.h.bf16 %v11828_v37  ;;  %v11829_v62 = vunpack.i.l.bf16 %v11828_v37  ;;  %v11825_v63 = vunpack.i.h.bf16 %v11823_v7  ;;  %v11824_v0 = vunpack.i.l.bf16 %v11823_v7  ;;  %11405 = vmatprep.subr.msk.bf16.mxu0 %vm12398_vm13, %v11403_v56  ;;  %v5006_v37 = vld [vmem:[#allocation2 + $0x250] sm:$0xff] }
0x25ec   :  { %11408 = vmatpush3.bf16.msk.msra.mxu0 %vm12398_vm13, %v11403_v56 }
0x25ed   :  { %v12080_v1 = vpop.eup %12079  ;;  %v11433_v48 = vpack.c.bf16 %v11830_v59, %v11829_v62  ;;  %v11415_v50 = vpack.c.bf16 %v11825_v63, %v11824_v0 }
0x25ee   :  { %v6046_v3 = vpop.permute.xlu1 %6045  ;;  %v5507_v43 = vmul.f32 %v12080_v1, %v12072_v40  ;;  %v6048_v12 = vpop.permute.xlu0 %6047 }
0x25ef   :  { %10823 = vmatmul.mubr.msk.f32.vlgmr.msra.gmra.mrb[38].mxu0 %vm560_vm9, %v5305_v2  ;;  %11417 = vmatprep.subr.msk.bf16.mxu0 %vm12398_vm13, %v11415_v50 }
0x25f0   :  { %11435 = vmatprep.subr.msk.bf16.mxu1 %vm12337_vm6, %v11433_v48  ;;  %10872 = vmatprep.mubr.msk.f32.mxu1 %vm107_vm1, %v6046_v3 }
0x25f1   :  { %v12082_v10 = vpop.eup %12081  ;;  %11420 = vmatpush3.bf16.msk.msra.mxu0 %vm12398_vm13, %v11415_v50  ;;  %10836 = vmatprep.mubr.msk.f32.mxu0 %vm560_vm9, %v5507_v43 }
0x25f2   :  { %11438 = vmatpush3.bf16.xpose.msk.msra.mxu1 %vm12337_vm6, %v11433_v48  ;;  %v5508_v52 = vmul.f32 %v12082_v10, %v12074_v46  ;;  %10839 = vmatprep.subr.mxu0 %v5005_v39 }
0x25f4   :  { %10837 = vmatmul.mubr.msk.f32.vlgmr.msra.gmra.mrb[40].mxu0 %vm560_vm9, %v5508_v52 }
0x25f5   :  { %10840 = vmatpush3.msra.mxu0 %v5005_v39  ;;  %v9921_v39 = vld [vmem:[#allocation2 + $0x260] ss:$0 sm:$0xff] }
0x25f6   :  { %10844 = vmatprep.subr.mxu0 %v5004_v25 }
0x25f9   :  { %10873 = vmatmul.mubr.msk.f32.vlgmr.msra.gmra.mrb[50].mxu1 %vm107_vm1, %v6048_v12 }
0x261f   :  { %v5852_v41 = vpop.xlane.xlu1 %5851  ;;  %v5855_v17 = vpop.xlane.xlu0 %5854 }
0x2620   :  { %v5856_v18 = vsub.f32 %v5842_v54, %v5852_v41  ;;  %v5857_v15 = vsub.f32 %v5847_v53, %v5855_v17 }
0x2622   :  { %v5858_v22 = vmul.f32 1.442695, %v5856_v18  ;;  %v5860_v33 = vmul.f32 1.442695, %v5857_v15 }
0x2624   :  { %12083 = vpow2.f32 %v5858_v22  ;;  %v5007_v22 = vld [vmem:[#allocation2 + $0x258] sm:$0xff] }
0x2625   :  { %12085 = vpow2.f32 %v5860_v33 }
0x262e   :  { %v12084_v51 = vpop.eup %12083 }
0x262f   :  { %v12086_v26 = vpop.eup %12085  ;;  %v5862_v19 = vsel %vm560_vm9, %v12084_v51, 0.0 }
0x2630   :  { %5863 = vadd.xlane.f32.xlu0 %v5862_v19  ;;  %v5865_v35 = vsel %vm560_vm9, %v12086_v26, 0.0 }
0x2631   :  { %5866 = vadd.xlane.f32.xlu1 %v5865_v35 }
0x2646   :  { %11832 = vrot.lane.b32.xlu0 %v12908_v21, %s12237_s20 }
0x26bd   :  { %v5864_v23 = vpop.xlane.xlu0 %5863 }
0x26be   :  { %v5867_v57 = vpop.xlane.xlu1 %5866  ;;  %12087 = vrcp.f32 %v5864_v23 }
0x26bf   :  { %12089 = vrcp.f32 %v5867_v57 }
0x26c1   :  { %v11833_v30 = vpop.permute.xlu0 %11832 }
0x26c2   :  { %v10824_v40 = vpop.f32.mrb[38].mxu0  ;;  %v11835_v16 = vunpack.i.h.bf16 %v11833_v30  ;;  %v11834_v60 = vunpack.i.l.bf16 %v11833_v30 }
0x26c3   :  { %v5385_v46 = vpop.f32.mrb[39].mxu0 }
0x26c4   :  { %v11427_v54 = vpack.c.bf16 %v11835_v16, %v11834_v60 }
0x26c7   :  { %v10838_v49 = vpop.f32.mrb[40].mxu0 }
0x26c8   :  { %v5588_v53 = vpop.f32.mrb[41].mxu0  ;;  %v12088_v32 = vpop.eup %12087 }
0x26c9   :  { %10841 = vmatprep.mubr.msk.f32.mxu0 %vm107_vm1, %v5588_v53  ;;  %v12090_v34 = vpop.eup %12089  ;;  %v5872_v20 = vmul.f32 %v12088_v32, %v12084_v51 }
0x26ca   :  { %10842 = vmatmul.mubr.msk.f32.vlgmr.msra.gmra.mrb[42].mxu0 %vm107_vm1, %v10838_v49  ;;  %v5873_v56 = vmul.f32 %v12090_v34, %v12086_v26  ;;  %v6378_v34 = vld [vmem:[#allocation2 + $0x270] sm:$0xff] }
0x26cb   :  { %10845 = vmatpush3.msra.mxu0 %v5004_v25  ;;  %10846 = vmatprep.mubr.msk.f32.mxu0 %vm107_vm1, %v5385_v46 }
0x26cc   :  { %v10874_v4 = vpop.f32.mrb[50].mxu1  ;;  %11429 = vmatprep.subr.msk.bf16.mxu0 %vm12398_vm13, %v11427_v54 }
0x26cd   :  { %v6127_v44 = vpop.f32.mrb[51].mxu1  ;;  %v6133_v6 = vadd.f32 %v10874_v4, %v12951_v58 }
0x26ce   :  { %v6128_v55 = vadd.f32 %v6127_v44, %v12956_v36 }
0x26cf   :  { %v6139_v45 = vsel %vm560_vm9, %v6133_v6, -inf }
0x26d0   :  { %v6136_v29 = vsel %vm560_vm9, %v6128_v55, -inf }
0x26d1   :  { %6137 = vmax.xlane.f32.xlu1 %v6136_v29 }
0x26d2   :  { %10847 = vmatmul.mubr.msk.f32.vlgmr.msra.gmra.mrb[42].mxu0 %vm107_vm1, %v10824_v40 }
0x26d3   :  { %11432 = vmatpush3.bf16.msk.msra.mxu0 %vm12398_vm13, %v11427_v54  ;;  %10860 = vmatprep.mubr.msk.f32.mxu0 %vm560_vm9, %v5872_v20 }
0x26d4   :  { %10863 = vmatprep.subr.mxu0 %v5006_v37 }
0x26d5   :  { %6140 = vmax.xlane.f32.xlu1 %v6139_v45  ;;  %v6380_v45 = vld [vmem:[#allocation2 + $0x280] sm:$0xff] }
0x26d6   :  { %10861 = vmatmul.mubr.msk.f32.vlgmr.msra.gmra.mrb[44].mxu0 %vm560_vm9, %v5873_v56  ;;  %v6379_v56 = vld [vmem:[#allocation2 + $0x278] sm:$0xff] }
0x26d7   :  { %10864 = vmatpush3.msra.mxu0 %v5006_v37  ;;  %v11449_v37 = vpack.c.bf16 %v6380_v45, %v6379_v56 }
0x275e   :  { %v6138_v7 = vpop.xlane.xlu1 %6137 }
0x275f   :  { %v6142_v59 = vsub.f32 %v6128_v55, %v6138_v7 }
0x2761   :  { %v6144_v0 = vmul.f32 1.442695, %v6142_v59 }
0x2762   :  { %v6141_v62 = vpop.xlane.xlu1 %6140 }
0x2763   :  { %v6143_v63 = vsub.f32 %v6133_v6, %v6141_v62 }
0x2765   :  { %v6146_v1 = vmul.f32 1.442695, %v6143_v63 }
0x2767   :  { %12091 = vpow2.f32 %v6146_v1 }
0x2768   :  { %12093 = vpow2.f32 %v6144_v0 }
0x2771   :  { %v12092_v48 = vpop.eup %12091 }
0x2772   :  { %v6151_v50 = vsel %vm560_vm9, %v12092_v48, 0.0  ;;  %v12094_v2 = vpop.eup %12093 }
0x2773   :  { %6152 = vadd.xlane.f32.xlu1 %v6151_v50  ;;  %v6148_v3 = vsel %vm560_vm9, %v12094_v2, 0.0 }
0x2777   :  { %6149 = vadd.xlane.f32.xlu1 %v6148_v3  ;;  %v6374_v3 = vrot.slane %v12890_v14, %v12529_v11 }
0x2788   :  { %11837 = vrot.lane.b32.xlu1 %v12908_v21, %s12238_s21 }
0x27a9   :  { %v10862_v43 = vpop.f32.mrb[44].mxu0 }
0x27aa   :  { %v5953_v10 = vpop.f32.mrb[45].mxu0 }
0x27ab   :  { %10865 = vmatprep.mubr.msk.f32.mxu0 %vm107_vm1, %v5953_v10 }
0x27ac   :  { %10866 = vmatmul.mubr.msk.f32.vlgmr.msra.gmra.mrb[42].mxu0 %vm107_vm1, %v10862_v43 }
0x2800   :  { %v6153_v52 = vpop.xlane.xlu1 %6152 }
0x2801   :  { %12095 = vrcp.f32 %v6153_v52 }
0x2804   :  { %v6150_v12 = vpop.xlane.xlu1 %6149 }
0x2805   :  { %12097 = vrcp.f32 %v6150_v12 }
0x2808   :  { %v11838_v41 = vpop.permute.xlu1 %11837 }
0x2809   :  { %v11840_v17 = vunpack.i.h.bf16 %v11838_v41  ;;  %v11839_v18 = vunpack.i.l.bf16 %v11838_v41 }
0x280b   :  { %v11439_v15 = vpack.c.bf16 %v11840_v17, %v11839_v18  ;;  %v12096_v33 = vpop.eup %12095  ;;  %v6382_v18 = vld [vmem:[#allocation2 + $0x290] sm:$0xff] }
0x280c   :  { %v6159_v26 = vmul.f32 %v12096_v33, %v12092_v48  ;;  %v6368_v48 = vrot.slane %v12890_v14, %v12526_v9  ;;  %v6384_v33 = vld [vmem:[#allocation2 + $0x2a0] sm:$0xff] }
0x280d   :  { %11441 = vmatprep.subr.msk.bf16.mxu0 %vm12398_vm13, %v11439_v15 }
0x280e   :  { %11444 = vmatpush3.bf16.msk.msra.mxu0 %vm12398_vm13, %v11439_v15  ;;  %v6383_v15 = vld [vmem:[#allocation2 + $0x298] sm:$0xff] }
0x280f   :  { %v12098_v21 = vpop.eup %12097  ;;  %10882 = vmatprep.subr.mxu0 %v5007_v22 }
0x2810   :  { %v6158_v51 = vmul.f32 %v12098_v21, %v12094_v2  ;;  %v6385_v21 = vld [vmem:[#allocation2 + $0x2a8] sm:$0xff] }
0x2812   :  { %10879 = vmatprep.mubr.msk.f32.mxu0 %vm560_vm9, %v6158_v51  ;;  %v11457_v51 = vpack.c.bf16 %v6385_v21, %v6384_v33 }
0x2813   :  { %10880 = vmatmul.mubr.msk.f32.vlgmr.msra.gmra.mrb[46].mxu0 %vm560_vm9, %v6159_v26  ;;  %v6386_v26 = vld [vmem:[#allocation2 + $0x2b0] sm:$0xff] }
0x2814   :  { %10883 = vmatpush3.msra.mxu0 %v5007_v22  ;;  %v11453_v22 = vpack.c.bf16 %v6383_v15, %v6382_v18 }
0x2816   :  { %11454 = vmatprep.subr.bf16.mxu0 %v11453_v22 }
0x28e6   :  { %v10881_v19 = vpop.f32.mrb[46].mxu0 }
0x28e7   :  { %v6239_v35 = vpop.f32.mrb[47].mxu0 }
0x28e8   :  { %10884 = vmatprep.mubr.msk.f32.mxu0 %vm107_vm1, %v6239_v35 }
0x28e9   :  { %10885 = vmatmul.mubr.msk.f32.vlgmr.msra.gmra.mrb[42].mxu0 %vm107_vm1, %v10881_v19  ;;  %v6387_v19 = vld [vmem:[#allocation2 + $0x2b8] sm:$0xff] }
0x28ea   :  { %11456 = vmatpush3.bf16.msra.mxu0 %v11453_v22  ;;  %v11461_v35 = vpack.c.bf16 %v6387_v19, %v6386_v26 }
0x28eb   :  { %11458 = vmatprep.subr.bf16.mxu0 %v11457_v51 }
0x28ee   :  { %11460 = vmatpush3.bf16.msra.mxu0 %v11457_v51 }
0x28ef   :  { %11462 = vmatprep.subr.bf16.mxu0 %v11461_v35 }
0x28f2   :  { %11464 = vmatpush3.bf16.msra.mxu0 %v11461_v35 }
0x29bc   :  { %v10886_v25 = vpop.f32.mrb[42].mxu0 }
0x29bd   :  { %v6336_v23 = vadd.f32 %v10886_v25, %v9921_v39  ;;  %v6320_v40 = vpop.f32.mrb[43].mxu0  ;;  %v6389_v25 = vld [vmem:[#allocation2 + $0x2c8] sm:$0xff] }
0x29be   :  { %v6335_v30 = vadd.f32 %v9921_v39, %v6320_v40  ;;  %v6388_v39 = vld [vmem:[#allocation2 + $0x2c0] sm:$0xff]  ;;  %v9922_v40 = vld [vmem:[#allocation2 + $0x288] ss:$0 sm:$0xff] }
0x29bf   :  { %v6338_v46 = vadd.f32 %v6336_v23, %v12902_v24  ;;  %v11465_v23 = vpack.c.bf16 %v6389_v25, %v6388_v39 }
0x29c0   :  { %v6337_v57 = vadd.f32 %v6335_v30, %v12900_v27  ;;  %v6377_v27 = vld [vmem:[#allocation2 + $0x268] sm:$0xff] }
0x29c1   :  { %v6342_v16 = vsel %vm296_vm5, %v6338_v46, 0.0  ;;  %v11445_v20 = vpack.c.bf16 %v6378_v34, %v6377_v27  ;;  %11466 = vmatprep.subr.bf16.mxu0 %v11465_v23 }
0x29c2   :  { %6343 = vadd.xlane.f32.xlu1 %v6342_v16  ;;  %v6339_v60 = vsel %vm296_vm5, %v6337_v57, 0.0  ;;  %11468 = vmatpush3.bf16.msra.mxu0 %v11465_v23 }
0x29c3   :  { %6340 = vadd.xlane.f32.xlu0 %v6339_v60  ;;  %11446 = vmatprep.subr.bf16.mxu1 %v11445_v20 }
0x29c4   :  { %11448 = vmatpush3.bf16.msra.mxu1 %v11445_v20 }
0x29c5   :  { %11450 = vmatprep.subr.bf16.mxu1 %v11449_v37 }
0x29c8   :  { %11452 = vmatpush3.bf16.msra.mxu1 %v11449_v37 }
0x2a4f   :  { %v6344_v49 = vpop.xlane.xlu1 %6343 }
0x2a50   :  { %v6346_v53 = vmul.f32 0.03125, %v6344_v49  ;;  %v6341_v54 = vpop.xlane.xlu0 %6340 }
0x2a51   :  { %v6345_v4 = vmul.f32 0.03125, %v6341_v54 }
0x2a52   :  { %v6348_v44 = vsub.f32 %v6338_v46, %v6346_v53 }
0x2a53   :  { %v6347_v32 = vsub.f32 %v6337_v57, %v6345_v4 }
0x2a54   :  { %v6350_v29 = vmul.f32 %v6348_v44, %v6348_v44 }
0x2a55   :  { %v6349_v55 = vmul.f32 %v6347_v32, %v6347_v32 }
0x2a56   :  { %v6354_v24 = vsel %vm296_vm5, %v6350_v29, 0.0 }
0x2a57   :  { %v6351_v6 = vsel %vm296_vm5, %v6349_v55, 0.0 }
0x2a58   :  { %6352 = vadd.xlane.f32.xlu0 %v6351_v6 }
0x2a5c   :  { %6355 = vadd.xlane.f32.xlu0 %v6354_v24 }
0x2ae5   :  { %v6353_v7 = vpop.xlane.xlu0 %6352 }
0x2ae6   :  { %v6357_v59 = vmul.f32 0.03125, %v6353_v7 }
0x2ae8   :  { %v6359_v62 = vadd.f32 1e-05, %v6357_v59 }
0x2ae9   :  { %v6356_v63 = vpop.xlane.xlu0 %6355 }
0x2aea   :  { %12099 = vrsqrt.f32 %v6359_v62  ;;  %v6358_v0 = vmul.f32 0.03125, %v6356_v63 }
0x2aec   :  { %v6360_v1 = vadd.f32 1e-05, %v6358_v0 }
0x2aee   :  { %12101 = vrsqrt.f32 %v6360_v1 }
0x2af4   :  { %v12100_v50 = vpop.eup %12099 }
0x2af5   :  { %v6363_v2 = vmul.f32 %v12100_v50, %v6347_v32 }
0x2af7   :  { %v6369_v43 = vmul.f32 %v6368_v48, %v6363_v2 }
0x2af8   :  { %v12102_v10 = vpop.eup %12101 }
0x2af9   :  { %v6364_v52 = vmul.f32 %v12102_v10, %v6348_v44  ;;  %v13044_v12 = vadd.f32 %v6374_v3, %v6369_v43 }
0x2afb   :  { %v6370_v41 = vmul.f32 %v6368_v48, %v6364_v52  ;;  %10895 = vmatprep.mubr.msk.f32.mxu1 %vm296_vm5, %v13044_v12 }
0x2afd   :  { %v13048_v17 = vadd.f32 %v6374_v3, %v6370_v41 }
0x2aff   :  { %10896 = vmatmul.mubr.msk.f32.vlgmr.msra.gmra.mrb[52].mxu1 %vm296_vm5, %v13048_v17 }
0x2bd2   :  { %v10897_v30 = vpop.f32.mrb[52].mxu1 }
0x2bd3   :  { %v6473_v46 = vadd.f32 %v10897_v30, %v9922_v40  ;;  %v6467_v57 = vpop.f32.mrb[53].mxu1 }
0x2bd4   :  { %v6468_v16 = vadd.f32 %v9922_v40, %v6467_v57 }
0x2bd5   :  { %v6479_v60 = vmul.f32 0.70710677, %v6473_v46 }
0x2bd6   :  { %v6478_v49 = vmul.f32 0.70710677, %v6468_v16  ;;  %v6476_v57 = vmul.f32 0.5, %v6468_v16 }
0x2bd7   :  { %v6481_v53 = vand.u32 2147483647, %v6479_v60  ;;  %vm6521_vm7 = vcmp.lt.f32.partialorder %v6479_v60, 0.0 }
0x2bd8   :  { %v6480_v54 = vand.u32 2147483647, %v6478_v49  ;;  %vm6520_vm11 = vcmp.lt.f32.partialorder %v6478_v49, 0.0 }
0x2bd9   :  { %v6483_v4 = vmul.f32 0.3275911, %v6481_v53  ;;  %v6509_v6 = vsub.f32 0.0, %v6481_v53 }
0x2bda   :  { %v6482_v44 = vmul.f32 0.3275911, %v6480_v54  ;;  %v6508_v29 = vsub.f32 0.0, %v6480_v54 }
0x2bdb   :  { %v6485_v32 = vadd.f32 1.0, %v6483_v4  ;;  %v6511_v27 = vmul.f32 %v6509_v6, %v6481_v53 }
0x2bdc   :  { %v6484_v55 = vadd.f32 1.0, %v6482_v44  ;;  %v6510_v56 = vmul.f32 %v6508_v29, %v6480_v54  ;;  %v6477_v54 = vmul.f32 0.5, %v6473_v46 }
0x2bdd   :  { %12103 = vrcp.f32 %v6485_v32  ;;  %v6514_v7 = vmul.f32 1.442695, %v6511_v27  ;;  %v9925_v32 = vld [vmem:[#allocation2 + $0x2d0] ss:$0 sm:$0xff] }
0x2bde   :  { %12105 = vrcp.f32 %v6484_v55  ;;  %v6512_v63 = vmul.f32 1.442695, %v6510_v56 }
0x2bdf   :  { %12107 = vpow2.f32 %v6514_v7 }
0x2be0   :  { %12109 = vpow2.f32 %v6512_v63  ;;  %v6659_v63 = vld [vmem:[#allocation2 + $0x2f8] sm:$0xff] }
0x2be7   :  { %v12104_v24 = vpop.eup %12103 }
0x2be8   :  { %v12106_v34 = vpop.eup %12105  ;;  %v6491_v20 = vmul.f32 1.0614054, %v12104_v24 }
0x2be9   :  { %v6490_v45 = vmul.f32 1.0614054, %v12106_v34  ;;  %v12108_v22 = vpop.eup %12107 }
0x2bea   :  { %v6493_v37 = vadd.f32 -1.4531521, %v6491_v20  ;;  %v12110_v21 = vpop.eup %12109 }
0x2beb   :  { %v6492_v59 = vadd.f32 -1.4531521, %v6490_v45 }
0x2bec   :  { %v6495_v62 = vmul.f32 %v12104_v24, %v6493_v37 }
0x2bed   :  { %v6494_v0 = vmul.f32 %v12106_v34, %v6492_v59 }
0x2bee   :  { %v6497_v1 = vadd.f32 1.4214138, %v6495_v62 }
0x2bef   :  { %v6496_v48 = vadd.f32 1.4214138, %v6494_v0  ;;  %v6656_v0 = vld [vmem:[#allocation2 + $0x2e0] sm:$0xff] }
0x2bf0   :  { %v6499_v50 = vmul.f32 %v12104_v24, %v6497_v1  ;;  %v6657_v1 = vld [vmem:[#allocation2 + $0x2e8] sm:$0xff] }
0x2bf1   :  { %v6498_v2 = vmul.f32 %v12106_v34, %v6496_v48 }
0x2bf2   :  { %v6501_v3 = vadd.f32 -0.28449672, %v6499_v50  ;;  %v11841_v50 = vpack.i.bf16 %v6657_v1, %v6656_v0 }
0x2bf3   :  { %v6500_v43 = vadd.f32 -0.28449672, %v6498_v2  ;;  %v11469_v2 = vpack.c.bf16 %v6657_v1, %v6656_v0 }
0x2bf4   :  { %v6503_v10 = vmul.f32 %v12104_v24, %v6501_v3 }
0x2bf5   :  { %v6502_v52 = vmul.f32 %v12106_v34, %v6500_v43  ;;  %11470 = vmatprep.subr.bf16.mxu1 %v11469_v2  ;;  %v9928_v43 = vld [vmem:[#allocation2 + $0x300] ss:$0 sm:$0xff] }
0x2bf6   :  { %v6505_v41 = vadd.f32 0.2548296, %v6503_v10  ;;  %11472 = vmatpush3.bf16.msra.mxu1 %v11469_v2 }
0x2bf7   :  { %v6504_v18 = vadd.f32 0.2548296, %v6502_v52 }
0x2bf8   :  { %v6507_v15 = vmul.f32 %v12104_v24, %v6505_v41 }
0x2bf9   :  { %v6506_v33 = vmul.f32 %v12106_v34, %v6504_v18 }
0x2bfa   :  { %v6517_v51 = vmul.f32 %v12108_v22, %v6507_v15 }
0x2bfb   :  { %v6516_v26 = vmul.f32 %v12110_v21, %v6506_v33 }
0x2bfc   :  { %v6519_v19 = vsub.f32 1.0, %v6517_v51 }
0x2bfd   :  { %v6518_v35 = vsub.f32 1.0, %v6516_v26 }
0x2bfe   :  { %v6523_v39 = vsub.f32 0.0, %v6519_v19 }
0x2bff   :  { %v6522_v25 = vsub.f32 0.0, %v6518_v35 }
0x2c00   :  { %v6525_v23 = vsel %vm6521_vm7, %v6523_v39, %v6519_v19  ;;  %v6645_v19 = vsub.s32 4, %v12351_v47 }
0x2c01   :  { %v6527_v40 = vadd.f32 1.0, %v6525_v23  ;;  %v6524_v30 = vsel %vm6520_vm11, %v6522_v25, %v6518_v35  ;;  %v6651_v35 = vsub.s32 5, %v12351_v47 }
0x2c02   :  { %v6526_v53 = vadd.f32 1.0, %v6524_v30  ;;  %v6646_v39 = vrot.slane %v12890_v14, %v6645_v19 }
0x2c03   :  { %v6529_v44 = vmul.f32 %v6527_v40, %v6477_v54  ;;  %v6652_v40 = vrot.slane %v12890_v14, %v6651_v35 }
0x2c04   :  { %v6528_v4 = vmul.f32 %v6526_v53, %v6476_v57 }
0x2c06   :  { %10914 = vmatprep.mubr.msk.f32.mxu0 %vm1817_vm0, %v6528_v4 }
0x2c07   :  { %10915 = vmatmul.mubr.msk.f32.vlgmr.msra.gmra.mrb[48].mxu0 %vm1817_vm0, %v6529_v44 }
0x2cda   :  { %v10916_v55 = vpop.f32.mrb[48].mxu0 }
0x2cdb   :  { %v6606_v6 = vpop.f32.mrb[49].mxu0  ;;  %v6612_v29 = vadd.f32 %v10916_v55, %v9925_v32 }
0x2cdc   :  { %v6607_v24 = vadd.f32 %v9925_v32, %v6606_v6 }
0x2cdd   :  { %v6616_v49 = vadd.f32 %v6612_v29, %v13048_v17  ;;  %v6658_v17 = vld [vmem:[#allocation2 + $0x2f0] sm:$0xff] }
0x2cde   :  { %v6615_v60 = vadd.f32 %v6607_v24, %v13044_v12  ;;  %v11846_v48 = vpack.i.bf16 %v6659_v63, %v6658_v17  ;;  %v11473_v3 = vpack.c.bf16 %v6659_v63, %v6658_v17 }
0x2cdf   :  { %v6620_v46 = vsel %vm296_vm5, %v6616_v49, 0.0 }
0x2ce0   :  { %v6617_v27 = vsel %vm296_vm5, %v6615_v60, 0.0  ;;  %11474 = vmatprep.subr.bf16.mxu1 %v11473_v3 }
0x2ce1   :  { %6618 = vadd.xlane.f32.xlu0 %v6617_v27  ;;  %11476 = vmatpush3.bf16.msra.mxu1 %v11473_v3 }
0x2ce5   :  { %6621 = vadd.xlane.f32.xlu0 %v6620_v46 }
0x2d6e   :  { %v6619_v16 = vpop.xlane.xlu0 %6618 }
0x2d6f   :  { %v6623_v34 = vmul.f32 0.03125, %v6619_v16 }
0x2d71   :  { %v6625_v20 = vsub.f32 %v6615_v60, %v6623_v34 }
0x2d72   :  { %v6622_v56 = vpop.xlane.xlu0 %6621 }
0x2d73   :  { %v6624_v45 = vmul.f32 0.03125, %v6622_v56  ;;  %v6627_v37 = vmul.f32 %v6625_v20, %v6625_v20 }
0x2d75   :  { %v6626_v7 = vsub.f32 %v6616_v49, %v6624_v45  ;;  %v6629_v59 = vsel %vm296_vm5, %v6627_v37, 0.0 }
0x2d76   :  { %6630 = vadd.xlane.f32.xlu0 %v6629_v59 }
0x2d77   :  { %v6628_v62 = vmul.f32 %v6626_v7, %v6626_v7 }
0x2d79   :  { %v6632_v12 = vsel %vm296_vm5, %v6628_v62, 0.0 }
0x2d7a   :  { %6633 = vadd.xlane.f32.xlu1 %v6632_v12 }
0x2d8b   :  { %11847 = vrot.lane.b32.xlu1 %v11846_v48, %s12231_s0 }
0x2d8c   :  { %11842 = vrot.lane.b32.xlu0 %v11841_v50, %s12231_s0 }
0x2d8f   :  { %6768 = vrot.lane.b32.xlu1 %v9928_v43, %s12231_s0 }
0x2e03   :  { %v6631_v10 = vpop.xlane.xlu0 %6630 }
0x2e04   :  { %v6635_v52 = vmul.f32 0.03125, %v6631_v10 }
0x2e06   :  { %v6637_v41 = vadd.f32 1e-05, %v6635_v52 }
0x2e07   :  { %v6634_v18 = vpop.xlane.xlu1 %6633  ;;  %v11843_v15 = vpop.permute.xlu0 %11842 }
0x2e08   :  { %12111 = vrsqrt.f32 %v6637_v41  ;;  %v6636_v22 = vmul.f32 0.03125, %v6634_v18  ;;  %v11845_v33 = vunpack.i.h.bf16 %v11843_v15  ;;  %v11844_v21 = vunpack.i.l.bf16 %v11843_v15 }
0x2e0a   :  { %v6638_v51 = vadd.f32 1e-05, %v6636_v22  ;;  %v11477_v26 = vpack.c.bf16 %v11845_v33, %v11844_v21 }
0x2e0b   :  { %v11848_v30 = vpop.permute.xlu1 %11847 }
0x2e0c   :  { %12113 = vrsqrt.f32 %v6638_v51  ;;  %11478 = vmatprep.subr.bf16.mxu1 %v11477_v26  ;;  %v11850_v44 = vunpack.i.h.bf16 %v11848_v30  ;;  %v11849_v32 = vunpack.i.l.bf16 %v11848_v30 }
0x2e0e   :  { %v11481_v29 = vpack.c.bf16 %v11850_v44, %v11849_v32 }
0x2e0f   :  { %v6769_v49 = vpop.permute.xlu1 %6768 }
0x2e12   :  { %v12112_v25 = vpop.eup %12111 }
0x2e13   :  { %v6641_v23 = vmul.f32 %v12112_v25, %v6625_v20 }
0x2e15   :  { %v6647_v57 = vmul.f32 %v6646_v39, %v6641_v23 }
0x2e16   :  { %v12114_v53 = vpop.eup %12113 }
0x2e17   :  { %v6642_v54 = vmul.f32 %v12114_v53, %v6626_v7  ;;  %v13071_v4 = vadd.f32 %v6652_v40, %v6647_v57 }
0x2e19   :  { %v6648_v55 = vmul.f32 %v6646_v39, %v6642_v54  ;;  %10925 = vmatprep.mubr.msk.f32.mxu1 %vm296_vm5, %v13071_v4 }
0x2e1b   :  { %v13075_v6 = vadd.f32 %v6652_v40, %v6648_v55 }
0x2e1d   :  { %10926 = vmatmul.mubr.msk.f32.vlgmr.msra.gmra.mrb[54].mxu1 %vm296_vm5, %v13075_v6 }
0x2e1e   :  { %11480 = vmatpush3.bf16.msra.mxu1 %v11477_v26  ;;  %10936 = vmatprep.mubr.msk.f32.mxu1 %vm296_vm5, %v13071_v4 }
0x2e1f   :  { %11482 = vmatprep.subr.bf16.mxu1 %v11481_v29 }
0x2e22   :  { %11484 = vmatpush3.bf16.msra.mxu1 %v11481_v29 }
0x2e25   :  { %10937 = vmatmul.mubr.msk.f32.vlgmr.msra.gmra.mrb[56].mxu1 %vm296_vm5, %v13075_v6 }
0x2ef0   :  { %v10927_v14 = vpop.f32.mrb[54].mxu1 }
0x2ef1   :  { %v6742_v24 = vpop.f32.mrb[55].mxu1  ;;  %v13093_v45 = vadd.f32 %v10927_v14, %v9928_v43 }
0x2ef2   :  { %v13083_v60 = vadd.f32 %v9928_v43, %v6742_v24 }
0x2ef4   :  { %10943 = vmatprep.mubr.msk.f32.mxu0 %vm107_vm1, %v13083_v60 }
0x2ef8   :  { %v10938_v27 = vpop.f32.mrb[56].mxu1 }
0x2ef9   :  { %v6843_v46 = vadd.f32 %v10938_v27, %v6769_v49  ;;  %v6837_v16 = vpop.f32.mrb[57].mxu1 }
0x2efa   :  { %v6838_v34 = vadd.f32 %v6837_v16, %v6769_v49 }
0x2efc   :  { %v11485_v20 = vpack.c.bf16 %v6843_v46, %v6838_v34  ;;  %v13087_v56 = vpack.i.bf16 %v6843_v46, %v6838_v34 }
0x2efe   :  { %11487 = vmatprep.subr.msk.bf16.mxu0 %vm12337_vm6, %v11485_v20 }
0x2eff   :  { %11490 = vmatpush3.bf16.xpose.msk.msra.mxu0 %vm12337_vm6, %v11485_v20 }
0x2f06   :  { %10944 = vmatmul.mubr.msk.f32.vlgmr.msra.gmra.mrb[50].mxu0 %vm107_vm1, %v13093_v45 }
0x2fd9   :  { %v10945_v37 = vpop.f32.mrb[50].mxu0 }
0x2fda   :  { %v6930_v7 = vadd.f32 %v10945_v37, %v12753_v38  ;;  %v6924_v59 = vpop.f32.mrb[51].mxu0 }
0x2fdb   :  { %v6925_v62 = vadd.f32 %v6924_v59, %v12756_v28 }
0x2fdc   :  { %v6936_v12 = vsel %vm3907_vm3, %v6930_v7, -inf }
0x2fdd   :  { %6937 = vmax.xlane.f32.xlu1 %v6936_v12  ;;  %v6933_v17 = vsel %vm3907_vm3, %v6925_v62, -inf }
0x2fde   :  { %6934 = vmax.xlane.f32.xlu0 %v6933_v17 }
0x2fee   :  { %11852 = vrot.lane.b32.xlu1 %v13087_v56, %s12231_s0 }
0x2ff2   :  { %7044 = vrot.lane.b32.xlu1 %v13083_v60, %s12233_s1 }
0x2ff6   :  { %7046 = vrot.lane.b32.xlu1 %v13093_v45, %s12233_s1 }
0x2ffa   :  { %7408 = vrot.lane.b32.xlu1 %v13083_v60, %s12234_s17 }
0x306a   :  { %v6938_v63 = vpop.xlane.xlu1 %6937 }
0x306b   :  { %v6940_v0 = vsub.f32 %v6930_v7, %v6938_v63  ;;  %v6935_v1 = vpop.xlane.xlu0 %6934 }
0x306c   :  { %v6939_v48 = vsub.f32 %v6925_v62, %v6935_v1 }
0x306d   :  { %v6943_v50 = vmul.f32 1.442695, %v6940_v0 }
0x306e   :  { %v6941_v2 = vmul.f32 1.442695, %v6939_v48  ;;  %v11853_v3 = vpop.permute.xlu1 %11852 }
0x306f   :  { %12115 = vpow2.f32 %v6943_v50  ;;  %v11855_v43 = vunpack.i.h.bf16 %v11853_v3  ;;  %v11854_v10 = vunpack.i.l.bf16 %v11853_v3 }
0x3070   :  { %12117 = vpow2.f32 %v6941_v2 }
0x3071   :  { %v11491_v52 = vpack.c.bf16 %v11855_v43, %v11854_v10 }
0x3072   :  { %v7045_v57 = vpop.permute.xlu1 %7044 }
0x3073   :  { %11492 = vmatprep.subr.bf16.mxu1 %v11491_v52 }
0x3074   :  { %11494 = vmatpush3.bf16.msra.mxu1 %v11491_v52 }
0x3076   :  { %v7047_v29 = vpop.permute.xlu1 %7046 }
0x3079   :  { %v12116_v41 = vpop.eup %12115 }
0x307a   :  { %v6948_v18 = vsel %vm3907_vm3, %v12116_v41, 0.0  ;;  %v12118_v15 = vpop.eup %12117  ;;  %v7409_v14 = vpop.permute.xlu1 %7408 }
0x307b   :  { %6949 = vadd.xlane.f32.xlu0 %v6948_v18  ;;  %v6945_v22 = vsel %vm3907_vm3, %v12118_v15, 0.0 }
0x307f   :  { %6946 = vadd.xlane.f32.xlu0 %v6945_v22 }
0x3095   :  { %11857 = vrot.lane.b32.xlu0 %v13087_v56, %s12233_s1 }
0x3099   :  { %11862 = vrot.lane.b32.xlu0 %v13087_v56, %s12234_s17 }
0x309d   :  { %7410 = vrot.lane.b32.xlu0 %v13093_v45, %s12234_s17 }
0x3108   :  { %v6950_v33 = vpop.xlane.xlu0 %6949 }
0x3109   :  { %12119 = vrcp.f32 %v6950_v33 }
0x310c   :  { %v6947_v21 = vpop.xlane.xlu0 %6946 }
0x310d   :  { %12121 = vrcp.f32 %v6947_v21 }
0x3110   :  { %v11858_v51 = vpop.permute.xlu0 %11857 }
0x3111   :  { %v11860_v26 = vunpack.i.h.bf16 %v11858_v51  ;;  %v11859_v39 = vunpack.i.l.bf16 %v11858_v51 }
0x3113   :  { %v11495_v25 = vpack.c.bf16 %v11860_v26, %v11859_v39  ;;  %v12120_v40 = vpop.eup %12119 }
0x3114   :  { %v11863_v23 = vpop.permute.xlu0 %11862  ;;  %v6956_v32 = vmul.f32 %v12120_v40, %v12116_v41 }
0x3115   :  { %11497 = vmatprep.subr.msk.bf16.mxu1 %vm12337_vm6, %v11495_v25  ;;  %v11865_v53 = vunpack.i.h.bf16 %v11863_v23  ;;  %v11864_v54 = vunpack.i.l.bf16 %v11863_v23 }
0x3117   :  { %v12122_v30 = vpop.eup %12121  ;;  %v11505_v55 = vpack.c.bf16 %v11865_v53, %v11864_v54 }
0x3118   :  { %v6955_v44 = vmul.f32 %v12122_v30, %v12118_v15  ;;  %v7411_v24 = vpop.permute.xlu0 %7410 }
0x311a   :  { %10950 = vmatprep.mubr.msk.f32.mxu1 %vm3907_vm3, %v6955_v44 }
0x311b   :  { %10951 = vmatmul.mubr.msk.f32.vlgmr.msra.gmra.mrb[58].mxu1 %vm3907_vm3, %v6956_v32 }
0x311c   :  { %11500 = vmatpush3.bf16.xpose.msk.msra.mxu1 %vm12337_vm6, %v11495_v25  ;;  %10957 = vmatprep.mubr.msk.f32.mxu1 %vm107_vm1, %v7045_v57 }
0x311d   :  { %11507 = vmatprep.subr.msk.bf16.mxu1 %vm12337_vm6, %v11505_v55 }
0x3123   :  { %10958 = vmatmul.mubr.msk.f32.vlgmr.msra.gmra.mrb[60].mxu1 %vm107_vm1, %v7047_v29 }
0x3124   :  { %11510 = vmatpush3.bf16.xpose.msk.msra.mxu1 %vm12337_vm6, %v11505_v55  ;;  %10981 = vmatprep.mubr.msk.f32.mxu1 %vm107_vm1, %v7409_v14 }
0x312b   :  { %10982 = vmatmul.mubr.msk.f32.vlgmr.msra.gmra.mrb[62].mxu1 %vm107_vm1, %v7411_v24 }
0x31ee   :  { %v13131_v49 = vpop.f32.mrb[58].mxu1 }
0x31ef   :  { %v13133_v27 = vpop.f32.mrb[59].mxu1 }
0x31f6   :  { %v10959_v46 = vpop.f32.mrb[60].mxu1 }
0x31f7   :  { %v7132_v16 = vadd.f32 %v10959_v46, %v12753_v38  ;;  %v7126_v34 = vpop.f32.mrb[61].mxu1 }
0x31f8   :  { %v7127_v20 = vadd.f32 %v7126_v34, %v12756_v28 }
0x31f9   :  { %v7138_v37 = vsel %vm3907_vm3, %v7132_v16, -inf }
0x31fa   :  { %7139 = vmax.xlane.f32.xlu0 %v7138_v37  ;;  %v7135_v7 = vsel %vm3907_vm3, %v7127_v20, -inf  ;;  %v6662_v37 = vld [vmem:[#allocation2 + $0x310] sm:$0xff] }
0x31fb   :  { %7136 = vmax.xlane.f32.xlu1 %v7135_v7  ;;  %v6661_v7 = vld [vmem:[#allocation2 + $0x308] sm:$0xff] }
0x31fe   :  { %v10983_v59 = vpop.f32.mrb[62].mxu1 }
0x31ff   :  { %v7490_v62 = vpop.f32.mrb[63].mxu1  ;;  %v7496_v52 = vadd.f32 %v10983_v59, %v12753_v38 }
0x3200   :  { %v7491_v10 = vadd.f32 %v7490_v62, %v12756_v28 }
0x3201   :  { %v7502_v18 = vsel %vm3907_vm3, %v7496_v52, -inf }
0x3202   :  { %v7499_v41 = vsel %vm3907_vm3, %v7491_v10, -inf }
0x3287   :  { %v7140_v12 = vpop.xlane.xlu0 %7139 }
0x3288   :  { %v7142_v17 = vsub.f32 %v7132_v16, %v7140_v12  ;;  %v7137_v63 = vpop.xlane.xlu1 %7136 }
0x3289   :  { %v7141_v0 = vsub.f32 %v7127_v20, %v7137_v63 }
0x328a   :  { %v7145_v1 = vmul.f32 1.442695, %v7142_v17 }
0x328b   :  { %v7143_v48 = vmul.f32 1.442695, %v7141_v0 }
0x328c   :  { %12123 = vpow2.f32 %v7145_v1 }
0x328d   :  { %12125 = vpow2.f32 %v7143_v48 }
0x3296   :  { %v12124_v50 = vpop.eup %12123 }
0x3297   :  { %v12126_v2 = vpop.eup %12125  ;;  %v7150_v3 = vsel %vm3907_vm3, %v12124_v50, 0.0 }
0x3298   :  { %7151 = vadd.xlane.f32.xlu1 %v7150_v3  ;;  %v7147_v43 = vsel %vm3907_vm3, %v12126_v2, 0.0 }
0x3299   :  { %7148 = vadd.xlane.f32.xlu0 %v7147_v43 }
0x32a9   :  { %11872 = vrot.lane.b32.xlu1 %v13087_v56, %s12236_s19 }
0x32ad   :  { %7693 = vrot.lane.b32.xlu1 %v13083_v60, %s12236_s19 }
0x32af   :  { %11867 = vrot.lane.b32.xlu0 %v13087_v56, %s12235_s18 }
0x32b3   :  { %7695 = vrot.lane.b32.xlu0 %v13093_v45, %s12236_s19 }
0x32d1   :  { %7500 = vmax.xlane.f32.xlu1 %v7499_v41 }
0x32d2   :  { %7503 = vmax.xlane.f32.xlu0 %v7502_v18 }
0x3325   :  { %v7152_v15 = vpop.xlane.xlu1 %7151 }
0x3326   :  { %12127 = vrcp.f32 %v7152_v15  ;;  %v7149_v22 = vpop.xlane.xlu0 %7148 }
0x3327   :  { %12129 = vrcp.f32 %v7149_v22 }
0x3329   :  { %v11873_v60 = vpop.permute.xlu1 %11872 }
0x332a   :  { %v11875_v33 = vunpack.i.h.bf16 %v11873_v60  ;;  %v11874_v21 = vunpack.i.l.bf16 %v11873_v60  ;;  %v11868_v51 = vpop.permute.xlu0 %11867 }
0x332b   :  { %v11870_v26 = vunpack.i.h.bf16 %v11868_v51  ;;  %v11869_v45 = vunpack.i.l.bf16 %v11868_v51 }
0x332c   :  { %v11515_v39 = vpack.c.bf16 %v11875_v33, %v11874_v21 }
0x332d   :  { %v11501_v25 = vpack.c.bf16 %v11870_v26, %v11869_v45  ;;  %v7694_v23 = vpop.permute.xlu1 %7693 }
0x332e   :  { %11517 = vmatprep.subr.msk.bf16.mxu1 %vm12337_vm6, %v11515_v39  ;;  %11000 = vmatprep.mubr.msk.f32.mxu1 %vm107_vm1, %v7694_v23  ;;  %v7696_v54 = vpop.permute.xlu0 %7695 }
0x332f   :  { %11502 = vmatprep.subr.bf16.mxu0 %v11501_v25  ;;  %11520 = vmatpush3.bf16.xpose.msk.msra.mxu1 %vm12337_vm6, %v11515_v39 }
0x3330   :  { %v12128_v40 = vpop.eup %12127  ;;  %11504 = vmatpush3.bf16.msra.mxu0 %v11501_v25 }
0x3331   :  { %v12130_v30 = vpop.eup %12129  ;;  %v7158_v53 = vmul.f32 %v12128_v40, %v12124_v50  ;;  %10967 = vmatprep.subr.mxu0 %v6662_v37 }
0x3332   :  { %v7157_v57 = vmul.f32 %v12130_v30, %v12126_v2 }
0x3334   :  { %10964 = vmatprep.mubr.msk.f32.mxu0 %vm3907_vm3, %v7157_v57 }
0x3335   :  { %10965 = vmatmul.mubr.msk.f32.vlgmr.msra.gmra.mrb[52].mxu0 %vm3907_vm3, %v7158_v53 }
0x3336   :  { %11001 = vmatmul.mubr.msk.f32.vlgmr.msra.gmra.mrb[64].mxu1 %vm107_vm1, %v7696_v54  ;;  %10968 = vmatpush3.msra.mxu0 %v6662_v37 }
0x3337   :  { %10972 = vmatprep.subr.mxu0 %v6661_v7 }
0x335e   :  { %v7501_v44 = vpop.xlane.xlu1 %7500 }
0x335f   :  { %v7505_v32 = vsub.f32 %v7491_v10, %v7501_v44  ;;  %v7504_v55 = vpop.xlane.xlu0 %7503 }
0x3360   :  { %v7506_v29 = vsub.f32 %v7496_v52, %v7504_v55 }
0x3361   :  { %v7507_v14 = vmul.f32 1.442695, %v7505_v32  ;;  %v6664_v32 = vld [vmem:[#allocation2 + $0x320] sm:$0xff] }
0x3362   :  { %v7509_v24 = vmul.f32 1.442695, %v7506_v29 }
0x3363   :  { %12131 = vpow2.f32 %v7507_v14 }
0x3364   :  { %12133 = vpow2.f32 %v7509_v24 }
0x336d   :  { %v12132_v46 = vpop.eup %12131 }
0x336e   :  { %v12134_v16 = vpop.eup %12133  ;;  %v7511_v34 = vsel %vm3907_vm3, %v12132_v46, 0.0 }
0x336f   :  { %7512 = vadd.xlane.f32.xlu0 %v7511_v34  ;;  %v7514_v20 = vsel %vm3907_vm3, %v12134_v16, 0.0 }
0x3370   :  { %7515 = vadd.xlane.f32.xlu1 %v7514_v20 }
0x3385   :  { %11877 = vrot.lane.b32.xlu0 %v13087_v56, %s12237_s20 }
0x33fc   :  { %v7513_v59 = vpop.xlane.xlu0 %7512 }
0x33fd   :  { %12135 = vrcp.f32 %v7513_v59  ;;  %v7516_v12 = vpop.xlane.xlu1 %7515 }
0x33fe   :  { %12137 = vrcp.f32 %v7516_v12 }
0x3400   :  { %v11878_v62 = vpop.permute.xlu0 %11877 }
0x3401   :  { %v11880_v17 = vunpack.i.h.bf16 %v11878_v62  ;;  %v11879_v63 = vunpack.i.l.bf16 %v11878_v62 }
0x3403   :  { %v11511_v2 = vpack.c.bf16 %v11880_v17, %v11879_v63  ;;  %v8026_v63 = vld [vmem:[#allocation2 + $0x340] sm:$0xff] }
0x3407   :  { %v12136_v52 = vpop.eup %12135 }
0x3408   :  { %v10966_v0 = vpop.f32.mrb[52].mxu0  ;;  %v12138_v18 = vpop.eup %12137  ;;  %v7521_v15 = vmul.f32 %v12136_v52, %v12132_v46 }
0x3409   :  { %v7237_v1 = vpop.f32.mrb[53].mxu0  ;;  %v11002_v48 = vpop.f32.mrb[64].mxu1 }
0x340a   :  { %10969 = vmatprep.mubr.msk.f32.mxu0 %vm107_vm1, %v7237_v1  ;;  %v7775_v50 = vpop.f32.mrb[65].mxu1  ;;  %v7781_v43 = vadd.f32 %v11002_v48, %v12753_v38  ;;  %v6663_v38 = vld [vmem:[#allocation2 + $0x318] sm:$0xff] }
0x340b   :  { %v7776_v3 = vadd.f32 %v7775_v50, %v12756_v28  ;;  %10970 = vmatmul.mubr.msk.f32.vlgmr.msra.gmra.mrb[54].mxu0 %vm107_vm1, %v10966_v0  ;;  %v7522_v28 = vmul.f32 %v12138_v18, %v12134_v16  ;;  %v9965_v16 = vld [vmem:[#allocation2 + $0x328] ss:$0 sm:$0xff]  ;;  %v8025_v18 = vld [vmem:[#allocation2 + $0x338] sm:$0xff] }
0x340c   :  { %10973 = vmatpush3.msra.mxu0 %v6661_v7  ;;  %10974 = vmatprep.mubr.msk.f32.mxu0 %vm107_vm1, %v13133_v27  ;;  %v7787_v41 = vsel %vm3907_vm3, %v7781_v43, -inf  ;;  %v8027_v0 = vld [vmem:[#allocation2 + $0x348] sm:$0xff] }
0x340d   :  { %11512 = vmatprep.subr.bf16.mxu0 %v11511_v2  ;;  %v7784_v10 = vsel %vm3907_vm3, %v7776_v3, -inf  ;;  %v11891_v1 = vpack.i.bf16 %v8027_v0, %v8026_v63 }
0x340e   :  { %7785 = vmax.xlane.f32.xlu1 %v7784_v10 }
0x3412   :  { %7788 = vmax.xlane.f32.xlu1 %v7787_v41  ;;  %v8024_v41 = vld [vmem:[#allocation2 + $0x330] sm:$0xff] }
0x3413   :  { %10975 = vmatmul.mubr.msk.f32.vlgmr.msra.gmra.mrb[54].mxu0 %vm107_vm1, %v13131_v49 }
0x3414   :  { %11514 = vmatpush3.bf16.msra.mxu0 %v11511_v2  ;;  %10988 = vmatprep.mubr.msk.f32.mxu0 %vm3907_vm3, %v7521_v15  ;;  %v11886_v15 = vpack.i.bf16 %v8025_v18, %v8024_v41 }
0x3415   :  { %10991 = vmatprep.subr.mxu0 %v6663_v38 }
0x3417   :  { %10989 = vmatmul.mubr.msk.f32.vlgmr.msra.gmra.mrb[56].mxu0 %vm3907_vm3, %v7522_v28  ;;  %v11525_v28 = vpack.c.bf16 %v8025_v18, %v8024_v41 }
0x3418   :  { %10992 = vmatpush3.msra.mxu0 %v6663_v38  ;;  %v11529_v38 = vpack.c.bf16 %v8027_v0, %v8026_v63 }
0x3419   :  { %11526 = vmatprep.subr.bf16.mxu1 %v11525_v28 }
0x341a   :  { %11528 = vmatpush3.bf16.msra.mxu1 %v11525_v28 }
0x341b   :  { %11530 = vmatprep.subr.bf16.mxu1 %v11529_v38 }
0x341e   :  { %11532 = vmatpush3.bf16.msra.mxu1 %v11529_v38 }
0x349b   :  { %v7786_v27 = vpop.xlane.xlu1 %7785 }
0x349c   :  { %v7790_v22 = vsub.f32 %v7776_v3, %v7786_v27  ;;  %v9966_v27 = vld [vmem:[#allocation2 + $0x350] ss:$0 sm:$0xff] }
0x349e   :  { %v7792_v21 = vmul.f32 1.442695, %v7790_v22 }
0x349f   :  { %v7789_v60 = vpop.xlane.xlu1 %7788 }
0x34a0   :  { %v7791_v33 = vsub.f32 %v7781_v43, %v7789_v60 }
0x34a2   :  { %v7794_v51 = vmul.f32 1.442695, %v7791_v33 }
0x34a4   :  { %12139 = vpow2.f32 %v7794_v51 }
0x34a5   :  { %12141 = vpow2.f32 %v7792_v21 }
0x34ae   :  { %v12140_v26 = vpop.eup %12139 }
0x34af   :  { %v7799_v49 = vsel %vm3907_vm3, %v12140_v26, 0.0  ;;  %v12142_v45 = vpop.eup %12141 }
0x34b0   :  { %7800 = vadd.xlane.f32.xlu1 %v7799_v49  ;;  %v7796_v39 = vsel %vm3907_vm3, %v12142_v45, 0.0 }
0x34b4   :  { %7797 = vadd.xlane.f32.xlu1 %v7796_v39 }
0x34c5   :  { %11882 = vrot.lane.b32.xlu1 %v13087_v56, %s12238_s21 }
0x34ea   :  { %v10990_v25 = vpop.f32.mrb[56].mxu0 }
0x34eb   :  { %v7601_v23 = vpop.f32.mrb[57].mxu0 }
0x34ec   :  { %10993 = vmatprep.mubr.msk.f32.mxu0 %vm107_vm1, %v7601_v23 }
0x34ed   :  { %10994 = vmatmul.mubr.msk.f32.vlgmr.msra.gmra.mrb[54].mxu0 %vm107_vm1, %v10990_v25 }
0x353d   :  { %v7801_v40 = vpop.xlane.xlu1 %7800 }
0x353e   :  { %12143 = vrcp.f32 %v7801_v40 }
0x3541   :  { %v7798_v30 = vpop.xlane.xlu1 %7797 }
0x3542   :  { %12145 = vrcp.f32 %v7798_v30 }
0x3545   :  { %v11883_v57 = vpop.permute.xlu1 %11882 }
0x3546   :  { %v11885_v53 = vunpack.i.h.bf16 %v11883_v57  ;;  %v11884_v54 = vunpack.i.l.bf16 %v11883_v57 }
0x3548   :  { %v11521_v44 = vpack.c.bf16 %v11885_v53, %v11884_v54  ;;  %v12144_v55 = vpop.eup %12143  ;;  %v13198_v53 = vld [vmem:[#allocation2 + $0x3f0] sm:$0x3f] }
0x3549   :  { %v7807_v14 = vmul.f32 %v12144_v55, %v12140_v26 }
0x354a   :  { %11522 = vmatprep.subr.bf16.mxu0 %v11521_v44 }
0x354b   :  { %11524 = vmatpush3.bf16.msra.mxu0 %v11521_v44 }
0x354c   :  { %v12146_v29 = vpop.eup %12145  ;;  %11010 = vmatprep.subr.mxu0 %v6664_v32 }
0x354d   :  { %v7806_v56 = vmul.f32 %v12146_v29, %v12142_v45 }
0x354f   :  { %11007 = vmatprep.mubr.msk.f32.mxu0 %vm3907_vm3, %v7806_v56 }
0x3550   :  { %11008 = vmatmul.mubr.msk.f32.vlgmr.msra.gmra.mrb[58].mxu0 %vm3907_vm3, %v7807_v14  ;;  %v8021_v14 = vrot.slane %v13198_v53, %v12500_v61 }
0x3551   :  { %11011 = vmatpush3.msra.mxu0 %v6664_v32  ;;  %v8015_v32 = vrot.slane %v13198_v53, %v12495_v31 }
0x3623   :  { %v11009_v24 = vpop.f32.mrb[58].mxu0 }
0x3624   :  { %v7886_v46 = vpop.f32.mrb[59].mxu0 }
0x3625   :  { %11012 = vmatprep.mubr.msk.f32.mxu0 %vm107_vm1, %v7886_v46 }
0x3626   :  { %11013 = vmatmul.mubr.msk.f32.vlgmr.msra.gmra.mrb[54].mxu0 %vm107_vm1, %v11009_v24 }
0x3627   :  { %11034 = vmatprep.mubr.msk.f32.mxu0 %vm296_vm5, %v12883_v5 }
0x36f9   :  { %v11014_v34 = vpop.f32.mrb[54].mxu0 }
0x36fa   :  { %v7983_v20 = vadd.f32 %v11014_v34, %v9965_v16  ;;  %v7967_v37 = vpop.f32.mrb[55].mxu0 }
0x36fb   :  { %v7982_v7 = vadd.f32 %v9965_v16, %v7967_v37 }
0x36fc   :  { %v7985_v59 = vadd.f32 %v7983_v20, %v13075_v6 }
0x36fd   :  { %v7984_v62 = vadd.f32 %v7982_v7, %v13071_v4 }
0x36fe   :  { %v7989_v12 = vsel %vm296_vm5, %v7985_v59, 0.0 }
0x36ff   :  { %7990 = vadd.xlane.f32.xlu1 %v7989_v12  ;;  %v7986_v17 = vsel %vm296_vm5, %v7984_v62, 0.0 }
0x3700   :  { %7987 = vadd.xlane.f32.xlu0 %v7986_v17 }
0x3710   :  { %11892 = vrot.lane.b32.xlu1 %v11891_v1, %s12231_s0 }
0x378c   :  { %v7991_v5 = vpop.xlane.xlu1 %7990 }
0x378d   :  { %v7993_v48 = vmul.f32 0.03125, %v7991_v5  ;;  %v7988_v50 = vpop.xlane.xlu0 %7987 }
0x378e   :  { %v7992_v2 = vmul.f32 0.03125, %v7988_v50 }
0x378f   :  { %v7995_v3 = vsub.f32 %v7985_v59, %v7993_v48 }
0x3790   :  { %v7994_v43 = vsub.f32 %v7984_v62, %v7992_v2  ;;  %v11893_v51 = vpop.permute.xlu1 %11892 }
0x3791   :  { %v7997_v6 = vmul.f32 %v7995_v3, %v7995_v3  ;;  %v11895_v45 = vunpack.i.h.bf16 %v11893_v51  ;;  %v11894_v39 = vunpack.i.l.bf16 %v11893_v51 }
0x3792   :  { %v7996_v10 = vmul.f32 %v7994_v43, %v7994_v43 }
0x3793   :  { %v8001_v4 = vsel %vm296_vm5, %v7997_v6, 0.0  ;;  %v11537_v57 = vpack.c.bf16 %v11895_v45, %v11894_v39 }
0x3794   :  { %8002 = vadd.xlane.f32.xlu0 %v8001_v4  ;;  %v7998_v52 = vsel %vm296_vm5, %v7996_v10, 0.0 }
0x3798   :  { %7999 = vadd.xlane.f32.xlu0 %v7998_v52 }
0x37ae   :  { %11887 = vrot.lane.b32.xlu0 %v11886_v15, %s12231_s0 }
0x37b2   :  { %8136 = vrot.lane.b32.xlu0 %v9966_v27, %s12231_s0 }
0x3821   :  { %v8003_v22 = vpop.xlane.xlu0 %8002 }
0x3822   :  { %v8005_v60 = vmul.f32 0.03125, %v8003_v22 }
0x3824   :  { %v8007_v33 = vadd.f32 1e-05, %v8005_v60 }
0x3825   :  { %v8000_v21 = vpop.xlane.xlu0 %7999 }
0x3826   :  { %12147 = vrsqrt.f32 %v8007_v33  ;;  %v8004_v26 = vmul.f32 0.03125, %v8000_v21 }
0x3828   :  { %v8006_v49 = vadd.f32 1e-05, %v8004_v26 }
0x3829   :  { %v11888_v25 = vpop.permute.xlu0 %11887 }
0x382a   :  { %12149 = vrsqrt.f32 %v8006_v49  ;;  %v11890_v23 = vunpack.i.h.bf16 %v11888_v25  ;;  %v11889_v40 = vunpack.i.l.bf16 %v11888_v25 }
0x382c   :  { %v11533_v30 = vpack.c.bf16 %v11890_v23, %v11889_v40 }
0x382d   :  { %v8137_v34 = vpop.permute.xlu0 %8136 }
0x382e   :  { %11534 = vmatprep.subr.bf16.mxu0 %v11533_v30 }
0x382f   :  { %11536 = vmatpush3.bf16.msra.mxu0 %v11533_v30 }
0x3830   :  { %v12148_v54 = vpop.eup %12147  ;;  %11538 = vmatprep.subr.bf16.mxu0 %v11537_v57 }
0x3831   :  { %v8011_v44 = vmul.f32 %v12148_v54, %v7995_v3 }
0x3833   :  { %11540 = vmatpush3.bf16.msra.mxu0 %v11537_v57  ;;  %v8017_v56 = vmul.f32 %v8015_v32, %v8011_v44 }
0x3834   :  { %v12150_v55 = vpop.eup %12149 }
0x3835   :  { %v8010_v29 = vmul.f32 %v12150_v55, %v7994_v43  ;;  %v13208_v16 = vadd.f32 %v8021_v14, %v8017_v56 }
0x3836   :  { %11035 = vmatmul.mubr.msk.f32.vlgmr.msra.gmra.mrb[60].mxu0 %vm296_vm5, %v12881_v8 }
0x3837   :  { %v8016_v24 = vmul.f32 %v8015_v32, %v8010_v29 }
0x3839   :  { %v13206_v46 = vadd.f32 %v8021_v14, %v8016_v24 }
0x383b   :  { %11023 = vmatprep.mubr.msk.f32.mxu1 %vm296_vm5, %v13206_v46 }
0x383c   :  { %11024 = vmatmul.mubr.msk.f32.vlgmr.msra.gmra.mrb[66].mxu1 %vm296_vm5, %v13208_v16 }
0x3909   :  { %v11036_v20 = vpop.f32.mrb[60].mxu0 }
0x390a   :  { %v8211_v37 = vadd.f32 %v11036_v20, %v8137_v34  ;;  %v8205_v7 = vpop.f32.mrb[61].mxu0 }
0x390b   :  { %v8206_v8 = vadd.f32 %v8205_v7, %v8137_v34 }
0x390d   :  { %v13214_v59 = vpack.i.bf16 %v8211_v37, %v8206_v8  ;;  %v11541_v62 = vpack.c.bf16 %v8211_v37, %v8206_v8 }
0x390f   :  { %v11025_v12 = vpop.f32.mrb[66].mxu1  ;;  %11897 = vrot.lane.b32.xlu0 %v13214_v59, %s12233_s1  ;;  %11543 = vmatprep.subr.msk.bf16.mxu1 %vm12337_vm6, %v11541_v62 }
0x3910   :  { %v13220_v17 = vadd.f32 %v11025_v12, %v9966_v27  ;;  %v8110_v63 = vpop.f32.mrb[67].mxu1  ;;  %11546 = vmatpush3.bf16.xpose.msk.msra.mxu1 %vm12337_vm6, %v11541_v62 }
0x3911   :  { %v13224_v0 = vadd.f32 %v9966_v27, %v8110_v63 }
0x3913   :  { %8413 = vrot.lane.b32.xlu1 %v13224_v0, %s12233_s1  ;;  %11041 = vmatprep.mubr.msk.f32.mxu1 %vm107_vm1, %v13224_v0 }
0x3914   :  { %8415 = vrot.lane.b32.xlu0 %v13220_v17, %s12233_s1 }
0x3917   :  { %11902 = vrot.lane.b32.xlu1 %v13214_v59, %s12234_s17  ;;  %11042 = vmatmul.mubr.msk.f32.vlgmr.msra.gmra.mrb[68].mxu1 %vm107_vm1, %v13220_v17 }
0x3918   :  { %8778 = vrot.lane.b32.xlu0 %v13224_v0, %s12234_s17 }
0x391b   :  { %8780 = vrot.lane.b32.xlu1 %v13220_v17, %s12234_s17 }
0x3981   :  { %v11898_v1 = vpop.permute.xlu0 %11897 }
0x3982   :  { %v11900_v5 = vunpack.i.h.bf16 %v11898_v1  ;;  %v11899_v48 = vunpack.i.l.bf16 %v11898_v1 }
0x3984   :  { %v11553_v50 = vpack.c.bf16 %v11900_v5, %v11899_v48 }
0x3985   :  { %v8414_v2 = vpop.permute.xlu1 %8413 }
0x3986   :  { %11555 = vmatprep.subr.msk.bf16.mxu1 %vm12337_vm6, %v11553_v50  ;;  %11055 = vmatprep.mubr.msk.f32.mxu1 %vm107_vm1, %v8414_v2  ;;  %v8416_v3 = vpop.permute.xlu0 %8415 }
0x3987   :  { %11558 = vmatpush3.bf16.xpose.msk.msra.mxu1 %vm12337_vm6, %v11553_v50 }
0x3989   :  { %v11903_v43 = vpop.permute.xlu1 %11902 }
0x398a   :  { %v11905_v6 = vunpack.i.h.bf16 %v11903_v43  ;;  %v11904_v4 = vunpack.i.l.bf16 %v11903_v43  ;;  %v8779_v52 = vpop.permute.xlu0 %8778 }
0x398c   :  { %v11565_v10 = vpack.c.bf16 %v11905_v6, %v11904_v4 }
0x398d   :  { %v8781_v41 = vpop.permute.xlu1 %8780 }
0x398e   :  { %11056 = vmatmul.mubr.msk.f32.vlgmr.msra.gmra.mrb[70].mxu1 %vm107_vm1, %v8416_v3  ;;  %11567 = vmatprep.subr.msk.bf16.mxu1 %vm12337_vm6, %v11565_v10 }
0x398f   :  { %11570 = vmatpush3.bf16.xpose.msk.msra.mxu1 %vm12337_vm6, %v11565_v10  ;;  %11079 = vmatprep.mubr.msk.f32.mxu1 %vm107_vm1, %v8779_v52 }
0x3996   :  { %11080 = vmatmul.mubr.msk.f32.vlgmr.msra.gmra.mrb[72].mxu1 %vm107_vm1, %v8781_v41 }
0x39ea   :  { %v11043_v18 = vpop.f32.mrb[68].mxu1 }
0x39eb   :  { %v8298_v15 = vadd.f32 %v11043_v18, %v12951_v58  ;;  %v8292_v28 = vpop.f32.mrb[69].mxu1 }
0x39ec   :  { %v8293_v38 = vadd.f32 %v8292_v28, %v12956_v36 }
0x39ed   :  { %v8304_v27 = vsel %vm560_vm9, %v8298_v15, -inf }
0x39ee   :  { %8305 = vmax.xlane.f32.xlu1 %v8304_v27  ;;  %v8301_v22 = vsel %vm560_vm9, %v8293_v38, -inf }
0x39ef   :  { %8302 = vmax.xlane.f32.xlu0 %v8301_v22 }
0x3a61   :  { %v11057_v60 = vpop.f32.mrb[70].mxu1 }
0x3a62   :  { %v8495_v33 = vpop.f32.mrb[71].mxu1  ;;  %v8501_v51 = vadd.f32 %v11057_v60, %v12951_v58 }
0x3a63   :  { %v8496_v21 = vadd.f32 %v8495_v33, %v12956_v36 }
0x3a64   :  { %v8507_v45 = vsel %vm560_vm9, %v8501_v51, -inf }
0x3a65   :  { %v8504_v26 = vsel %vm560_vm9, %v8496_v21, -inf }
0x3a66   :  { %8505 = vmax.xlane.f32.xlu0 %v8504_v26 }
0x3a69   :  { %v11081_v49 = vpop.f32.mrb[72].mxu1 }
0x3a6a   :  { %v8860_v39 = vpop.f32.mrb[73].mxu1  ;;  %8508 = vmax.xlane.f32.xlu0 %v8507_v45  ;;  %v8866_v48 = vadd.f32 %v11081_v49, %v12951_v58 }
0x3a6b   :  { %v8861_v50 = vadd.f32 %v8860_v39, %v12956_v36 }
0x3a6c   :  { %v8872_v3 = vsel %vm560_vm9, %v8866_v48, -inf }
0x3a6d   :  { %v8869_v2 = vsel %vm560_vm9, %v8861_v50, -inf }
0x3a7b   :  { %v8306_v25 = vpop.xlane.xlu1 %8305 }
0x3a7c   :  { %v8308_v23 = vsub.f32 %v8298_v15, %v8306_v25  ;;  %v8303_v40 = vpop.xlane.xlu0 %8302 }
0x3a7d   :  { %v8307_v30 = vsub.f32 %v8293_v38, %v8303_v40 }
0x3a7e   :  { %v8311_v57 = vmul.f32 1.442695, %v8308_v23 }
0x3a7f   :  { %v8309_v54 = vmul.f32 1.442695, %v8307_v30 }
0x3a80   :  { %12151 = vpow2.f32 %v8311_v57 }
0x3a81   :  { %12153 = vpow2.f32 %v8309_v54 }
0x3a8a   :  { %v12152_v44 = vpop.eup %12151 }
0x3a8b   :  { %v12154_v32 = vpop.eup %12153  ;;  %v8316_v55 = vsel %vm560_vm9, %v12152_v44, 0.0 }
0x3a8c   :  { %8317 = vadd.xlane.f32.xlu0 %v8316_v55  ;;  %v8313_v29 = vsel %vm560_vm9, %v12154_v32, 0.0 }
0x3a8d   :  { %8314 = vadd.xlane.f32.xlu1 %v8313_v29 }
0x3af3   :  { %v8506_v56 = vpop.xlane.xlu0 %8505 }
0x3af4   :  { %v8510_v14 = vsub.f32 %v8496_v21, %v8506_v56  ;;  %v8030_v56 = vld [vmem:[#allocation2 + $0x360] sm:$0xff] }
0x3af6   :  { %v8512_v24 = vmul.f32 1.442695, %v8510_v14  ;;  %v8029_v14 = vld [vmem:[#allocation2 + $0x358] sm:$0xff] }
0x3af7   :  { %v8509_v34 = vpop.xlane.xlu0 %8508 }
0x3af8   :  { %12155 = vpow2.f32 %v8512_v24  ;;  %v8511_v20 = vsub.f32 %v8501_v51, %v8509_v34 }
0x3afa   :  { %v8514_v37 = vmul.f32 1.442695, %v8511_v20 }
0x3afc   :  { %12157 = vpow2.f32 %v8514_v37 }
0x3b02   :  { %v12156_v7 = vpop.eup %12155 }
0x3b03   :  { %v8516_v8 = vsel %vm560_vm9, %v12156_v7, 0.0 }
0x3b04   :  { %8517 = vadd.xlane.f32.xlu1 %v8516_v8 }
0x3b06   :  { %v12158_v62 = vpop.eup %12157 }
0x3b07   :  { %v8519_v12 = vsel %vm560_vm9, %v12158_v62, 0.0 }
0x3b08   :  { %8520 = vadd.xlane.f32.xlu0 %v8519_v12 }
0x3b15   :  { %11907 = vrot.lane.b32.xlu1 %v13214_v59, %s12231_s0 }
0x3b19   :  { %11917 = vrot.lane.b32.xlu1 %v13214_v59, %s12236_s19 }
0x3b1a   :  { %v8315_v63 = vpop.xlane.xlu1 %8314 }
0x3b1b   :  { %12159 = vrcp.f32 %v8315_v63 }
0x3b1d   :  { %9064 = vrot.lane.b32.xlu1 %v13224_v0, %s12236_s19  ;;  %v8318_v0 = vpop.xlane.xlu0 %8317 }
0x3b1e   :  { %11912 = vrot.lane.b32.xlu0 %v13214_v59, %s12235_s18  ;;  %12161 = vrcp.f32 %v8318_v0 }
0x3b22   :  { %9066 = vrot.lane.b32.xlu0 %v13220_v17, %s12236_s19 }
0x3b25   :  { %v12160_v1 = vpop.eup %12159 }
0x3b26   :  { %v8323_v5 = vmul.f32 %v12160_v1, %v12154_v32 }
0x3b28   :  { %11048 = vmatprep.mubr.msk.f32.mxu0 %vm560_vm9, %v8323_v5  ;;  %v12162_v41 = vpop.eup %12161 }
0x3b29   :  { %v8324_v33 = vmul.f32 %v12162_v41, %v12152_v44 }
0x3b41   :  { %8870 = vmax.xlane.f32.xlu1 %v8869_v2  ;;  %8873 = vmax.xlane.f32.xlu0 %v8872_v3 }
0x3b91   :  { %v8518_v43 = vpop.xlane.xlu1 %8517 }
0x3b92   :  { %12163 = vrcp.f32 %v8518_v43 }
0x3b95   :  { %v11908_v6 = vpop.permute.xlu1 %11907  ;;  %v8521_v17 = vpop.xlane.xlu0 %8520 }
0x3b96   :  { %v11910_v4 = vunpack.i.h.bf16 %v11908_v6  ;;  %v11909_v10 = vunpack.i.l.bf16 %v11908_v6  ;;  %12165 = vrcp.f32 %v8521_v17 }
0x3b98   :  { %v11547_v52 = vpack.c.bf16 %v11910_v4, %v11909_v10 }
0x3b99   :  { %v11918_v18 = vpop.permute.xlu1 %11917  ;;  %v11913_v15 = vpop.permute.xlu0 %11912 }
0x3b9a   :  { %v11920_v28 = vunpack.i.h.bf16 %v11918_v18  ;;  %v11919_v38 = vunpack.i.l.bf16 %v11918_v18  ;;  %v11915_v27 = vunpack.i.h.bf16 %v11913_v15  ;;  %v11914_v22 = vunpack.i.l.bf16 %v11913_v15  ;;  %11549 = vmatprep.subr.msk.bf16.mxu0 %vm12398_vm13, %v11547_v52 }
0x3b9b   :  { %11552 = vmatpush3.bf16.msk.msra.mxu0 %vm12398_vm13, %v11547_v52 }
0x3b9c   :  { %v12164_v60 = vpop.eup %12163  ;;  %v11577_v21 = vpack.c.bf16 %v11920_v28, %v11919_v38  ;;  %v11559_v51 = vpack.c.bf16 %v11915_v27, %v11914_v22 }
0x3b9d   :  { %v9065_v26 = vpop.permute.xlu1 %9064  ;;  %v8526_v49 = vmul.f32 %v12164_v60, %v12156_v7  ;;  %v9067_v25 = vpop.permute.xlu0 %9066 }
0x3b9e   :  { %11049 = vmatmul.mubr.msk.f32.vlgmr.msra.gmra.mrb[62].mxu0 %vm560_vm9, %v8324_v33  ;;  %11561 = vmatprep.subr.msk.bf16.mxu0 %vm12398_vm13, %v11559_v51 }
0x3b9f   :  { %11579 = vmatprep.subr.msk.bf16.mxu1 %vm12337_vm6, %v11577_v21  ;;  %11098 = vmatprep.mubr.msk.f32.mxu1 %vm107_vm1, %v9065_v26 }
0x3ba0   :  { %v12166_v45 = vpop.eup %12165  ;;  %11564 = vmatpush3.bf16.msk.msra.mxu0 %vm12398_vm13, %v11559_v51  ;;  %11062 = vmatprep.mubr.msk.f32.mxu0 %vm560_vm9, %v8526_v49 }
0x3ba1   :  { %v8527_v39 = vmul.f32 %v12166_v45, %v12158_v62  ;;  %11582 = vmatpush3.bf16.xpose.msk.msra.mxu1 %vm12337_vm6, %v11577_v21  ;;  %11065 = vmatprep.subr.mxu0 %v8030_v56 }
0x3ba3   :  { %11063 = vmatmul.mubr.msk.f32.vlgmr.msra.gmra.mrb[64].mxu0 %vm560_vm9, %v8527_v39 }
0x3ba4   :  { %11066 = vmatpush3.msra.mxu0 %v8030_v56 }
0x3ba5   :  { %11070 = vmatprep.subr.mxu0 %v8029_v14 }
0x3ba8   :  { %11099 = vmatmul.mubr.msk.f32.vlgmr.msra.gmra.mrb[74].mxu1 %vm107_vm1, %v9067_v25  ;;  %v8032_v25 = vld [vmem:[#allocation2 + $0x370] sm:$0xff] }
0x3bce   :  { %v8871_v23 = vpop.xlane.xlu1 %8870  ;;  %v8874_v40 = vpop.xlane.xlu0 %8873 }
0x3bcf   :  { %v8875_v30 = vsub.f32 %v8861_v50, %v8871_v23  ;;  %v8876_v57 = vsub.f32 %v8866_v48, %v8874_v40 }
0x3bd1   :  { %v8877_v54 = vmul.f32 1.442695, %v8875_v30  ;;  %v8879_v44 = vmul.f32 1.442695, %v8876_v57 }
0x3bd3   :  { %12167 = vpow2.f32 %v8877_v54 }
0x3bd4   :  { %12169 = vpow2.f32 %v8879_v44  ;;  %v10007_v44 = vld [vmem:[#allocation2 + $0x378] ss:$0 sm:$0xff] }
0x3bdd   :  { %v12168_v32 = vpop.eup %12167 }
0x3bde   :  { %v12170_v55 = vpop.eup %12169  ;;  %v8881_v29 = vsel %vm560_vm9, %v12168_v32, 0.0 }
0x3bdf   :  { %8882 = vadd.xlane.f32.xlu0 %v8881_v29  ;;  %v8884_v42 = vsel %vm560_vm9, %v12170_v55, 0.0 }
0x3be0   :  { %8885 = vadd.xlane.f32.xlu1 %v8884_v42 }
0x3bf5   :  { %11922 = vrot.lane.b32.xlu0 %v13214_v59, %s12237_s20 }
0x3c6c   :  { %v8883_v24 = vpop.xlane.xlu0 %8882 }
0x3c6d   :  { %v8886_v7 = vpop.xlane.xlu1 %8885  ;;  %12171 = vrcp.f32 %v8883_v24 }
0x3c6e   :  { %12173 = vrcp.f32 %v8886_v7 }
0x3c70   :  { %v11923_v20 = vpop.permute.xlu0 %11922 }
0x3c71   :  { %v11050_v34 = vpop.f32.mrb[62].mxu0  ;;  %v11925_v8 = vunpack.i.h.bf16 %v11923_v20  ;;  %v11924_v62 = vunpack.i.l.bf16 %v11923_v20 }
0x3c72   :  { %v8404_v37 = vpop.f32.mrb[63].mxu0 }
0x3c73   :  { %v11571_v1 = vpack.c.bf16 %v11925_v8, %v11924_v62 }
0x3c76   :  { %v11064_v12 = vpop.f32.mrb[64].mxu0 }
0x3c77   :  { %v8607_v63 = vpop.f32.mrb[65].mxu0  ;;  %v12172_v50 = vpop.eup %12171 }
0x3c78   :  { %11067 = vmatprep.mubr.msk.f32.mxu0 %vm107_vm1, %v8607_v63  ;;  %v12174_v43 = vpop.eup %12173  ;;  %v8891_v6 = vmul.f32 %v12172_v50, %v12168_v32  ;;  %v9398_v50 = vld [vmem:[#allocation2 + $0x390] sm:$0xff] }
0x3c79   :  { %11068 = vmatmul.mubr.msk.f32.vlgmr.msra.gmra.mrb[66].mxu0 %vm107_vm1, %v11064_v12  ;;  %v8892_v17 = vmul.f32 %v12174_v43, %v12170_v55 }
0x3c7a   :  { %11071 = vmatpush3.msra.mxu0 %v8029_v14  ;;  %11072 = vmatprep.mubr.msk.f32.mxu0 %vm107_vm1, %v8404_v37 }
0x3c7b   :  { %v11100_v5 = vpop.f32.mrb[74].mxu1  ;;  %11573 = vmatprep.subr.msk.bf16.mxu0 %vm12398_vm13, %v11571_v1 }
0x3c7c   :  { %v9146_v48 = vpop.f32.mrb[75].mxu1  ;;  %v9152_v3 = vadd.f32 %v11100_v5, %v12951_v58  ;;  %v9397_v5 = vld [vmem:[#allocation2 + $0x388] sm:$0xff] }
0x3c7d   :  { %v9147_v2 = vadd.f32 %v9146_v48, %v12956_v36  ;;  %v8031_v36 = vld [vmem:[#allocation2 + $0x368] sm:$0xff] }
0x3c7e   :  { %v9158_v4 = vsel %vm560_vm9, %v9152_v3, -inf }
0x3c7f   :  { %v9155_v0 = vsel %vm560_vm9, %v9147_v2, -inf }
0x3c80   :  { %9156 = vmax.xlane.f32.xlu1 %v9155_v0 }
0x3c81   :  { %11073 = vmatmul.mubr.msk.f32.vlgmr.msra.gmra.mrb[66].mxu0 %vm107_vm1, %v11050_v34 }
0x3c82   :  { %11576 = vmatpush3.bf16.msk.msra.mxu0 %vm12398_vm13, %v11571_v1  ;;  %11086 = vmatprep.mubr.msk.f32.mxu0 %vm560_vm9, %v8891_v6 }
0x3c83   :  { %11089 = vmatprep.subr.mxu0 %v8031_v36 }
0x3c84   :  { %9159 = vmax.xlane.f32.xlu1 %v9158_v4 }
0x3c85   :  { %11087 = vmatmul.mubr.msk.f32.vlgmr.msra.gmra.mrb[68].mxu0 %vm560_vm9, %v8892_v17 }
0x3c86   :  { %11090 = vmatpush3.msra.mxu0 %v8031_v36 }
0x3d0d   :  { %v9157_v58 = vpop.xlane.xlu1 %9156 }
0x3d0e   :  { %v9161_v10 = vsub.f32 %v9147_v2, %v9157_v58  ;;  %v9399_v2 = vld [vmem:[#allocation2 + $0x398] sm:$0xff]  ;;  %v9387_v58 = vrot.slane %v13198_v53, %v12526_v9  ;;  %v9401_v9 = vld [vmem:[#allocation2 + $0x3a8] sm:$0xff] }
0x3d10   :  { %v9163_v18 = vmul.f32 1.442695, %v9161_v10 }
0x3d11   :  { %v9160_v52 = vpop.xlane.xlu1 %9159 }
0x3d12   :  { %v9162_v41 = vsub.f32 %v9152_v3, %v9160_v52  ;;  %v11593_v3 = vpack.c.bf16 %v9399_v2, %v9398_v50 }
0x3d14   :  { %v9165_v15 = vmul.f32 1.442695, %v9162_v41  ;;  %v9393_v41 = vrot.slane %v13198_v53, %v12529_v11  ;;  %v9403_v11 = vld [vmem:[#allocation2 + $0x3b8] sm:$0xff] }
0x3d16   :  { %12175 = vpow2.f32 %v9165_v15 }
0x3d17   :  { %12177 = vpow2.f32 %v9163_v18 }
0x3d20   :  { %v12176_v28 = vpop.eup %12175 }
0x3d21   :  { %v9170_v38 = vsel %vm560_vm9, %v12176_v28, 0.0  ;;  %v12178_v27 = vpop.eup %12177 }
0x3d22   :  { %9171 = vadd.xlane.f32.xlu1 %v9170_v38  ;;  %v9167_v22 = vsel %vm560_vm9, %v12178_v27, 0.0 }
0x3d26   :  { %9168 = vadd.xlane.f32.xlu1 %v9167_v22 }
0x3d37   :  { %11927 = vrot.lane.b32.xlu1 %v13214_v59, %s12238_s21 }
0x3d58   :  { %v11088_v60 = vpop.f32.mrb[68].mxu0 }
0x3d59   :  { %v8972_v33 = vpop.f32.mrb[69].mxu0 }
0x3d5a   :  { %11091 = vmatprep.mubr.msk.f32.mxu0 %vm107_vm1, %v8972_v33 }
0x3d5b   :  { %11092 = vmatmul.mubr.msk.f32.vlgmr.msra.gmra.mrb[66].mxu0 %vm107_vm1, %v11088_v60  ;;  %v9402_v60 = vld [vmem:[#allocation2 + $0x3b0] sm:$0xff] }
0x3d5c   :  { %v11597_v33 = vpack.c.bf16 %v9402_v60, %v9401_v9 }
0x3daf   :  { %v9172_v21 = vpop.xlane.xlu1 %9171 }
0x3db0   :  { %12179 = vrcp.f32 %v9172_v21  ;;  %v9404_v21 = vld [vmem:[#allocation2 + $0x3c0] sm:$0xff] }
0x3db3   :  { %v9169_v51 = vpop.xlane.xlu1 %9168 }
0x3db4   :  { %12181 = vrcp.f32 %v9169_v51  ;;  %v11601_v51 = vpack.c.bf16 %v9404_v21, %v9403_v11 }
0x3db7   :  { %v11928_v26 = vpop.permute.xlu1 %11927 }
0x3db8   :  { %v11930_v49 = vunpack.i.h.bf16 %v11928_v26  ;;  %v11929_v45 = vunpack.i.l.bf16 %v11928_v26  ;;  %v9405_v26 = vld [vmem:[#allocation2 + $0x3c8] sm:$0xff] }
0x3dba   :  { %v11583_v39 = vpack.c.bf16 %v11930_v49, %v11929_v45  ;;  %v12180_v23 = vpop.eup %12179  ;;  %v9406_v49 = vld [vmem:[#allocation2 + $0x3d0] sm:$0xff] }
0x3dbb   :  { %v9178_v30 = vmul.f32 %v12180_v23, %v12176_v28  ;;  %v11605_v45 = vpack.c.bf16 %v9406_v49, %v9405_v26 }
0x3dbc   :  { %11585 = vmatprep.subr.msk.bf16.mxu0 %vm12398_vm13, %v11583_v39 }
0x3dbd   :  { %11588 = vmatpush3.bf16.msk.msra.mxu0 %vm12398_vm13, %v11583_v39  ;;  %v9407_v39 = vld [vmem:[#allocation2 + $0x3d8] sm:$0xff] }
0x3dbe   :  { %v12182_v59 = vpop.eup %12181  ;;  %11108 = vmatprep.subr.mxu0 %v8032_v25 }
0x3dbf   :  { %v9177_v40 = vmul.f32 %v12182_v59, %v12178_v27  ;;  %v10008_v59 = vld [vmem:[#allocation2 + $0x3a0] ss:$0 sm:$0xff] }
0x3dc1   :  { %11105 = vmatprep.mubr.msk.f32.mxu0 %vm560_vm9, %v9177_v40 }
0x3dc2   :  { %11106 = vmatmul.mubr.msk.f32.vlgmr.msra.gmra.mrb[70].mxu0 %vm560_vm9, %v9178_v30 }
0x3dc3   :  { %11109 = vmatpush3.msra.mxu0 %v8032_v25  ;;  %v9408_v25 = vld [vmem:[#allocation2 + $0x3e0] sm:$0xff] }
0x3dc4   :  { %11598 = vmatprep.subr.bf16.mxu0 %v11597_v33  ;;  %v11609_v23 = vpack.c.bf16 %v9408_v25, %v9407_v39 }
0x3e95   :  { %v11107_v57 = vpop.f32.mrb[70].mxu0 }
0x3e96   :  { %v9258_v54 = vpop.f32.mrb[71].mxu0 }
0x3e97   :  { %11110 = vmatprep.mubr.msk.f32.mxu0 %vm107_vm1, %v9258_v54 }
0x3e98   :  { %11111 = vmatmul.mubr.msk.f32.vlgmr.msra.gmra.mrb[66].mxu0 %vm107_vm1, %v11107_v57 }
0x3e99   :  { %11600 = vmatpush3.bf16.msra.mxu0 %v11597_v33 }
0x3e9a   :  { %11602 = vmatprep.subr.bf16.mxu0 %v11601_v51 }
0x3e9d   :  { %11604 = vmatpush3.bf16.msra.mxu0 %v11601_v51 }
0x3e9e   :  { %11606 = vmatprep.subr.bf16.mxu0 %v11605_v45 }
0x3ea1   :  { %11608 = vmatpush3.bf16.msra.mxu0 %v11605_v45 }
0x3ea2   :  { %11610 = vmatprep.subr.bf16.mxu0 %v11609_v23 }
0x3ea5   :  { %11612 = vmatpush3.bf16.msra.mxu0 %v11609_v23  ;;  %v10011_v23 = vld [vmem:[#allocation2 + $0x3e8] ss:$0 sm:$0xff] }
0x3f6b   :  { %v11112_v32 = vpop.f32.mrb[66].mxu0 }
0x3f6c   :  { %v9355_v55 = vadd.f32 %v11112_v32, %v10007_v44  ;;  %v9339_v13 = vpop.f32.mrb[67].mxu0 }
0x3f6d   :  { %v9354_v29 = vadd.f32 %v10007_v44, %v9339_v13 }
0x3f6e   :  { %v9357_v42 = vadd.f32 %v9355_v55, %v13208_v16 }
0x3f6f   :  { %v9356_v56 = vadd.f32 %v9354_v29, %v13206_v46  ;;  %v9396_v46 = vld [vmem:[#allocation2 + $0x380] sm:$0xff] }
0x3f70   :  { %v9361_v14 = vsel %vm296_vm5, %v9357_v42, 0.0  ;;  %v11589_v48 = vpack.c.bf16 %v9397_v5, %v9396_v46 }
0x3f71   :  { %9362 = vadd.xlane.f32.xlu1 %v9361_v14  ;;  %v9358_v24 = vsel %vm296_vm5, %v9356_v56, 0.0 }
0x3f72   :  { %9359 = vadd.xlane.f32.xlu0 %v9358_v24  ;;  %11590 = vmatprep.subr.bf16.mxu1 %v11589_v48 }
0x3f73   :  { %11592 = vmatpush3.bf16.msra.mxu1 %v11589_v48 }
0x3f74   :  { %11594 = vmatprep.subr.bf16.mxu1 %v11593_v3 }
0x3f77   :  { %11596 = vmatpush3.bf16.msra.mxu1 %v11593_v3 }
0x3ffe   :  { %v9363_v34 = vpop.xlane.xlu1 %9362 }
0x3fff   :  { %v9365_v20 = vmul.f32 0.03125, %v9363_v34  ;;  %v9360_v37 = vpop.xlane.xlu0 %9359 }
0x4000   :  { %v9364_v7 = vmul.f32 0.03125, %v9360_v37 }
0x4001   :  { %v9367_v8 = vsub.f32 %v9357_v42, %v9365_v20 }
0x4002   :  { %v9366_v62 = vsub.f32 %v9356_v56, %v9364_v7 }
0x4003   :  { %v9369_v1 = vmul.f32 %v9367_v8, %v9367_v8 }
0x4004   :  { %v9368_v12 = vmul.f32 %v9366_v62, %v9366_v62 }
0x4005   :  { %v9373_v16 = vsel %vm296_vm5, %v9369_v1, 0.0 }
0x4006   :  { %v9370_v63 = vsel %vm296_vm5, %v9368_v12, 0.0 }
0x4007   :  { %9371 = vadd.xlane.f32.xlu0 %v9370_v63 }
0x400b   :  { %9374 = vadd.xlane.f32.xlu0 %v9373_v16 }
0x4094   :  { %v9372_v0 = vpop.xlane.xlu0 %9371 }
0x4095   :  { %v9376_v43 = vmul.f32 0.03125, %v9372_v0 }
0x4097   :  { %v9378_v6 = vadd.f32 1e-05, %v9376_v43 }
0x4098   :  { %v9375_v17 = vpop.xlane.xlu0 %9374 }
0x4099   :  { %12183 = vrsqrt.f32 %v9378_v6  ;;  %v9377_v4 = vmul.f32 0.03125, %v9375_v17 }
0x409b   :  { %v9379_v36 = vadd.f32 1e-05, %v9377_v4 }
0x409d   :  { %12185 = vrsqrt.f32 %v9379_v36 }
0x40a3   :  { %v12184_v10 = vpop.eup %12183 }
0x40a4   :  { %v9382_v52 = vmul.f32 %v12184_v10, %v9366_v62 }
0x40a6   :  { %v9388_v18 = vmul.f32 %v9387_v58, %v9382_v52 }
0x40a7   :  { %v12186_v15 = vpop.eup %12185 }
0x40a8   :  { %v9383_v28 = vmul.f32 %v12186_v15, %v9367_v8  ;;  %v13338_v38 = vadd.f32 %v9393_v41, %v9388_v18 }
0x40aa   :  { %v9389_v27 = vmul.f32 %v9387_v58, %v9383_v28  ;;  %11121 = vmatprep.mubr.msk.f32.mxu1 %vm296_vm5, %v13338_v38 }
0x40ac   :  { %v13342_v22 = vadd.f32 %v9393_v41, %v9389_v27 }
0x40ae   :  { %11122 = vmatmul.mubr.msk.f32.vlgmr.msra.gmra.mrb[76].mxu1 %vm296_vm5, %v13342_v22 }
0x4181   :  { %v11123_v40 = vpop.f32.mrb[76].mxu1 }
0x4182   :  { %v9492_v30 = vadd.f32 %v11123_v40, %v10008_v59  ;;  %v9486_v57 = vpop.f32.mrb[77].mxu1 }
0x4183   :  { %v9487_v54 = vadd.f32 %v10008_v59, %v9486_v57 }
0x4184   :  { %v9498_v44 = vmul.f32 0.70710677, %v9492_v30  ;;  %v9496_v45 = vmul.f32 0.5, %v9492_v30 }
0x4185   :  { %v9497_v32 = vmul.f32 0.70710677, %v9487_v54  ;;  %v9495_v26 = vmul.f32 0.5, %v9487_v54 }
0x4186   :  { %v9500_v55 = vand.u32 2147483647, %v9498_v44  ;;  %vm9540_vm1 = vcmp.lt.f32.partialorder %v9498_v44, 0.0 }
0x4187   :  { %v9499_v13 = vand.u32 2147483647, %v9497_v32  ;;  %vm9539_vm6 = vcmp.lt.f32.partialorder %v9497_v32, 0.0 }
0x4188   :  { %v9502_v29 = vmul.f32 0.3275911, %v9500_v55  ;;  %v9528_v24 = vsub.f32 0.0, %v9500_v55 }
0x4189   :  { %v9501_v42 = vmul.f32 0.3275911, %v9499_v13  ;;  %v9527_v34 = vsub.f32 0.0, %v9499_v13 }
0x418a   :  { %v9504_v56 = vadd.f32 1.0, %v9502_v29  ;;  %v9530_v37 = vmul.f32 %v9528_v24, %v9500_v55 }
0x418b   :  { %v9503_v14 = vadd.f32 1.0, %v9501_v42  ;;  %v9529_v62 = vmul.f32 %v9527_v34, %v9499_v13 }
0x418c   :  { %12187 = vrcp.f32 %v9504_v56  ;;  %v9533_v1 = vmul.f32 1.442695, %v9530_v37 }
0x418d   :  { %12189 = vrcp.f32 %v9503_v14  ;;  %v9531_v5 = vmul.f32 1.442695, %v9529_v62 }
0x418e   :  { %12191 = vpow2.f32 %v9533_v1  ;;  %v9665_v1 = vrot.slane %v13198_v53, %v6645_v19 }
0x418f   :  { %12193 = vpow2.f32 %v9531_v5  ;;  %v9671_v5 = vrot.slane %v13198_v53, %v6651_v35 }
0x4196   :  { %v12188_v20 = vpop.eup %12187 }
0x4197   :  { %v12190_v7 = vpop.eup %12189  ;;  %v9510_v8 = vmul.f32 1.0614054, %v12188_v20 }
0x4198   :  { %v9509_v12 = vmul.f32 1.0614054, %v12190_v7  ;;  %v12192_v52 = vpop.eup %12191 }
0x4199   :  { %v9512_v63 = vadd.f32 -1.4531521, %v9510_v8  ;;  %v12194_v18 = vpop.eup %12193 }
0x419a   :  { %v9511_v16 = vadd.f32 -1.4531521, %v9509_v12 }
0x419b   :  { %v9514_v46 = vmul.f32 %v12188_v20, %v9512_v63 }
0x419c   :  { %v9513_v48 = vmul.f32 %v12190_v7, %v9511_v16 }
0x419d   :  { %v9516_v50 = vadd.f32 1.4214138, %v9514_v46 }
0x419e   :  { %v9515_v2 = vadd.f32 1.4214138, %v9513_v48 }
0x419f   :  { %v9518_v3 = vmul.f32 %v12188_v20, %v9516_v50 }
0x41a0   :  { %v9517_v0 = vmul.f32 %v12190_v7, %v9515_v2 }
0x41a1   :  { %v9520_v43 = vadd.f32 -0.28449672, %v9518_v3 }
0x41a2   :  { %v9519_v6 = vadd.f32 -0.28449672, %v9517_v0 }
0x41a3   :  { %v9522_v17 = vmul.f32 %v12188_v20, %v9520_v43 }
0x41a4   :  { %v9521_v4 = vmul.f32 %v12190_v7, %v9519_v6 }
0x41a5   :  { %v9524_v36 = vadd.f32 0.2548296, %v9522_v17 }
0x41a6   :  { %v9523_v58 = vadd.f32 0.2548296, %v9521_v4 }
0x41a7   :  { %v9526_v10 = vmul.f32 %v12188_v20, %v9524_v36 }
0x41a8   :  { %v9525_v41 = vmul.f32 %v12190_v7, %v9523_v58 }
0x41a9   :  { %v9536_v15 = vmul.f32 %v12192_v52, %v9526_v10 }
0x41aa   :  { %v9535_v28 = vmul.f32 %v12194_v18, %v9525_v41 }
0x41ab   :  { %v9538_v27 = vsub.f32 1.0, %v9536_v15 }
0x41ac   :  { %v9537_v9 = vsub.f32 1.0, %v9535_v28 }
0x41ad   :  { %v9542_v60 = vsub.f32 0.0, %v9538_v27 }
0x41ae   :  { %v9541_v33 = vsub.f32 0.0, %v9537_v9 }
0x41af   :  { %v9544_v11 = vsel %vm9540_vm1, %v9542_v60, %v9538_v27 }
0x41b0   :  { %v9546_v21 = vadd.f32 1.0, %v9544_v11  ;;  %v9543_v51 = vsel %vm9539_vm6, %v9541_v33, %v9537_v9  ;;  %v9674_v33 = vld [vmem:[#allocation2 + $0x30] sm:$0x3] }
0x41b1   :  { %v9545_v49 = vadd.f32 1.0, %v9543_v51  ;;  %v9704_v11 = vrot.slane %v9674_v33, %v12495_v31  ;;  %v10015_v31 = vld [vmem:[#allocation2 + $0x20] ss:$0 sm:$0xff] }
0x41b2   :  { %v9548_v25 = vmul.f32 %v9546_v21, %v9496_v45 }
0x41b3   :  { %v9547_v39 = vmul.f32 %v9545_v49, %v9495_v26  ;;  %v9710_v26 = vrot.slane %v9674_v33, %v12500_v61 }
0x41b5   :  { %11140 = vmatprep.mubr.msk.f32.mxu0 %vm1817_vm0, %v9547_v39  ;;  %v10014_v39 = vld [vmem:[#allocation2 + $0x18] ss:$0 sm:$0xff] }
0x41b6   :  { %11141 = vmatmul.mubr.msk.f32.vlgmr.msra.gmra.mrb[72].mxu0 %vm1817_vm0, %v9548_v25 }
0x4289   :  { %v11142_v59 = vpop.f32.mrb[72].mxu0 }
0x428a   :  { %v9625_v40 = vpop.f32.mrb[73].mxu0  ;;  %v9631_v57 = vadd.f32 %v11142_v59, %v10011_v23 }
0x428b   :  { %v9626_v55 = vadd.f32 %v10011_v23, %v9625_v40 }
0x428c   :  { %v9635_v32 = vadd.f32 %v9631_v57, %v13342_v22 }
0x428d   :  { %v9634_v44 = vadd.f32 %v9626_v55, %v13338_v38 }
0x428e   :  { %v9639_v30 = vsel %vm296_vm5, %v9635_v32, 0.0 }
0x428f   :  { %v9636_v13 = vsel %vm296_vm5, %v9634_v44, 0.0 }
0x4290   :  { %9637 = vadd.xlane.f32.xlu0 %v9636_v13 }
0x4294   :  { %9640 = vadd.xlane.f32.xlu0 %v9639_v30 }
0x431d   :  { %v9638_v54 = vpop.xlane.xlu0 %9637 }
0x431e   :  { %v9642_v29 = vmul.f32 0.03125, %v9638_v54 }
0x4320   :  { %v9644_v42 = vsub.f32 %v9634_v44, %v9642_v29 }
0x4321   :  { %v9641_v56 = vpop.xlane.xlu0 %9640 }
0x4322   :  { %v9643_v14 = vmul.f32 0.03125, %v9641_v56  ;;  %v9646_v24 = vmul.f32 %v9644_v42, %v9644_v42 }
0x4324   :  { %v9645_v34 = vsub.f32 %v9635_v32, %v9643_v14  ;;  %v9648_v20 = vsel %vm296_vm5, %v9646_v24, 0.0 }
0x4325   :  { %9649 = vadd.xlane.f32.xlu0 %v9648_v20 }
0x4326   :  { %v9647_v37 = vmul.f32 %v9645_v34, %v9645_v34 }
0x4328   :  { %v9651_v38 = vsel %vm296_vm5, %v9647_v37, 0.0 }
0x4329   :  { %9652 = vadd.xlane.f32.xlu1 %v9651_v38 }
0x43b2   :  { %v9650_v22 = vpop.xlane.xlu0 %9649 }
0x43b3   :  { %v9654_v7 = vmul.f32 0.03125, %v9650_v22 }
0x43b5   :  { %v9656_v8 = vadd.f32 1e-05, %v9654_v7 }
0x43b6   :  { %v9653_v62 = vpop.xlane.xlu1 %9652 }
0x43b7   :  { %12195 = vrsqrt.f32 %v9656_v8  ;;  %v9655_v12 = vmul.f32 0.03125, %v9653_v62 }
0x43b9   :  { %v9657_v63 = vadd.f32 1e-05, %v9655_v12 }
0x43bb   :  { %12197 = vrsqrt.f32 %v9657_v63 }
0x43c1   :  { %v12196_v16 = vpop.eup %12195 }
0x43c2   :  { %v9660_v46 = vmul.f32 %v12196_v16, %v9644_v42 }
0x43c4   :  { %v9666_v48 = vmul.f32 %v9665_v1, %v9660_v46 }
0x43c5   :  { %v12198_v50 = vpop.eup %12197 }
0x43c6   :  { %v9672_v2 = vadd.f32 %v9671_v5, %v9666_v48  ;;  %v9661_v3 = vmul.f32 %v12198_v50, %v9645_v34 }
0x43c8   :  { %v9675_v0 = vsel %vm296_vm5, %v9672_v2, 0.0  ;;  %v9667_v43 = vmul.f32 %v9665_v1, %v9661_v3 }
0x43c9   :  { %9676 = vadd.xlane.f32.xlu0 %v9675_v0 }
0x43ca   :  { %v9673_v6 = vadd.f32 %v9671_v5, %v9667_v43 }
0x43cc   :  { %v9678_v17 = vsel %vm296_vm5, %v9673_v6, 0.0 }
0x43cd   :  { %9679 = vadd.xlane.f32.xlu1 %v9678_v17 }
0x4456   :  { %v9677_v4 = vpop.xlane.xlu0 %9676 }
0x4457   :  { %v9681_v19 = vmul.f32 0.03125, %v9677_v4 }
0x4459   :  { %v9683_v36 = vsub.f32 %v9672_v2, %v9681_v19 }
0x445a   :  { %v9680_v58 = vpop.xlane.xlu1 %9679 }
0x445b   :  { %v9682_v10 = vmul.f32 0.03125, %v9680_v58  ;;  %v9685_v47 = vmul.f32 %v9683_v36, %v9683_v36 }
0x445d   :  { %v9684_v52 = vsub.f32 %v9673_v6, %v9682_v10  ;;  %v9687_v35 = vsel %vm296_vm5, %v9685_v47, 0.0 }
0x445e   :  { %9688 = vadd.xlane.f32.xlu0 %v9687_v35 }
0x445f   :  { %v9686_v53 = vmul.f32 %v9684_v52, %v9684_v52 }
0x4461   :  { %v9690_v41 = vsel %vm296_vm5, %v9686_v53, 0.0 }
0x4462   :  { %9691 = vadd.xlane.f32.xlu1 %v9690_v41 }
0x44eb   :  { %v9689_v18 = vpop.xlane.xlu0 %9688 }
0x44ec   :  { %v9693_v15 = vmul.f32 0.03125, %v9689_v18 }
0x44ee   :  { %v9695_v28 = vadd.f32 1e-05, %v9693_v15 }
0x44ef   :  { %v9692_v27 = vpop.xlane.xlu1 %9691 }
0x44f0   :  { %12199 = vrsqrt.f32 %v9695_v28  ;;  %v9694_v9 = vmul.f32 0.03125, %v9692_v27 }
0x44f2   :  { %v9696_v60 = vadd.f32 1e-05, %v9694_v9 }
0x44f4   :  { %12201 = vrsqrt.f32 %v9696_v60 }
0x44fa   :  { %v12200_v21 = vpop.eup %12199 }
0x44fb   :  { %v9699_v51 = vmul.f32 %v12200_v21, %v9683_v36 }
0x44fd   :  { %v9705_v49 = vmul.f32 %v9704_v11, %v9699_v51 }
0x44fe   :  { %v12202_v45 = vpop.eup %12201 }
0x44ff   :  { %v9711_v25 = vadd.f32 %v9710_v26, %v9705_v49  ;;  %v9700_v23 = vmul.f32 %v12202_v45, %v9684_v52 }
0x4501   :  { %v9719_v59 = vmul.f32 %v10014_v39, %v9711_v25  ;;  %v9706_v40 = vmul.f32 %v9704_v11, %v9700_v23 }
0x4503   :  { %v9721_v57 = vsel %vm296_vm5, %v9719_v59, 0.0  ;;  %v9712_v55 = vadd.f32 %v9710_v26, %v9706_v40 }
0x4504   :  { %9722 = vadd.xlane.f32.xlu0 %v9721_v57 }
0x4505   :  { %v9720_v44 = vmul.f32 %v10014_v39, %v9712_v55 }
0x4507   :  { %v9724_v32 = vsel %vm296_vm5, %v9720_v44, 0.0 }
0x4508   :  { %9725 = vadd.xlane.f32.xlu1 %v9724_v32 }
0x4591   :  { %v9723_v13 = vpop.xlane.xlu0 %9722 }
0x4592   :  { %v9731_v30 = vadd.f32 %v10015_v31, %v9723_v13 }
0x4594   :  { %9734 = vst.msk [vmem:[%s13379_s5] sm:$0xff] %vm9733_vm12, %v9731_v30 }
0x4595   :  { %v9726_v61 = vpop.xlane.xlu1 %9725 }
0x4596   :  { %v9732_v54 = vadd.f32 %v10015_v31, %v9726_v61 }
0x4598   :  { %9735 = vst.msk [vmem:[%s13379_s5 + $0x8] sm:$0xff] %vm9733_vm12, %v9732_v54 }
0x4599   :  { %9740 = vsyncpa [#allocation3], 1 }

</bundles_post_ra>
